<compile_context>
chip_gen: v6e
topology: v6e:2x2x1
jax: 0.10.0
libtpu: 0.0.40
codegen_flags: <defaults>
</compile_context>

<pallas_src>
import functools
import math

import jax
import jax.numpy as jnp
from jax import lax
from jax.experimental import pallas as pl
from jax.experimental.pallas import tpu as pltpu


def _layer_norm(x, w, b, eps=1e-5):
    mu = jnp.mean(x, axis=-1, keepdims=True)
    xc = x - mu
    var = jnp.mean(xc * xc, axis=-1, keepdims=True)
    return xc * lax.rsqrt(var + eps) * w + b


def _encoder_kernel(
    x0_ref, hsum_ref, hexp_ref,
    wqkv_ref, bqkv_ref, wo_ref, bo_ref,
    ln1w_ref, ln1b_ref,
    w1_ref, b1_ref, w2_ref, b2_ref,
    ln2w_ref, ln2b_ref,
    out_ref,
    *, batch, seq, n_heads, n_layers,
):
    B, S, H, L = batch, seq, n_heads, n_layers
    N, D = x0_ref.shape
    HD = D // H
    scale = 1.0 / math.sqrt(HD)

    hsum = hsum_ref[...]          # (D, H)  0/1 head-sum matrix (f32)
    hexp = hexp_ref[...]          # (H, D)  0/1 head-expand matrix (f32)
    x = x0_ref[...]               # (N, D)  f32 residual stream

    for l in range(L):            # static unroll; all weights resident in VMEM
        # ---------------- multi-head self-attention (all heads batched) -----
        qkv = jnp.dot(x.astype(jnp.bfloat16), wqkv_ref[l],
                      preferred_element_type=jnp.float32) + bqkv_ref[l]   # (N, 3D)
        q = qkv[:, 0:D].reshape(B, S, D)
        k = qkv[:, D:2 * D].reshape(B, S, D)
        v = qkv[:, 2 * D:3 * D].reshape(B, S, D)

        # scores for all heads at once:
        #   prod[b,qi,ki,d] = q[b,qi,d] * k[b,ki,d]
        #   s[b,qi,ki,h]    = sum_d prod[b,qi,ki,d] * hsum[d,h]
        prod = q[:, :, None, :] * k[:, None, :, :]                        # (B,S,S,D)
        s = jnp.dot(prod.reshape(B * S * S, D), hsum,
                    preferred_element_type=jnp.float32)                   # (B*S*S, H)
        s = s.reshape(B, S, S, H) * scale

        # one softmax over the key axis for every (b, query, head) row
        s = s - jnp.max(s, axis=2, keepdims=True)
        p = jnp.exp(s)
        p = p * pl.reciprocal(jnp.sum(p, axis=2, keepdims=True), approx=True)

        # context: broadcast each head's probability onto its D-lanes, then
        # contract over the key axis.
        pe = jnp.dot(p.reshape(B * S * S, H), hexp,
                     preferred_element_type=jnp.float32).reshape(B, S, S, D)
        ctx = jnp.sum(pe * v[:, None, :, :], axis=2)                      # (B,S,D)
        attn = ctx.reshape(N, D)

        attn = jnp.dot(attn.astype(jnp.bfloat16), wo_ref[l],
                       preferred_element_type=jnp.float32) + bo_ref[l]

        # post-norm residual 1
        x1 = _layer_norm(x + attn, ln1w_ref[l], ln1b_ref[l])

        # ---------------- feed-forward (ReLU) + post-norm residual 2 --------
        hid = jnp.maximum(
            jnp.dot(x1.astype(jnp.bfloat16), w1_ref[l],
                    preferred_element_type=jnp.float32) + b1_ref[l], 0.0)
        ff = jnp.dot(hid.astype(jnp.bfloat16), w2_ref[l],
                     preferred_element_type=jnp.float32) + b2_ref[l]
        x = _layer_norm(x1 + ff, ln2w_ref[l], ln2b_ref[l])

    out_ref[...] = x


def simple_text_encoder(input_ids, params, *, n_heads):
    B, S = input_ids.shape
    emb = params['emb']
    V, D = emb.shape
    L = params['wqkv'].shape[0]
    H = n_heads
    HD = D // H
    N = B * S

    # Embedding gather in plain JAX (O(N*D)); feeds the fused encoder kernel.
    x0 = jnp.take(emb, input_ids.reshape(-1), axis=0).astype(jnp.float32)   # (N, D)

    # Constant 0/1 head-grouping matrices (hsum[d,h] = 1 iff d // HD == h).
    head_of_d = jnp.arange(D, dtype=jnp.int32) // HD
    hsum = (head_of_d[:, None] == jnp.arange(H, dtype=jnp.int32)[None, :]
            ).astype(jnp.float32)                                            # (D, H)
    hexp = hsum.T                                                            # (H, D)

    kernel = functools.partial(_encoder_kernel,
                               batch=B, seq=S, n_heads=H, n_layers=L)

    vmem = pl.BlockSpec(memory_space=pltpu.MemorySpace.VMEM)   # whole array in VMEM
    out = pl.pallas_call(
        kernel,
        out_shape=jax.ShapeDtypeStruct((N, D), jnp.float32),
        in_specs=[vmem] * 15,
        out_specs=vmem,
    )(x0, hsum, hexp,
      params['wqkv'], params['bqkv'], params['wo'], params['bo'],
      params['ln1w'], params['ln1b'],
      params['w1'], params['b1'], params['w2'], params['b2'],
      params['ln2w'], params['ln2b'])

    return out.reshape(B, S, D)


def init_params(key, *, vocab_size, d_model, d_ff, n_layers):
    D, FF, V, L = d_model, d_ff, vocab_size, n_layers
    keys = jax.random.split(key, 1 + 4 * L)
    emb = jax.random.normal(keys[0], (V, D), jnp.float32)

    def linear(k, fan_in, fan_out):
        kw, kb = jax.random.split(k)
        bound = 1.0 / math.sqrt(fan_in)
        w = jax.random.uniform(kw, (fan_in, fan_out), jnp.float32, -bound, bound)
        b = jax.random.uniform(kb, (1, fan_out), jnp.float32, -bound, bound)
        return w.astype(jnp.bfloat16), b    # MXU weights in bf16, biases in f32

    wqkv, bqkv, wo, bo, w1, b1, w2, b2 = ([] for _ in range(8))
    ln1w, ln1b, ln2w, ln2b = ([] for _ in range(4))
    idx = 1
    for _ in range(L):
        w, b = linear(keys[idx], D, 3 * D); idx += 1
        wqkv.append(w); bqkv.append(b)
        w, b = linear(keys[idx], D, D); idx += 1
        wo.append(w); bo.append(b)
        w, b = linear(keys[idx], D, FF); idx += 1
        w1.append(w); b1.append(b)
        w, b = linear(keys[idx], FF, D); idx += 1
        w2.append(w); b2.append(b)
        ln1w.append(jnp.ones((1, D), jnp.float32))
        ln1b.append(jnp.zeros((1, D), jnp.float32))
        ln2w.append(jnp.ones((1, D), jnp.float32))
        ln2b.append(jnp.zeros((1, D), jnp.float32))

    stack = lambda xs: jnp.stack(xs, axis=0)
    return {
        'emb': emb,
        'wqkv': stack(wqkv), 'bqkv': stack(bqkv),
        'wo': stack(wo), 'bo': stack(bo),
        'ln1w': stack(ln1w), 'ln1b': stack(ln1b),
        'w1': stack(w1), 'b1': stack(b1),
        'w2': stack(w2), 'b2': stack(b2),
        'ln2w': stack(ln2w), 'ln2b': stack(ln2b),
    }


def _reference(input_ids, params, *, n_heads):
    """Plain-JAX reference for PyTorch post-norm TransformerEncoder (eval mode).

    Mirrors the kernel's matmul numerics (bf16 MXU operands, f32 accumulation,
    f32 LayerNorm / softmax statistics) so a tight comparison is meaningful.
    """
    B, S = input_ids.shape
    emb = params['emb']
    D = emb.shape[1]
    H = n_heads
    HD = D // H
    L = params['wqkv'].shape[0]
    x = jnp.take(emb, input_ids.reshape(-1), axis=0).astype(jnp.float32)    # (N, D)

    def ln(z, w, b, eps=1e-5):
        mu = jnp.mean(z, -1, keepdims=True)
        var = jnp.mean((z - mu) ** 2, -1, keepdims=True)
        return (z - mu) / jnp.sqrt(var + eps) * w + b

    def mm(a, w):
        return jnp.dot(a.astype(jnp.bfloat16), w, preferred_element_type=jnp.float32)

    for l in range(L):
        qkv = mm(x, params['wqkv'][l]) + params['bqkv'][l]
        q, k, v = jnp.split(qkv, 3, axis=-1)
        q = q.reshape(B, S, H, HD)
        k = k.reshape(B, S, H, HD)
        v = v.reshape(B, S, H, HD)
        s = jnp.einsum('bqhd,bkhd->bhqk', q, k) / math.sqrt(HD)
        p = jax.nn.softmax(s, axis=-1)
        a = jnp.einsum('bhqk,bkhd->bqhd', p, v).reshape(B * S, D)
        a = mm(a, params['wo'][l]) + params['bo'][l]
        x = ln(x + a, params['ln1w'][l], params['ln1b'][l])
        h = jnp.maximum(mm(x, params['w1'][l]) + params['b1'][l], 0.0)
        f = mm(h, params['w2'][l]) + params['b2'][l]
        x = ln(x + f, params['ln2w'][l], params['ln2b'][l])
    return x.reshape(B, S, D)


if __name__ == "__main__":
    # Small shapes consistent with the module structure:
    # 4 encoder layers, 8 heads, post-norm, ReLU FFN, batch_first.
    B, S = 2, 8
    VOCAB = 512
    D_MODEL = 128
    N_HEADS = 8
    D_FF = 256
    N_LAYERS = 4

    key = jax.random.PRNGKey(0)
    kid, kp = jax.random.split(key)
    input_ids = jax.random.randint(kid, (B, S), 0, VOCAB, dtype=jnp.int32)
    params = init_params(kp, vocab_size=VOCAB, d_model=D_MODEL,
                         d_ff=D_FF, n_layers=N_LAYERS)

    fwd = jax.jit(functools.partial(simple_text_encoder, n_heads=N_HEADS))
    encoded = fwd(input_ids, params)
    jax.block_until_ready(encoded)

    ref = _reference(input_ids, params, n_heads=N_HEADS)
    assert encoded.shape == (B, S, D_MODEL)
    max_err = float(jnp.max(jnp.abs(encoded - ref)))
    # Tolerance covers the approx-reciprocal softmax denominator and minor
    # MXU accumulation-order differences; structural bugs produce O(1) errors.
    assert jnp.allclose(encoded, ref, atol=3e-2, rtol=3e-2), f"max_err={max_err}"

    print("KERNEL_OK")
</pallas_src>

<mosaic_0001>
module attributes {stable_mosaic.version = 11 : i64} {
  func.func @_encoder_kernel(%arg0: memref<16x128xf32, #tpu.memory_space<vmem>>, %arg1: memref<128x8xf32, #tpu.memory_space<vmem>>, %arg2: memref<8x128xf32, #tpu.memory_space<vmem>>, %arg3: memref<4x128x384xbf16, #tpu.memory_space<vmem>>, %arg4: memref<4x1x384xf32, #tpu.memory_space<vmem>>, %arg5: memref<4x128x128xbf16, #tpu.memory_space<vmem>>, %arg6: memref<4x1x128xf32, #tpu.memory_space<vmem>>, %arg7: memref<4x1x128xf32, #tpu.memory_space<vmem>>, %arg8: memref<4x1x128xf32, #tpu.memory_space<vmem>>, %arg9: memref<4x128x256xbf16, #tpu.memory_space<vmem>>, %arg10: memref<4x1x256xf32, #tpu.memory_space<vmem>>, %arg11: memref<4x256x128xbf16, #tpu.memory_space<vmem>>, %arg12: memref<4x1x128xf32, #tpu.memory_space<vmem>>, %arg13: memref<4x1x128xf32, #tpu.memory_space<vmem>>, %arg14: memref<4x1x128xf32, #tpu.memory_space<vmem>>, %arg15: memref<16x128xf32, #tpu.memory_space<vmem>>) attributes {dimension_semantics = [], scalar_prefetch = 0 : i64, scratch_operands = 0 : i64, tpu.core_type = #tpu.core_type<tc>} {
    %c0 = arith.constant 0 : index
    %c0_0 = arith.constant 0 : index
    %0 = vector.load %arg1[%c0, %c0_0] : memref<128x8xf32, #tpu.memory_space<vmem>>, vector<128x8xf32>
    %c0_1 = arith.constant 0 : index
    %c0_2 = arith.constant 0 : index
    %1 = vector.load %arg2[%c0_1, %c0_2] : memref<8x128xf32, #tpu.memory_space<vmem>>, vector<8x128xf32>
    %c0_3 = arith.constant 0 : index
    %c0_4 = arith.constant 0 : index
    %2 = vector.load %arg0[%c0_3, %c0_4] : memref<16x128xf32, #tpu.memory_space<vmem>>, vector<16x128xf32>
    %3 = arith.truncf %2 : vector<16x128xf32> to vector<16x128xbf16>
    %c0_5 = arith.constant 0 : index
    %c0_6 = arith.constant 0 : index
    %c0_7 = arith.constant 0 : index
    %4 = vector.load %arg3[%c0_5, %c0_6, %c0_7] : memref<4x128x384xbf16, #tpu.memory_space<vmem>>, vector<1x128x384xbf16>
    %5 = vector.shape_cast %4 : vector<1x128x384xbf16> to vector<128x384xbf16>
    %cst = arith.constant dense<0.000000e+00> : vector<16x384xf32>
    %6 = tpu.matmul %3, %5, %cst {dimension_numbers = #tpu.dot_dimension_numbers<[1], [0], [0], [1], [0, 0, 1, 1], [], []>} : vector<16x128xbf16>, vector<128x384xbf16>, vector<16x384xf32> -> vector<16x384xf32>
    %c0_8 = arith.constant 0 : index
    %c0_9 = arith.constant 0 : index
    %c0_10 = arith.constant 0 : index
    %7 = vector.load %arg4[%c0_8, %c0_9, %c0_10] : memref<4x1x384xf32, #tpu.memory_space<vmem>>, vector<1x1x384xf32>
    %8 = vector.shape_cast %7 : vector<1x1x384xf32> to vector<1x384xf32>
    %9 = vector.broadcast %8 : vector<1x384xf32> to vector<16x384xf32>
    %10 = arith.addf %6, %9 : vector<16x384xf32>
    %11 = vector.extract_strided_slice %10 {offsets = [0, 0], sizes = [16, 128], strides = [1, 1]} : vector<16x384xf32> to vector<16x128xf32>
    %12 = vector.shape_cast %11 : vector<16x128xf32> to vector<2x8x128xf32>
    %13 = vector.extract_strided_slice %10 {offsets = [0, 128], sizes = [16, 128], strides = [1, 1]} : vector<16x384xf32> to vector<16x128xf32>
    %14 = vector.shape_cast %13 : vector<16x128xf32> to vector<2x8x128xf32>
    %15 = vector.extract_strided_slice %10 {offsets = [0, 256], sizes = [16, 128], strides = [1, 1]} : vector<16x384xf32> to vector<16x128xf32>
    %16 = vector.shape_cast %15 : vector<16x128xf32> to vector<2x8x128xf32>
    %17 = vector.shape_cast %12 : vector<2x8x128xf32> to vector<2x8x1x128xf32>
    %18 = vector.shape_cast %14 : vector<2x8x128xf32> to vector<2x1x8x128xf32>
    %19 = vector.broadcast %17 : vector<2x8x1x128xf32> to vector<2x8x8x128xf32>
    %20 = vector.broadcast %18 : vector<2x1x8x128xf32> to vector<2x8x8x128xf32>
    %21 = arith.mulf %19, %20 : vector<2x8x8x128xf32>
    %22 = vector.shape_cast %21 : vector<2x8x8x128xf32> to vector<128x128xf32>
    %cst_11 = arith.constant dense<0.000000e+00> : vector<128x8xf32>
    %23 = tpu.matmul %22, %0, %cst_11 {dimension_numbers = #tpu.dot_dimension_numbers<[1], [0], [0], [1], [0, 0, 1, 1], [], []>} : vector<128x128xf32>, vector<128x8xf32>, vector<128x8xf32> -> vector<128x8xf32>
    %24 = vector.shape_cast %23 : vector<128x8xf32> to vector<2x8x8x8xf32>
    %cst_12 = arith.constant 2.500000e-01 : f32
    %25 = vector.broadcast %cst_12 : f32 to vector<2x8x8x8xf32>
    %26 = arith.mulf %24, %25 : vector<2x8x8x8xf32>
    %cst_13 = arith.constant dense<0xFF800000> : vector<2x8x8xf32>
    %27 = vector.multi_reduction <maximumf>, %26, %cst_13 [2] : vector<2x8x8x8xf32> to vector<2x8x8xf32>
    %28 = vector.shape_cast %27 : vector<2x8x8xf32> to vector<2x8x1x8xf32>
    %29 = vector.broadcast %28 : vector<2x8x1x8xf32> to vector<2x8x8x8xf32>
    %30 = arith.subf %26, %29 : vector<2x8x8x8xf32>
    %31 = math.exp %30 : vector<2x8x8x8xf32>
    %cst_14 = arith.constant dense<0.000000e+00> : vector<2x8x8xf32>
    %32 = vector.multi_reduction <add>, %31, %cst_14 [2] : vector<2x8x8x8xf32> to vector<2x8x8xf32>
    %33 = vector.shape_cast %32 : vector<2x8x8xf32> to vector<2x8x1x8xf32>
    %34 = tpu.reciprocal %33 {approx = true} : vector<2x8x1x8xf32> -> vector<2x8x1x8xf32>
    %35 = vector.broadcast %34 : vector<2x8x1x8xf32> to vector<2x8x8x8xf32>
    %36 = arith.mulf %31, %35 : vector<2x8x8x8xf32>
    %37 = vector.shape_cast %36 : vector<2x8x8x8xf32> to vector<128x8xf32>
    %cst_15 = arith.constant dense<0.000000e+00> : vector<128x128xf32>
    %38 = tpu.matmul %37, %1, %cst_15 {dimension_numbers = #tpu.dot_dimension_numbers<[1], [0], [0], [1], [0, 0, 1, 1], [], []>} : vector<128x8xf32>, vector<8x128xf32>, vector<128x128xf32> -> vector<128x128xf32>
    %39 = vector.shape_cast %38 : vector<128x128xf32> to vector<2x8x8x128xf32>
    %40 = vector.shape_cast %16 : vector<2x8x128xf32> to vector<2x1x8x128xf32>
    %41 = vector.broadcast %40 : vector<2x1x8x128xf32> to vector<2x8x8x128xf32>
    %42 = arith.mulf %39, %41 : vector<2x8x8x128xf32>
    %cst_16 = arith.constant dense<0.000000e+00> : vector<2x8x128xf32>
    %43 = vector.multi_reduction <add>, %42, %cst_16 [2] : vector<2x8x8x128xf32> to vector<2x8x128xf32>
    %44 = vector.shape_cast %43 : vector<2x8x128xf32> to vector<16x128xf32>
    %45 = arith.truncf %44 : vector<16x128xf32> to vector<16x128xbf16>
    %c0_17 = arith.constant 0 : index
    %c0_18 = arith.constant 0 : index
    %c0_19 = arith.constant 0 : index
    %46 = vector.load %arg5[%c0_17, %c0_18, %c0_19] : memref<4x128x128xbf16, #tpu.memory_space<vmem>>, vector<1x128x128xbf16>
    %47 = vector.shape_cast %46 : vector<1x128x128xbf16> to vector<128x128xbf16>
    %cst_20 = arith.constant dense<0.000000e+00> : vector<16x128xf32>
    %48 = tpu.matmul %45, %47, %cst_20 {dimension_numbers = #tpu.dot_dimension_numbers<[1], [0], [0], [1], [0, 0, 1, 1], [], []>} : vector<16x128xbf16>, vector<128x128xbf16>, vector<16x128xf32> -> vector<16x128xf32>
    %c0_21 = arith.constant 0 : index
    %c0_22 = arith.constant 0 : index
    %c0_23 = arith.constant 0 : index
    %49 = vector.load %arg6[%c0_21, %c0_22, %c0_23] : memref<4x1x128xf32, #tpu.memory_space<vmem>>, vector<1x1x128xf32>
    %50 = vector.shape_cast %49 : vector<1x1x128xf32> to vector<1x128xf32>
    %51 = vector.broadcast %50 : vector<1x128xf32> to vector<16x128xf32>
    %52 = arith.addf %48, %51 : vector<16x128xf32>
    %53 = arith.addf %2, %52 : vector<16x128xf32>
    %c0_24 = arith.constant 0 : index
    %c0_25 = arith.constant 0 : index
    %c0_26 = arith.constant 0 : index
    %54 = vector.load %arg7[%c0_24, %c0_25, %c0_26] : memref<4x1x128xf32, #tpu.memory_space<vmem>>, vector<1x1x128xf32>
    %55 = vector.shape_cast %54 : vector<1x1x128xf32> to vector<1x128xf32>
    %c0_27 = arith.constant 0 : index
    %c0_28 = arith.constant 0 : index
    %c0_29 = arith.constant 0 : index
    %56 = vector.load %arg8[%c0_27, %c0_28, %c0_29] : memref<4x1x128xf32, #tpu.memory_space<vmem>>, vector<1x1x128xf32>
    %57 = vector.shape_cast %56 : vector<1x1x128xf32> to vector<1x128xf32>
    %cst_30 = arith.constant dense<0.000000e+00> : vector<16xf32>
    %58 = vector.multi_reduction <add>, %53, %cst_30 [1] : vector<16x128xf32> to vector<16xf32>
    %59 = vector.shape_cast %58 : vector<16xf32> to vector<16x1xf32>
    %cst_31 = arith.constant 1.280000e+02 : f32
    %60 = vector.broadcast %cst_31 : f32 to vector<16x1xf32>
    %61 = arith.divf %59, %60 : vector<16x1xf32>
    %62 = vector.broadcast %61 : vector<16x1xf32> to vector<16x128xf32>
    %63 = arith.subf %53, %62 : vector<16x128xf32>
    %64 = arith.mulf %63, %63 : vector<16x128xf32>
    %cst_32 = arith.constant dense<0.000000e+00> : vector<16xf32>
    %65 = vector.multi_reduction <add>, %64, %cst_32 [1] : vector<16x128xf32> to vector<16xf32>
    %66 = vector.shape_cast %65 : vector<16xf32> to vector<16x1xf32>
    %cst_33 = arith.constant 1.280000e+02 : f32
    %67 = vector.broadcast %cst_33 : f32 to vector<16x1xf32>
    %68 = arith.divf %66, %67 : vector<16x1xf32>
    %cst_34 = arith.constant 9.99999974E-6 : f32
    %69 = vector.broadcast %cst_34 : f32 to vector<16x1xf32>
    %70 = arith.addf %68, %69 : vector<16x1xf32>
    %71 = math.rsqrt %70 : vector<16x1xf32>
    %72 = vector.broadcast %71 : vector<16x1xf32> to vector<16x128xf32>
    %73 = arith.mulf %63, %72 : vector<16x128xf32>
    %74 = vector.broadcast %55 : vector<1x128xf32> to vector<16x128xf32>
    %75 = arith.mulf %73, %74 : vector<16x128xf32>
    %76 = vector.broadcast %57 : vector<1x128xf32> to vector<16x128xf32>
    %77 = arith.addf %75, %76 : vector<16x128xf32>
    %78 = arith.truncf %77 : vector<16x128xf32> to vector<16x128xbf16>
    %c0_35 = arith.constant 0 : index
    %c0_36 = arith.constant 0 : index
    %c0_37 = arith.constant 0 : index
    %79 = vector.load %arg9[%c0_35, %c0_36, %c0_37] : memref<4x128x256xbf16, #tpu.memory_space<vmem>>, vector<1x128x256xbf16>
    %80 = vector.shape_cast %79 : vector<1x128x256xbf16> to vector<128x256xbf16>
    %cst_38 = arith.constant dense<0.000000e+00> : vector<16x256xf32>
    %81 = tpu.matmul %78, %80, %cst_38 {dimension_numbers = #tpu.dot_dimension_numbers<[1], [0], [0], [1], [0, 0, 1, 1], [], []>} : vector<16x128xbf16>, vector<128x256xbf16>, vector<16x256xf32> -> vector<16x256xf32>
    %c0_39 = arith.constant 0 : index
    %c0_40 = arith.constant 0 : index
    %c0_41 = arith.constant 0 : index
    %82 = vector.load %arg10[%c0_39, %c0_40, %c0_41] : memref<4x1x256xf32, #tpu.memory_space<vmem>>, vector<1x1x256xf32>
    %83 = vector.shape_cast %82 : vector<1x1x256xf32> to vector<1x256xf32>
    %84 = vector.broadcast %83 : vector<1x256xf32> to vector<16x256xf32>
    %85 = arith.addf %81, %84 : vector<16x256xf32>
    %cst_42 = arith.constant 0.000000e+00 : f32
    %86 = vector.broadcast %cst_42 : f32 to vector<16x256xf32>
    %87 = arith.maximumf %85, %86 : vector<16x256xf32>
    %88 = arith.truncf %87 : vector<16x256xf32> to vector<16x256xbf16>
    %c0_43 = arith.constant 0 : index
    %c0_44 = arith.constant 0 : index
    %c0_45 = arith.constant 0 : index
    %89 = vector.load %arg11[%c0_43, %c0_44, %c0_45] : memref<4x256x128xbf16, #tpu.memory_space<vmem>>, vector<1x256x128xbf16>
    %90 = vector.shape_cast %89 : vector<1x256x128xbf16> to vector<256x128xbf16>
    %cst_46 = arith.constant dense<0.000000e+00> : vector<16x128xf32>
    %91 = tpu.matmul %88, %90, %cst_46 {dimension_numbers = #tpu.dot_dimension_numbers<[1], [0], [0], [1], [0, 0, 1, 1], [], []>} : vector<16x256xbf16>, vector<256x128xbf16>, vector<16x128xf32> -> vector<16x128xf32>
    %c0_47 = arith.constant 0 : index
    %c0_48 = arith.constant 0 : index
    %c0_49 = arith.constant 0 : index
    %92 = vector.load %arg12[%c0_47, %c0_48, %c0_49] : memref<4x1x128xf32, #tpu.memory_space<vmem>>, vector<1x1x128xf32>
    %93 = vector.shape_cast %92 : vector<1x1x128xf32> to vector<1x128xf32>
    %94 = vector.broadcast %93 : vector<1x128xf32> to vector<16x128xf32>
    %95 = arith.addf %91, %94 : vector<16x128xf32>
    %96 = arith.addf %77, %95 : vector<16x128xf32>
    %c0_50 = arith.constant 0 : index
    %c0_51 = arith.constant 0 : index
    %c0_52 = arith.constant 0 : index
    %97 = vector.load %arg13[%c0_50, %c0_51, %c0_52] : memref<4x1x128xf32, #tpu.memory_space<vmem>>, vector<1x1x128xf32>
    %98 = vector.shape_cast %97 : vector<1x1x128xf32> to vector<1x128xf32>
    %c0_53 = arith.constant 0 : index
    %c0_54 = arith.constant 0 : index
    %c0_55 = arith.constant 0 : index
    %99 = vector.load %arg14[%c0_53, %c0_54, %c0_55] : memref<4x1x128xf32, #tpu.memory_space<vmem>>, vector<1x1x128xf32>
    %100 = vector.shape_cast %99 : vector<1x1x128xf32> to vector<1x128xf32>
    %cst_56 = arith.constant dense<0.000000e+00> : vector<16xf32>
    %101 = vector.multi_reduction <add>, %96, %cst_56 [1] : vector<16x128xf32> to vector<16xf32>
    %102 = vector.shape_cast %101 : vector<16xf32> to vector<16x1xf32>
    %cst_57 = arith.constant 1.280000e+02 : f32
    %103 = vector.broadcast %cst_57 : f32 to vector<16x1xf32>
    %104 = arith.divf %102, %103 : vector<16x1xf32>
    %105 = vector.broadcast %104 : vector<16x1xf32> to vector<16x128xf32>
    %106 = arith.subf %96, %105 : vector<16x128xf32>
    %107 = arith.mulf %106, %106 : vector<16x128xf32>
    %cst_58 = arith.constant dense<0.000000e+00> : vector<16xf32>
    %108 = vector.multi_reduction <add>, %107, %cst_58 [1] : vector<16x128xf32> to vector<16xf32>
    %109 = vector.shape_cast %108 : vector<16xf32> to vector<16x1xf32>
    %cst_59 = arith.constant 1.280000e+02 : f32
    %110 = vector.broadcast %cst_59 : f32 to vector<16x1xf32>
    %111 = arith.divf %109, %110 : vector<16x1xf32>
    %cst_60 = arith.constant 9.99999974E-6 : f32
    %112 = vector.broadcast %cst_60 : f32 to vector<16x1xf32>
    %113 = arith.addf %111, %112 : vector<16x1xf32>
    %114 = math.rsqrt %113 : vector<16x1xf32>
    %115 = vector.broadcast %114 : vector<16x1xf32> to vector<16x128xf32>
    %116 = arith.mulf %106, %115 : vector<16x128xf32>
    %117 = vector.broadcast %98 : vector<1x128xf32> to vector<16x128xf32>
    %118 = arith.mulf %116, %117 : vector<16x128xf32>
    %119 = vector.broadcast %100 : vector<1x128xf32> to vector<16x128xf32>
    %120 = arith.addf %118, %119 : vector<16x128xf32>
    %121 = arith.truncf %120 : vector<16x128xf32> to vector<16x128xbf16>
    %c1 = arith.constant 1 : index
    %c0_61 = arith.constant 0 : index
    %c0_62 = arith.constant 0 : index
    %122 = vector.load %arg3[%c1, %c0_61, %c0_62] : memref<4x128x384xbf16, #tpu.memory_space<vmem>>, vector<1x128x384xbf16>
    %123 = vector.shape_cast %122 : vector<1x128x384xbf16> to vector<128x384xbf16>
    %cst_63 = arith.constant dense<0.000000e+00> : vector<16x384xf32>
    %124 = tpu.matmul %121, %123, %cst_63 {dimension_numbers = #tpu.dot_dimension_numbers<[1], [0], [0], [1], [0, 0, 1, 1], [], []>} : vector<16x128xbf16>, vector<128x384xbf16>, vector<16x384xf32> -> vector<16x384xf32>
    %c1_64 = arith.constant 1 : index
    %c0_65 = arith.constant 0 : index
    %c0_66 = arith.constant 0 : index
    %125 = vector.load %arg4[%c1_64, %c0_65, %c0_66] : memref<4x1x384xf32, #tpu.memory_space<vmem>>, vector<1x1x384xf32>
    %126 = vector.shape_cast %125 : vector<1x1x384xf32> to vector<1x384xf32>
    %127 = vector.broadcast %126 : vector<1x384xf32> to vector<16x384xf32>
    %128 = arith.addf %124, %127 : vector<16x384xf32>
    %129 = vector.extract_strided_slice %128 {offsets = [0, 0], sizes = [16, 128], strides = [1, 1]} : vector<16x384xf32> to vector<16x128xf32>
    %130 = vector.shape_cast %129 : vector<16x128xf32> to vector<2x8x128xf32>
    %131 = vector.extract_strided_slice %128 {offsets = [0, 128], sizes = [16, 128], strides = [1, 1]} : vector<16x384xf32> to vector<16x128xf32>
    %132 = vector.shape_cast %131 : vector<16x128xf32> to vector<2x8x128xf32>
    %133 = vector.extract_strided_slice %128 {offsets = [0, 256], sizes = [16, 128], strides = [1, 1]} : vector<16x384xf32> to vector<16x128xf32>
    %134 = vector.shape_cast %133 : vector<16x128xf32> to vector<2x8x128xf32>
    %135 = vector.shape_cast %130 : vector<2x8x128xf32> to vector<2x8x1x128xf32>
    %136 = vector.shape_cast %132 : vector<2x8x128xf32> to vector<2x1x8x128xf32>
    %137 = vector.broadcast %135 : vector<2x8x1x128xf32> to vector<2x8x8x128xf32>
    %138 = vector.broadcast %136 : vector<2x1x8x128xf32> to vector<2x8x8x128xf32>
    %139 = arith.mulf %137, %138 : vector<2x8x8x128xf32>
    %140 = vector.shape_cast %139 : vector<2x8x8x128xf32> to vector<128x128xf32>
    %cst_67 = arith.constant dense<0.000000e+00> : vector<128x8xf32>
    %141 = tpu.matmul %140, %0, %cst_67 {dimension_numbers = #tpu.dot_dimension_numbers<[1], [0], [0], [1], [0, 0, 1, 1], [], []>} : vector<128x128xf32>, vector<128x8xf32>, vector<128x8xf32> -> vector<128x8xf32>
    %142 = vector.shape_cast %141 : vector<128x8xf32> to vector<2x8x8x8xf32>
    %cst_68 = arith.constant 2.500000e-01 : f32
    %143 = vector.broadcast %cst_68 : f32 to vector<2x8x8x8xf32>
    %144 = arith.mulf %142, %143 : vector<2x8x8x8xf32>
    %cst_69 = arith.constant dense<0xFF800000> : vector<2x8x8xf32>
    %145 = vector.multi_reduction <maximumf>, %144, %cst_69 [2] : vector<2x8x8x8xf32> to vector<2x8x8xf32>
    %146 = vector.shape_cast %145 : vector<2x8x8xf32> to vector<2x8x1x8xf32>
    %147 = vector.broadcast %146 : vector<2x8x1x8xf32> to vector<2x8x8x8xf32>
    %148 = arith.subf %144, %147 : vector<2x8x8x8xf32>
    %149 = math.exp %148 : vector<2x8x8x8xf32>
    %cst_70 = arith.constant dense<0.000000e+00> : vector<2x8x8xf32>
    %150 = vector.multi_reduction <add>, %149, %cst_70 [2] : vector<2x8x8x8xf32> to vector<2x8x8xf32>
    %151 = vector.shape_cast %150 : vector<2x8x8xf32> to vector<2x8x1x8xf32>
    %152 = tpu.reciprocal %151 {approx = true} : vector<2x8x1x8xf32> -> vector<2x8x1x8xf32>
    %153 = vector.broadcast %152 : vector<2x8x1x8xf32> to vector<2x8x8x8xf32>
    %154 = arith.mulf %149, %153 : vector<2x8x8x8xf32>
    %155 = vector.shape_cast %154 : vector<2x8x8x8xf32> to vector<128x8xf32>
    %cst_71 = arith.constant dense<0.000000e+00> : vector<128x128xf32>
    %156 = tpu.matmul %155, %1, %cst_71 {dimension_numbers = #tpu.dot_dimension_numbers<[1], [0], [0], [1], [0, 0, 1, 1], [], []>} : vector<128x8xf32>, vector<8x128xf32>, vector<128x128xf32> -> vector<128x128xf32>
    %157 = vector.shape_cast %156 : vector<128x128xf32> to vector<2x8x8x128xf32>
    %158 = vector.shape_cast %134 : vector<2x8x128xf32> to vector<2x1x8x128xf32>
    %159 = vector.broadcast %158 : vector<2x1x8x128xf32> to vector<2x8x8x128xf32>
    %160 = arith.mulf %157, %159 : vector<2x8x8x128xf32>
    %cst_72 = arith.constant dense<0.000000e+00> : vector<2x8x128xf32>
    %161 = vector.multi_reduction <add>, %160, %cst_72 [2] : vector<2x8x8x128xf32> to vector<2x8x128xf32>
    %162 = vector.shape_cast %161 : vector<2x8x128xf32> to vector<16x128xf32>
    %163 = arith.truncf %162 : vector<16x128xf32> to vector<16x128xbf16>
    %c1_73 = arith.constant 1 : index
    %c0_74 = arith.constant 0 : index
    %c0_75 = arith.constant 0 : index
    %164 = vector.load %arg5[%c1_73, %c0_74, %c0_75] : memref<4x128x128xbf16, #tpu.memory_space<vmem>>, vector<1x128x128xbf16>
    %165 = vector.shape_cast %164 : vector<1x128x128xbf16> to vector<128x128xbf16>
    %cst_76 = arith.constant dense<0.000000e+00> : vector<16x128xf32>
    %166 = tpu.matmul %163, %165, %cst_76 {dimension_numbers = #tpu.dot_dimension_numbers<[1], [0], [0], [1], [0, 0, 1, 1], [], []>} : vector<16x128xbf16>, vector<128x128xbf16>, vector<16x128xf32> -> vector<16x128xf32>
    %c1_77 = arith.constant 1 : index
    %c0_78 = arith.constant 0 : index
    %c0_79 = arith.constant 0 : index
    %167 = vector.load %arg6[%c1_77, %c0_78, %c0_79] : memref<4x1x128xf32, #tpu.memory_space<vmem>>, vector<1x1x128xf32>
    %168 = vector.shape_cast %167 : vector<1x1x128xf32> to vector<1x128xf32>
    %169 = vector.broadcast %168 : vector<1x128xf32> to vector<16x128xf32>
    %170 = arith.addf %166, %169 : vector<16x128xf32>
    %171 = arith.addf %120, %170 : vector<16x128xf32>
    %c1_80 = arith.constant 1 : index
    %c0_81 = arith.constant 0 : index
    %c0_82 = arith.constant 0 : index
    %172 = vector.load %arg7[%c1_80, %c0_81, %c0_82] : memref<4x1x128xf32, #tpu.memory_space<vmem>>, vector<1x1x128xf32>
    %173 = vector.shape_cast %172 : vector<1x1x128xf32> to vector<1x128xf32>
    %c1_83 = arith.constant 1 : index
    %c0_84 = arith.constant 0 : index
    %c0_85 = arith.constant 0 : index
    %174 = vector.load %arg8[%c1_83, %c0_84, %c0_85] : memref<4x1x128xf32, #tpu.memory_space<vmem>>, vector<1x1x128xf32>
    %175 = vector.shape_cast %174 : vector<1x1x128xf32> to vector<1x128xf32>
    %cst_86 = arith.constant dense<0.000000e+00> : vector<16xf32>
    %176 = vector.multi_reduction <add>, %171, %cst_86 [1] : vector<16x128xf32> to vector<16xf32>
    %177 = vector.shape_cast %176 : vector<16xf32> to vector<16x1xf32>
    %cst_87 = arith.constant 1.280000e+02 : f32
    %178 = vector.broadcast %cst_87 : f32 to vector<16x1xf32>
    %179 = arith.divf %177, %178 : vector<16x1xf32>
    %180 = vector.broadcast %179 : vector<16x1xf32> to vector<16x128xf32>
    %181 = arith.subf %171, %180 : vector<16x128xf32>
    %182 = arith.mulf %181, %181 : vector<16x128xf32>
    %cst_88 = arith.constant dense<0.000000e+00> : vector<16xf32>
    %183 = vector.multi_reduction <add>, %182, %cst_88 [1] : vector<16x128xf32> to vector<16xf32>
    %184 = vector.shape_cast %183 : vector<16xf32> to vector<16x1xf32>
    %cst_89 = arith.constant 1.280000e+02 : f32
    %185 = vector.broadcast %cst_89 : f32 to vector<16x1xf32>
    %186 = arith.divf %184, %185 : vector<16x1xf32>
    %cst_90 = arith.constant 9.99999974E-6 : f32
    %187 = vector.broadcast %cst_90 : f32 to vector<16x1xf32>
    %188 = arith.addf %186, %187 : vector<16x1xf32>
    %189 = math.rsqrt %188 : vector<16x1xf32>
    %190 = vector.broadcast %189 : vector<16x1xf32> to vector<16x128xf32>
    %191 = arith.mulf %181, %190 : vector<16x128xf32>
    %192 = vector.broadcast %173 : vector<1x128xf32> to vector<16x128xf32>
    %193 = arith.mulf %191, %192 : vector<16x128xf32>
    %194 = vector.broadcast %175 : vector<1x128xf32> to vector<16x128xf32>
    %195 = arith.addf %193, %194 : vector<16x128xf32>
    %196 = arith.truncf %195 : vector<16x128xf32> to vector<16x128xbf16>
    %c1_91 = arith.constant 1 : index
    %c0_92 = arith.constant 0 : index
    %c0_93 = arith.constant 0 : index
    %197 = vector.load %arg9[%c1_91, %c0_92, %c0_93] : memref<4x128x256xbf16, #tpu.memory_space<vmem>>, vector<1x128x256xbf16>
    %198 = vector.shape_cast %197 : vector<1x128x256xbf16> to vector<128x256xbf16>
    %cst_94 = arith.constant dense<0.000000e+00> : vector<16x256xf32>
    %199 = tpu.matmul %196, %198, %cst_94 {dimension_numbers = #tpu.dot_dimension_numbers<[1], [0], [0], [1], [0, 0, 1, 1], [], []>} : vector<16x128xbf16>, vector<128x256xbf16>, vector<16x256xf32> -> vector<16x256xf32>
    %c1_95 = arith.constant 1 : index
    %c0_96 = arith.constant 0 : index
    %c0_97 = arith.constant 0 : index
    %200 = vector.load %arg10[%c1_95, %c0_96, %c0_97] : memref<4x1x256xf32, #tpu.memory_space<vmem>>, vector<1x1x256xf32>
    %201 = vector.shape_cast %200 : vector<1x1x256xf32> to vector<1x256xf32>
    %202 = vector.broadcast %201 : vector<1x256xf32> to vector<16x256xf32>
    %203 = arith.addf %199, %202 : vector<16x256xf32>
    %cst_98 = arith.constant 0.000000e+00 : f32
    %204 = vector.broadcast %cst_98 : f32 to vector<16x256xf32>
    %205 = arith.maximumf %203, %204 : vector<16x256xf32>
    %206 = arith.truncf %205 : vector<16x256xf32> to vector<16x256xbf16>
    %c1_99 = arith.constant 1 : index
    %c0_100 = arith.constant 0 : index
    %c0_101 = arith.constant 0 : index
    %207 = vector.load %arg11[%c1_99, %c0_100, %c0_101] : memref<4x256x128xbf16, #tpu.memory_space<vmem>>, vector<1x256x128xbf16>
    %208 = vector.shape_cast %207 : vector<1x256x128xbf16> to vector<256x128xbf16>
    %cst_102 = arith.constant dense<0.000000e+00> : vector<16x128xf32>
    %209 = tpu.matmul %206, %208, %cst_102 {dimension_numbers = #tpu.dot_dimension_numbers<[1], [0], [0], [1], [0, 0, 1, 1], [], []>} : vector<16x256xbf16>, vector<256x128xbf16>, vector<16x128xf32> -> vector<16x128xf32>
    %c1_103 = arith.constant 1 : index
    %c0_104 = arith.constant 0 : index
    %c0_105 = arith.constant 0 : index
    %210 = vector.load %arg12[%c1_103, %c0_104, %c0_105] : memref<4x1x128xf32, #tpu.memory_space<vmem>>, vector<1x1x128xf32>
    %211 = vector.shape_cast %210 : vector<1x1x128xf32> to vector<1x128xf32>
    %212 = vector.broadcast %211 : vector<1x128xf32> to vector<16x128xf32>
    %213 = arith.addf %209, %212 : vector<16x128xf32>
    %214 = arith.addf %195, %213 : vector<16x128xf32>
    %c1_106 = arith.constant 1 : index
    %c0_107 = arith.constant 0 : index
    %c0_108 = arith.constant 0 : index
    %215 = vector.load %arg13[%c1_106, %c0_107, %c0_108] : memref<4x1x128xf32, #tpu.memory_space<vmem>>, vector<1x1x128xf32>
    %216 = vector.shape_cast %215 : vector<1x1x128xf32> to vector<1x128xf32>
    %c1_109 = arith.constant 1 : index
    %c0_110 = arith.constant 0 : index
    %c0_111 = arith.constant 0 : index
    %217 = vector.load %arg14[%c1_109, %c0_110, %c0_111] : memref<4x1x128xf32, #tpu.memory_space<vmem>>, vector<1x1x128xf32>
    %218 = vector.shape_cast %217 : vector<1x1x128xf32> to vector<1x128xf32>
    %cst_112 = arith.constant dense<0.000000e+00> : vector<16xf32>
    %219 = vector.multi_reduction <add>, %214, %cst_112 [1] : vector<16x128xf32> to vector<16xf32>
    %220 = vector.shape_cast %219 : vector<16xf32> to vector<16x1xf32>
    %cst_113 = arith.constant 1.280000e+02 : f32
    %221 = vector.broadcast %cst_113 : f32 to vector<16x1xf32>
    %222 = arith.divf %220, %221 : vector<16x1xf32>
    %223 = vector.broadcast %222 : vector<16x1xf32> to vector<16x128xf32>
    %224 = arith.subf %214, %223 : vector<16x128xf32>
    %225 = arith.mulf %224, %224 : vector<16x128xf32>
    %cst_114 = arith.constant dense<0.000000e+00> : vector<16xf32>
    %226 = vector.multi_reduction <add>, %225, %cst_114 [1] : vector<16x128xf32> to vector<16xf32>
    %227 = vector.shape_cast %226 : vector<16xf32> to vector<16x1xf32>
    %cst_115 = arith.constant 1.280000e+02 : f32
    %228 = vector.broadcast %cst_115 : f32 to vector<16x1xf32>
    %229 = arith.divf %227, %228 : vector<16x1xf32>
    %cst_116 = arith.constant 9.99999974E-6 : f32
    %230 = vector.broadcast %cst_116 : f32 to vector<16x1xf32>
    %231 = arith.addf %229, %230 : vector<16x1xf32>
    %232 = math.rsqrt %231 : vector<16x1xf32>
    %233 = vector.broadcast %232 : vector<16x1xf32> to vector<16x128xf32>
    %234 = arith.mulf %224, %233 : vector<16x128xf32>
    %235 = vector.broadcast %216 : vector<1x128xf32> to vector<16x128xf32>
    %236 = arith.mulf %234, %235 : vector<16x128xf32>
    %237 = vector.broadcast %218 : vector<1x128xf32> to vector<16x128xf32>
    %238 = arith.addf %236, %237 : vector<16x128xf32>
    %239 = arith.truncf %238 : vector<16x128xf32> to vector<16x128xbf16>
    %c2 = arith.constant 2 : index
    %c0_117 = arith.constant 0 : index
    %c0_118 = arith.constant 0 : index
    %240 = vector.load %arg3[%c2, %c0_117, %c0_118] : memref<4x128x384xbf16, #tpu.memory_space<vmem>>, vector<1x128x384xbf16>
    %241 = vector.shape_cast %240 : vector<1x128x384xbf16> to vector<128x384xbf16>
    %cst_119 = arith.constant dense<0.000000e+00> : vector<16x384xf32>
    %242 = tpu.matmul %239, %241, %cst_119 {dimension_numbers = #tpu.dot_dimension_numbers<[1], [0], [0], [1], [0, 0, 1, 1], [], []>} : vector<16x128xbf16>, vector<128x384xbf16>, vector<16x384xf32> -> vector<16x384xf32>
    %c2_120 = arith.constant 2 : index
    %c0_121 = arith.constant 0 : index
    %c0_122 = arith.constant 0 : index
    %243 = vector.load %arg4[%c2_120, %c0_121, %c0_122] : memref<4x1x384xf32, #tpu.memory_space<vmem>>, vector<1x1x384xf32>
    %244 = vector.shape_cast %243 : vector<1x1x384xf32> to vector<1x384xf32>
    %245 = vector.broadcast %244 : vector<1x384xf32> to vector<16x384xf32>
    %246 = arith.addf %242, %245 : vector<16x384xf32>
    %247 = vector.extract_strided_slice %246 {offsets = [0, 0], sizes = [16, 128], strides = [1, 1]} : vector<16x384xf32> to vector<16x128xf32>
    %248 = vector.shape_cast %247 : vector<16x128xf32> to vector<2x8x128xf32>
    %249 = vector.extract_strided_slice %246 {offsets = [0, 128], sizes = [16, 128], strides = [1, 1]} : vector<16x384xf32> to vector<16x128xf32>
    %250 = vector.shape_cast %249 : vector<16x128xf32> to vector<2x8x128xf32>
    %251 = vector.extract_strided_slice %246 {offsets = [0, 256], sizes = [16, 128], strides = [1, 1]} : vector<16x384xf32> to vector<16x128xf32>
    %252 = vector.shape_cast %251 : vector<16x128xf32> to vector<2x8x128xf32>
    %253 = vector.shape_cast %248 : vector<2x8x128xf32> to vector<2x8x1x128xf32>
    %254 = vector.shape_cast %250 : vector<2x8x128xf32> to vector<2x1x8x128xf32>
    %255 = vector.broadcast %253 : vector<2x8x1x128xf32> to vector<2x8x8x128xf32>
    %256 = vector.broadcast %254 : vector<2x1x8x128xf32> to vector<2x8x8x128xf32>
    %257 = arith.mulf %255, %256 : vector<2x8x8x128xf32>
    %258 = vector.shape_cast %257 : vector<2x8x8x128xf32> to vector<128x128xf32>
    %cst_123 = arith.constant dense<0.000000e+00> : vector<128x8xf32>
    %259 = tpu.matmul %258, %0, %cst_123 {dimension_numbers = #tpu.dot_dimension_numbers<[1], [0], [0], [1], [0, 0, 1, 1], [], []>} : vector<128x128xf32>, vector<128x8xf32>, vector<128x8xf32> -> vector<128x8xf32>
    %260 = vector.shape_cast %259 : vector<128x8xf32> to vector<2x8x8x8xf32>
    %cst_124 = arith.constant 2.500000e-01 : f32
    %261 = vector.broadcast %cst_124 : f32 to vector<2x8x8x8xf32>
    %262 = arith.mulf %260, %261 : vector<2x8x8x8xf32>
    %cst_125 = arith.constant dense<0xFF800000> : vector<2x8x8xf32>
    %263 = vector.multi_reduction <maximumf>, %262, %cst_125 [2] : vector<2x8x8x8xf32> to vector<2x8x8xf32>
    %264 = vector.shape_cast %263 : vector<2x8x8xf32> to vector<2x8x1x8xf32>
    %265 = vector.broadcast %264 : vector<2x8x1x8xf32> to vector<2x8x8x8xf32>
    %266 = arith.subf %262, %265 : vector<2x8x8x8xf32>
    %267 = math.exp %266 : vector<2x8x8x8xf32>
    %cst_126 = arith.constant dense<0.000000e+00> : vector<2x8x8xf32>
    %268 = vector.multi_reduction <add>, %267, %cst_126 [2] : vector<2x8x8x8xf32> to vector<2x8x8xf32>
    %269 = vector.shape_cast %268 : vector<2x8x8xf32> to vector<2x8x1x8xf32>
    %270 = tpu.reciprocal %269 {approx = true} : vector<2x8x1x8xf32> -> vector<2x8x1x8xf32>
    %271 = vector.broadcast %270 : vector<2x8x1x8xf32> to vector<2x8x8x8xf32>
    %272 = arith.mulf %267, %271 : vector<2x8x8x8xf32>
    %273 = vector.shape_cast %272 : vector<2x8x8x8xf32> to vector<128x8xf32>
    %cst_127 = arith.constant dense<0.000000e+00> : vector<128x128xf32>
    %274 = tpu.matmul %273, %1, %cst_127 {dimension_numbers = #tpu.dot_dimension_numbers<[1], [0], [0], [1], [0, 0, 1, 1], [], []>} : vector<128x8xf32>, vector<8x128xf32>, vector<128x128xf32> -> vector<128x128xf32>
    %275 = vector.shape_cast %274 : vector<128x128xf32> to vector<2x8x8x128xf32>
    %276 = vector.shape_cast %252 : vector<2x8x128xf32> to vector<2x1x8x128xf32>
    %277 = vector.broadcast %276 : vector<2x1x8x128xf32> to vector<2x8x8x128xf32>
    %278 = arith.mulf %275, %277 : vector<2x8x8x128xf32>
    %cst_128 = arith.constant dense<0.000000e+00> : vector<2x8x128xf32>
    %279 = vector.multi_reduction <add>, %278, %cst_128 [2] : vector<2x8x8x128xf32> to vector<2x8x128xf32>
    %280 = vector.shape_cast %279 : vector<2x8x128xf32> to vector<16x128xf32>
    %281 = arith.truncf %280 : vector<16x128xf32> to vector<16x128xbf16>
    %c2_129 = arith.constant 2 : index
    %c0_130 = arith.constant 0 : index
    %c0_131 = arith.constant 0 : index
    %282 = vector.load %arg5[%c2_129, %c0_130, %c0_131] : memref<4x128x128xbf16, #tpu.memory_space<vmem>>, vector<1x128x128xbf16>
    %283 = vector.shape_cast %282 : vector<1x128x128xbf16> to vector<128x128xbf16>
    %cst_132 = arith.constant dense<0.000000e+00> : vector<16x128xf32>
    %284 = tpu.matmul %281, %283, %cst_132 {dimension_numbers = #tpu.dot_dimension_numbers<[1], [0], [0], [1], [0, 0, 1, 1], [], []>} : vector<16x128xbf16>, vector<128x128xbf16>, vector<16x128xf32> -> vector<16x128xf32>
    %c2_133 = arith.constant 2 : index
    %c0_134 = arith.constant 0 : index
    %c0_135 = arith.constant 0 : index
    %285 = vector.load %arg6[%c2_133, %c0_134, %c0_135] : memref<4x1x128xf32, #tpu.memory_space<vmem>>, vector<1x1x128xf32>
    %286 = vector.shape_cast %285 : vector<1x1x128xf32> to vector<1x128xf32>
    %287 = vector.broadcast %286 : vector<1x128xf32> to vector<16x128xf32>
    %288 = arith.addf %284, %287 : vector<16x128xf32>
    %289 = arith.addf %238, %288 : vector<16x128xf32>
    %c2_136 = arith.constant 2 : index
    %c0_137 = arith.constant 0 : index
    %c0_138 = arith.constant 0 : index
    %290 = vector.load %arg7[%c2_136, %c0_137, %c0_138] : memref<4x1x128xf32, #tpu.memory_space<vmem>>, vector<1x1x128xf32>
    %291 = vector.shape_cast %290 : vector<1x1x128xf32> to vector<1x128xf32>
    %c2_139 = arith.constant 2 : index
    %c0_140 = arith.constant 0 : index
    %c0_141 = arith.constant 0 : index
    %292 = vector.load %arg8[%c2_139, %c0_140, %c0_141] : memref<4x1x128xf32, #tpu.memory_space<vmem>>, vector<1x1x128xf32>
    %293 = vector.shape_cast %292 : vector<1x1x128xf32> to vector<1x128xf32>
    %cst_142 = arith.constant dense<0.000000e+00> : vector<16xf32>
    %294 = vector.multi_reduction <add>, %289, %cst_142 [1] : vector<16x128xf32> to vector<16xf32>
    %295 = vector.shape_cast %294 : vector<16xf32> to vector<16x1xf32>
    %cst_143 = arith.constant 1.280000e+02 : f32
    %296 = vector.broadcast %cst_143 : f32 to vector<16x1xf32>
    %297 = arith.divf %295, %296 : vector<16x1xf32>
    %298 = vector.broadcast %297 : vector<16x1xf32> to vector<16x128xf32>
    %299 = arith.subf %289, %298 : vector<16x128xf32>
    %300 = arith.mulf %299, %299 : vector<16x128xf32>
    %cst_144 = arith.constant dense<0.000000e+00> : vector<16xf32>
    %301 = vector.multi_reduction <add>, %300, %cst_144 [1] : vector<16x128xf32> to vector<16xf32>
    %302 = vector.shape_cast %301 : vector<16xf32> to vector<16x1xf32>
    %cst_145 = arith.constant 1.280000e+02 : f32
    %303 = vector.broadcast %cst_145 : f32 to vector<16x1xf32>
    %304 = arith.divf %302, %303 : vector<16x1xf32>
    %cst_146 = arith.constant 9.99999974E-6 : f32
    %305 = vector.broadcast %cst_146 : f32 to vector<16x1xf32>
    %306 = arith.addf %304, %305 : vector<16x1xf32>
    %307 = math.rsqrt %306 : vector<16x1xf32>
    %308 = vector.broadcast %307 : vector<16x1xf32> to vector<16x128xf32>
    %309 = arith.mulf %299, %308 : vector<16x128xf32>
    %310 = vector.broadcast %291 : vector<1x128xf32> to vector<16x128xf32>
    %311 = arith.mulf %309, %310 : vector<16x128xf32>
    %312 = vector.broadcast %293 : vector<1x128xf32> to vector<16x128xf32>
    %313 = arith.addf %311, %312 : vector<16x128xf32>
    %314 = arith.truncf %313 : vector<16x128xf32> to vector<16x128xbf16>
    %c2_147 = arith.constant 2 : index
    %c0_148 = arith.constant 0 : index
    %c0_149 = arith.constant 0 : index
    %315 = vector.load %arg9[%c2_147, %c0_148, %c0_149] : memref<4x128x256xbf16, #tpu.memory_space<vmem>>, vector<1x128x256xbf16>
    %316 = vector.shape_cast %315 : vector<1x128x256xbf16> to vector<128x256xbf16>
    %cst_150 = arith.constant dense<0.000000e+00> : vector<16x256xf32>
    %317 = tpu.matmul %314, %316, %cst_150 {dimension_numbers = #tpu.dot_dimension_numbers<[1], [0], [0], [1], [0, 0, 1, 1], [], []>} : vector<16x128xbf16>, vector<128x256xbf16>, vector<16x256xf32> -> vector<16x256xf32>
    %c2_151 = arith.constant 2 : index
    %c0_152 = arith.constant 0 : index
    %c0_153 = arith.constant 0 : index
    %318 = vector.load %arg10[%c2_151, %c0_152, %c0_153] : memref<4x1x256xf32, #tpu.memory_space<vmem>>, vector<1x1x256xf32>
    %319 = vector.shape_cast %318 : vector<1x1x256xf32> to vector<1x256xf32>
    %320 = vector.broadcast %319 : vector<1x256xf32> to vector<16x256xf32>
    %321 = arith.addf %317, %320 : vector<16x256xf32>
    %cst_154 = arith.constant 0.000000e+00 : f32
    %322 = vector.broadcast %cst_154 : f32 to vector<16x256xf32>
    %323 = arith.maximumf %321, %322 : vector<16x256xf32>
    %324 = arith.truncf %323 : vector<16x256xf32> to vector<16x256xbf16>
    %c2_155 = arith.constant 2 : index
    %c0_156 = arith.constant 0 : index
    %c0_157 = arith.constant 0 : index
    %325 = vector.load %arg11[%c2_155, %c0_156, %c0_157] : memref<4x256x128xbf16, #tpu.memory_space<vmem>>, vector<1x256x128xbf16>
    %326 = vector.shape_cast %325 : vector<1x256x128xbf16> to vector<256x128xbf16>
    %cst_158 = arith.constant dense<0.000000e+00> : vector<16x128xf32>
    %327 = tpu.matmul %324, %326, %cst_158 {dimension_numbers = #tpu.dot_dimension_numbers<[1], [0], [0], [1], [0, 0, 1, 1], [], []>} : vector<16x256xbf16>, vector<256x128xbf16>, vector<16x128xf32> -> vector<16x128xf32>
    %c2_159 = arith.constant 2 : index
    %c0_160 = arith.constant 0 : index
    %c0_161 = arith.constant 0 : index
    %328 = vector.load %arg12[%c2_159, %c0_160, %c0_161] : memref<4x1x128xf32, #tpu.memory_space<vmem>>, vector<1x1x128xf32>
    %329 = vector.shape_cast %328 : vector<1x1x128xf32> to vector<1x128xf32>
    %330 = vector.broadcast %329 : vector<1x128xf32> to vector<16x128xf32>
    %331 = arith.addf %327, %330 : vector<16x128xf32>
    %332 = arith.addf %313, %331 : vector<16x128xf32>
    %c2_162 = arith.constant 2 : index
    %c0_163 = arith.constant 0 : index
    %c0_164 = arith.constant 0 : index
    %333 = vector.load %arg13[%c2_162, %c0_163, %c0_164] : memref<4x1x128xf32, #tpu.memory_space<vmem>>, vector<1x1x128xf32>
    %334 = vector.shape_cast %333 : vector<1x1x128xf32> to vector<1x128xf32>
    %c2_165 = arith.constant 2 : index
    %c0_166 = arith.constant 0 : index
    %c0_167 = arith.constant 0 : index
    %335 = vector.load %arg14[%c2_165, %c0_166, %c0_167] : memref<4x1x128xf32, #tpu.memory_space<vmem>>, vector<1x1x128xf32>
    %336 = vector.shape_cast %335 : vector<1x1x128xf32> to vector<1x128xf32>
    %cst_168 = arith.constant dense<0.000000e+00> : vector<16xf32>
    %337 = vector.multi_reduction <add>, %332, %cst_168 [1] : vector<16x128xf32> to vector<16xf32>
    %338 = vector.shape_cast %337 : vector<16xf32> to vector<16x1xf32>
    %cst_169 = arith.constant 1.280000e+02 : f32
    %339 = vector.broadcast %cst_169 : f32 to vector<16x1xf32>
    %340 = arith.divf %338, %339 : vector<16x1xf32>
    %341 = vector.broadcast %340 : vector<16x1xf32> to vector<16x128xf32>
    %342 = arith.subf %332, %341 : vector<16x128xf32>
    %343 = arith.mulf %342, %342 : vector<16x128xf32>
    %cst_170 = arith.constant dense<0.000000e+00> : vector<16xf32>
    %344 = vector.multi_reduction <add>, %343, %cst_170 [1] : vector<16x128xf32> to vector<16xf32>
    %345 = vector.shape_cast %344 : vector<16xf32> to vector<16x1xf32>
    %cst_171 = arith.constant 1.280000e+02 : f32
    %346 = vector.broadcast %cst_171 : f32 to vector<16x1xf32>
    %347 = arith.divf %345, %346 : vector<16x1xf32>
    %cst_172 = arith.constant 9.99999974E-6 : f32
    %348 = vector.broadcast %cst_172 : f32 to vector<16x1xf32>
    %349 = arith.addf %347, %348 : vector<16x1xf32>
    %350 = math.rsqrt %349 : vector<16x1xf32>
    %351 = vector.broadcast %350 : vector<16x1xf32> to vector<16x128xf32>
    %352 = arith.mulf %342, %351 : vector<16x128xf32>
    %353 = vector.broadcast %334 : vector<1x128xf32> to vector<16x128xf32>
    %354 = arith.mulf %352, %353 : vector<16x128xf32>
    %355 = vector.broadcast %336 : vector<1x128xf32> to vector<16x128xf32>
    %356 = arith.addf %354, %355 : vector<16x128xf32>
    %357 = arith.truncf %356 : vector<16x128xf32> to vector<16x128xbf16>
    %c3 = arith.constant 3 : index
    %c0_173 = arith.constant 0 : index
    %c0_174 = arith.constant 0 : index
    %358 = vector.load %arg3[%c3, %c0_173, %c0_174] : memref<4x128x384xbf16, #tpu.memory_space<vmem>>, vector<1x128x384xbf16>
    %359 = vector.shape_cast %358 : vector<1x128x384xbf16> to vector<128x384xbf16>
    %cst_175 = arith.constant dense<0.000000e+00> : vector<16x384xf32>
    %360 = tpu.matmul %357, %359, %cst_175 {dimension_numbers = #tpu.dot_dimension_numbers<[1], [0], [0], [1], [0, 0, 1, 1], [], []>} : vector<16x128xbf16>, vector<128x384xbf16>, vector<16x384xf32> -> vector<16x384xf32>
    %c3_176 = arith.constant 3 : index
    %c0_177 = arith.constant 0 : index
    %c0_178 = arith.constant 0 : index
    %361 = vector.load %arg4[%c3_176, %c0_177, %c0_178] : memref<4x1x384xf32, #tpu.memory_space<vmem>>, vector<1x1x384xf32>
    %362 = vector.shape_cast %361 : vector<1x1x384xf32> to vector<1x384xf32>
    %363 = vector.broadcast %362 : vector<1x384xf32> to vector<16x384xf32>
    %364 = arith.addf %360, %363 : vector<16x384xf32>
    %365 = vector.extract_strided_slice %364 {offsets = [0, 0], sizes = [16, 128], strides = [1, 1]} : vector<16x384xf32> to vector<16x128xf32>
    %366 = vector.shape_cast %365 : vector<16x128xf32> to vector<2x8x128xf32>
    %367 = vector.extract_strided_slice %364 {offsets = [0, 128], sizes = [16, 128], strides = [1, 1]} : vector<16x384xf32> to vector<16x128xf32>
    %368 = vector.shape_cast %367 : vector<16x128xf32> to vector<2x8x128xf32>
    %369 = vector.extract_strided_slice %364 {offsets = [0, 256], sizes = [16, 128], strides = [1, 1]} : vector<16x384xf32> to vector<16x128xf32>
    %370 = vector.shape_cast %369 : vector<16x128xf32> to vector<2x8x128xf32>
    %371 = vector.shape_cast %366 : vector<2x8x128xf32> to vector<2x8x1x128xf32>
    %372 = vector.shape_cast %368 : vector<2x8x128xf32> to vector<2x1x8x128xf32>
    %373 = vector.broadcast %371 : vector<2x8x1x128xf32> to vector<2x8x8x128xf32>
    %374 = vector.broadcast %372 : vector<2x1x8x128xf32> to vector<2x8x8x128xf32>
    %375 = arith.mulf %373, %374 : vector<2x8x8x128xf32>
    %376 = vector.shape_cast %375 : vector<2x8x8x128xf32> to vector<128x128xf32>
    %cst_179 = arith.constant dense<0.000000e+00> : vector<128x8xf32>
    %377 = tpu.matmul %376, %0, %cst_179 {dimension_numbers = #tpu.dot_dimension_numbers<[1], [0], [0], [1], [0, 0, 1, 1], [], []>} : vector<128x128xf32>, vector<128x8xf32>, vector<128x8xf32> -> vector<128x8xf32>
    %378 = vector.shape_cast %377 : vector<128x8xf32> to vector<2x8x8x8xf32>
    %cst_180 = arith.constant 2.500000e-01 : f32
    %379 = vector.broadcast %cst_180 : f32 to vector<2x8x8x8xf32>
    %380 = arith.mulf %378, %379 : vector<2x8x8x8xf32>
    %cst_181 = arith.constant dense<0xFF800000> : vector<2x8x8xf32>
    %381 = vector.multi_reduction <maximumf>, %380, %cst_181 [2] : vector<2x8x8x8xf32> to vector<2x8x8xf32>
    %382 = vector.shape_cast %381 : vector<2x8x8xf32> to vector<2x8x1x8xf32>
    %383 = vector.broadcast %382 : vector<2x8x1x8xf32> to vector<2x8x8x8xf32>
    %384 = arith.subf %380, %383 : vector<2x8x8x8xf32>
    %385 = math.exp %384 : vector<2x8x8x8xf32>
    %cst_182 = arith.constant dense<0.000000e+00> : vector<2x8x8xf32>
    %386 = vector.multi_reduction <add>, %385, %cst_182 [2] : vector<2x8x8x8xf32> to vector<2x8x8xf32>
    %387 = vector.shape_cast %386 : vector<2x8x8xf32> to vector<2x8x1x8xf32>
    %388 = tpu.reciprocal %387 {approx = true} : vector<2x8x1x8xf32> -> vector<2x8x1x8xf32>
    %389 = vector.broadcast %388 : vector<2x8x1x8xf32> to vector<2x8x8x8xf32>
    %390 = arith.mulf %385, %389 : vector<2x8x8x8xf32>
    %391 = vector.shape_cast %390 : vector<2x8x8x8xf32> to vector<128x8xf32>
    %cst_183 = arith.constant dense<0.000000e+00> : vector<128x128xf32>
    %392 = tpu.matmul %391, %1, %cst_183 {dimension_numbers = #tpu.dot_dimension_numbers<[1], [0], [0], [1], [0, 0, 1, 1], [], []>} : vector<128x8xf32>, vector<8x128xf32>, vector<128x128xf32> -> vector<128x128xf32>
    %393 = vector.shape_cast %392 : vector<128x128xf32> to vector<2x8x8x128xf32>
    %394 = vector.shape_cast %370 : vector<2x8x128xf32> to vector<2x1x8x128xf32>
    %395 = vector.broadcast %394 : vector<2x1x8x128xf32> to vector<2x8x8x128xf32>
    %396 = arith.mulf %393, %395 : vector<2x8x8x128xf32>
    %cst_184 = arith.constant dense<0.000000e+00> : vector<2x8x128xf32>
    %397 = vector.multi_reduction <add>, %396, %cst_184 [2] : vector<2x8x8x128xf32> to vector<2x8x128xf32>
    %398 = vector.shape_cast %397 : vector<2x8x128xf32> to vector<16x128xf32>
    %399 = arith.truncf %398 : vector<16x128xf32> to vector<16x128xbf16>
    %c3_185 = arith.constant 3 : index
    %c0_186 = arith.constant 0 : index
    %c0_187 = arith.constant 0 : index
    %400 = vector.load %arg5[%c3_185, %c0_186, %c0_187] : memref<4x128x128xbf16, #tpu.memory_space<vmem>>, vector<1x128x128xbf16>
    %401 = vector.shape_cast %400 : vector<1x128x128xbf16> to vector<128x128xbf16>
    %cst_188 = arith.constant dense<0.000000e+00> : vector<16x128xf32>
    %402 = tpu.matmul %399, %401, %cst_188 {dimension_numbers = #tpu.dot_dimension_numbers<[1], [0], [0], [1], [0, 0, 1, 1], [], []>} : vector<16x128xbf16>, vector<128x128xbf16>, vector<16x128xf32> -> vector<16x128xf32>
    %c3_189 = arith.constant 3 : index
    %c0_190 = arith.constant 0 : index
    %c0_191 = arith.constant 0 : index
    %403 = vector.load %arg6[%c3_189, %c0_190, %c0_191] : memref<4x1x128xf32, #tpu.memory_space<vmem>>, vector<1x1x128xf32>
    %404 = vector.shape_cast %403 : vector<1x1x128xf32> to vector<1x128xf32>
    %405 = vector.broadcast %404 : vector<1x128xf32> to vector<16x128xf32>
    %406 = arith.addf %402, %405 : vector<16x128xf32>
    %407 = arith.addf %356, %406 : vector<16x128xf32>
    %c3_192 = arith.constant 3 : index
    %c0_193 = arith.constant 0 : index
    %c0_194 = arith.constant 0 : index
    %408 = vector.load %arg7[%c3_192, %c0_193, %c0_194] : memref<4x1x128xf32, #tpu.memory_space<vmem>>, vector<1x1x128xf32>
    %409 = vector.shape_cast %408 : vector<1x1x128xf32> to vector<1x128xf32>
    %c3_195 = arith.constant 3 : index
    %c0_196 = arith.constant 0 : index
    %c0_197 = arith.constant 0 : index
    %410 = vector.load %arg8[%c3_195, %c0_196, %c0_197] : memref<4x1x128xf32, #tpu.memory_space<vmem>>, vector<1x1x128xf32>
    %411 = vector.shape_cast %410 : vector<1x1x128xf32> to vector<1x128xf32>
    %cst_198 = arith.constant dense<0.000000e+00> : vector<16xf32>
    %412 = vector.multi_reduction <add>, %407, %cst_198 [1] : vector<16x128xf32> to vector<16xf32>
    %413 = vector.shape_cast %412 : vector<16xf32> to vector<16x1xf32>
    %cst_199 = arith.constant 1.280000e+02 : f32
    %414 = vector.broadcast %cst_199 : f32 to vector<16x1xf32>
    %415 = arith.divf %413, %414 : vector<16x1xf32>
    %416 = vector.broadcast %415 : vector<16x1xf32> to vector<16x128xf32>
    %417 = arith.subf %407, %416 : vector<16x128xf32>
    %418 = arith.mulf %417, %417 : vector<16x128xf32>
    %cst_200 = arith.constant dense<0.000000e+00> : vector<16xf32>
    %419 = vector.multi_reduction <add>, %418, %cst_200 [1] : vector<16x128xf32> to vector<16xf32>
    %420 = vector.shape_cast %419 : vector<16xf32> to vector<16x1xf32>
    %cst_201 = arith.constant 1.280000e+02 : f32
    %421 = vector.broadcast %cst_201 : f32 to vector<16x1xf32>
    %422 = arith.divf %420, %421 : vector<16x1xf32>
    %cst_202 = arith.constant 9.99999974E-6 : f32
    %423 = vector.broadcast %cst_202 : f32 to vector<16x1xf32>
    %424 = arith.addf %422, %423 : vector<16x1xf32>
    %425 = math.rsqrt %424 : vector<16x1xf32>
    %426 = vector.broadcast %425 : vector<16x1xf32> to vector<16x128xf32>
    %427 = arith.mulf %417, %426 : vector<16x128xf32>
    %428 = vector.broadcast %409 : vector<1x128xf32> to vector<16x128xf32>
    %429 = arith.mulf %427, %428 : vector<16x128xf32>
    %430 = vector.broadcast %411 : vector<1x128xf32> to vector<16x128xf32>
    %431 = arith.addf %429, %430 : vector<16x128xf32>
    %432 = arith.truncf %431 : vector<16x128xf32> to vector<16x128xbf16>
    %c3_203 = arith.constant 3 : index
    %c0_204 = arith.constant 0 : index
    %c0_205 = arith.constant 0 : index
    %433 = vector.load %arg9[%c3_203, %c0_204, %c0_205] : memref<4x128x256xbf16, #tpu.memory_space<vmem>>, vector<1x128x256xbf16>
    %434 = vector.shape_cast %433 : vector<1x128x256xbf16> to vector<128x256xbf16>
    %cst_206 = arith.constant dense<0.000000e+00> : vector<16x256xf32>
    %435 = tpu.matmul %432, %434, %cst_206 {dimension_numbers = #tpu.dot_dimension_numbers<[1], [0], [0], [1], [0, 0, 1, 1], [], []>} : vector<16x128xbf16>, vector<128x256xbf16>, vector<16x256xf32> -> vector<16x256xf32>
    %c3_207 = arith.constant 3 : index
    %c0_208 = arith.constant 0 : index
    %c0_209 = arith.constant 0 : index
    %436 = vector.load %arg10[%c3_207, %c0_208, %c0_209] : memref<4x1x256xf32, #tpu.memory_space<vmem>>, vector<1x1x256xf32>
    %437 = vector.shape_cast %436 : vector<1x1x256xf32> to vector<1x256xf32>
    %438 = vector.broadcast %437 : vector<1x256xf32> to vector<16x256xf32>
    %439 = arith.addf %435, %438 : vector<16x256xf32>
    %cst_210 = arith.constant 0.000000e+00 : f32
    %440 = vector.broadcast %cst_210 : f32 to vector<16x256xf32>
    %441 = arith.maximumf %439, %440 : vector<16x256xf32>
    %442 = arith.truncf %441 : vector<16x256xf32> to vector<16x256xbf16>
    %c3_211 = arith.constant 3 : index
    %c0_212 = arith.constant 0 : index
    %c0_213 = arith.constant 0 : index
    %443 = vector.load %arg11[%c3_211, %c0_212, %c0_213] : memref<4x256x128xbf16, #tpu.memory_space<vmem>>, vector<1x256x128xbf16>
    %444 = vector.shape_cast %443 : vector<1x256x128xbf16> to vector<256x128xbf16>
    %cst_214 = arith.constant dense<0.000000e+00> : vector<16x128xf32>
    %445 = tpu.matmul %442, %444, %cst_214 {dimension_numbers = #tpu.dot_dimension_numbers<[1], [0], [0], [1], [0, 0, 1, 1], [], []>} : vector<16x256xbf16>, vector<256x128xbf16>, vector<16x128xf32> -> vector<16x128xf32>
    %c3_215 = arith.constant 3 : index
    %c0_216 = arith.constant 0 : index
    %c0_217 = arith.constant 0 : index
    %446 = vector.load %arg12[%c3_215, %c0_216, %c0_217] : memref<4x1x128xf32, #tpu.memory_space<vmem>>, vector<1x1x128xf32>
    %447 = vector.shape_cast %446 : vector<1x1x128xf32> to vector<1x128xf32>
    %448 = vector.broadcast %447 : vector<1x128xf32> to vector<16x128xf32>
    %449 = arith.addf %445, %448 : vector<16x128xf32>
    %450 = arith.addf %431, %449 : vector<16x128xf32>
    %c3_218 = arith.constant 3 : index
    %c0_219 = arith.constant 0 : index
    %c0_220 = arith.constant 0 : index
    %451 = vector.load %arg13[%c3_218, %c0_219, %c0_220] : memref<4x1x128xf32, #tpu.memory_space<vmem>>, vector<1x1x128xf32>
    %452 = vector.shape_cast %451 : vector<1x1x128xf32> to vector<1x128xf32>
    %c3_221 = arith.constant 3 : index
    %c0_222 = arith.constant 0 : index
    %c0_223 = arith.constant 0 : index
    %453 = vector.load %arg14[%c3_221, %c0_222, %c0_223] : memref<4x1x128xf32, #tpu.memory_space<vmem>>, vector<1x1x128xf32>
    %454 = vector.shape_cast %453 : vector<1x1x128xf32> to vector<1x128xf32>
    %cst_224 = arith.constant dense<0.000000e+00> : vector<16xf32>
    %455 = vector.multi_reduction <add>, %450, %cst_224 [1] : vector<16x128xf32> to vector<16xf32>
    %456 = vector.shape_cast %455 : vector<16xf32> to vector<16x1xf32>
    %cst_225 = arith.constant 1.280000e+02 : f32
    %457 = vector.broadcast %cst_225 : f32 to vector<16x1xf32>
    %458 = arith.divf %456, %457 : vector<16x1xf32>
    %459 = vector.broadcast %458 : vector<16x1xf32> to vector<16x128xf32>
    %460 = arith.subf %450, %459 : vector<16x128xf32>
    %461 = arith.mulf %460, %460 : vector<16x128xf32>
    %cst_226 = arith.constant dense<0.000000e+00> : vector<16xf32>
    %462 = vector.multi_reduction <add>, %461, %cst_226 [1] : vector<16x128xf32> to vector<16xf32>
    %463 = vector.shape_cast %462 : vector<16xf32> to vector<16x1xf32>
    %cst_227 = arith.constant 1.280000e+02 : f32
    %464 = vector.broadcast %cst_227 : f32 to vector<16x1xf32>
    %465 = arith.divf %463, %464 : vector<16x1xf32>
    %cst_228 = arith.constant 9.99999974E-6 : f32
    %466 = vector.broadcast %cst_228 : f32 to vector<16x1xf32>
    %467 = arith.addf %465, %466 : vector<16x1xf32>
    %468 = math.rsqrt %467 : vector<16x1xf32>
    %469 = vector.broadcast %468 : vector<16x1xf32> to vector<16x128xf32>
    %470 = arith.mulf %460, %469 : vector<16x128xf32>
    %471 = vector.broadcast %452 : vector<1x128xf32> to vector<16x128xf32>
    %472 = arith.mulf %470, %471 : vector<16x128xf32>
    %473 = vector.broadcast %454 : vector<1x128xf32> to vector<16x128xf32>
    %474 = arith.addf %472, %473 : vector<16x128xf32>
    %c0_229 = arith.constant 0 : index
    %c0_230 = arith.constant 0 : index
    %475 = vector.load %arg15[%c0_229, %c0_230] : memref<16x128xf32, #tpu.memory_space<vmem>>, vector<16x128xf32>
    tpu.vector_store %arg15[%c0_229, %c0_230], %474 {strides = array<i32>} : memref<16x128xf32, #tpu.memory_space<vmem>>, vector<16x128xf32>,
    return
  }
}

</mosaic_0001>

<bundles_post_ra>
// kernel: simple_text_encoder.1
= control target key start
LH: loop header
LB: loop body
LE: loop exit
PB: predicated region body
PF: predicated region fallthrough
CT: control target
= control target key end

     0   :  { %20 = vsyncpa [#allocation3], 0  ;;  %s11199_s0 = inlined_call_operand.vmem [shape: f32[16,128], index: 0, kind: input, shape index: {}]   ;;  %s11200_s1 = inlined_call_operand.vmem [shape: f32[128,8], index: 1, kind: input, shape index: {}]   ;;  %s11201_s2 = inlined_call_operand.vmem [shape: f32[8,128], index: 2, kind: input, shape index: {}]   ;;  %s11202_s3 = inlined_call_operand.hbm [shape: bf16[4,128,384], index: 3, kind: input, shape index: {}]   ;;  %s11203_s4 = inlined_call_operand.vmem [shape: f32[4,1,384], index: 4, kind: input, shape index: {}]   ;;  %s11204_s5 = inlined_call_operand.vmem [shape: bf16[4,128,128], index: 5, kind: input, shape index: {}]   ;;  %s11205_s6 = inlined_call_operand.vmem [shape: f32[4,1,128], index: 6, kind: input, shape index: {}]   ;;  %s11206_s7 = inlined_call_operand.vmem [shape: f32[4,1,128], index: 7, kind: input, shape index: {}]   ;;  %s11207_s8 = inlined_call_operand.vmem [shape: f32[4,1,128], index: 8, kind: input, shape index: {}]   ;;  %s11208_s9 = inlined_call_operand.hbm [shape: bf16[4,128,256], index: 9, kind: input, shape index: {}]   ;;  %s11209_s10 = inlined_call_operand.vmem [shape: f32[4,1,256], index: 10, kind: input, shape index: {}]   ;;  %s11210_s11 = inlined_call_operand.hbm [shape: bf16[4,256,128], index: 11, kind: input, shape index: {}]   ;;  %s11211_s12 = inlined_call_operand.vmem [shape: f32[4,1,128], index: 12, kind: input, shape index: {}]   ;;  %s11212_s13 = inlined_call_operand.vmem [shape: f32[4,1,128], index: 13, kind: input, shape index: {}]   ;;  %s11213_s14 = inlined_call_operand.vmem [shape: f32[4,1,128], index: 14, kind: input, shape index: {}]   ;;  %s11214_s15 = inlined_call_operand.hbm [shape: f32[16,128], index: 15, kind: output, shape index: {}]  }
   0x1   :  { %21 = vsyncpa [#allocation6], 0 }
   0x2   :  { %22 = vsyncpa [#allocation4], 0  ;;  %s9487_s18 = smov [#allocation5]  }
   0x3   :  { %s56_s19 = sshll.u32 %s9487_s18, 4  ;;  %s57_s19 = int_to_ptr.vmem [resolvable:$true] %s56_s19 }
   0x4   :  { %s9409_s20 = scalar_lea.vmem %s57_s19, 8192  ;;  %p9414_p1 = scmp.lt.s32.totalorder %s57_s19, %s57_s19 }
   0x5   :  { %p9410_p0 = scmp.ne.s32.totalorder %s57_s19, %s9409_s20  ;;  %p9415_p2 = scmp.lt.s32.totalorder %s9409_s20, %s9409_s20 }
   0x7   :  { %p9416_p3 = por %p9415_p2, %p9414_p1 }
   0x9   :  { %p9417_p4 = pnand %p9416_p3, %p9410_p0 }
   0xb   :  { %9420 = shalt.err (!%p9417_p4)
}
   0xc   :  { %s9488_s21 = smov 128   ;;  %s9489_s22 = smov 8  }
   0xd   :  { %62 = dma.hbm_to_vmem [thread:$0]  %s11208_s9, 8192, %s57_s19, [#allocation6], %s9488_s21, %s9488_s21, %s9489_s22  }
   0xe   :  { %s9490_s25 = smov [#allocation2]  }
   0xf   :  { %s34_s26 = sshll.u32 %s9490_s25, 4  ;;  %s35_s26 = int_to_ptr.vmem [resolvable:$true] %s34_s26 }
  0x10   :  { %s9429_s27 = scalar_lea.vmem %s35_s26, 12288  ;;  %p9434_p6 = scmp.lt.s32.totalorder %s35_s26, %s35_s26 }
  0x11   :  { %p9430_p5 = scmp.ne.s32.totalorder %s35_s26, %s9429_s27  ;;  %p9435_p7 = scmp.lt.s32.totalorder %s9429_s27, %s9429_s27 }
  0x13   :  { %p9436_p8 = por %p9435_p7, %p9434_p6 }
  0x15   :  { %p9437_p9 = pnand %p9436_p8, %p9430_p5 }
  0x17   :  { %9440 = shalt.err (!%p9437_p9)
}
  0x18   :  { %s9491_s28 = smov 192   ;;  %s9492_s29 = smov 12  }
  0x19   :  { %40 = dma.hbm_to_vmem [thread:$0]  %s11202_s3, 12288, %s35_s26, [#allocation3], %s9491_s28, %s9491_s28, %s9492_s29  }
  0x1a   :  { %s9493_s17 = smov [#allocation7]  }
  0x1b   :  { %s70_s18 = sshll.u32 %s9493_s17, 4  ;;  %s71_s18 = int_to_ptr.vmem [resolvable:$true] %s70_s18 }
  0x1c   :  { %s9449_s9 = scalar_lea.vmem %s71_s18, 8192  ;;  %p9454_p11 = scmp.lt.s32.totalorder %s71_s18, %s71_s18 }
  0x1d   :  { %p9450_p10 = scmp.ne.s32.totalorder %s71_s18, %s9449_s9  ;;  %p9455_p12 = scmp.lt.s32.totalorder %s9449_s9, %s9449_s9 }
  0x1f   :  { %p9456_p13 = por %p9455_p12, %p9454_p11 }
  0x21   :  { %p9457_p0 = pnand %p9456_p13, %p9450_p10 }
  0x23   :  { %9460 = shalt.err (!%p9457_p0)
}
  0x24   :  { %s9494_s19 = smov 64   ;;  %s9495_s20 = smov 4  }
  0x25   :  { %76 = dma.hbm_to_vmem [thread:$0]  %s11210_s11, 8192, %s71_s18, [#allocation6], %s9494_s19, %s9494_s19, %s9495_s20  }
  0x26   :  { %9481 = dma.done.wait [#allocation3], 12288  }
  0x27   :  { %9482 = vsyncadd [#allocation3], 4294955008 }
  0x28   :  { %9483 = dma.done.wait [#allocation6], 16384  }
  0x29   :  { %9484 = vsyncadd [#allocation6], 4294950912  ;;  %v11215_v0 = vmov 0   ;;  %v8739_v1 = vld [vmem:[#allocation2 + $0xac] ss:$12 sps:$4 sm:$0xff]   ;;  %v110_v17 = vld [vmem:[%s11199_s0] sm:$0xff]  ;;  %v147_v36 = vlaneseq }
  0x2a   :  { %322 = vmatprep.mubr.bf16.mxu0 %v11215_v0  ;;  %v8741_v2 = vld [vmem:[#allocation2 + $0xa8] ss:$12 sps:$4 sm:$0xff]   ;;  %290 = vmatprep.subr.bf16.mxu0 %v8739_v1  ;;  %v8744_v4 = vld [vmem:[#allocation2 + $0x90] ss:$12 sps:$4 sm:$0xff]   ;;  %v8747_v6 = vld [vmem:[#allocation2 + $0x78] ss:$12 sps:$4 sm:$0xff]  }
  0x2b   :  { %v8742_v3 = vld [vmem:[#allocation2 + $0x94] ss:$12 sps:$4 sm:$0xff]   ;;  %291 = vmatpush1.bf16.msra.mxu0 %v8741_v2  ;;  %v8745_v5 = vld [vmem:[#allocation2 + $0x7c] ss:$12 sps:$4 sm:$0xff]   ;;  %v8748_v7 = vld [vmem:[#allocation2 + $0x64] ss:$12 sps:$4 sm:$0xff]  }
  0x2c   :  { %292 = vmatprep.subr.bf16.mxu0 %v8742_v3  ;;  %v8750_v8 = vld [vmem:[#allocation2 + $0x60] ss:$12 sps:$4 sm:$0xff]   ;;  %v8753_v10 = vld [vmem:[#allocation2 + $0x48] ss:$12 sps:$4 sm:$0xff]   ;;  %v8756_v12 = vld [vmem:[#allocation2 + $0x30] ss:$12 sps:$4 sm:$0xff]  }
  0x2d   :  { %v8751_v9 = vld [vmem:[#allocation2 + $0x4c] ss:$12 sps:$4 sm:$0xff]   ;;  %v8754_v11 = vld [vmem:[#allocation2 + $0x34] ss:$12 sps:$4 sm:$0xff]   ;;  %v8757_v13 = vld [vmem:[#allocation2 + $0x1c] ss:$12 sps:$4 sm:$0xff]  }
  0x2e   :  { %v8759_v14 = vld [vmem:[#allocation2 + $0x18] ss:$12 sps:$4 sm:$0xff]   ;;  %v8762_v16 = vld [vmem:[#allocation2] ss:$12 sps:$4 sm:$0xff]   ;;  %v107_v21 = vld [vmem:[%s11200_s1 + $0x70] sm:$0xff]  ;;  %v9651_v37 = vshrl.u32 %v147_v36, 7 }
  0x2f   :  { %293 = vmatpush1.bf16.msra.mxu0 %v8744_v4  ;;  %v8760_v15 = vld [vmem:[#allocation2 + $0x4] ss:$12 sps:$4 sm:$0xff]   ;;  %v111_v18 = vld [vmem:[%s11199_s0 + $0x8] sm:$0xff]  ;;  %v108_v19 = vld [vmem:[%s11200_s1 + $0x78] sm:$0xff]  ;;  %v9497_v38 = vmov 1966171168  }
  0x30   :  { %294 = vmatprep.subr.bf16.mxu0 %v8745_v5  ;;  %v9603_v20 = vpack.c.bf16 %v111_v18, %v110_v17  ;;  %v106_v22 = vld [vmem:[%s11200_s1 + $0x68] sm:$0xff]  ;;  %v105_v23 = vld [vmem:[%s11200_s1 + $0x60] sm:$0xff]  ;;  %v104_v24 = vld [vmem:[%s11200_s1 + $0x58] sm:$0xff]  ;;  %v378_v39 = vunpack.c.l.s4 %v9497_v38  ;;  %v9654_v40 = vsub.s32 0, %v9651_v37  ;;  %v9664_v46 = vsub.s32 1, %v9651_v37 }
  0x31   :  { %v103_v25 = vld [vmem:[%s11200_s1 + $0x50] sm:$0xff]  ;;  %v102_v26 = vld [vmem:[%s11200_s1 + $0x48] sm:$0xff]  ;;  %v101_v27 = vld [vmem:[%s11200_s1 + $0x40] sm:$0xff]  ;;  %vm9499_vm0 = vmmov 0   ;;  %vm731_vm1 = vcmask 64512   ;;  %vm1412_vm2 = vcmask 1041409  }
  0x32   :  { %v100_v28 = vld [vmem:[%s11200_s1 + $0x38] sm:$0xff]  ;;  %v99_v29 = vld [vmem:[%s11200_s1 + $0x30] sm:$0xff]  ;;  %v98_v30 = vld [vmem:[%s11200_s1 + $0x28] sm:$0xff]  ;;  %v379_v42 = vunpack.c.0.s8 %v378_v39  ;;  %vm1414_vm3 = vcmask 1042434   ;;  %vm1416_vm4 = vcmask 1043459   ;;  %vm1418_vm5 = vcmask 1044484  }
  0x33   :  { %295 = vmatpush1.bf16.msra.mxu0 %v8747_v6  ;;  %v97_v31 = vld [vmem:[%s11200_s1 + $0x20] sm:$0xff]  ;;  %v96_v32 = vld [vmem:[%s11200_s1 + $0x18] sm:$0xff]  ;;  %v95_v33 = vld [vmem:[%s11200_s1 + $0x10] sm:$0xff]  ;;  %vm1420_vm6 = vcmask 1045509   ;;  %vm1422_vm7 = vcmask 1046534   ;;  %vm1424_vm8 = vcmask 1047559  }
  0x34   :  { %296 = vmatprep.subr.bf16.mxu0 %v8748_v7  ;;  %v94_v34 = vld [vmem:[%s11200_s1 + $0x8] sm:$0xff]  ;;  %v93_v35 = vld [vmem:[%s11200_s1] sm:$0xff]  ;;  %v9661_v44 = vsub.s32 %v379_v42, %v9651_v37 }
  0x35   :  { %v145_v41 = vld [vmem:[%s11203_s4] sm:$0x7] }
  0x36   :  { %v150_v43 = vrot.slane %v145_v41, %v9654_v40  ;;  %v154_v51 = vrot.slane %v145_v41, %v9664_v46 }
  0x37   :  { %297 = vmatpush1.bf16.msra.mxu0 %v8750_v8 }
  0x38   :  { %298 = vmatprep.subr.bf16.mxu0 %v8751_v9 }
  0x3b   :  { %299 = vmatpush1.bf16.msra.mxu0 %v8753_v10 }
  0x3c   :  { %300 = vmatprep.subr.bf16.mxu0 %v8754_v11 }
  0x3f   :  { %301 = vmatpush1.bf16.msra.mxu0 %v8756_v12 }
  0x40   :  { %302 = vmatprep.subr.bf16.mxu0 %v8757_v13 }
  0x43   :  { %303 = vmatpush1.bf16.msra.mxu0 %v8759_v14 }
  0x44   :  { %304 = vmatprep.subr.bf16.mxu0 %v8760_v15 }
  0x47   :  { %305 = vmatpush1.bf16.msra.mxu0 %v8762_v16 }
  0x48   :  { %8257 = vmatprep.subr.mxu0 %v108_v19 }
  0x4a   :  { %323 = vmatmul.mubr.bf16.vlgmr.msra.gmra.mxu0 %v9603_v20 }
  0x4b   :  { %8258 = vmatpush3.msra.mxu0 %v108_v19 }
  0x4c   :  { %8259 = vmatprep.subr.mxu0 %v107_v21 }
  0x4d   :  { %8260 = vmatpush3.msra.mxu0 %v107_v21 }
  0x4e   :  { %8261 = vmatprep.subr.mxu0 %v106_v22 }
  0x4f   :  { %8262 = vmatpush3.msra.mxu0 %v106_v22 }
  0x50   :  { %8263 = vmatprep.subr.mxu0 %v105_v23 }
  0x51   :  { %8264 = vmatpush3.msra.mxu0 %v105_v23 }
  0x52   :  { %8265 = vmatprep.subr.mxu0 %v104_v24 }
  0x53   :  { %8266 = vmatpush3.msra.mxu0 %v104_v24 }
  0x54   :  { %8267 = vmatprep.subr.mxu0 %v103_v25 }
  0x55   :  { %8268 = vmatpush3.msra.mxu0 %v103_v25 }
  0x56   :  { %8269 = vmatprep.subr.mxu0 %v102_v26 }
  0x57   :  { %8270 = vmatpush3.msra.mxu0 %v102_v26 }
  0x58   :  { %8271 = vmatprep.subr.mxu0 %v101_v27 }
  0x59   :  { %8272 = vmatpush3.msra.mxu0 %v101_v27 }
  0x5a   :  { %8273 = vmatprep.subr.mxu0 %v100_v28 }
  0x5b   :  { %8274 = vmatpush3.msra.mxu0 %v100_v28 }
  0x5c   :  { %8275 = vmatprep.subr.mxu0 %v99_v29 }
  0x5d   :  { %8276 = vmatpush3.msra.mxu0 %v99_v29 }
  0x5e   :  { %8277 = vmatprep.subr.mxu0 %v98_v30 }
  0x5f   :  { %8278 = vmatpush3.msra.mxu0 %v98_v30 }
  0x60   :  { %8279 = vmatprep.subr.mxu0 %v97_v31 }
  0x61   :  { %8280 = vmatpush3.msra.mxu0 %v97_v31 }
  0x62   :  { %8281 = vmatprep.subr.mxu0 %v96_v32 }
  0x63   :  { %8282 = vmatpush3.msra.mxu0 %v96_v32 }
  0x64   :  { %8283 = vmatprep.subr.mxu0 %v95_v33 }
  0x65   :  { %8284 = vmatpush3.msra.mxu0 %v95_v33 }
  0x66   :  { %8285 = vmatprep.subr.mxu0 %v94_v34 }
  0x67   :  { %8286 = vmatpush3.msra.mxu0 %v94_v34 }
  0x68   :  { %8287 = vmatprep.subr.mxu0 %v93_v35 }
  0x69   :  { %8288 = vmatpush3.msra.mxu0 %v93_v35 }
 0x10a   :  { %v324_v45 = vpop.f32.mrf.mxu0 }
 0x10b   :  { %v325_v47 = vadd.f32 %v324_v45, %v150_v43 }
 0x10c   :  { %v326_v48 = vpop.f32.mrf.mxu0 }
 0x10d   :  { %v376_v49 = vcombine.high %v325_v47, %v325_v47  ;;  %v383_v50 = vrot.slane %v325_v47, %v9661_v44  ;;  %v327_v60 = vadd.f32 %v326_v48, %v154_v51 }
 0x10e   :  { %v328_v52 = vpop.f32.mrf.mxu0 }
 0x10f   :  { %v390_v53 = vrot.slane %v376_v49, %v9661_v44  ;;  %v391_v54 = vcombine.high %v383_v50, %v383_v50  ;;  %v399_v55 = vrot.slane %v383_v50, %v9661_v44  ;;  %v329_v58 = vadd.f32 %v328_v52, %v150_v43 }
 0x110   :  { %v330_v22 = vpop.f32.mrf.mxu0 }
 0x111   :  { %v413_v56 = vrot.slane %v391_v54, %v9661_v44  ;;  %v421_v57 = vcombine.high %v399_v55, %v399_v55  ;;  %v406_v59 = vrot.slane %v390_v53, %v9661_v44  ;;  %v477_v61 = vrot.slane %v399_v55, %v9654_v40  ;;  %v8763_v55 = vld [vmem:[#allocation2 + $0xb0] ss:$12 sps:$4 sm:$0xff]  }
 0x112   :  { %v392_v62 = vcombine.high %v390_v53, %v390_v53  ;;  %v432_v4 = vrot.slane %v329_v58, %v9661_v44  ;;  %v425_v11 = vcombine.high %v329_v58, %v329_v58  ;;  %v331_v28 = vadd.f32 %v330_v22, %v154_v51  ;;  %v8765_v58 = vld [vmem:[#allocation2 + $0x80] ss:$12 sps:$4 sm:$0xff]  }
 0x113   :  { %v481_v63 = vrot.slane %v413_v56, %v9654_v40  ;;  %v485_v1 = vrot.slane %v421_v57, %v9654_v40  ;;  %v423_v2 = vcombine.high %v413_v56, %v413_v56  ;;  %v554_v3 = vmul.f32 %v477_v61, %v327_v60  ;;  %v8764_v57 = vld [vmem:[#allocation2 + $0x98] ss:$12 sps:$4 sm:$0xff]  }
 0x114   :  { %v493_v8 = vrot.slane %v406_v59, %v9654_v40  ;;  %v420_v9 = vrot.slane %v392_v62, %v9661_v44  ;;  %v422_v10 = vcombine.high %v406_v59, %v406_v59  ;;  %v440_v12 = vcombine.high %v432_v4, %v432_v4  ;;  %v8766_v59 = vld [vmem:[#allocation2 + $0x68] ss:$12 sps:$4 sm:$0xff]   ;;  %v8768_v61 = vld [vmem:[#allocation2 + $0x38] ss:$12 sps:$4 sm:$0xff]   ;;  %v8769_v62 = vld [vmem:[#allocation2 + $0x20] ss:$12 sps:$4 sm:$0xff]  }
 0x115   :  { %v555_v5 = vmul.f32 %v481_v63, %v327_v60  ;;  %v556_v6 = vmul.f32 %v485_v1, %v327_v60  ;;  %v489_v7 = vrot.slane %v423_v2, %v9654_v40  ;;  %8289 = vmatprep.mubr.f32.mxu0 %v554_v3  ;;  %v448_v16 = vrot.slane %v432_v4, %v9661_v44  ;;  %v8770_v63 = vld [vmem:[#allocation2 + $0x8] ss:$12 sps:$4 sm:$0xff]   ;;  %v109_v1 = vld [vmem:[%s11201_s2] sm:$0xff] }
 0x116   :  { %v497_v14 = vrot.slane %v420_v9, %v9654_v40  ;;  %v424_v15 = vcombine.high %v420_v9, %v420_v9  ;;  %v558_v17 = vmul.f32 %v493_v8, %v327_v60  ;;  %v501_v18 = vrot.slane %v422_v10, %v9654_v40 }
 0x117   :  { %8290 = vmatmul.mubr.f32.vlgmr.msra.gmra.mxu0 %v555_v5  ;;  %v557_v13 = vmul.f32 %v489_v7, %v327_v60  ;;  %v439_v19 = vrot.slane %v425_v11, %v9661_v44  ;;  %v462_v21 = vrot.slane %v440_v12, %v9661_v44  ;;  %v470_v25 = vcombine.high %v448_v16, %v448_v16 }
 0x118   :  { %8292 = vmatprep.mubr.f32.mxu0 %v556_v6  ;;  %v559_v23 = vmul.f32 %v497_v14, %v327_v60  ;;  %v505_v24 = vrot.slane %v424_v15, %v9654_v40  ;;  %v560_v26 = vmul.f32 %v501_v18, %v327_v60  ;;  %v509_v27 = vrot.slane %v448_v16, %v9654_v40 }
 0x119   :  { %v441_v29 = vcombine.high %v439_v19, %v439_v19  ;;  %v513_v31 = vrot.slane %v462_v21, %v9654_v40  ;;  %v472_v32 = vcombine.high %v462_v21, %v462_v21  ;;  %v455_v33 = vrot.slane %v439_v19, %v9661_v44 }
 0x11a   :  { %v561_v30 = vmul.f32 %v505_v24, %v327_v60  ;;  %v562_v34 = vmul.f32 %v509_v27, %v331_v28  ;;  %v517_v35 = vrot.slane %v470_v25, %v9654_v40  ;;  %v11217_v56 = vmov 0.0   ;;  %v8767_v60 = vld [vmem:[#allocation2 + $0x50] ss:$12 sps:$4 sm:$0xff]  }
 0x11b   :  { %8293 = vmatmul.mubr.f32.gmra.mxu0 %v557_v13  ;;  %v563_v36 = vmul.f32 %v513_v31, %v331_v28  ;;  %v521_v38 = vrot.slane %v472_v32, %v9654_v40  ;;  %v469_v39 = vrot.slane %v441_v29, %v9661_v44  ;;  %v525_v42 = vrot.slane %v455_v33, %v9654_v40 }
 0x11c   :  { %8295 = vmatprep.mubr.f32.mxu0 %v558_v17  ;;  %v564_v41 = vmul.f32 %v517_v35, %v331_v28  ;;  %v471_v43 = vcombine.high %v455_v33, %v455_v33  ;;  %8237 = vmatprep.subr.bf16.mxu1 %v11217_v56 }
 0x11d   :  { %v565_v45 = vmul.f32 %v521_v38, %v331_v28  ;;  %v529_v47 = vrot.slane %v469_v39, %v9654_v40  ;;  %v473_v48 = vcombine.high %v469_v39, %v469_v39  ;;  %v566_v49 = vmul.f32 %v525_v42, %v331_v28  ;;  %8238 = vmatpush3.bf16.msra.mxu1 %v8763_v55 }
 0x11e   :  { %v533_v50 = vrot.slane %v471_v43, %v9654_v40  ;;  %8239 = vmatprep.subr.bf16.mxu1 %v11217_v56  ;;  %8253 = vmatprep.mubr.msk.bf16.mxu1 %vm9499_vm0, %v11217_v56 }
 0x11f   :  { %8296 = vmatmul.mubr.f32.gmra.mxu0 %v559_v23  ;;  %v567_v51 = vmul.f32 %v529_v47, %v331_v28  ;;  %v537_v52 = vrot.slane %v473_v48, %v9654_v40 }
 0x120   :  { %8298 = vmatprep.mubr.f32.mxu0 %v560_v26  ;;  %v568_v53 = vmul.f32 %v533_v50, %v331_v28 }
 0x121   :  { %v569_v54 = vmul.f32 %v537_v52, %v331_v28  ;;  %8240 = vmatpush3.bf16.msra.mxu1 %v8764_v57 }
 0x122   :  { %8241 = vmatprep.subr.bf16.mxu1 %v11217_v56 }
 0x123   :  { %8299 = vmatmul.mubr.f32.gmra.mxu0 %v561_v30 }
 0x124   :  { %8301 = vmatprep.mubr.f32.mxu0 %v562_v34 }
 0x125   :  { %8242 = vmatpush3.bf16.msra.mxu1 %v8765_v58 }
 0x126   :  { %8243 = vmatprep.subr.bf16.mxu1 %v11217_v56 }
 0x127   :  { %8302 = vmatmul.mubr.f32.gmra.mxu0 %v563_v36 }
 0x128   :  { %8304 = vmatprep.mubr.f32.mxu0 %v564_v41 }
 0x129   :  { %8244 = vmatpush3.bf16.msra.mxu1 %v8766_v59 }
 0x12a   :  { %8245 = vmatprep.subr.bf16.mxu1 %v11217_v56 }
 0x12b   :  { %8305 = vmatmul.mubr.f32.gmra.mxu0 %v565_v45 }
 0x12c   :  { %8307 = vmatprep.mubr.f32.mxu0 %v566_v49 }
 0x12d   :  { %8246 = vmatpush3.bf16.msra.mxu1 %v8767_v60 }
 0x12e   :  { %8247 = vmatprep.subr.bf16.mxu1 %v11217_v56 }
 0x12f   :  { %8308 = vmatmul.mubr.f32.gmra.mxu0 %v567_v51 }
 0x130   :  { %8310 = vmatprep.mubr.f32.mxu0 %v568_v53 }
 0x131   :  { %8248 = vmatpush3.bf16.msra.mxu1 %v8768_v61 }
 0x132   :  { %8249 = vmatprep.subr.bf16.mxu1 %v11217_v56 }
 0x133   :  { %8311 = vmatmul.mubr.f32.gmra.mxu0 %v569_v54 }
 0x134   :  { %1708 = vmatprep.mubr.bf16.mxu0 %v11215_v0 }
 0x135   :  { %8250 = vmatpush3.bf16.msra.mxu1 %v8769_v62 }
 0x136   :  { %8251 = vmatprep.subr.bf16.mxu1 %v11217_v56 }
 0x139   :  { %8252 = vmatpush3.bf16.msra.mxu1 %v8770_v63 }
 0x13a   :  { %8313 = vmatprep.subr.mxu1 %v109_v1 }
 0x13c   :  { %8254 = vmatmul.mubr.bf16.vlgmr.msra.gmra.mxu1 %v9603_v20 }
 0x13d   :  { %8314 = vmatpush3.msra.mxu1 %v109_v1 }
 0x13e   :  { %8339 = vmatprep.subr.bf16.mxu1 %v11217_v56 }
 0x1d7   :  { %v8291_v2 = vpop.f32.mrf.mxu0 }
 0x1d8   :  { %v716_v3 = vmul.f32 0.25, %v8291_v2 }
 0x1d9   :  { %v636_v4 = vpop.f32.mrf.mxu0 }
 0x1da   :  { %v739_v5 = vsel %vm731_vm1, %v716_v3, -inf  ;;  %v715_v6 = vmul.f32 0.25, %v636_v4 }
 0x1db   :  { %v740_v7 = vrot.slane %v739_v5, 4  ;;  %v8294_v8 = vpop.f32.mrf.mxu0 }
 0x1dc   :  { %v732_v9 = vsel %vm731_vm1, %v715_v6, -inf  ;;  %v9713_v20 = vmul.f32 0.25, %v8294_v8 }
 0x1dd   :  { %v741_v10 = vmax.f32 %v739_v5, %v740_v7  ;;  %v733_v11 = vrot.slane %v732_v9, 4  ;;  %v646_v12 = vpop.f32.mrf.mxu0 }
 0x1de   :  { %v753_v13 = vsel %vm731_vm1, %v9713_v20, -inf  ;;  %v9717_v14 = vmul.f32 0.25, %v646_v12 }
 0x1df   :  { %v742_v15 = vrot.slane %v741_v10, 2  ;;  %v734_v16 = vmax.f32 %v732_v9, %v733_v11  ;;  %v754_v17 = vrot.slane %v753_v13, 4  ;;  %v8297_v18 = vpop.f32.mrf.mxu0 }
 0x1e0   :  { %v746_v19 = vsel %vm731_vm1, %v9717_v14, -inf  ;;  %v9721_v21 = vmul.f32 0.25, %v8297_v18 }
 0x1e1   :  { %v743_v22 = vmax.f32 %v741_v10, %v742_v15  ;;  %v735_v23 = vrot.slane %v734_v16, 2  ;;  %v755_v24 = vmax.f32 %v753_v13, %v754_v17  ;;  %v747_v25 = vrot.slane %v746_v19, 4  ;;  %v656_v26 = vpop.f32.mrf.mxu0 }
 0x1e2   :  { %v767_v27 = vsel %vm731_vm1, %v9721_v21, -inf  ;;  %v9725_v28 = vmul.f32 0.25, %v656_v26 }
 0x1e3   :  { %v744_v29 = vrot.slane %v743_v22, 1  ;;  %v736_v30 = vmax.f32 %v734_v16, %v735_v23  ;;  %v756_v31 = vrot.slane %v755_v24, 2  ;;  %v748_v32 = vmax.f32 %v746_v19, %v747_v25  ;;  %v8300_v33 = vpop.f32.mrf.mxu0 }
 0x1e4   :  { %v768_v34 = vrot.slane %v767_v27, 4  ;;  %v760_v35 = vsel %vm731_vm1, %v9725_v28, -inf  ;;  %v9729_v36 = vmul.f32 0.25, %v8300_v33 }
 0x1e5   :  { %v745_v38 = vmax.f32 %v743_v22, %v744_v29  ;;  %v737_v39 = vrot.slane %v736_v30, 1  ;;  %v757_v41 = vmax.f32 %v755_v24, %v756_v31  ;;  %v749_v42 = vrot.slane %v748_v32, 2  ;;  %v666_v43 = vpop.f32.mrf.mxu0 }
 0x1e6   :  { %v769_v45 = vmax.f32 %v767_v27, %v768_v34  ;;  %v761_v47 = vrot.slane %v760_v35, 4  ;;  %v781_v48 = vsel %vm731_vm1, %v9729_v36, -inf  ;;  %v9733_v49 = vmul.f32 0.25, %v666_v43 }
 0x1e7   :  { %v845_v50 = vsub.f32 %v716_v3, %v745_v38  ;;  %v738_v51 = vmax.f32 %v736_v30, %v737_v39  ;;  %v758_v52 = vrot.slane %v757_v41, 1  ;;  %v750_v53 = vmax.f32 %v748_v32, %v749_v42  ;;  %v8303_v54 = vpop.f32.mrf.mxu0 }
 0x1e8   :  { %v770_v55 = vrot.slane %v769_v45, 2  ;;  %v762_v57 = vmax.f32 %v760_v35, %v761_v47  ;;  %v782_v58 = vrot.slane %v781_v48, 4  ;;  %v774_v59 = vsel %vm731_vm1, %v9733_v49, -inf }
 0x1e9   :  { %v862_v60 = vmul.f32 1.442695, %v845_v50  ;;  %v844_v61 = vsub.f32 %v715_v6, %v738_v51  ;;  %v759_v62 = vmax.f32 %v757_v41, %v758_v52  ;;  %v751_v63 = vrot.slane %v750_v53, 1  ;;  %v676_v1 = vpop.f32.mrf.mxu0 }
 0x1ea   :  { %v771_v2 = vmax.f32 %v769_v45, %v770_v55  ;;  %v763_v4 = vrot.slane %v762_v57, 2  ;;  %v783_v5 = vmax.f32 %v781_v48, %v782_v58  ;;  %v775_v7 = vrot.slane %v774_v59, 4 }
 0x1eb   :  { %9059 = vpow2.f32 %v862_v60  ;;  %v860_v3 = vmul.f32 1.442695, %v844_v61  ;;  %v847_v8 = vsub.f32 %v9713_v20, %v759_v62  ;;  %v752_v9 = vmax.f32 %v750_v53, %v751_v63  ;;  %v8306_v15 = vpop.f32.mrf.mxu0 }
 0x1ec   :  { %v772_v10 = vrot.slane %v771_v2, 1  ;;  %v764_v11 = vmax.f32 %v762_v57, %v763_v4  ;;  %v784_v12 = vrot.slane %v783_v5, 2  ;;  %v776_v13 = vmax.f32 %v774_v59, %v775_v7 }
 0x1ed   :  { %9061 = vpow2.f32 %v860_v3  ;;  %v866_v16 = vmul.f32 1.442695, %v847_v8  ;;  %v846_v6 = vsub.f32 %v9717_v14, %v752_v9  ;;  %v9739_v17 = vmul.f32 0.25, %v8303_v54  ;;  %v686_v31 = vpop.f32.mrf.mxu0 }
 0x1ee   :  { %v773_v18 = vmax.f32 %v771_v2, %v772_v10  ;;  %v765_v19 = vrot.slane %v764_v11, 1  ;;  %v785_v22 = vmax.f32 %v783_v5, %v784_v12  ;;  %v777_v23 = vrot.slane %v776_v13, 2 }
 0x1ef   :  { %9063 = vpow2.f32 %v866_v16  ;;  %v864_v24 = vmul.f32 1.442695, %v846_v6  ;;  %v795_v20 = vsel %vm731_vm1, %v9739_v17, -inf  ;;  %v9743_v25 = vmul.f32 0.25, %v676_v1  ;;  %v8309_v53 = vpop.f32.mrf.mxu0 }
 0x1f0   :  { %v849_v26 = vsub.f32 %v9721_v21, %v773_v18  ;;  %v766_v27 = vmax.f32 %v764_v11, %v765_v19  ;;  %v786_v29 = vrot.slane %v785_v22, 1  ;;  %v778_v30 = vmax.f32 %v776_v13, %v777_v23 }
 0x1f1   :  { %9065 = vpow2.f32 %v864_v24  ;;  %v796_v14 = vrot.slane %v795_v20, 4  ;;  %v788_v32 = vsel %vm731_vm1, %v9743_v25, -inf  ;;  %v9748_v33 = vmul.f32 0.25, %v8306_v15 }
 0x1f2   :  { %v870_v34 = vmul.f32 1.442695, %v849_v26  ;;  %v848_v35 = vsub.f32 %v9725_v28, %v766_v27  ;;  %v787_v38 = vmax.f32 %v785_v22, %v786_v29  ;;  %v779_v39 = vrot.slane %v778_v30, 1 }
 0x1f3   :  { %v797_v41 = vmax.f32 %v795_v20, %v796_v14  ;;  %v789_v42 = vrot.slane %v788_v32, 4  ;;  %v809_v21 = vsel %vm731_vm1, %v9748_v33, -inf  ;;  %v9753_v43 = vmul.f32 0.25, %v686_v31 }
 0x1f4   :  { %9067 = vpow2.f32 %v870_v34  ;;  %v868_v45 = vmul.f32 1.442695, %v848_v35  ;;  %v851_v47 = vsub.f32 %v9729_v36, %v787_v38  ;;  %v780_v48 = vmax.f32 %v778_v30, %v779_v39 }
 0x1f5   :  { %v798_v50 = vrot.slane %v797_v41, 2  ;;  %v790_v51 = vmax.f32 %v788_v32, %v789_v42  ;;  %v810_v52 = vrot.slane %v809_v21, 4  ;;  %v802_v28 = vsel %vm731_vm1, %v9753_v43, -inf }
 0x1f6   :  { %9069 = vpow2.f32 %v868_v45  ;;  %v874_v54 = vmul.f32 1.442695, %v851_v47  ;;  %v850_v55 = vsub.f32 %v9733_v49, %v780_v48  ;;  %v803_v57 = vrot.slane %v802_v28, 4 }
 0x1f7   :  { %v799_v58 = vmax.f32 %v797_v41, %v798_v50  ;;  %v791_v59 = vrot.slane %v790_v51, 2  ;;  %v811_v60 = vmax.f32 %v809_v21, %v810_v52  ;;  %v9761_v63 = vmul.f32 0.25, %v8309_v53 }
 0x1f8   :  { %v9759_v61 = vpop.eup %9059  ;;  %9071 = vpow2.f32 %v874_v54  ;;  %v872_v36 = vmul.f32 1.442695, %v850_v55  ;;  %v804_v62 = vmax.f32 %v802_v28, %v803_v57 }
 0x1f9   :  { %v899_v1 = vsel %vm731_vm1, %v9759_v61, 0.0  ;;  %v800_v2 = vrot.slane %v799_v58, 1  ;;  %v792_v4 = vmax.f32 %v790_v51, %v791_v59  ;;  %v812_v5 = vrot.slane %v811_v60, 2 }
 0x1fa   :  { %v9765_v7 = vpop.eup %9061  ;;  %v900_v49 = vrot.slane %v899_v1, 4  ;;  %9073 = vpow2.f32 %v872_v36  ;;  %v805_v3 = vrot.slane %v804_v62, 2  ;;  %v823_v6 = vsel %vm731_vm1, %v9761_v63, -inf }
 0x1fb   :  { %v892_v8 = vsel %vm731_vm1, %v9765_v7, 0.0  ;;  %v801_v9 = vmax.f32 %v799_v58, %v800_v2  ;;  %v793_v10 = vrot.slane %v792_v4, 1  ;;  %v813_v11 = vmax.f32 %v811_v60, %v812_v5 }
 0x1fc   :  { %v9769_v12 = vpop.eup %9063  ;;  %v901_v13 = vadd.f32 %v900_v49, %v899_v1  ;;  %v893_v15 = vrot.slane %v892_v8, 4  ;;  %v806_v16 = vmax.f32 %v804_v62, %v805_v3  ;;  %v824_v39 = vrot.slane %v823_v6, 4 }
 0x1fd   :  { %v913_v18 = vsel %vm731_vm1, %v9769_v12, 0.0  ;;  %v853_v19 = vsub.f32 %v9739_v17, %v801_v9  ;;  %v794_v22 = vmax.f32 %v792_v4, %v793_v10  ;;  %v814_v23 = vrot.slane %v813_v11, 1  ;;  %v696_v17 = vpop.f32.mrf.mxu0 }
 0x1fe   :  { %v9776_v24 = vpop.eup %9065  ;;  %v902_v20 = vrot.slane %v901_v13, 2  ;;  %v894_v26 = vadd.f32 %v893_v15, %v892_v8  ;;  %v914_v27 = vrot.slane %v913_v18, 4  ;;  %v807_v29 = vrot.slane %v806_v16, 1 }
 0x1ff   :  { %v906_v30 = vsel %vm731_vm1, %v9776_v24, 0.0  ;;  %v878_v31 = vmul.f32 1.442695, %v853_v19  ;;  %v852_v14 = vsub.f32 %v9743_v25, %v794_v22  ;;  %v815_v32 = vmax.f32 %v813_v11, %v814_v23  ;;  %v8312_v57 = vpop.f32.mrf.mxu0 }
 0x200   :  { %v903_v34 = vadd.f32 %v902_v20, %v901_v13  ;;  %v915_v35 = vadd.f32 %v914_v27, %v913_v18  ;;  %v907_v38 = vrot.slane %v906_v30, 4  ;;  %v808_v45 = vmax.f32 %v806_v16, %v807_v29 }
 0x201   :  { %v9781_v41 = vpop.eup %9067  ;;  %9075 = vpow2.f32 %v878_v31  ;;  %v876_v42 = vmul.f32 1.442695, %v852_v14  ;;  %v855_v21 = vsub.f32 %v9748_v33, %v815_v32  ;;  %v895_v48 = vrot.slane %v894_v26, 2  ;;  %v706_v11 = vpop.f32.mrf.mxu0 }
 0x202   :  { %v904_v47 = vrot.slane %v903_v34, 1  ;;  %v916_v50 = vrot.slane %v915_v35, 2  ;;  %v908_v51 = vadd.f32 %v907_v38, %v906_v30  ;;  %v927_v25 = vsel %vm731_vm1, %v9781_v41, 0.0 }
 0x203   :  { %v9784_v52 = vpop.eup %9069  ;;  %9077 = vpow2.f32 %v876_v42  ;;  %v882_v28 = vmul.f32 1.442695, %v855_v21  ;;  %v854_v53 = vsub.f32 %v9753_v43, %v808_v45  ;;  %v9789_v55 = vmul.f32 0.25, %v696_v17 }
 0x204   :  { %v909_v54 = vrot.slane %v908_v51, 2  ;;  %v928_v33 = vrot.slane %v927_v25, 4  ;;  %v920_v59 = vsel %vm731_vm1, %v9784_v52, 0.0  ;;  %v905_v36 = vadd.f32 %v904_v47, %v903_v34 }
 0x205   :  { %v9791_v58 = vpop.eup %9071  ;;  %9079 = vpow2.f32 %v882_v28  ;;  %v880_v60 = vmul.f32 1.442695, %v854_v53  ;;  %v896_v62 = vadd.f32 %v895_v48, %v894_v26  ;;  %v9795_v1 = vadd.f32 %v916_v50, %v915_v35 }
 0x206   :  { %v921_v2 = vrot.slane %v920_v59, 4  ;;  %v929_v43 = vadd.f32 %v928_v33, %v927_v25  ;;  %v941_v5 = vsel %vm731_vm1, %v9791_v58, 0.0  ;;  %v825_v49 = vmax.f32 %v823_v6, %v824_v39 }
 0x207   :  { %v9797_v4 = vpop.eup %9073  ;;  %9081 = vpow2.f32 %v880_v60  ;;  %v9801_v3 = vadd.f32 %v909_v54, %v908_v51  ;;  %v942_v9 = vrot.slane %v941_v5, 4  ;;  %v816_v18 = vsel %vm731_vm1, %v9789_v55, -inf }
 0x208   :  { %v922_v8 = vadd.f32 %v921_v2, %v920_v59  ;;  %v934_v10 = vsel %vm731_vm1, %v9797_v4, 0.0  ;;  %v930_v13 = vrot.slane %v929_v43, 2  ;;  %v826_v16 = vrot.slane %v825_v49, 2 }
 0x209   :  { %v935_v15 = vrot.slane %v934_v10, 4  ;;  %v943_v22 = vadd.f32 %v942_v9, %v941_v5  ;;  %v817_v23 = vrot.slane %v816_v18, 4  ;;  %v9807_v20 = vmul.f32 0.25, %v8312_v57 }
 0x20a   :  { %v923_v19 = vrot.slane %v922_v8, 2  ;;  %v897_v6 = vrot.slane %v896_v62, 1  ;;  %v9809_v26 = vadd.f32 %v930_v13, %v929_v43  ;;  %v827_v27 = vmax.f32 %v825_v49, %v826_v16 }
 0x20b   :  { %v9811_v29 = vmul.f32 0.25, %v706_v11  ;;  %9083 = vrcp.f32 %v905_v36  ;;  %v936_v30 = vadd.f32 %v935_v15, %v934_v10  ;;  %v818_v31 = vmax.f32 %v816_v18, %v817_v23 }
 0x20c   :  { %v837_v14 = vsel %vm731_vm1, %v9807_v20, -inf  ;;  %v918_v32 = vrot.slane %v9795_v1, 1  ;;  %v944_v34 = vrot.slane %v943_v22, 2  ;;  %v828_v35 = vrot.slane %v827_v27, 1 }
 0x20d   :  { %v838_v38 = vrot.slane %v837_v14, 4  ;;  %v911_v17 = vrot.slane %v9801_v3, 1  ;;  %v924_v42 = vadd.f32 %v923_v19, %v922_v8  ;;  %v819_v21 = vrot.slane %v818_v31, 2 }
 0x20e   :  { %v9816_v39 = vpop.eup %9075  ;;  %v830_v45 = vsel %vm731_vm1, %v9811_v29, -inf  ;;  %v932_v47 = vrot.slane %v9809_v26, 1  ;;  %v829_v50 = vmax.f32 %v827_v27, %v828_v35  ;;  %v937_v28 = vrot.slane %v936_v30, 2 }
 0x20f   :  { %v955_v48 = vsel %vm731_vm1, %v9816_v39, 0.0  ;;  %v839_v51 = vmax.f32 %v837_v14, %v838_v38  ;;  %v820_v54 = vmax.f32 %v818_v31, %v819_v21  ;;  %v831_v57 = vrot.slane %v830_v45, 4 }
 0x210   :  { %v9824_v25 = vpop.eup %9077  ;;  %v956_v53 = vrot.slane %v955_v48, 4  ;;  %v945_v33 = vadd.f32 %v944_v34, %v943_v22  ;;  %v857_v60 = vsub.f32 %v9761_v63, %v829_v50  ;;  %v898_v13 = vadd.f32 %v897_v6, %v896_v62 }
 0x211   :  { %v948_v59 = vsel %vm731_vm1, %v9824_v25, 0.0  ;;  %v840_v36 = vrot.slane %v839_v51, 2  ;;  %v821_v49 = vrot.slane %v820_v54, 1  ;;  %v832_v8 = vmax.f32 %v830_v45, %v831_v57 }
 0x212   :  { %v9829_v2 = vpop.eup %9079  ;;  %v957_v43 = vadd.f32 %v956_v53, %v955_v48  ;;  %v949_v5 = vrot.slane %v948_v59, 4  ;;  %v886_v10 = vmul.f32 1.442695, %v857_v60  ;;  %v938_v16 = vadd.f32 %v937_v28, %v936_v30 }
 0x213   :  { %v969_v9 = vsel %vm731_vm1, %v9829_v2, 0.0  ;;  %v841_v11 = vmax.f32 %v839_v51, %v840_v36  ;;  %v822_v22 = vmax.f32 %v820_v54, %v821_v49  ;;  %v833_v27 = vrot.slane %v832_v8, 2 }
 0x214   :  { %v9833_v15 = vpop.eup %9081  ;;  %v950_v18 = vadd.f32 %v949_v5, %v948_v59  ;;  %v970_v19 = vrot.slane %v969_v9, 4  ;;  %9085 = vpow2.f32 %v886_v10  ;;  %v958_v31 = vrot.slane %v957_v43, 2 }
 0x215   :  { %v962_v63 = vsel %vm731_vm1, %v9833_v15, 0.0  ;;  %v842_v23 = vrot.slane %v841_v11, 1  ;;  %v856_v38 = vsub.f32 %v9789_v55, %v822_v22  ;;  %v834_v62 = vmax.f32 %v832_v8, %v833_v27 }
 0x216   :  { %v951_v14 = vrot.slane %v950_v18, 2  ;;  %v971_v34 = vadd.f32 %v970_v19, %v969_v9  ;;  %v963_v35 = vrot.slane %v962_v63, 4  ;;  %9087 = vrcp.f32 %v898_v13 }
 0x217   :  { %v843_v21 = vmax.f32 %v841_v11, %v842_v23  ;;  %v925_v6 = vrot.slane %v924_v42, 1  ;;  %v946_v30 = vrot.slane %v945_v33, 1  ;;  %v939_v51 = vrot.slane %v938_v16, 1 }
 0x218   :  { %v952_v45 = vadd.f32 %v951_v14, %v950_v18  ;;  %v964_v48 = vadd.f32 %v963_v35, %v962_v63  ;;  %v9084_v50 = vpop.eup %9083  ;;  %v884_v28 = vmul.f32 1.442695, %v856_v38  ;;  %v835_v54 = vrot.slane %v834_v62, 1 }
 0x219   :  { %v859_v53 = vsub.f32 %v9807_v20, %v843_v21  ;;  %v959_v57 = vadd.f32 %v958_v31, %v957_v43  ;;  %v972_v59 = vrot.slane %v971_v34, 2  ;;  %v912_v36 = vadd.f32 %v911_v17, %v9801_v3 }
 0x21a   :  { %v965_v60 = vrot.slane %v964_v48, 2  ;;  %9089 = vpow2.f32 %v884_v28  ;;  %v836_v5 = vmax.f32 %v834_v62, %v835_v54  ;;  %v919_v49 = vadd.f32 %v918_v32, %v9795_v1 }
 0x21b   :  { %v890_v55 = vmul.f32 1.442695, %v859_v53  ;;  %v953_v8 = vrot.slane %v952_v45, 1  ;;  %9091 = vrcp.f32 %v912_v36  ;;  %v926_v10 = vadd.f32 %v925_v6, %v924_v42 }
 0x21c   :  { %v966_v9 = vadd.f32 %v965_v60, %v964_v48  ;;  %v858_v20 = vsub.f32 %v9811_v29, %v836_v5  ;;  %v933_v43 = vadd.f32 %v932_v47, %v9809_v26  ;;  %v940_v11 = vadd.f32 %v939_v51, %v938_v16 }
 0x21d   :  { %9093 = vpow2.f32 %v890_v55  ;;  %v947_v17 = vadd.f32 %v946_v30, %v945_v33  ;;  %v960_v18 = vrot.slane %v959_v57, 1  ;;  %v973_v19 = vadd.f32 %v972_v59, %v971_v34 }
 0x21e   :  { %9095 = vrcp.f32 %v919_v49  ;;  %v967_v13 = vrot.slane %v966_v9, 1  ;;  %v888_v3 = vmul.f32 1.442695, %v858_v20  ;;  %v954_v22 = vadd.f32 %v953_v8, %v952_v45 }
 0x21f   :  { %9097 = vrcp.f32 %v926_v10  ;;  %v974_v42 = vrot.slane %v973_v19, 1  ;;  %v961_v16 = vadd.f32 %v960_v18, %v959_v57  ;;  %v1021_v23 = vmul.f32 %v9084_v50, %v9759_v61 }
 0x220   :  { %9099 = vrcp.f32 %v933_v43  ;;  %v968_v29 = vadd.f32 %v967_v13, %v966_v9 }
 0x221   :  { %9101 = vpow2.f32 %v888_v3  ;;  %v9845_v1 = vpop.eup %9085  ;;  %v975_v14 = vadd.f32 %v974_v42, %v973_v19 }
 0x222   :  { %9103 = vrcp.f32 %v940_v11  ;;  %v983_v32 = vsel %vm731_vm1, %v9845_v1, 0.0 }
 0x223   :  { %9105 = vrcp.f32 %v947_v17  ;;  %v9088_v26 = vpop.eup %9087  ;;  %v984_v47 = vrot.slane %v983_v32, 4 }
 0x224   :  { %9107 = vrcp.f32 %v954_v22  ;;  %v1020_v33 = vmul.f32 %v9088_v26, %v9765_v7 }
 0x225   :  { %v985_v63 = vadd.f32 %v984_v47, %v983_v32  ;;  %9109 = vrcp.f32 %v968_v29 }
 0x226   :  { %8315 = vmatprep.mubr.msk.f32.mxu1 %vm731_vm1, %v1020_v33  ;;  %9111 = vrcp.f32 %v961_v16 }
 0x227   :  { %v9852_v27 = vpop.eup %9089  ;;  %v986_v31 = vrot.slane %v985_v63, 2  ;;  %8316 = vmatmul.mubr.msk.f32.vlgmr.msra.gmra.mxu1 %vm731_vm1, %v1021_v23  ;;  %9113 = vrcp.f32 %v975_v14 }
 0x228   :  { %v9092_v34 = vpop.eup %9091  ;;  %v976_v35 = vsel %vm731_vm1, %v9852_v27, 0.0 }
 0x229   :  { %v987_v7 = vadd.f32 %v986_v31, %v985_v63  ;;  %v977_v21 = vrot.slane %v976_v35, 4  ;;  %v1022_v61 = vmul.f32 %v9092_v34, %v9776_v24  ;;  %v8771_v34 = vld [vmem:[%s11204_s5 + $0x38] sm:$0xff]  }
 0x22a   :  { %v9857_v38 = vpop.eup %9093  ;;  %8340 = vmatpush3.bf16.msra.mxu1 %v8771_v34 }
 0x22b   :  { %v9096_v62 = vpop.eup %9095  ;;  %v997_v6 = vsel %vm731_vm1, %v9857_v38, 0.0  ;;  %v978_v45 = vadd.f32 %v977_v21, %v976_v35  ;;  %8318 = vmatprep.mubr.msk.f32.mxu1 %vm731_vm1, %v1022_v61  ;;  %v988_v28 = vrot.slane %v987_v7, 1  ;;  %8341 = vmatprep.subr.bf16.mxu1 %v11217_v56  ;;  %v8772_v35 = vld [vmem:[%s11204_s5 + $0x30] sm:$0xff]   ;;  %v8775_v21 = vld [vmem:[%s11204_s5 + $0x18] sm:$0xff]  }
 0x22c   :  { %v9098_v30 = vpop.eup %9097  ;;  %v998_v48 = vrot.slane %v997_v6, 4  ;;  %v1023_v50 = vmul.f32 %v9096_v62, %v9769_v12  ;;  %v8776_v61 = vld [vmem:[%s11204_s5 + $0x10] sm:$0xff]   ;;  %v8777_v62 = vld [vmem:[%s11204_s5 + $0x8] sm:$0xff]  }
 0x22d   :  { %v9100_v51 = vpop.eup %9099  ;;  %v1024_v53 = vmul.f32 %v9098_v30, %v9784_v52  ;;  %v979_v57 = vrot.slane %v978_v45, 2  ;;  %v989_v52 = vadd.f32 %v988_v28, %v987_v7  ;;  %v8774_v7 = vld [vmem:[%s11204_s5 + $0x20] sm:$0xff]   ;;  %v9923_v30 = vsub.s32 2, %v9651_v37 }
 0x22e   :  { %v9102_v54 = vpop.eup %9101  ;;  %v999_v59 = vadd.f32 %v998_v48, %v997_v6  ;;  %8319 = vmatmul.mubr.msk.f32.gmra.mxu1 %vm731_vm1, %v1023_v50  ;;  %v1025_v36 = vmul.f32 %v9100_v51, %v9781_v41  ;;  %v8778_v6 = vld [vmem:[%s11204_s5] sm:$0xff]  }
 0x22f   :  { %v9104_v24 = vpop.eup %9103  ;;  %v990_v60 = vsel %vm731_vm1, %v9102_v54, 0.0  ;;  %8321 = vmatprep.mubr.msk.f32.mxu1 %vm731_vm1, %v1024_v53  ;;  %v980_v5 = vadd.f32 %v979_v57, %v978_v45  ;;  %9115 = vrcp.f32 %v989_v52  ;;  %8342 = vmatpush3.bf16.msra.mxu1 %v8772_v35  ;;  %v9347_v45 = vld [vmem:[%s11203_s4] sm:$0x7] }
 0x230   :  { %v9106_v55 = vpop.eup %9105  ;;  %v1000_v12 = vrot.slane %v999_v59, 2  ;;  %v991_v49 = vrot.slane %v990_v60, 4  ;;  %v1026_v8 = vmul.f32 %v9104_v24, %v9797_v4  ;;  %8343 = vmatprep.subr.bf16.mxu1 %v11217_v56  ;;  %v158_v48 = vrot.slane %v9347_v45, %v9923_v30 }
 0x231   :  { %v9108_v9 = vpop.eup %9107  ;;  %v981_v10 = vrot.slane %v980_v5, 1  ;;  %v1027_v17 = vmul.f32 %v9106_v55, %v9791_v58 }
 0x232   :  { %v1001_v20 = vadd.f32 %v1000_v12, %v999_v59  ;;  %v992_v43 = vadd.f32 %v991_v49, %v990_v60  ;;  %8322 = vmatmul.mubr.msk.f32.gmra.mxu1 %vm731_vm1, %v1025_v36  ;;  %v1028_v11 = vmul.f32 %v9108_v9, %v9824_v25  ;;  %v9110_v13 = vpop.eup %9109 }
 0x233   :  { %8324 = vmatprep.mubr.msk.f32.mxu1 %vm731_vm1, %v1026_v8  ;;  %v982_v18 = vadd.f32 %v981_v10, %v980_v5  ;;  %v9112_v19 = vpop.eup %9111  ;;  %v1030_v22 = vmul.f32 %v9110_v13, %v9833_v15 }
 0x234   :  { %v1002_v3 = vrot.slane %v1001_v20, 1  ;;  %v993_v41 = vrot.slane %v992_v43, 2  ;;  %v1029_v25 = vmul.f32 %v9112_v19, %v9816_v39  ;;  %v9114_v26 = vpop.eup %9113 }
 0x235   :  { %9117 = vrcp.f32 %v982_v18  ;;  %v1031_v58 = vmul.f32 %v9114_v26, %v9829_v2  ;;  %v367_v2 = vpop.f32.mrf.mxu1 }
 0x236   :  { %v994_v4 = vadd.f32 %v993_v41, %v992_v43  ;;  %8325 = vmatmul.mubr.msk.f32.gmra.mxu1 %vm731_vm1, %v1027_v17  ;;  %v1003_v32 = vadd.f32 %v1002_v3, %v1001_v20  ;;  %v368_v50 = vadd.f32 %v367_v2, %v158_v48 }
 0x237   :  { %8327 = vmatprep.mubr.msk.f32.mxu1 %vm731_vm1, %v1028_v11 }
 0x238   :  { %v995_v29 = vrot.slane %v994_v4, 1  ;;  %9119 = vrcp.f32 %v1003_v32 }
 0x23a   :  { %8328 = vmatmul.mubr.msk.f32.gmra.mxu1 %vm731_vm1, %v1029_v25  ;;  %v996_v42 = vadd.f32 %v995_v29, %v994_v4 }
 0x23b   :  { %8330 = vmatprep.mubr.msk.f32.mxu1 %vm731_vm1, %v1030_v22 }
 0x23c   :  { %9121 = vrcp.f32 %v996_v42  ;;  %v9116_v47 = vpop.eup %9115 }
 0x23d   :  { %v1033_v33 = vmul.f32 %v9116_v47, %v9845_v1 }
 0x23e   :  { %8331 = vmatmul.mubr.msk.f32.gmra.mxu1 %vm731_vm1, %v1031_v58 }
 0x242   :  { %v9118_v16 = vpop.eup %9117 }
 0x243   :  { %v1032_v15 = vmul.f32 %v9118_v16, %v9852_v27  ;;  %v8255_v27 = vpop.f32.mrf.mxu1 }
 0x245   :  { %8333 = vmatprep.mubr.msk.f32.mxu1 %vm731_vm1, %v1032_v15  ;;  %v9120_v39 = vpop.eup %9119  ;;  %v370_v14 = vpop.f32.mrf.mxu1 }
 0x246   :  { %8334 = vmatmul.mubr.msk.f32.gmra.mxu1 %vm731_vm1, %v1033_v33  ;;  %v1035_v31 = vmul.f32 %v9120_v39, %v9857_v38  ;;  %v8773_v38 = vld [vmem:[%s11204_s5 + $0x28] sm:$0xff]   ;;  %v9929_v41 = vadd.f32 %v370_v14, %v158_v48 }
 0x247   :  { %v8256_v1 = vpop.f32.mrf.mxu1  ;;  %8344 = vmatpush3.bf16.msra.mxu1 %v8773_v38 }
 0x248   :  { %8345 = vmatprep.subr.bf16.mxu1 %v11217_v56 }
 0x249   :  { %v9122_v63 = vpop.eup %9121 }
 0x24a   :  { %v1034_v23 = vmul.f32 %v9122_v63, %v9102_v54 }
 0x24b   :  { %8346 = vmatpush3.bf16.msra.mxu1 %v8774_v7 }
 0x24c   :  { %8336 = vmatprep.mubr.msk.f32.mxu1 %vm731_vm1, %v1034_v23  ;;  %8347 = vmatprep.subr.bf16.mxu1 %v11217_v56 }
 0x24d   :  { %8337 = vmatmul.mubr.msk.f32.gmra.mxu1 %vm731_vm1, %v1035_v31 }
 0x24e   :  { %8355 = vmatprep.mubr.msk.bf16.mxu1 %vm9499_vm0, %v11217_v56 }
 0x24f   :  { %8348 = vmatpush3.bf16.msra.mxu1 %v8775_v21 }
 0x250   :  { %8349 = vmatprep.subr.bf16.mxu1 %v11217_v56 }
 0x253   :  { %8350 = vmatpush3.bf16.msra.mxu1 %v8776_v61 }
 0x254   :  { %8351 = vmatprep.subr.bf16.mxu1 %v11217_v56 }
 0x257   :  { %8352 = vmatpush3.bf16.msra.mxu1 %v8777_v62 }
 0x258   :  { %8353 = vmatprep.subr.bf16.mxu1 %v11217_v56 }
 0x25b   :  { %8354 = vmatpush3.bf16.msra.mxu1 %v8778_v6 }
 0x2e7   :  { %v8317_v51 = vpop.f32.mrf.mxu1 }
 0x2e8   :  { %v1230_v28 = vmul.f32 %v8317_v51, %v368_v50 }
 0x2e9   :  { %v1150_v53 = vpop.f32.mrf.mxu1 }
 0x2ea   :  { %v1229_v54 = vmul.f32 %v1150_v53, %v368_v50  ;;  %v1251_v57 = vrot.slane %v1230_v28, 4 }
 0x2ec   :  { %v1245_v59 = vrot.slane %v1229_v54, 4  ;;  %v1252_v36 = vadd.f32 %v1251_v57, %v1230_v28 }
 0x2ee   :  { %v8320_v24 = vpop.f32.mrf.mxu1  ;;  %v1246_v60 = vadd.f32 %v1245_v59, %v1229_v54  ;;  %v1253_v8 = vrot.slane %v1252_v36, 2 }
 0x2ef   :  { %v1232_v55 = vmul.f32 %v8320_v24, %v368_v50 }
 0x2f0   :  { %v1160_v5 = vpop.f32.mrf.mxu1  ;;  %v1247_v37 = vrot.slane %v1246_v60, 2  ;;  %v1254_v11 = vadd.f32 %v1253_v8, %v1252_v36 }
 0x2f1   :  { %v1231_v49 = vmul.f32 %v1160_v5, %v368_v50  ;;  %v1263_v9 = vrot.slane %v1232_v55, 4 }
 0x2f2   :  { %v8323_v12 = vpop.f32.mrf.mxu1  ;;  %v1248_v10 = vadd.f32 %v1247_v37, %v1246_v60  ;;  %v1255_v29 = vrot.slane %v1254_v11, 1 }
 0x2f3   :  { %v1257_v43 = vrot.slane %v1231_v49, 4  ;;  %v1264_v13 = vadd.f32 %v1263_v9, %v1232_v55  ;;  %v1234_v19 = vmul.f32 %v8323_v12, %v368_v50 }
 0x2f4   :  { %v1170_v52 = vpop.f32.mrf.mxu1  ;;  %v1249_v18 = vrot.slane %v1248_v10, 1  ;;  %v1256_v31 = vadd.f32 %v1255_v29, %v1254_v11 }
 0x2f5   :  { %v1233_v17 = vmul.f32 %v1170_v52, %v368_v50  ;;  %v1258_v22 = vadd.f32 %v1257_v43, %v1231_v49  ;;  %v1265_v25 = vrot.slane %v1264_v13, 2  ;;  %v1275_v15 = vrot.slane %v1234_v19, 4 }
 0x2f6   :  { %v8326_v20 = vpop.f32.mrf.mxu1  ;;  %v1250_v16 = vadd.f32 %v1249_v18, %v1248_v10  ;;  %v1342_v48 = vpack.c.bf16 %v1256_v31, %v1256_v31 }
 0x2f7   :  { %v1269_v42 = vrot.slane %v1233_v17, 4  ;;  %v1259_v39 = vrot.slane %v1258_v22, 2  ;;  %v1266_v2 = vadd.f32 %v1265_v25, %v1264_v13  ;;  %v1236_v27 = vmul.f32 %v8326_v20, %v368_v50 }
 0x2f8   :  { %v1180_v3 = vpop.f32.mrf.mxu1  ;;  %v1341_v38 = vpack.c.bf16 %v1250_v16, %v1250_v16  ;;  %v1276_v7 = vadd.f32 %v1275_v15, %v1234_v19  ;;  %v1397_v12 = vunpack.c.l.b16 %v1342_v48 }
 0x2f9   :  { %v1235_v58 = vmul.f32 %v1180_v3, %v368_v50  ;;  %v1270_v14 = vadd.f32 %v1269_v42, %v1233_v17  ;;  %v1260_v21 = vadd.f32 %v1259_v39, %v1258_v22  ;;  %v1267_v51 = vrot.slane %v1266_v2, 1 }
 0x2fa   :  { %v8329_v4 = vpop.f32.mrf.mxu1  ;;  %v1287_v28 = vrot.slane %v1236_v27, 4  ;;  %v1277_v50 = vrot.slane %v1276_v7, 2  ;;  %v1396_v60 = vunpack.c.l.b16 %v1341_v38 }
 0x2fb   :  { %v1238_v32 = vmul.f32 %v8329_v4, %v9929_v41  ;;  %v1281_v1 = vrot.slane %v1235_v58, 4  ;;  %v1271_v53 = vrot.slane %v1270_v14, 2  ;;  %v1261_v36 = vrot.slane %v1260_v21, 1 }
 0x2fc   :  { %v1190_v26 = vpop.f32.mrf.mxu1  ;;  %v9936_v52 = vadd.f32 %v1267_v51, %v1266_v2  ;;  %v1288_v20 = vadd.f32 %v1287_v28, %v1236_v27  ;;  %v1413_v19 = vsel %vm1412_vm2, %v1397_v12, %v1396_v60  ;;  %v1278_v22 = vadd.f32 %v1277_v50, %v1276_v7 }
 0x2fd   :  { %v1299_v47 = vrot.slane %v1238_v32, 4  ;;  %v1237_v23 = vmul.f32 %v1190_v26, %v9929_v41  ;;  %v1282_v54 = vadd.f32 %v1281_v1, %v1235_v58  ;;  %v1272_v10 = vadd.f32 %v1271_v53, %v1270_v14 }
 0x2fe   :  { %v8332_v33 = vpop.f32.mrf.mxu1  ;;  %v1262_v4 = vadd.f32 %v1261_v36, %v1260_v21  ;;  %v1344_v58 = vpack.c.bf16 %v9936_v52, %v9936_v52  ;;  %v1289_v16 = vrot.slane %v1288_v20, 2  ;;  %v1279_v27 = vrot.slane %v1278_v22, 1 }
 0x2ff   :  { %v1300_v63 = vadd.f32 %v1299_v47, %v1238_v32  ;;  %v1293_v34 = vrot.slane %v1237_v23, 4  ;;  %v1240_v35 = vmul.f32 %v8332_v33, %v9929_v41  ;;  %v1283_v43 = vrot.slane %v1282_v54, 2 }
 0x300   :  { %v1200_v45 = vpop.f32.mrf.mxu1  ;;  %v1273_v47 = vrot.slane %v1272_v10, 1  ;;  %v1343_v2 = vpack.c.bf16 %v1262_v4, %v1262_v4  ;;  %v1290_v48 = vadd.f32 %v1289_v16, %v1288_v20 }
 0x301   :  { %v1301_v61 = vrot.slane %v1300_v63, 2  ;;  %v1294_v62 = vadd.f32 %v1293_v34, %v1237_v23  ;;  %v1311_v6 = vrot.slane %v1240_v35, 4  ;;  %v1239_v24 = vmul.f32 %v1200_v45, %v9929_v41 }
 0x302   :  { %v1284_v15 = vadd.f32 %v1283_v43, %v1282_v54  ;;  %v1398_v54 = vunpack.c.l.b16 %v1343_v2 }
 0x303   :  { %v1295_v57 = vrot.slane %v1294_v62, 2  ;;  %v1312_v59 = vadd.f32 %v1311_v6, %v1240_v35  ;;  %v1302_v55 = vadd.f32 %v1301_v61, %v1300_v63  ;;  %v1305_v8 = vrot.slane %v1239_v24, 4 }
 0x304   :  { %v1274_v61 = vadd.f32 %v1273_v47, %v1272_v10  ;;  %v1415_v10 = vsel %vm1414_vm3, %v1398_v54, %v1413_v19 }
 0x305   :  { %v1296_v5 = vadd.f32 %v1295_v57, %v1294_v62  ;;  %v1313_v49 = vrot.slane %v1312_v59, 2  ;;  %v1306_v3 = vadd.f32 %v1305_v8, %v1239_v24  ;;  %v1303_v32 = vrot.slane %v1302_v55, 1 }
 0x306   :  { %v8335_v37 = vpop.f32.mrf.mxu1  ;;  %v1285_v62 = vrot.slane %v1284_v15, 1  ;;  %v1280_v8 = vadd.f32 %v1279_v27, %v1278_v22 }
 0x307   :  { %v1242_v9 = vmul.f32 %v8335_v37, %v9929_v41  ;;  %v1297_v13 = vrot.slane %v1296_v5, 1  ;;  %v1314_v29 = vadd.f32 %v1313_v49, %v1312_v59  ;;  %v1307_v25 = vrot.slane %v1306_v3, 2 }
 0x308   :  { %v1210_v11 = vpop.f32.mrf.mxu1  ;;  %v1304_v14 = vadd.f32 %v1303_v32, %v1302_v55  ;;  %v1286_v37 = vadd.f32 %v1285_v62, %v1284_v15 }
 0x309   :  { %v1323_v17 = vrot.slane %v1242_v9, 4  ;;  %v1241_v18 = vmul.f32 %v1210_v11, %v9929_v41  ;;  %v1298_v39 = vadd.f32 %v1297_v13, %v1296_v5  ;;  %v1308_v63 = vadd.f32 %v1307_v25, %v1306_v3 }
 0x30a   :  { %v1315_v35 = vrot.slane %v1314_v29, 1  ;;  %v1350_v57 = vpack.c.bf16 %v1304_v14, %v1304_v14  ;;  %v1345_v5 = vpack.c.bf16 %v1274_v61, %v1274_v61  ;;  %v1347_v32 = vpack.c.bf16 %v1286_v37, %v1286_v37 }
 0x30b   :  { %v1324_v26 = vadd.f32 %v1323_v17, %v1242_v9  ;;  %v1317_v42 = vrot.slane %v1241_v18, 4  ;;  %v1309_v38 = vrot.slane %v1308_v63, 1  ;;  %v1349_v51 = vpack.c.bf16 %v1298_v39, %v1298_v39 }
 0x30c   :  { %v1316_v24 = vadd.f32 %v1315_v35, %v1314_v29  ;;  %v1291_v9 = vrot.slane %v1290_v48, 1  ;;  %v1405_v13 = vunpack.c.l.b16 %v1350_v57  ;;  %v1400_v4 = vunpack.c.l.b16 %v1345_v5  ;;  %v7505_v57 = vld [vmem:[%s11205_s6] ss:$0 sm:$0xff] }
 0x30d   :  { %v8338_v33 = vpop.f32.mrf.mxu1  ;;  %v1325_v23 = vrot.slane %v1324_v26, 2  ;;  %v1318_v31 = vadd.f32 %v1317_v42, %v1241_v18  ;;  %v1310_v28 = vadd.f32 %v1309_v38, %v1308_v63  ;;  %v1346_v42 = vpack.c.bf16 %v1280_v8, %v1280_v8  ;;  %v8779_v8 = vld [vmem:[#allocation5 + $0x70] ss:$8 sps:$4 sm:$0xff]  }
 0x30e   :  { %v1244_v1 = vmul.f32 %v8338_v33, %v9929_v41  ;;  %v1352_v3 = vpack.c.bf16 %v1316_v24, %v1316_v24  ;;  %v1292_v47 = vadd.f32 %v1291_v9, %v1290_v48  ;;  %v1402_v2 = vunpack.c.l.b16 %v1347_v32  ;;  %v8781_v9 = vld [vmem:[#allocation5 + $0x74] ss:$8 sps:$4 sm:$0xff]   ;;  %v8785_v32 = vld [vmem:[#allocation5 + $0x50] ss:$8 sps:$4 sm:$0xff]  }
 0x30f   :  { %v1220_v34 = vpop.f32.mrf.mxu1  ;;  %v1326_v7 = vadd.f32 %v1325_v23, %v1324_v26  ;;  %v1319_v21 = vrot.slane %v1318_v31, 2  ;;  %v1351_v60 = vpack.c.bf16 %v1310_v28, %v1310_v28  ;;  %v1399_v26 = vunpack.c.l.b16 %v1344_v58  ;;  %1676 = vmatprep.subr.bf16.mxu0 %v8781_v9 }
 0x310   :  { %v1335_v6 = vrot.slane %v1244_v1, 4  ;;  %v1243_v45 = vmul.f32 %v1220_v34, %v9929_v41  ;;  %v1404_v41 = vunpack.c.l.b16 %v1349_v51  ;;  %v1407_v63 = vunpack.c.l.b16 %v1352_v3  ;;  %1677 = vmatpush1.bf16.msra.mxu0 %v8779_v8 }
 0x311   :  { %v1320_v53 = vadd.f32 %v1319_v21, %v1318_v31  ;;  %v1327_v36 = vrot.slane %v1326_v7, 1  ;;  %v1406_v20 = vunpack.c.l.b16 %v1351_v60  ;;  %v1417_v39 = vsel %vm1416_vm4, %v1399_v26, %v1415_v10  ;;  %v9348_v60 = vld [vmem:[%s11199_s0] sm:$0xff]  ;;  %v8793_v26 = vld [vmem:[#allocation5 + $0x34] ss:$8 sps:$4 sm:$0xff]  }
 0x312   :  { %v1336_v59 = vadd.f32 %v1335_v6, %v1244_v1  ;;  %v1329_v50 = vrot.slane %v1243_v45, 4  ;;  %v1426_v22 = vsel %vm1412_vm2, %v1405_v13, %v1404_v41  ;;  %v1419_v31 = vsel %vm1418_vm5, %v1400_v4, %v1417_v39  ;;  %v8787_v4 = vld [vmem:[#allocation5 + $0x54] ss:$8 sps:$4 sm:$0xff]  }
 0x313   :  { %v1321_v55 = vrot.slane %v1320_v53, 1  ;;  %v1328_v17 = vadd.f32 %v1327_v36, %v1326_v7  ;;  %v1427_v16 = vsel %vm1414_vm3, %v1406_v20, %v1426_v22  ;;  %v1401_v58 = vunpack.c.l.b16 %v1346_v42  ;;  %v8791_v42 = vld [vmem:[#allocation5 + $0x30] ss:$8 sps:$4 sm:$0xff]   ;;  %v8794_v22 = vld [vmem:[#allocation5 + $0x20] ss:$8 sps:$4 sm:$0xff]  }
 0x314   :  { %v1337_v12 = vrot.slane %v1336_v59, 2  ;;  %v1330_v49 = vadd.f32 %v1329_v50, %v1243_v45  ;;  %v1348_v14 = vpack.c.bf16 %v1292_v47, %v1292_v47  ;;  %v1428_v1 = vsel %vm1416_vm4, %v1407_v63, %v1427_v16  ;;  %v8796_v47 = vld [vmem:[#allocation5 + $0x24] ss:$8 sps:$4 sm:$0xff]   ;;  %v8799_v16 = vld [vmem:[#allocation5 + $0x14] ss:$8 sps:$4 sm:$0xff]  }
 0x315   :  { %v1322_v52 = vadd.f32 %v1321_v55, %v1320_v53  ;;  %v1354_v23 = vpack.c.bf16 %v1328_v17, %v1328_v17  ;;  %v1421_v7 = vsel %vm1420_vm6, %v1401_v58, %v1419_v31  ;;  %v8784_v17 = vld [vmem:[#allocation5 + $0x64] ss:$8 sps:$4 sm:$0xff]   ;;  %v8803_v39 = vld [vmem:[#allocation7 + $0x78] sm:$0xff]   ;;  %v8806_v31 = vld [vmem:[#allocation7 + $0x30] sm:$0xff]  }
 0x316   :  { %v1338_v43 = vadd.f32 %v1337_v12, %v1336_v59  ;;  %v1331_v11 = vrot.slane %v1330_v49, 2  ;;  %v1423_v61 = vsel %vm1422_vm7, %v1402_v2, %v1421_v7  ;;  %v1403_v6 = vunpack.c.l.b16 %v1348_v14  ;;  %v9349_v12 = vld [vmem:[%s11199_s0 + $0x8] sm:$0xff]  ;;  %1678 = vmatprep.subr.bf16.mxu0 %v8784_v17  ;;  %v8804_v63 = vld [vmem:[#allocation7 + $0x38] sm:$0xff]   ;;  %7948 = vmatprep.subr.bf16.mxu1 %v8803_v39  ;;  %v8809_v58 = vld [vmem:[#allocation7 + $0x60] sm:$0xff]  }
 0x317   :  { %v1353_v18 = vpack.c.bf16 %v1322_v52, %v1322_v52  ;;  %v1409_v21 = vunpack.c.l.b16 %v1354_v23  ;;  %v8805_v23 = vld [vmem:[#allocation7 + $0x70] sm:$0xff]   ;;  %v8807_v2 = vld [vmem:[#allocation7 + $0x68] sm:$0xff]   ;;  %v8810_v14 = vld [vmem:[#allocation7 + $0x20] sm:$0xff]  }
 0x318   :  { %v1339_v29 = vrot.slane %v1338_v43, 1  ;;  %v1332_v25 = vadd.f32 %v1331_v11, %v1330_v49  ;;  %v1425_v28 = vsel %vm1424_vm8, %v1403_v6, %v1423_v61 }
 0x319   :  { %v1408_v15 = vunpack.c.l.b16 %v1353_v18  ;;  %v8782_v18 = vld [vmem:[#allocation5 + $0x60] ss:$8 sps:$4 sm:$0xff]  }
 0x31a   :  { %v1340_v19 = vadd.f32 %v1339_v29, %v1338_v43  ;;  %v1333_v33 = vrot.slane %v1332_v25, 1  ;;  %1679 = vmatpush1.bf16.msra.mxu0 %v8782_v18  ;;  %v8790_v29 = vld [vmem:[#allocation5 + $0x44] ss:$8 sps:$4 sm:$0xff]  }
 0x31b   :  { %v1429_v35 = vsel %vm1418_vm5, %v1408_v15, %v1428_v1  ;;  %1680 = vmatprep.subr.bf16.mxu0 %v8787_v4  ;;  %v8797_v15 = vld [vmem:[#allocation5 + $0x10] ss:$8 sps:$4 sm:$0xff]  }
 0x31c   :  { %v1334_v27 = vadd.f32 %v1333_v33, %v1332_v25  ;;  %v1356_v34 = vpack.c.bf16 %v1340_v19, %v1340_v19  ;;  %v1430_v48 = vsel %vm1420_vm6, %v1409_v21, %v1429_v35  ;;  %v8788_v25 = vld [vmem:[#allocation5 + $0x40] ss:$8 sps:$4 sm:$0xff]   ;;  %v8802_v19 = vld [vmem:[#allocation5 + $0x4] ss:$8 sps:$4 sm:$0xff]   ;;  %v8811_v1 = vld [vmem:[#allocation7 + $0x58] sm:$0xff]  }
 0x31d   :  { %v8800_v33 = vld [vmem:[#allocation5] ss:$8 sps:$4 sm:$0xff]  }
 0x31e   :  { %v1355_v38 = vpack.c.bf16 %v1334_v27, %v1334_v27  ;;  %v1411_v45 = vunpack.c.l.b16 %v1356_v34  ;;  %1681 = vmatpush1.bf16.msra.mxu0 %v8785_v32  ;;  %v8808_v27 = vld [vmem:[#allocation7 + $0x28] sm:$0xff]   ;;  %v8812_v34 = vld [vmem:[#allocation7 + $0x18] sm:$0xff]  }
 0x31f   :  { %1682 = vmatprep.subr.bf16.mxu0 %v8790_v29 }
 0x320   :  { %v1410_v62 = vunpack.c.l.b16 %v1355_v38 }
 0x322   :  { %v1431_v51 = vsel %vm1422_vm7, %v1410_v62, %v1430_v48  ;;  %1683 = vmatpush1.bf16.msra.mxu0 %v8788_v25  ;;  %v7514_v48 = vld [vmem:[%s11206_s7] ss:$0 sm:$0xff] }
 0x323   :  { %v1432_v53 = vsel %vm1424_vm8, %v1411_v45, %v1431_v51  ;;  %1684 = vmatprep.subr.bf16.mxu0 %v8793_v26 }
 0x324   :  { %v1433_v54 = vpack.c.b16 %v1432_v53, %v1425_v28 }
 0x326   :  { %8356 = vmatmul.mubr.bf16.vlgmr.msra.gmra.mxu1 %v1433_v54  ;;  %1685 = vmatpush1.bf16.msra.mxu0 %v8791_v42  ;;  %v7515_v54 = vld [vmem:[%s11207_s8] ss:$0 sm:$0xff] }
 0x327   :  { %1686 = vmatprep.subr.bf16.mxu0 %v8796_v47  ;;  %7949 = vmatpush3.bf16.msra.mxu1 %v8804_v63  ;;  %v7532_v42 = vld [vmem:[%s11211_s12] ss:$0 sm:$0xff] }
 0x328   :  { %7950 = vmatprep.subr.bf16.mxu1 %v8805_v23 }
 0x32a   :  { %1687 = vmatpush1.bf16.msra.mxu0 %v8794_v22 }
 0x32b   :  { %1688 = vmatprep.subr.bf16.mxu0 %v8799_v16  ;;  %7951 = vmatpush3.bf16.msra.mxu1 %v8806_v31  ;;  %v8819_v31 = vld [vmem:[#allocation2 + $0x168] ss:$12 sps:$4 sm:$0xff]  }
 0x32c   :  { %7952 = vmatprep.subr.bf16.mxu1 %v8807_v2  ;;  %v8821_v2 = vld [vmem:[#allocation2 + $0x16c] ss:$12 sps:$4 sm:$0xff]  }
 0x32e   :  { %1689 = vmatpush1.bf16.msra.mxu0 %v8797_v15 }
 0x32f   :  { %1690 = vmatprep.subr.bf16.mxu0 %v8802_v19  ;;  %7953 = vmatpush3.bf16.msra.mxu1 %v8808_v27  ;;  %v8822_v27 = vld [vmem:[#allocation2 + $0x170] ss:$12 sps:$4 sm:$0xff]  }
 0x330   :  { %7954 = vmatprep.subr.bf16.mxu1 %v8809_v58 }
 0x332   :  { %1691 = vmatpush1.bf16.msra.mxu0 %v8800_v33 }
 0x333   :  { %7955 = vmatpush3.bf16.msra.mxu1 %v8810_v14  ;;  %2123 = vmatprep.subr.bf16.mxu0 %v8821_v2  ;;  %v9360_v2 = vld [vmem:[%s11200_s1 + $0x30] sm:$0xff] }
 0x334   :  { %7956 = vmatprep.subr.bf16.mxu1 %v8811_v1 }
 0x337   :  { %7957 = vmatpush3.bf16.msra.mxu1 %v8812_v34 }
 0x3e6   :  { %v1517_v59 = vpop.f32.mrf.mxu1 }
 0x3e7   :  { %v1518_v50 = vadd.f32 %v7505_v57, %v1517_v59 }
 0x3e8   :  { %v8357_v24 = vpop.f32.mrf.mxu1 }
 0x3e9   :  { %v1524_v36 = vadd.f32 %v9348_v60, %v1518_v50  ;;  %v8813_v60 = vld [vmem:[#allocation7 + $0x50] sm:$0xff]  }
 0x3ea   :  { %v1520_v55 = vpop.f32.mrf.mxu1  ;;  %7958 = vmatprep.subr.bf16.mxu1 %v8813_v60  ;;  %v8839_v60 = vld [vmem:[#allocation2 + $0xf0] ss:$12 sps:$4 sm:$0xff]  }
 0x3eb   :  { %v1521_v5 = vadd.f32 %v7505_v57, %v1520_v55  ;;  %1528 = vadd.xlane.f32.xlu0 %v1524_v36  ;;  %v8815_v55 = vld [vmem:[#allocation7 + $0x48] sm:$0xff]  }
 0x3ec   :  { %v8358_v37 = vpop.f32.mrf.mxu1 }
 0x3ed   :  { %v1525_v49 = vadd.f32 %v9349_v12, %v1521_v5  ;;  %v8816_v5 = vld [vmem:[#allocation7 + $0x8] sm:$0xff]   ;;  %v8817_v37 = vld [vmem:[#allocation7 + $0x40] sm:$0xff]  }
 0x3ee   :  { %v8818_v12 = vld [vmem:[#allocation7] sm:$0xff]  }
 0x3ef   :  { %1530 = vadd.xlane.f32.xlu0 %v1525_v49 }
 0x474   :  { %v1529_v41 = vpop.xlane.xlu0 %1528 }
 0x475   :  { %v1533_v52 = vmul.f32 0.0078125, %v1529_v41 }
 0x477   :  { %v9966_v10 = vsub.f32 %v1524_v36, %v1533_v52  ;;  %v8814_v36 = vld [vmem:[#allocation7 + $0x10] sm:$0xff]  }
 0x478   :  { %v1531_v20 = vpop.xlane.xlu0 %1530  ;;  %7959 = vmatpush3.bf16.msra.mxu1 %v8814_v36  ;;  %v8842_v36 = vld [vmem:[#allocation2 + $0xf8] ss:$12 sps:$4 sm:$0xff]  }
 0x479   :  { %v1534_v43 = vmul.f32 0.0078125, %v1531_v20  ;;  %v1537_v11 = vmul.f32 %v9966_v10, %v9966_v10  ;;  %7960 = vmatprep.subr.bf16.mxu1 %v8815_v55  ;;  %v8845_v55 = vld [vmem:[#allocation2 + $0xdc] ss:$12 sps:$4 sm:$0xff]  }
 0x47b   :  { %v9970_v13 = vsub.f32 %v1525_v49, %v1534_v43  ;;  %1539 = vadd.xlane.f32.xlu1 %v1537_v11  ;;  %v1584_v49 = vld [vmem:[%s11209_s10] sm:$0x3] }
 0x47c   :  { %7961 = vmatpush3.bf16.msra.mxu1 %v8816_v5  ;;  %v1593_v9 = vrot.slane %v1584_v49, %v9664_v46  ;;  %v1589_v41 = vrot.slane %v1584_v49, %v9654_v40  ;;  %v8843_v5 = vld [vmem:[#allocation2 + $0xd8] ss:$12 sps:$4 sm:$0xff]   ;;  %v8847_v49 = vld [vmem:[#allocation2 + $0xc0] ss:$12 sps:$4 sm:$0xff]  }
 0x47d   :  { %v1538_v3 = vmul.f32 %v9970_v13, %v9970_v13  ;;  %7962 = vmatprep.subr.bf16.mxu1 %v8817_v37  ;;  %v8846_v37 = vld [vmem:[#allocation2 + $0xe0] ss:$12 sps:$4 sm:$0xff]  }
 0x47f   :  { %1541 = vadd.xlane.f32.xlu1 %v1538_v3 }
 0x480   :  { %7963 = vmatpush3.bf16.msra.mxu1 %v8818_v12  ;;  %v8849_v12 = vld [vmem:[#allocation2 + $0xc4] ss:$12 sps:$4 sm:$0xff]  }
 0x481   :  { %8359 = vmatprep.subr.bf16.mxu1 %v11217_v56 }
 0x504   :  { %v1540_v35 = vpop.xlane.xlu1 %1539 }
 0x505   :  { %v1543_v38 = vmul.f32 0.0078125, %v1540_v35 }
 0x507   :  { %v1545_v7 = vadd.f32 1e-05, %v1543_v38 }
 0x508   :  { %v1542_v21 = vpop.xlane.xlu1 %1541 }
 0x509   :  { %9123 = vrsqrt.f32 %v1545_v7  ;;  %v1544_v61 = vmul.f32 0.0078125, %v1542_v21 }
 0x50b   :  { %v1546_v62 = vadd.f32 1e-05, %v1544_v61  ;;  %v8825_v61 = vld [vmem:[#allocation2 + $0x154] ss:$12 sps:$4 sm:$0xff]  }
 0x50d   :  { %9125 = vrsqrt.f32 %v1546_v62  ;;  %v8823_v62 = vld [vmem:[#allocation2 + $0x150] ss:$12 sps:$4 sm:$0xff]  }
 0x516   :  { %v9124_v6 = vpop.eup %9123 }
 0x517   :  { %v1549_v45 = vmul.f32 %v9124_v6, %v9966_v10  ;;  %v8826_v6 = vld [vmem:[#allocation2 + $0x158] ss:$12 sps:$4 sm:$0xff]  }
 0x519   :  { %v1557_v53 = vmul.f32 %v7514_v48, %v1549_v45  ;;  %v8829_v45 = vld [vmem:[#allocation2 + $0x13c] ss:$12 sps:$4 sm:$0xff]  }
 0x51a   :  { %v9126_v51 = vpop.eup %9125 }
 0x51b   :  { %v1550_v28 = vmul.f32 %v9126_v51, %v9970_v13  ;;  %v1565_v59 = vadd.f32 %v7515_v54, %v1557_v53  ;;  %v8830_v51 = vld [vmem:[#allocation2 + $0x140] ss:$12 sps:$4 sm:$0xff]   ;;  %v8833_v53 = vld [vmem:[#allocation2 + $0x124] ss:$12 sps:$4 sm:$0xff]  }
 0x51d   :  { %v1558_v57 = vmul.f32 %v7514_v48, %v1550_v28  ;;  %v8827_v48 = vld [vmem:[#allocation2 + $0x138] ss:$12 sps:$4 sm:$0xff]   ;;  %v8831_v28 = vld [vmem:[#allocation2 + $0x120] ss:$12 sps:$4 sm:$0xff]  }
 0x51f   :  { %v1566_v50 = vadd.f32 %v7515_v54, %v1558_v57  ;;  %v8834_v54 = vld [vmem:[#allocation2 + $0x128] ss:$12 sps:$4 sm:$0xff]   ;;  %v8837_v57 = vld [vmem:[#allocation2 + $0x10c] ss:$12 sps:$4 sm:$0xff]  }
 0x521   :  { %v1567_v24 = vpack.c.bf16 %v1566_v50, %v1565_v59 }
 0x523   :  { %1709 = vmatmul.mubr.bf16.vlgmr.msra.gmra.mxu0 %v1567_v24  ;;  %v8841_v24 = vld [vmem:[#allocation2 + $0xf4] ss:$12 sps:$4 sm:$0xff]  }
 0x524   :  { %2155 = vmatprep.mubr.bf16.mxu0 %v11215_v0  ;;  %2124 = vmatpush1.bf16.msra.mxu0 %v8819_v31  ;;  %v9359_v31 = vld [vmem:[%s11200_s1 + $0x38] sm:$0xff] }
 0x525   :  { %2125 = vmatprep.subr.bf16.mxu0 %v8825_v61 }
 0x528   :  { %2126 = vmatpush1.bf16.msra.mxu0 %v8823_v62 }
 0x529   :  { %2127 = vmatprep.subr.bf16.mxu0 %v8829_v45 }
 0x52c   :  { %2128 = vmatpush1.bf16.msra.mxu0 %v8827_v48 }
 0x52d   :  { %2129 = vmatprep.subr.bf16.mxu0 %v8833_v53 }
 0x530   :  { %2130 = vmatpush1.bf16.msra.mxu0 %v8831_v28 }
 0x531   :  { %2131 = vmatprep.subr.bf16.mxu0 %v8837_v57 }
 0x5e3   :  { %v1710_v8 = vpop.f32.mrf.mxu0 }
 0x5e4   :  { %v1711_v11 = vadd.f32 %v1710_v8, %v1589_v41  ;;  %v8850_v8 = vld [vmem:[#allocation2 + $0xc8] ss:$12 sps:$4 sm:$0xff]  }
 0x5e5   :  { %v1712_v52 = vpop.f32.mrf.mxu0 }
 0x5e6   :  { %v1713_v20 = vadd.f32 %v1712_v52, %v1593_v9  ;;  %v1719_v32 = vmax.f32 %v1711_v11, 0.0 }
 0x5e7   :  { %v1714_v10 = vpop.f32.mrf.mxu0 }
 0x5e8   :  { %v1715_v43 = vadd.f32 %v1714_v10, %v1589_v41  ;;  %v1720_v18 = vmax.f32 %v1713_v20, 0.0  ;;  %v9351_v41 = vld [vmem:[%s11201_s2] sm:$0xff] }
 0x5e9   :  { %v1716_v13 = vpop.f32.mrf.mxu0 }
 0x5ea   :  { %v1717_v3 = vadd.f32 %v1716_v13, %v1593_v9  ;;  %v1721_v17 = vmax.f32 %v1715_v43, 0.0  ;;  %v9350_v9 = vld [vmem:[%s11200_s1 + $0x78] sm:$0xff] }
 0x5ec   :  { %v1722_v4 = vmax.f32 %v1717_v3, 0.0  ;;  %v1723_v25 = vpack.c.bf16 %v1721_v17, %v1719_v32 }
 0x5ee   :  { %v1724_v29 = vpack.c.bf16 %v1722_v4, %v1720_v18  ;;  %v7549_v18 = vld [vmem:[%s11212_s13] ss:$0 sm:$0xff] }
 0x5f0   :  { %1892 = vmatprep.mubr.bf16.mxu1 %v1724_v29 }
 0x5f1   :  { %1893 = vmatmul.mubr.bf16.vlgmr.msra.gmra.mxu1 %v1723_v25  ;;  %v7550_v25 = vld [vmem:[%s11213_s14] ss:$0 sm:$0xff] }
 0x5f2   :  { %8375 = vmatprep.mubr.msk.bf16.mxu1 %vm9499_vm0, %v11217_v56  ;;  %8360 = vmatpush3.bf16.msra.mxu1 %v8822_v27  ;;  %v9361_v27 = vld [vmem:[%s11200_s1 + $0x28] sm:$0xff] }
 0x5f3   :  { %8361 = vmatprep.subr.bf16.mxu1 %v11217_v56 }
 0x5f6   :  { %8362 = vmatpush3.bf16.msra.mxu1 %v8826_v6 }
 0x5f7   :  { %8363 = vmatprep.subr.bf16.mxu1 %v11217_v56 }
 0x5fa   :  { %8364 = vmatpush3.bf16.msra.mxu1 %v8830_v51 }
 0x5fb   :  { %8365 = vmatprep.subr.bf16.mxu1 %v11217_v56 }
 0x5fe   :  { %8366 = vmatpush3.bf16.msra.mxu1 %v8834_v54 }
 0x5ff   :  { %8367 = vmatprep.subr.bf16.mxu1 %v11217_v56 }
 0x6b1   :  { %v7964_v26 = vpop.f32.mrf.mxu1 }
 0x6b3   :  { %v7965_v47 = vpop.f32.mrf.mxu1 }
 0x6b4   :  { %v7966_v22 = vadd.f32 %v7965_v47, %v7964_v26 }
 0x6b5   :  { %v7967_v16 = vpop.f32.mrf.mxu1 }
 0x6b6   :  { %v1895_v15 = vadd.f32 %v7966_v22, %v7532_v42 }
 0x6b7   :  { %v7968_v19 = vpop.f32.mrf.mxu1 }
 0x6b8   :  { %v7969_v33 = vadd.f32 %v7968_v19, %v7967_v16  ;;  %v1901_v39 = vadd.f32 %v1895_v15, %v1565_v59  ;;  %v8835_v59 = vld [vmem:[#allocation2 + $0x108] ss:$12 sps:$4 sm:$0xff]   ;;  %v9354_v19 = vld [vmem:[%s11200_s1 + $0x60] sm:$0xff] }
 0x6b9   :  { %2132 = vmatpush1.bf16.msra.mxu0 %v8835_v59  ;;  %v9352_v16 = vld [vmem:[%s11200_s1 + $0x70] sm:$0xff]  ;;  %v9353_v15 = vld [vmem:[%s11200_s1 + $0x68] sm:$0xff] }
 0x6ba   :  { %v1898_v63 = vadd.f32 %v7969_v33, %v7532_v42  ;;  %1905 = vadd.xlane.f32.xlu0 %v1901_v39  ;;  %2133 = vmatprep.subr.bf16.mxu0 %v8841_v24  ;;  %v9355_v33 = vld [vmem:[%s11200_s1 + $0x58] sm:$0xff] }
 0x6bc   :  { %v1902_v23 = vadd.f32 %v1898_v63, %v1566_v50  ;;  %v8838_v50 = vld [vmem:[#allocation2 + $0x110] ss:$12 sps:$4 sm:$0xff]   ;;  %v9357_v63 = vld [vmem:[%s11200_s1 + $0x48] sm:$0xff] }
 0x6bd   :  { %8368 = vmatpush3.bf16.msra.mxu1 %v8838_v50  ;;  %2134 = vmatpush1.bf16.msra.mxu0 %v8839_v60 }
 0x6be   :  { %1907 = vadd.xlane.f32.xlu1 %v1902_v23  ;;  %8369 = vmatprep.subr.bf16.mxu1 %v11217_v56 }
 0x6bf   :  { %2135 = vmatprep.subr.bf16.mxu0 %v8845_v55 }
 0x6c1   :  { %8370 = vmatpush3.bf16.msra.mxu1 %v8842_v36  ;;  %2136 = vmatpush1.bf16.msra.mxu0 %v8843_v5 }
 0x6c2   :  { %8371 = vmatprep.subr.bf16.mxu1 %v11217_v56  ;;  %2137 = vmatprep.subr.bf16.mxu0 %v8849_v12 }
 0x6c5   :  { %8372 = vmatpush3.bf16.msra.mxu1 %v8846_v37  ;;  %2138 = vmatpush1.bf16.msra.mxu0 %v8847_v49 }
 0x6c6   :  { %8373 = vmatprep.subr.bf16.mxu1 %v11217_v56  ;;  %8379 = vmatprep.subr.mxu0 %v9350_v9 }
 0x6c9   :  { %8374 = vmatpush3.bf16.msra.mxu1 %v8850_v8 }
 0x6ca   :  { %8435 = vmatprep.subr.mxu1 %v9351_v41 }
 0x743   :  { %v1906_v58 = vpop.xlane.xlu0 %1905 }
 0x744   :  { %v1909_v14 = vmul.f32 0.0078125, %v1906_v58  ;;  %v9362_v58 = vld [vmem:[%s11200_s1 + $0x20] sm:$0xff] }
 0x746   :  { %v9995_v1 = vsub.f32 %v1901_v39, %v1909_v14  ;;  %v9356_v39 = vld [vmem:[%s11200_s1 + $0x50] sm:$0xff]  ;;  %v9363_v14 = vld [vmem:[%s11200_s1 + $0x18] sm:$0xff] }
 0x747   :  { %v1908_v34 = vpop.xlane.xlu1 %1907 }
 0x748   :  { %v1910_v35 = vmul.f32 0.0078125, %v1908_v34  ;;  %v1913_v38 = vmul.f32 %v9995_v1, %v9995_v1  ;;  %v9365_v34 = vld [vmem:[%s11200_s1 + $0x8] sm:$0xff] }
 0x74a   :  { %v9999_v7 = vsub.f32 %v1902_v23, %v1910_v35  ;;  %1915 = vadd.xlane.f32.xlu0 %v1913_v38  ;;  %v9358_v23 = vld [vmem:[%s11200_s1 + $0x40] sm:$0xff] }
 0x74b   :  { %v9366_v35 = vld [vmem:[%s11200_s1] sm:$0xff] }
 0x74c   :  { %v1914_v21 = vmul.f32 %v9999_v7, %v9999_v7  ;;  %v10078_v38 = vld [vmem:[%s11203_s4 + $0x3] sm:$0x7] }
 0x74d   :  { %v1987_v28 = vrot.slane %v10078_v38, %v9664_v46 }
 0x74e   :  { %1917 = vadd.xlane.f32.xlu1 %v1914_v21 }
 0x7d3   :  { %v1916_v52 = vpop.xlane.xlu0 %1915 }
 0x7d4   :  { %v1919_v10 = vmul.f32 0.0078125, %v1916_v52 }
 0x7d6   :  { %v1921_v20 = vadd.f32 1e-05, %v1919_v10 }
 0x7d7   :  { %v1918_v43 = vpop.xlane.xlu1 %1917 }
 0x7d8   :  { %9127 = vrsqrt.f32 %v1921_v20  ;;  %v1920_v11 = vmul.f32 0.0078125, %v1918_v43 }
 0x7da   :  { %v1922_v13 = vadd.f32 1e-05, %v1920_v11 }
 0x7dc   :  { %9129 = vrsqrt.f32 %v1922_v13 }
 0x7e5   :  { %v9128_v3 = vpop.eup %9127 }
 0x7e6   :  { %v1925_v17 = vmul.f32 %v9128_v3, %v9995_v1  ;;  %v9364_v1 = vld [vmem:[%s11200_s1 + $0x10] sm:$0xff] }
 0x7e8   :  { %v1933_v29 = vmul.f32 %v7549_v18, %v1925_v17 }
 0x7e9   :  { %v9130_v4 = vpop.eup %9129 }
 0x7ea   :  { %v1926_v32 = vmul.f32 %v9130_v4, %v9999_v7  ;;  %v10023_v42 = vadd.f32 %v7550_v25, %v1933_v29  ;;  %v1983_v7 = vrot.slane %v10078_v38, %v9654_v40 }
 0x7ec   :  { %v1934_v26 = vmul.f32 %v7549_v18, %v1926_v32 }
 0x7ee   :  { %v10025_v47 = vadd.f32 %v7550_v25, %v1934_v26 }
 0x7f0   :  { %v1943_v22 = vpack.c.bf16 %v10025_v47, %v10023_v42 }
 0x7f2   :  { %2156 = vmatmul.mubr.bf16.vlgmr.msra.gmra.mxu0 %v1943_v22  ;;  %8376 = vmatmul.mubr.bf16.vlgmr.msra.gmra.mxu1 %v1943_v22 }
 0x7f3   :  { %8380 = vmatpush3.msra.mxu0 %v9350_v9  ;;  %8436 = vmatpush3.msra.mxu1 %v9351_v41 }
 0x7f4   :  { %8381 = vmatprep.subr.mxu0 %v9352_v16  ;;  %8461 = vmatprep.subr.bf16.mxu1 %v11217_v56 }
 0x7f5   :  { %8382 = vmatpush3.msra.mxu0 %v9352_v16 }
 0x7f6   :  { %8383 = vmatprep.subr.mxu0 %v9353_v15 }
 0x7f7   :  { %8384 = vmatpush3.msra.mxu0 %v9353_v15 }
 0x7f8   :  { %8385 = vmatprep.subr.mxu0 %v9354_v19 }
 0x7f9   :  { %8386 = vmatpush3.msra.mxu0 %v9354_v19 }
 0x7fa   :  { %8387 = vmatprep.subr.mxu0 %v9355_v33 }
 0x7fb   :  { %8388 = vmatpush3.msra.mxu0 %v9355_v33 }
 0x7fc   :  { %8389 = vmatprep.subr.mxu0 %v9356_v39 }
 0x7fd   :  { %8390 = vmatpush3.msra.mxu0 %v9356_v39 }
 0x7fe   :  { %8391 = vmatprep.subr.mxu0 %v9357_v63 }
 0x7ff   :  { %8392 = vmatpush3.msra.mxu0 %v9357_v63 }
 0x800   :  { %8393 = vmatprep.subr.mxu0 %v9358_v23 }
 0x801   :  { %8394 = vmatpush3.msra.mxu0 %v9358_v23 }
 0x802   :  { %8395 = vmatprep.subr.mxu0 %v9359_v31 }
 0x803   :  { %8396 = vmatpush3.msra.mxu0 %v9359_v31 }
 0x804   :  { %8397 = vmatprep.subr.mxu0 %v9360_v2 }
 0x805   :  { %8398 = vmatpush3.msra.mxu0 %v9360_v2 }
 0x806   :  { %8399 = vmatprep.subr.mxu0 %v9361_v27 }
 0x807   :  { %8400 = vmatpush3.msra.mxu0 %v9361_v27 }
 0x808   :  { %8401 = vmatprep.subr.mxu0 %v9362_v58 }
 0x809   :  { %8402 = vmatpush3.msra.mxu0 %v9362_v58 }
 0x80a   :  { %8403 = vmatprep.subr.mxu0 %v9363_v14 }
 0x80b   :  { %8404 = vmatpush3.msra.mxu0 %v9363_v14 }
 0x80c   :  { %8405 = vmatprep.subr.mxu0 %v9364_v1 }
 0x80d   :  { %8406 = vmatpush3.msra.mxu0 %v9364_v1 }
 0x80e   :  { %8407 = vmatprep.subr.mxu0 %v9365_v34 }
 0x80f   :  { %8408 = vmatpush3.msra.mxu0 %v9365_v34 }
 0x810   :  { %8409 = vmatprep.subr.mxu0 %v9366_v35 }
 0x811   :  { %8410 = vmatpush3.msra.mxu0 %v9366_v35 }
 0x8b2   :  { %v2157_v21 = vpop.f32.mrf.mxu0  ;;  %v10082_v61 = vpop.f32.mrf.mxu1 }
 0x8b3   :  { %v2158_v62 = vadd.f32 %v2157_v21, %v1983_v7 }
 0x8b4   :  { %v2159_v6 = vpop.f32.mrf.mxu0  ;;  %v8377_v45 = vpop.f32.mrf.mxu1 }
 0x8b5   :  { %v2209_v48 = vcombine.high %v2158_v62, %v2158_v62  ;;  %v2216_v51 = vrot.slane %v2158_v62, %v9661_v44  ;;  %v2160_v37 = vadd.f32 %v2159_v6, %v1987_v28 }
 0x8b6   :  { %v2161_v53 = vpop.f32.mrf.mxu0  ;;  %v10087_v54 = vpop.f32.mrf.mxu1 }
 0x8b7   :  { %v2223_v57 = vrot.slane %v2209_v48, %v9661_v44  ;;  %v2224_v59 = vcombine.high %v2216_v51, %v2216_v51  ;;  %v2232_v50 = vrot.slane %v2216_v51, %v9661_v44  ;;  %v2162_v55 = vadd.f32 %v2161_v53, %v1983_v7 }
 0x8b8   :  { %v8378_v24 = vpop.f32.mrf.mxu1  ;;  %v2163_v33 = vpop.f32.mrf.mxu0 }
 0x8b9   :  { %v2246_v60 = vrot.slane %v2224_v59, %v9661_v44  ;;  %v2254_v36 = vcombine.high %v2232_v50, %v2232_v50  ;;  %v2239_v5 = vrot.slane %v2223_v57, %v9661_v44  ;;  %v2310_v12 = vrot.slane %v2232_v50, %v9654_v40 }
 0x8ba   :  { %v2225_v49 = vcombine.high %v2223_v57, %v2223_v57  ;;  %v2265_v10 = vrot.slane %v2162_v55, %v9661_v44  ;;  %v2258_v18 = vcombine.high %v2162_v55, %v2162_v55  ;;  %v2164_v27 = vadd.f32 %v2163_v33, %v1987_v28 }
 0x8bb   :  { %v2314_v8 = vrot.slane %v2246_v60, %v9654_v40  ;;  %v2318_v9 = vrot.slane %v2254_v36, %v9654_v40  ;;  %v2256_v41 = vcombine.high %v2246_v60, %v2246_v60  ;;  %v2387_v52 = vmul.f32 %v2310_v12, %v2160_v37 }
 0x8bc   :  { %v2326_v13 = vrot.slane %v2239_v5, %v9654_v40  ;;  %v2253_v3 = vrot.slane %v2225_v49, %v9661_v44  ;;  %v2255_v17 = vcombine.high %v2239_v5, %v2239_v5  ;;  %v2273_v4 = vcombine.high %v2265_v10, %v2265_v10 }
 0x8bd   :  { %v2388_v20 = vmul.f32 %v2314_v8, %v2160_v37  ;;  %v2389_v43 = vmul.f32 %v2318_v9, %v2160_v37  ;;  %v2322_v11 = vrot.slane %v2256_v41, %v9654_v40  ;;  %8411 = vmatprep.mubr.f32.mxu0 %v2387_v52  ;;  %v2281_v26 = vrot.slane %v2265_v10, %v9661_v44 }
 0x8be   :  { %v2330_v29 = vrot.slane %v2253_v3, %v9654_v40  ;;  %v2257_v25 = vcombine.high %v2253_v3, %v2253_v3  ;;  %v2391_v22 = vmul.f32 %v2326_v13, %v2160_v37  ;;  %v2334_v16 = vrot.slane %v2255_v17, %v9654_v40 }
 0x8bf   :  { %8412 = vmatmul.mubr.f32.vlgmr.msra.gmra.mxu0 %v2388_v20  ;;  %v2390_v32 = vmul.f32 %v2322_v11, %v2160_v37  ;;  %v2272_v15 = vrot.slane %v2258_v18, %v9661_v44  ;;  %v2295_v19 = vrot.slane %v2273_v4, %v9661_v44  ;;  %v2303_v23 = vcombine.high %v2281_v26, %v2281_v26 }
 0x8c0   :  { %8414 = vmatprep.mubr.f32.mxu0 %v2389_v43  ;;  %v2392_v39 = vmul.f32 %v2330_v29, %v2160_v37  ;;  %v2338_v63 = vrot.slane %v2257_v25, %v9654_v40  ;;  %v2393_v31 = vmul.f32 %v2334_v16, %v2160_v37  ;;  %v2342_v2 = vrot.slane %v2281_v26, %v9654_v40 }
 0x8c1   :  { %v2274_v58 = vcombine.high %v2272_v15, %v2272_v15  ;;  %v2346_v1 = vrot.slane %v2295_v19, %v9654_v40  ;;  %v2305_v34 = vcombine.high %v2295_v19, %v2295_v19  ;;  %v2288_v35 = vrot.slane %v2272_v15, %v9661_v44 }
 0x8c2   :  { %v2394_v14 = vmul.f32 %v2338_v63, %v2160_v37  ;;  %v2395_v7 = vmul.f32 %v2342_v2, %v2164_v27  ;;  %v2350_v21 = vrot.slane %v2303_v23, %v9654_v40 }
 0x8c3   :  { %8415 = vmatmul.mubr.f32.gmra.mxu0 %v2390_v32  ;;  %v2396_v62 = vmul.f32 %v2346_v1, %v2164_v27  ;;  %v2354_v6 = vrot.slane %v2305_v34, %v9654_v40  ;;  %v2302_v45 = vrot.slane %v2274_v58, %v9661_v44  ;;  %v2358_v51 = vrot.slane %v2288_v35, %v9654_v40 }
 0x8c4   :  { %8417 = vmatprep.mubr.f32.mxu0 %v2391_v22  ;;  %v2397_v48 = vmul.f32 %v2350_v21, %v2164_v27  ;;  %v2304_v28 = vcombine.high %v2288_v35, %v2288_v35 }
 0x8c5   :  { %v2398_v53 = vmul.f32 %v2354_v6, %v2164_v27  ;;  %v2362_v57 = vrot.slane %v2302_v45, %v9654_v40  ;;  %v2306_v59 = vcombine.high %v2302_v45, %v2302_v45  ;;  %v2399_v50 = vmul.f32 %v2358_v51, %v2164_v27 }
 0x8c6   :  { %v2366_v24 = vrot.slane %v2304_v28, %v9654_v40 }
 0x8c7   :  { %8418 = vmatmul.mubr.f32.gmra.mxu0 %v2392_v39  ;;  %v2400_v60 = vmul.f32 %v2362_v57, %v2164_v27  ;;  %v2370_v36 = vrot.slane %v2306_v59, %v9654_v40 }
 0x8c8   :  { %8420 = vmatprep.mubr.f32.mxu0 %v2393_v31  ;;  %v2401_v55 = vmul.f32 %v2366_v24, %v2164_v27 }
 0x8c9   :  { %v2402_v5 = vmul.f32 %v2370_v36, %v2164_v27 }
 0x8cb   :  { %8421 = vmatmul.mubr.f32.gmra.mxu0 %v2394_v14 }
 0x8cc   :  { %8423 = vmatprep.mubr.f32.mxu0 %v2395_v7 }
 0x8cf   :  { %8424 = vmatmul.mubr.f32.gmra.mxu0 %v2396_v62 }
 0x8d0   :  { %8426 = vmatprep.mubr.f32.mxu0 %v2397_v48 }
 0x8d3   :  { %8427 = vmatmul.mubr.f32.gmra.mxu0 %v2398_v53 }
 0x8d4   :  { %8429 = vmatprep.mubr.f32.mxu0 %v2399_v50 }
 0x8d7   :  { %8430 = vmatmul.mubr.f32.gmra.mxu0 %v2400_v60 }
 0x8d8   :  { %8432 = vmatprep.mubr.f32.mxu0 %v2401_v55 }
 0x8db   :  { %8433 = vmatmul.mubr.f32.gmra.mxu0 %v2402_v5 }
 0x8dc   :  { %3538 = vmatprep.mubr.bf16.mxu0 %v11215_v0 }
 0x97f   :  { %v8413_v37 = vpop.f32.mrf.mxu0 }
 0x980   :  { %v2549_v12 = vmul.f32 0.25, %v8413_v37 }
 0x981   :  { %v2469_v49 = vpop.f32.mrf.mxu0 }
 0x982   :  { %v2571_v8 = vsel %vm731_vm1, %v2549_v12, -inf  ;;  %v2548_v9 = vmul.f32 0.25, %v2469_v49 }
 0x983   :  { %v2572_v41 = vrot.slane %v2571_v8, 4  ;;  %v8416_v52 = vpop.f32.mrf.mxu0 }
 0x984   :  { %v2564_v10 = vsel %vm731_vm1, %v2548_v9, -inf  ;;  %v10119_v20 = vmul.f32 0.25, %v8416_v52 }
 0x985   :  { %v2573_v43 = vmax.f32 %v2571_v8, %v2572_v41  ;;  %v2565_v11 = vrot.slane %v2564_v10, 4  ;;  %v2479_v13 = vpop.f32.mrf.mxu0 }
 0x986   :  { %v2585_v3 = vsel %vm731_vm1, %v10119_v20, -inf  ;;  %v10123_v17 = vmul.f32 0.25, %v2479_v13 }
 0x987   :  { %v2574_v18 = vrot.slane %v2573_v43, 2  ;;  %v2566_v4 = vmax.f32 %v2564_v10, %v2565_v11  ;;  %v2586_v32 = vrot.slane %v2585_v3, 4  ;;  %v8419_v29 = vpop.f32.mrf.mxu0 }
 0x988   :  { %v2578_v25 = vsel %vm731_vm1, %v10123_v17, -inf  ;;  %v10127_v26 = vmul.f32 0.25, %v8419_v29 }
 0x989   :  { %v2575_v22 = vmax.f32 %v2573_v43, %v2574_v18  ;;  %v2567_v16 = vrot.slane %v2566_v4, 2  ;;  %v2587_v15 = vmax.f32 %v2585_v3, %v2586_v32  ;;  %v2579_v19 = vrot.slane %v2578_v25, 4  ;;  %v2489_v33 = vpop.f32.mrf.mxu0 }
 0x98a   :  { %v2599_v39 = vsel %vm731_vm1, %v10127_v26, -inf  ;;  %v10131_v63 = vmul.f32 0.25, %v2489_v33 }
 0x98b   :  { %v2576_v23 = vrot.slane %v2575_v22, 1  ;;  %v2568_v31 = vmax.f32 %v2566_v4, %v2567_v16  ;;  %v2588_v2 = vrot.slane %v2587_v15, 2  ;;  %v2580_v27 = vmax.f32 %v2578_v25, %v2579_v19  ;;  %v8422_v58 = vpop.f32.mrf.mxu0 }
 0x98c   :  { %v2600_v14 = vrot.slane %v2599_v39, 4  ;;  %v2592_v1 = vsel %vm731_vm1, %v10131_v63, -inf  ;;  %v10135_v34 = vmul.f32 0.25, %v8422_v58 }
 0x98d   :  { %v2577_v35 = vmax.f32 %v2575_v22, %v2576_v23  ;;  %v2569_v7 = vrot.slane %v2568_v31, 1  ;;  %v2589_v21 = vmax.f32 %v2587_v15, %v2588_v2  ;;  %v2581_v62 = vrot.slane %v2580_v27, 2  ;;  %v2499_v6 = vpop.f32.mrf.mxu0 }
 0x98e   :  { %v2601_v45 = vmax.f32 %v2599_v39, %v2600_v14  ;;  %v2593_v48 = vrot.slane %v2592_v1, 4  ;;  %v2613_v51 = vsel %vm731_vm1, %v10135_v34, -inf  ;;  %v10139_v28 = vmul.f32 0.25, %v2499_v6 }
 0x98f   :  { %v2677_v53 = vsub.f32 %v2549_v12, %v2577_v35  ;;  %v2570_v57 = vmax.f32 %v2568_v31, %v2569_v7  ;;  %v2590_v59 = vrot.slane %v2589_v21, 1  ;;  %v2582_v50 = vmax.f32 %v2580_v27, %v2581_v62  ;;  %v8425_v24 = vpop.f32.mrf.mxu0 }
 0x990   :  { %v2602_v60 = vrot.slane %v2601_v45, 2  ;;  %v2594_v36 = vmax.f32 %v2592_v1, %v2593_v48  ;;  %v2614_v55 = vrot.slane %v2613_v51, 4  ;;  %v2606_v5 = vsel %vm731_vm1, %v10139_v28, -inf }
 0x991   :  { %v2694_v37 = vmul.f32 1.442695, %v2677_v53  ;;  %v2676_v49 = vsub.f32 %v2548_v9, %v2570_v57  ;;  %v2591_v8 = vmax.f32 %v2589_v21, %v2590_v59  ;;  %v2583_v41 = vrot.slane %v2582_v50, 1  ;;  %v2509_v52 = vpop.f32.mrf.mxu0 }
 0x992   :  { %v2603_v10 = vmax.f32 %v2601_v45, %v2602_v60  ;;  %v2595_v43 = vrot.slane %v2594_v36, 2  ;;  %v2615_v11 = vmax.f32 %v2613_v51, %v2614_v55  ;;  %v2607_v13 = vrot.slane %v2606_v5, 4 }
 0x993   :  { %9131 = vpow2.f32 %v2694_v37  ;;  %v2692_v12 = vmul.f32 1.442695, %v2676_v49  ;;  %v2679_v3 = vsub.f32 %v10119_v20, %v2591_v8  ;;  %v2584_v18 = vmax.f32 %v2582_v50, %v2583_v41  ;;  %v8428_v22 = vpop.f32.mrf.mxu0 }
 0x994   :  { %v2604_v4 = vrot.slane %v2603_v10, 1  ;;  %v2596_v32 = vmax.f32 %v2594_v36, %v2595_v43  ;;  %v2616_v29 = vrot.slane %v2615_v11, 2  ;;  %v2608_v25 = vmax.f32 %v2606_v5, %v2607_v13 }
 0x995   :  { %9133 = vpow2.f32 %v2692_v12  ;;  %v2698_v16 = vmul.f32 1.442695, %v2679_v3  ;;  %v2678_v9 = vsub.f32 %v10123_v17, %v2584_v18  ;;  %v10145_v15 = vmul.f32 0.25, %v8425_v24  ;;  %v2519_v35 = vpop.f32.mrf.mxu0 }
 0x996   :  { %v2605_v19 = vmax.f32 %v2603_v10, %v2604_v4  ;;  %v2597_v33 = vrot.slane %v2596_v32, 1  ;;  %v2617_v39 = vmax.f32 %v2615_v11, %v2616_v29  ;;  %v2609_v23 = vrot.slane %v2608_v25, 2 }
 0x997   :  { %9135 = vpow2.f32 %v2698_v16  ;;  %v2696_v31 = vmul.f32 1.442695, %v2678_v9  ;;  %v2627_v20 = vsel %vm731_vm1, %v10145_v15, -inf  ;;  %v10149_v2 = vmul.f32 0.25, %v2509_v52  ;;  %v8431_v5 = vpop.f32.mrf.mxu0 }
 0x998   :  { %v2681_v27 = vsub.f32 %v10127_v26, %v2605_v19  ;;  %v2598_v58 = vmax.f32 %v2596_v32, %v2597_v33  ;;  %v2618_v14 = vrot.slane %v2617_v39, 1  ;;  %v2610_v1 = vmax.f32 %v2608_v25, %v2609_v23 }
 0x999   :  { %9137 = vpow2.f32 %v2696_v31  ;;  %v2628_v17 = vrot.slane %v2627_v20, 4  ;;  %v2620_v7 = vsel %vm731_vm1, %v10149_v2, -inf  ;;  %v10154_v21 = vmul.f32 0.25, %v8428_v22 }
 0x99a   :  { %v2702_v62 = vmul.f32 1.442695, %v2681_v27  ;;  %v2680_v6 = vsub.f32 %v10131_v63, %v2598_v58  ;;  %v2619_v45 = vmax.f32 %v2617_v39, %v2618_v14  ;;  %v2611_v48 = vrot.slane %v2610_v1, 1 }
 0x99b   :  { %v2629_v51 = vmax.f32 %v2627_v20, %v2628_v17  ;;  %v2621_v53 = vrot.slane %v2620_v7, 4  ;;  %v2641_v26 = vsel %vm731_vm1, %v10154_v21, -inf  ;;  %v10159_v57 = vmul.f32 0.25, %v2519_v35 }
 0x99c   :  { %9139 = vpow2.f32 %v2702_v62  ;;  %v2700_v59 = vmul.f32 1.442695, %v2680_v6  ;;  %v2683_v50 = vsub.f32 %v10135_v34, %v2619_v45  ;;  %v2612_v24 = vmax.f32 %v2610_v1, %v2611_v48 }
 0x99d   :  { %v2630_v60 = vrot.slane %v2629_v51, 2  ;;  %v2622_v36 = vmax.f32 %v2620_v7, %v2621_v53  ;;  %v2642_v55 = vrot.slane %v2641_v26, 4  ;;  %v2634_v63 = vsel %vm731_vm1, %v10159_v57, -inf }
 0x99e   :  { %9141 = vpow2.f32 %v2700_v59  ;;  %v2706_v37 = vmul.f32 1.442695, %v2683_v50  ;;  %v2682_v49 = vsub.f32 %v10139_v28, %v2612_v24  ;;  %v2635_v8 = vrot.slane %v2634_v63, 4 }
 0x99f   :  { %v2631_v41 = vmax.f32 %v2629_v51, %v2630_v60  ;;  %v2623_v52 = vrot.slane %v2622_v36, 2  ;;  %v2643_v10 = vmax.f32 %v2641_v26, %v2642_v55  ;;  %v10167_v13 = vmul.f32 0.25, %v8431_v5 }
 0x9a0   :  { %v10165_v43 = vpop.eup %9131  ;;  %9143 = vpow2.f32 %v2706_v37  ;;  %v2704_v34 = vmul.f32 1.442695, %v2682_v49  ;;  %v2636_v11 = vmax.f32 %v2634_v63, %v2635_v8 }
 0x9a1   :  { %v2731_v12 = vsel %vm731_vm1, %v10165_v43, 0.0  ;;  %v2632_v3 = vrot.slane %v2631_v41, 1  ;;  %v2624_v18 = vmax.f32 %v2622_v36, %v2623_v52  ;;  %v2644_v4 = vrot.slane %v2643_v10, 2 }
 0x9a2   :  { %v10171_v32 = vpop.eup %9133  ;;  %v2732_v28 = vrot.slane %v2731_v12, 4  ;;  %9145 = vpow2.f32 %v2704_v34  ;;  %v2637_v29 = vrot.slane %v2636_v11, 2  ;;  %v2655_v31 = vsel %vm731_vm1, %v10167_v13, -inf }
 0x9a3   :  { %v2724_v25 = vsel %vm731_vm1, %v10171_v32, 0.0  ;;  %v2633_v22 = vmax.f32 %v2631_v41, %v2632_v3  ;;  %v2625_v16 = vrot.slane %v2624_v18, 1  ;;  %v2645_v9 = vmax.f32 %v2643_v10, %v2644_v4 }
 0x9a4   :  { %v10175_v19 = vpop.eup %9135  ;;  %v2733_v33 = vadd.f32 %v2732_v28, %v2731_v12  ;;  %v2725_v39 = vrot.slane %v2724_v25, 4  ;;  %v2638_v23 = vmax.f32 %v2636_v11, %v2637_v29  ;;  %v2656_v50 = vrot.slane %v2655_v31, 4 }
 0x9a5   :  { %v2745_v20 = vsel %vm731_vm1, %v10175_v19, 0.0  ;;  %v2685_v27 = vsub.f32 %v10145_v15, %v2633_v22  ;;  %v2626_v58 = vmax.f32 %v2624_v18, %v2625_v16  ;;  %v2646_v14 = vrot.slane %v2645_v9, 1  ;;  %v2529_v15 = vpop.f32.mrf.mxu0 }
 0x9a6   :  { %v10182_v1 = vpop.eup %9137  ;;  %v2734_v35 = vrot.slane %v2733_v33, 2  ;;  %v2726_v17 = vadd.f32 %v2725_v39, %v2724_v25  ;;  %v2746_v7 = vrot.slane %v2745_v20, 4  ;;  %v2639_v62 = vrot.slane %v2638_v23, 1 }
 0x9a7   :  { %v2738_v6 = vsel %vm731_vm1, %v10182_v1, 0.0  ;;  %v2710_v45 = vmul.f32 1.442695, %v2685_v27  ;;  %v2684_v48 = vsub.f32 %v10149_v2, %v2626_v58  ;;  %v2647_v51 = vmax.f32 %v2645_v9, %v2646_v14  ;;  %v8434_v11 = vpop.f32.mrf.mxu0 }
 0x9a8   :  { %v2735_v53 = vadd.f32 %v2734_v35, %v2733_v33  ;;  %v2747_v26 = vadd.f32 %v2746_v7, %v2745_v20  ;;  %v2739_v59 = vrot.slane %v2738_v6, 4  ;;  %v2640_v55 = vmax.f32 %v2638_v23, %v2639_v62 }
 0x9a9   :  { %v10187_v24 = vpop.eup %9139  ;;  %9147 = vpow2.f32 %v2710_v45  ;;  %v2708_v60 = vmul.f32 1.442695, %v2684_v48  ;;  %v2687_v36 = vsub.f32 %v10154_v21, %v2647_v51  ;;  %v2727_v5 = vrot.slane %v2726_v17, 2  ;;  %v2539_v27 = vpop.f32.mrf.mxu0 }
 0x9aa   :  { %v2736_v63 = vrot.slane %v2735_v53, 1  ;;  %v2748_v37 = vrot.slane %v2747_v26, 2  ;;  %v2740_v49 = vadd.f32 %v2739_v59, %v2738_v6  ;;  %v2759_v2 = vsel %vm731_vm1, %v10187_v24, 0.0 }
 0x9ab   :  { %v10190_v8 = vpop.eup %9141  ;;  %9149 = vpow2.f32 %v2708_v60  ;;  %v2714_v41 = vmul.f32 1.442695, %v2687_v36  ;;  %v2686_v52 = vsub.f32 %v10159_v57, %v2640_v55  ;;  %v10195_v34 = vmul.f32 0.25, %v2529_v15 }
 0x9ac   :  { %v2741_v10 = vrot.slane %v2740_v49, 2  ;;  %v2760_v21 = vrot.slane %v2759_v2, 4  ;;  %v2752_v3 = vsel %vm731_vm1, %v10190_v8, 0.0  ;;  %v2737_v4 = vadd.f32 %v2736_v63, %v2735_v53 }
 0x9ad   :  { %v10197_v12 = vpop.eup %9143  ;;  %9151 = vpow2.f32 %v2714_v41  ;;  %v2712_v18 = vmul.f32 1.442695, %v2686_v52  ;;  %v2728_v28 = vadd.f32 %v2727_v5, %v2726_v17  ;;  %v10201_v29 = vadd.f32 %v2748_v37, %v2747_v26 }
 0x9ae   :  { %v2753_v25 = vrot.slane %v2752_v3, 4  ;;  %v2761_v57 = vadd.f32 %v2760_v21, %v2759_v2  ;;  %v2773_v16 = vsel %vm731_vm1, %v10197_v12, 0.0  ;;  %v2657_v9 = vmax.f32 %v2655_v31, %v2656_v50 }
 0x9af   :  { %v10203_v22 = vpop.eup %9145  ;;  %9153 = vpow2.f32 %v2712_v18  ;;  %v10207_v33 = vadd.f32 %v2741_v10, %v2740_v49  ;;  %v2774_v23 = vrot.slane %v2773_v16, 4  ;;  %v2648_v17 = vsel %vm731_vm1, %v10195_v34, -inf }
 0x9b0   :  { %v2754_v39 = vadd.f32 %v2753_v25, %v2752_v3  ;;  %v2766_v20 = vsel %vm731_vm1, %v10203_v22, 0.0  ;;  %v2762_v58 = vrot.slane %v2761_v57, 2  ;;  %v2658_v35 = vrot.slane %v2657_v9, 2 }
 0x9b1   :  { %v2767_v14 = vrot.slane %v2766_v20, 4  ;;  %v2775_v62 = vadd.f32 %v2774_v23, %v2773_v16  ;;  %v2649_v6 = vrot.slane %v2648_v17, 4  ;;  %v10213_v45 = vmul.f32 0.25, %v8434_v11 }
 0x9b2   :  { %v2755_v7 = vrot.slane %v2754_v39, 2  ;;  %v2729_v31 = vrot.slane %v2728_v28, 1  ;;  %v10215_v48 = vadd.f32 %v2762_v58, %v2761_v57  ;;  %v2659_v51 = vmax.f32 %v2657_v9, %v2658_v35 }
 0x9b3   :  { %v10217_v53 = vmul.f32 0.25, %v2539_v27  ;;  %9155 = vrcp.f32 %v2737_v4  ;;  %v2768_v26 = vadd.f32 %v2767_v14, %v2766_v20  ;;  %v2650_v59 = vmax.f32 %v2648_v17, %v2649_v6 }
 0x9b4   :  { %v2669_v50 = vsel %vm731_vm1, %v10213_v45, -inf  ;;  %v2750_v15 = vrot.slane %v10201_v29, 1  ;;  %v2776_v60 = vrot.slane %v2775_v62, 2  ;;  %v2660_v36 = vrot.slane %v2659_v51, 1 }
 0x9b5   :  { %v2670_v55 = vrot.slane %v2669_v50, 4  ;;  %v2743_v5 = vrot.slane %v10207_v33, 1  ;;  %v2756_v37 = vadd.f32 %v2755_v7, %v2754_v39  ;;  %v2651_v49 = vrot.slane %v2650_v59, 2 }
 0x9b6   :  { %v10222_v63 = vpop.eup %9147  ;;  %v2662_v2 = vsel %vm731_vm1, %v10217_v53, -inf  ;;  %v2764_v41 = vrot.slane %v10215_v48, 1  ;;  %v2661_v10 = vmax.f32 %v2659_v51, %v2660_v36  ;;  %v2769_v3 = vrot.slane %v2768_v26, 2 }
 0x9b7   :  { %v2787_v52 = vsel %vm731_vm1, %v10222_v63, 0.0  ;;  %v2671_v11 = vmax.f32 %v2669_v50, %v2670_v55  ;;  %v2652_v4 = vmax.f32 %v2650_v59, %v2651_v49  ;;  %v2663_v25 = vrot.slane %v2662_v2, 4 }
 0x9b8   :  { %v10230_v21 = vpop.eup %9149  ;;  %v2788_v18 = vrot.slane %v2787_v52, 4  ;;  %v2777_v57 = vadd.f32 %v2776_v60, %v2775_v62  ;;  %v2689_v9 = vsub.f32 %v10167_v13, %v2661_v10  ;;  %v2730_v6 = vadd.f32 %v2729_v31, %v2728_v28 }
 0x9b9   :  { %v2780_v16 = vsel %vm731_vm1, %v10230_v21, 0.0  ;;  %v2672_v39 = vrot.slane %v2671_v11, 2  ;;  %v2653_v58 = vrot.slane %v2652_v4, 1  ;;  %v2664_v14 = vmax.f32 %v2662_v2, %v2663_v25 }
 0x9ba   :  { %v10235_v23 = vpop.eup %9151  ;;  %v2789_v20 = vadd.f32 %v2788_v18, %v2787_v52  ;;  %v2781_v27 = vrot.slane %v2780_v16, 4  ;;  %v2718_v17 = vmul.f32 1.442695, %v2689_v9  ;;  %v2770_v62 = vadd.f32 %v2769_v3, %v2768_v26 }
 0x9bb   :  { %v2801_v35 = vsel %vm731_vm1, %v10235_v23, 0.0  ;;  %v2673_v7 = vmax.f32 %v2671_v11, %v2672_v39  ;;  %v2654_v60 = vmax.f32 %v2652_v4, %v2653_v58  ;;  %v2665_v55 = vrot.slane %v2664_v14, 2 }
 0x9bc   :  { %v10239_v51 = vpop.eup %9153  ;;  %v2782_v59 = vadd.f32 %v2781_v27, %v2780_v16  ;;  %v2802_v50 = vrot.slane %v2801_v35, 4  ;;  %9157 = vpow2.f32 %v2718_v17  ;;  %v2790_v49 = vrot.slane %v2789_v20, 2 }
 0x9bd   :  { %v2794_v13 = vsel %vm731_vm1, %v10239_v51, 0.0  ;;  %v2674_v36 = vrot.slane %v2673_v7, 1  ;;  %v2688_v18 = vsub.f32 %v10195_v34, %v2654_v60  ;;  %v2666_v28 = vmax.f32 %v2664_v14, %v2665_v55 }
 0x9be   :  { %v2783_v2 = vrot.slane %v2782_v59, 2  ;;  %v2803_v52 = vadd.f32 %v2802_v50, %v2801_v35  ;;  %v2795_v10 = vrot.slane %v2794_v13, 4  ;;  %9159 = vrcp.f32 %v2730_v6 }
 0x9bf   :  { %v2675_v11 = vmax.f32 %v2673_v7, %v2674_v36  ;;  %v2757_v31 = vrot.slane %v2756_v37, 1  ;;  %v2778_v26 = vrot.slane %v2777_v57, 1  ;;  %v2771_v16 = vrot.slane %v2770_v62, 1 }
 0x9c0   :  { %v2784_v3 = vadd.f32 %v2783_v2, %v2782_v59  ;;  %v2796_v25 = vadd.f32 %v2795_v10, %v2794_v13  ;;  %v9156_v4 = vpop.eup %9155  ;;  %v2716_v9 = vmul.f32 1.442695, %v2688_v18  ;;  %v2667_v27 = vrot.slane %v2666_v28, 1 }
 0x9c1   :  { %v2691_v39 = vsub.f32 %v10213_v45, %v2675_v11  ;;  %v2791_v58 = vadd.f32 %v2790_v49, %v2789_v20  ;;  %v2804_v17 = vrot.slane %v2803_v52, 2  ;;  %v2744_v35 = vadd.f32 %v2743_v5, %v10207_v33 }
 0x9c2   :  { %v2797_v0 = vrot.slane %v2796_v25, 2  ;;  %9161 = vpow2.f32 %v2716_v9  ;;  %v2668_v7 = vmax.f32 %v2666_v28, %v2667_v27  ;;  %v2751_v14 = vadd.f32 %v2750_v15, %v10201_v29 }
 0x9c3   :  { %v2722_v34 = vmul.f32 1.442695, %v2691_v39  ;;  %v2785_v6 = vrot.slane %v2784_v3, 1  ;;  %9163 = vrcp.f32 %v2744_v35  ;;  %v2758_v50 = vadd.f32 %v2757_v31, %v2756_v37 }
 0x9c4   :  { %v2798_v59 = vadd.f32 %v2797_v0, %v2796_v25  ;;  %v2690_v45 = vsub.f32 %v10217_v53, %v2668_v7  ;;  %v2765_v20 = vadd.f32 %v2764_v41, %v10215_v48  ;;  %v2772_v60 = vadd.f32 %v2771_v16, %v2770_v62 }
 0x9c5   :  { %9165 = vpow2.f32 %v2722_v34  ;;  %v2779_v5 = vadd.f32 %v2778_v26, %v2777_v57  ;;  %v2792_v36 = vrot.slane %v2791_v58, 1  ;;  %v2805_v55 = vadd.f32 %v2804_v17, %v2803_v52 }
 0x9c6   :  { %9167 = vrcp.f32 %v2751_v14  ;;  %v2799_v13 = vrot.slane %v2798_v59, 1  ;;  %v2720_v33 = vmul.f32 1.442695, %v2690_v45  ;;  %v2786_v49 = vadd.f32 %v2785_v6, %v2784_v3 }
 0x9c7   :  { %9169 = vrcp.f32 %v2758_v50  ;;  %v2806_v15 = vrot.slane %v2805_v55, 1  ;;  %v2793_v41 = vadd.f32 %v2792_v36, %v2791_v58  ;;  %v2853_v2 = vmul.f32 %v9156_v4, %v10165_v43 }
 0x9c8   :  { %9171 = vrcp.f32 %v2765_v20  ;;  %v2800_v53 = vadd.f32 %v2799_v13, %v2798_v59 }
 0x9c9   :  { %9173 = vpow2.f32 %v2720_v33  ;;  %v10251_v29 = vpop.eup %9157  ;;  %v2807_v18 = vadd.f32 %v2806_v15, %v2805_v55 }
 0x9ca   :  { %9175 = vrcp.f32 %v2772_v60  ;;  %v2815_v0 = vsel %vm731_vm1, %v10251_v29, 0.0 }
 0x9cb   :  { %9177 = vrcp.f32 %v2779_v5  ;;  %v9160_v48 = vpop.eup %9159  ;;  %v2816_v37 = vrot.slane %v2815_v0, 4 }
 0x9cc   :  { %9179 = vrcp.f32 %v2786_v49  ;;  %v2852_v57 = vmul.f32 %v9160_v48, %v10171_v32 }
 0x9cd   :  { %v2817_v62 = vadd.f32 %v2816_v37, %v2815_v0  ;;  %9181 = vrcp.f32 %v2800_v53 }
 0x9ce   :  { %8437 = vmatprep.mubr.msk.f32.mxu1 %vm731_vm1, %v2852_v57  ;;  %9183 = vrcp.f32 %v2793_v41 }
 0x9cf   :  { %v10258_v52 = vpop.eup %9161  ;;  %v2818_v10 = vrot.slane %v2817_v62, 2  ;;  %8438 = vmatmul.mubr.msk.f32.vlgmr.msra.gmra.mxu1 %vm731_vm1, %v2853_v2  ;;  %9185 = vrcp.f32 %v2807_v18 }
 0x9d0   :  { %v9164_v11 = vpop.eup %9163  ;;  %v2808_v28 = vsel %vm731_vm1, %v10258_v52, 0.0 }
 0x9d1   :  { %v2819_v32 = vadd.f32 %v2818_v10, %v2817_v62  ;;  %v2809_v26 = vrot.slane %v2808_v28, 4  ;;  %v2854_v43 = vmul.f32 %v9164_v11, %v10182_v1 }
 0x9d2   :  { %v10263_v31 = vpop.eup %9165 }
 0x9d3   :  { %v9168_v3 = vpop.eup %9167  ;;  %v2829_v25 = vsel %vm731_vm1, %v10263_v31, 0.0  ;;  %v2810_v16 = vadd.f32 %v2809_v26, %v2808_v28  ;;  %8440 = vmatprep.mubr.msk.f32.mxu1 %vm731_vm1, %v2854_v43  ;;  %v2820_v58 = vrot.slane %v2819_v32, 1  ;;  %v8855_v26 = vld [vmem:[%s11204_s5 + $0x58] sm:$0xff]   ;;  %v8856_v43 = vld [vmem:[%s11204_s5 + $0x50] sm:$0xff]  }
 0x9d4   :  { %v9170_v4 = vpop.eup %9169  ;;  %v2830_v9 = vrot.slane %v2829_v25, 4  ;;  %v2855_v39 = vmul.f32 %v9168_v3, %v10175_v19  ;;  %v8857_v3 = vld [vmem:[%s11204_s5 + $0x48] sm:$0xff]  }
 0x9d5   :  { %v9172_v27 = vpop.eup %9171  ;;  %v2856_v17 = vmul.f32 %v9170_v4, %v10190_v8  ;;  %v2811_v34 = vrot.slane %v2810_v16, 2  ;;  %v2821_v8 = vadd.f32 %v2820_v58, %v2819_v32  ;;  %v1991_v4 = vrot.slane %v10078_v38, %v9923_v30 }
 0x9d6   :  { %v9174_v35 = vpop.eup %9173  ;;  %v2831_v7 = vadd.f32 %v2830_v9, %v2829_v25  ;;  %8441 = vmatmul.mubr.msk.f32.gmra.mxu1 %vm731_vm1, %v2855_v39  ;;  %v2857_v6 = vmul.f32 %v9172_v27, %v10187_v24  ;;  %v8858_v25 = vld [vmem:[%s11204_s5 + $0x40] sm:$0xff]  }
 0x9d7   :  { %v9176_v1 = vpop.eup %9175  ;;  %v2822_v14 = vsel %vm731_vm1, %v9174_v35, 0.0  ;;  %8443 = vmatprep.mubr.msk.f32.mxu1 %vm731_vm1, %v2856_v17  ;;  %v2812_v50 = vadd.f32 %v2811_v34, %v2810_v16  ;;  %9187 = vrcp.f32 %v2821_v8  ;;  %v2201_v16 = vadd.f32 %v10082_v61, %v1991_v4 }
 0x9d8   :  { %v9178_v59 = vpop.eup %9177  ;;  %v2832_v19 = vrot.slane %v2831_v7, 2  ;;  %v2823_v45 = vrot.slane %v2822_v14, 4  ;;  %v2858_v20 = vmul.f32 %v9176_v1, %v10203_v22 }
 0x9d9   :  { %v9180_v60 = vpop.eup %9179  ;;  %v2813_v13 = vrot.slane %v2812_v50, 1  ;;  %v2859_v0 = vmul.f32 %v9178_v59, %v10197_v12 }
 0x9da   :  { %v2833_v33 = vadd.f32 %v2832_v19, %v2831_v7  ;;  %v2824_v5 = vadd.f32 %v2823_v45, %v2822_v14  ;;  %8444 = vmatmul.mubr.msk.f32.gmra.mxu1 %vm731_vm1, %v2857_v6  ;;  %v2860_v36 = vmul.f32 %v9180_v60, %v10230_v21  ;;  %v9182_v55 = vpop.eup %9181 }
 0x9db   :  { %8446 = vmatprep.mubr.msk.f32.mxu1 %vm731_vm1, %v2858_v20  ;;  %v2814_v53 = vadd.f32 %v2813_v13, %v2812_v50  ;;  %v9184_v48 = vpop.eup %9183  ;;  %v2862_v15 = vmul.f32 %v9182_v55, %v10239_v51 }
 0x9dc   :  { %v2834_v49 = vrot.slane %v2833_v33, 1  ;;  %v2825_v24 = vrot.slane %v2824_v5, 2  ;;  %v2861_v21 = vmul.f32 %v9184_v48, %v10222_v63  ;;  %v9186_v57 = vpop.eup %9185 }
 0x9dd   :  { %9189 = vrcp.f32 %v2814_v53  ;;  %v2863_v12 = vmul.f32 %v9186_v57, %v10235_v23  ;;  %v8851_v23 = vld [vmem:[%s11204_s5 + $0x78] sm:$0xff]  }
 0x9de   :  { %v2826_v22 = vadd.f32 %v2825_v24, %v2824_v5  ;;  %8447 = vmatmul.mubr.msk.f32.gmra.mxu1 %vm731_vm1, %v2859_v0  ;;  %v2835_v37 = vadd.f32 %v2834_v49, %v2833_v33 }
 0x9df   :  { %8449 = vmatprep.mubr.msk.f32.mxu1 %vm731_vm1, %v2860_v36  ;;  %8462 = vmatpush3.bf16.msra.mxu1 %v8851_v23  ;;  %v10332_v36 = vadd.f32 %v10087_v54, %v1991_v4 }
 0x9e0   :  { %v2827_v41 = vrot.slane %v2826_v22, 1  ;;  %9191 = vrcp.f32 %v2835_v37  ;;  %8463 = vmatprep.subr.bf16.mxu1 %v11217_v56 }
 0x9e2   :  { %8450 = vmatmul.mubr.msk.f32.gmra.mxu1 %vm731_vm1, %v2861_v21  ;;  %v2828_v62 = vadd.f32 %v2827_v41, %v2826_v22 }
 0x9e3   :  { %8452 = vmatprep.mubr.msk.f32.mxu1 %vm731_vm1, %v2862_v15 }
 0x9e4   :  { %9193 = vrcp.f32 %v2828_v62  ;;  %v9188_v2 = vpop.eup %9187 }
 0x9e5   :  { %v2865_v18 = vmul.f32 %v9188_v2, %v10251_v29  ;;  %v8852_v29 = vld [vmem:[%s11204_s5 + $0x70] sm:$0xff]  }
 0x9e6   :  { %8453 = vmatmul.mubr.msk.f32.gmra.mxu1 %vm731_vm1, %v2863_v12 }
 0x9e7   :  { %8464 = vmatpush3.bf16.msra.mxu1 %v8852_v29 }
 0x9e8   :  { %8465 = vmatprep.subr.bf16.mxu1 %v11217_v56 }
 0x9ea   :  { %v9190_v10 = vpop.eup %9189 }
 0x9eb   :  { %v2864_v51 = vmul.f32 %v9190_v10, %v10258_v52  ;;  %v8853_v52 = vld [vmem:[%s11204_s5 + $0x68] sm:$0xff]  }
 0x9ec   :  { %8466 = vmatpush3.bf16.msra.mxu1 %v8853_v52 }
 0x9ed   :  { %8455 = vmatprep.mubr.msk.f32.mxu1 %vm731_vm1, %v2864_v51  ;;  %v9192_v63 = vpop.eup %9191  ;;  %8467 = vmatprep.subr.bf16.mxu1 %v11217_v56 }
 0x9ee   :  { %8456 = vmatmul.mubr.msk.f32.gmra.mxu1 %vm731_vm1, %v2865_v18  ;;  %v2867_v32 = vmul.f32 %v9192_v63, %v10263_v31  ;;  %v8854_v31 = vld [vmem:[%s11204_s5 + $0x60] sm:$0xff]  }
 0x9f0   :  { %8468 = vmatpush3.bf16.msra.mxu1 %v8854_v31 }
 0x9f1   :  { %v9194_v11 = vpop.eup %9193  ;;  %8469 = vmatprep.subr.bf16.mxu1 %v11217_v56 }
 0x9f2   :  { %v2866_v28 = vmul.f32 %v9194_v11, %v9174_v35 }
 0x9f4   :  { %8458 = vmatprep.mubr.msk.f32.mxu1 %vm731_vm1, %v2866_v28  ;;  %8470 = vmatpush3.bf16.msra.mxu1 %v8855_v26 }
 0x9f5   :  { %8459 = vmatmul.mubr.msk.f32.gmra.mxu1 %vm731_vm1, %v2867_v32  ;;  %8471 = vmatprep.subr.bf16.mxu1 %v11217_v56 }
 0x9f6   :  { %8477 = vmatprep.mubr.msk.bf16.mxu1 %vm9499_vm0, %v11217_v56 }
 0x9f8   :  { %8472 = vmatpush3.bf16.msra.mxu1 %v8856_v43 }
 0x9f9   :  { %8473 = vmatprep.subr.bf16.mxu1 %v11217_v56 }
 0x9fc   :  { %8474 = vmatpush3.bf16.msra.mxu1 %v8857_v3 }
 0x9fd   :  { %8475 = vmatprep.subr.bf16.mxu1 %v11217_v56 }
 0xa00   :  { %8476 = vmatpush3.bf16.msra.mxu1 %v8858_v25 }
 0xa8f   :  { %v8439_v9 = vpop.f32.mrf.mxu1 }
 0xa90   :  { %v3062_v39 = vmul.f32 %v8439_v9, %v2201_v16 }
 0xa91   :  { %v2982_v27 = vpop.f32.mrf.mxu1 }
 0xa92   :  { %v3061_v58 = vmul.f32 %v2982_v27, %v2201_v16  ;;  %v3083_v17 = vrot.slane %v3062_v39, 4 }
 0xa94   :  { %v3077_v35 = vrot.slane %v3061_v58, 4  ;;  %v3084_v1 = vadd.f32 %v3083_v17, %v3062_v39 }
 0xa96   :  { %v8442_v34 = vpop.f32.mrf.mxu1  ;;  %v3078_v7 = vadd.f32 %v3077_v35, %v3061_v58  ;;  %v3085_v45 = vrot.slane %v3084_v1, 2 }
 0xa97   :  { %v3064_v14 = vmul.f32 %v8442_v34, %v2201_v16 }
 0xa98   :  { %v2992_v6 = vpop.f32.mrf.mxu1  ;;  %v3079_v59 = vrot.slane %v3078_v7, 2  ;;  %v3086_v13 = vadd.f32 %v3085_v45, %v3084_v1 }
 0xa99   :  { %v3063_v19 = vmul.f32 %v2992_v6, %v2201_v16  ;;  %v3095_v20 = vrot.slane %v3064_v14, 4 }
 0xa9a   :  { %v8445_v50 = vpop.f32.mrf.mxu1  ;;  %v3080_v38 = vadd.f32 %v3079_v59, %v3078_v7  ;;  %v3087_v22 = vrot.slane %v3086_v13, 1 }
 0xa9b   :  { %v3089_v61 = vrot.slane %v3063_v19, 4  ;;  %v3096_v33 = vadd.f32 %v3095_v20, %v3064_v14  ;;  %v3066_v24 = vmul.f32 %v8445_v50, %v2201_v16 }
 0xa9c   :  { %v3002_v60 = vpop.f32.mrf.mxu1  ;;  %v3081_v49 = vrot.slane %v3080_v38, 1  ;;  %v3088_v18 = vadd.f32 %v3087_v22, %v3086_v13 }
 0xa9d   :  { %v3065_v55 = vmul.f32 %v3002_v60, %v2201_v16  ;;  %v3090_v53 = vadd.f32 %v3089_v61, %v3063_v19  ;;  %v3097_v15 = vrot.slane %v3096_v33, 2  ;;  %v3107_v12 = vrot.slane %v3066_v24, 4 }
 0xa9e   :  { %v8448_v8 = vpop.f32.mrf.mxu1  ;;  %v3082_v62 = vadd.f32 %v3081_v49, %v3080_v38  ;;  %v3174_v9 = vpack.c.bf16 %v3088_v18, %v3088_v18 }
 0xa9f   :  { %v3101_v41 = vrot.slane %v3065_v55, 4  ;;  %v3091_v10 = vrot.slane %v3090_v53, 2  ;;  %v3098_v63 = vadd.f32 %v3097_v15, %v3096_v33  ;;  %v3068_v11 = vmul.f32 %v8448_v8, %v2201_v16 }
 0xaa0   :  { %v3012_v5 = vpop.f32.mrf.mxu1  ;;  %v3173_v52 = vpack.c.bf16 %v3082_v62, %v3082_v62  ;;  %v3108_v31 = vadd.f32 %v3107_v12, %v3066_v24  ;;  %v3231_v19 = vunpack.c.l.b16 %v3174_v9 }
 0xaa1   :  { %v3067_v21 = vmul.f32 %v3012_v5, %v2201_v16  ;;  %v3102_v28 = vadd.f32 %v3101_v41, %v3065_v55  ;;  %v3092_v26 = vadd.f32 %v3091_v10, %v3090_v53  ;;  %v3099_v39 = vrot.slane %v3098_v63, 1 }
 0xaa2   :  { %v8451_v0 = vpop.f32.mrf.mxu1  ;;  %v3119_v27 = vrot.slane %v3068_v11, 4  ;;  %v3109_v16 = vrot.slane %v3108_v31, 2  ;;  %v3230_v1 = vunpack.c.l.b16 %v3173_v52 }
 0xaa3   :  { %v3070_v48 = vmul.f32 %v8451_v0, %v10332_v36  ;;  %v3113_v32 = vrot.slane %v3067_v21, 4  ;;  %v3103_v58 = vrot.slane %v3102_v28, 2  ;;  %v3093_v14 = vrot.slane %v3092_v26, 1 }
 0xaa4   :  { %v3022_v37 = vpop.f32.mrf.mxu1  ;;  %v10339_v38 = vadd.f32 %v3099_v39, %v3098_v63  ;;  %v3120_v61 = vadd.f32 %v3119_v27, %v3068_v11  ;;  %v3246_v0 = vsel %vm1412_vm2, %v3231_v19, %v3230_v1 }
 0xaa5   :  { %v3131_v57 = vrot.slane %v3070_v48, 4  ;;  %v3069_v54 = vmul.f32 %v3022_v37, %v10332_v36  ;;  %v3114_v17 = vadd.f32 %v3113_v32, %v3067_v21  ;;  %v3104_v8 = vadd.f32 %v3103_v58, %v3102_v28 }
 0xaa6   :  { %v8454_v2 = vpop.f32.mrf.mxu1  ;;  %v3094_v53 = vadd.f32 %v3093_v14, %v3092_v26  ;;  %v3121_v12 = vrot.slane %v3120_v61, 2 }
 0xaa7   :  { %v3132_v51 = vadd.f32 %v3131_v57, %v3070_v48  ;;  %v3125_v23 = vrot.slane %v3069_v54, 4  ;;  %v3072_v29 = vmul.f32 %v8454_v2, %v10332_v36  ;;  %v3115_v13 = vrot.slane %v3114_v17, 2 }
 0xaa8   :  { %v3032_v4 = vpop.f32.mrf.mxu1  ;;  %v3110_v48 = vadd.f32 %v3109_v16, %v3108_v31  ;;  %v3176_v57 = vpack.c.bf16 %v10339_v38, %v10339_v38  ;;  %v3105_v62 = vrot.slane %v3104_v8, 1  ;;  %v3175_v11 = vpack.c.bf16 %v3094_v53, %v3094_v53 }
 0xaa9   :  { %v3133_v43 = vrot.slane %v3132_v51, 2  ;;  %v3126_v3 = vadd.f32 %v3125_v23, %v3069_v54  ;;  %v3143_v25 = vrot.slane %v3072_v29, 4  ;;  %v3071_v7 = vmul.f32 %v3032_v4, %v10332_v36 }
 0xaaa   :  { %v3116_v2 = vadd.f32 %v3115_v13, %v3114_v17  ;;  %v3111_v28 = vrot.slane %v3110_v48, 1  ;;  %v3122_v39 = vadd.f32 %v3121_v12, %v3120_v61 }
 0xaab   :  { %v3127_v35 = vrot.slane %v3126_v3, 2  ;;  %v3144_v34 = vadd.f32 %v3143_v25, %v3072_v29  ;;  %v3134_v6 = vadd.f32 %v3133_v43, %v3132_v51  ;;  %v3137_v20 = vrot.slane %v3071_v7, 4 }
 0xaac   :  { %v3117_v25 = vrot.slane %v3116_v2, 1  ;;  %v3123_v38 = vrot.slane %v3122_v39, 1 }
 0xaad   :  { %v3128_v59 = vadd.f32 %v3127_v35, %v3126_v3  ;;  %v3145_v45 = vrot.slane %v3144_v34, 2  ;;  %v3138_v55 = vadd.f32 %v3137_v20, %v3071_v7  ;;  %v3135_v22 = vrot.slane %v3134_v6, 1 }
 0xaae   :  { %v8457_v50 = vpop.f32.mrf.mxu1  ;;  %v3106_v3 = vadd.f32 %v3105_v62, %v3104_v8  ;;  %v3232_v35 = vunpack.c.l.b16 %v3175_v11  ;;  %v3118_v19 = vadd.f32 %v3117_v25, %v3116_v2  ;;  %v3124_v12 = vadd.f32 %v3123_v38, %v3122_v39 }
 0xaaf   :  { %v3074_v60 = vmul.f32 %v8457_v50, %v10332_v36  ;;  %v3129_v5 = vrot.slane %v3128_v59, 1  ;;  %v3146_v15 = vadd.f32 %v3145_v45, %v3144_v34  ;;  %v3139_v37 = vrot.slane %v3138_v55, 2 }
 0xab0   :  { %v3042_v33 = vpop.f32.mrf.mxu1  ;;  %v3136_v32 = vadd.f32 %v3135_v22, %v3134_v6  ;;  %v3177_v50 = vpack.c.bf16 %v3106_v3, %v3106_v3  ;;  %v3247_v61 = vsel %vm1414_vm3, %v3232_v35, %v3246_v0 }
 0xab1   :  { %v3155_v49 = vrot.slane %v3074_v60, 4  ;;  %v3073_v24 = vmul.f32 %v3042_v33, %v10332_v36  ;;  %v3130_v51 = vadd.f32 %v3129_v5, %v3128_v59  ;;  %v3140_v54 = vadd.f32 %v3139_v37, %v3138_v55 }
 0xab2   :  { %v3147_v52 = vrot.slane %v3146_v15, 1  ;;  %v3182_v34 = vpack.c.bf16 %v3136_v32, %v3136_v32  ;;  %v3234_v22 = vunpack.c.l.b16 %v3177_v50 }
 0xab3   :  { %v3156_v41 = vadd.f32 %v3155_v49, %v3074_v60  ;;  %v3149_v21 = vrot.slane %v3073_v24, 4  ;;  %v3141_v31 = vrot.slane %v3140_v54, 1  ;;  %v3181_v27 = vpack.c.bf16 %v3130_v51, %v3130_v51 }
 0xab4   :  { %v3148_v1 = vadd.f32 %v3147_v52, %v3146_v15  ;;  %v3112_v60 = vadd.f32 %v3111_v28, %v3110_v48  ;;  %v3239_v55 = vunpack.c.l.b16 %v3182_v34  ;;  %v3179_v15 = vpack.c.bf16 %v3118_v19, %v3118_v19 }
 0xab5   :  { %v8460_v10 = vpop.f32.mrf.mxu1  ;;  %v3157_v18 = vrot.slane %v3156_v41, 2  ;;  %v3150_v63 = vadd.f32 %v3149_v21, %v3073_v24  ;;  %v3142_v58 = vadd.f32 %v3141_v31, %v3140_v54  ;;  %v3238_v8 = vunpack.c.l.b16 %v3181_v27 }
 0xab6   :  { %v3076_v23 = vmul.f32 %v8460_v10, %v10332_v36  ;;  %v3184_v49 = vpack.c.bf16 %v3148_v1, %v3148_v1  ;;  %v3233_v21 = vunpack.c.l.b16 %v3176_v57  ;;  %v3178_v62 = vpack.c.bf16 %v3112_v60, %v3112_v60  ;;  %v8861_v60 = vld [vmem:[#allocation5 + $0xf4] ss:$8 sps:$4 sm:$0xff]  }
 0xab7   :  { %v3052_v29 = vpop.f32.mrf.mxu1  ;;  %v3158_v26 = vadd.f32 %v3157_v18, %v3156_v41  ;;  %v3151_v43 = vrot.slane %v3150_v63, 2  ;;  %v3183_v14 = vpack.c.bf16 %v3142_v58, %v3142_v58  ;;  %v3253_v48 = vsel %vm1412_vm2, %v3239_v55, %v3238_v8  ;;  %3506 = vmatprep.subr.bf16.mxu0 %v8861_v60  ;;  %v8862_v55 = vld [vmem:[#allocation5 + $0xe0] ss:$8 sps:$4 sm:$0xff]  }
 0xab8   :  { %v3167_v4 = vrot.slane %v3076_v23, 4  ;;  %v3075_v9 = vmul.f32 %v3052_v29, %v10332_v36  ;;  %v3248_v54 = vsel %vm1416_vm4, %v3233_v21, %v3247_v61  ;;  %v3241_v18 = vunpack.c.l.b16 %v3184_v49  ;;  %v8867_v49 = vld [vmem:[#allocation5 + $0xd4] ss:$8 sps:$4 sm:$0xff]   ;;  %v8874_v21 = vld [vmem:[#allocation5 + $0xa0] ss:$8 sps:$4 sm:$0xff]  }
 0xab9   :  { %v3152_v17 = vadd.f32 %v3151_v43, %v3150_v63  ;;  %v3159_v6 = vrot.slane %v3158_v26, 1  ;;  %v3240_v13 = vunpack.c.l.b16 %v3183_v14  ;;  %v3249_v11 = vsel %vm1418_vm5, %v3234_v22, %v3248_v54  ;;  %v8868_v22 = vld [vmem:[#allocation5 + $0xc0] ss:$8 sps:$4 sm:$0xff]   ;;  %v8886_v54 = vld [vmem:[#allocation7 + $0xb0] sm:$0xff]  }
 0xaba   :  { %v3168_v16 = vadd.f32 %v3167_v4, %v3076_v23  ;;  %v3161_v7 = vrot.slane %v3075_v9, 4  ;;  %v3236_v28 = vunpack.c.l.b16 %v3179_v15  ;;  %v3235_v23 = vunpack.c.l.b16 %v3178_v62  ;;  %v8873_v15 = vld [vmem:[#allocation5 + $0xb4] ss:$8 sps:$4 sm:$0xff]  }
 0xabb   :  { %v3153_v59 = vrot.slane %v3152_v17, 1  ;;  %v3160_v24 = vadd.f32 %v3159_v6, %v3158_v26  ;;  %v3254_v2 = vsel %vm1414_vm3, %v3240_v13, %v3253_v48  ;;  %v3180_v29 = vpack.c.bf16 %v3124_v12, %v3124_v12  ;;  %v8879_v62 = vld [vmem:[#allocation5 + $0x94] ss:$8 sps:$4 sm:$0xff]   ;;  %v8877_v12 = vld [vmem:[#allocation5 + $0x90] ss:$8 sps:$4 sm:$0xff]  }
 0xabc   :  { %v3169_v45 = vrot.slane %v3168_v16, 2  ;;  %v3162_v20 = vadd.f32 %v3161_v7, %v3075_v9  ;;  %v3255_v57 = vsel %vm1416_vm4, %v3241_v18, %v3254_v2  ;;  %v3250_v43 = vsel %vm1420_vm6, %v3235_v23, %v3249_v11  ;;  %v8882_v48 = vld [vmem:[#allocation5 + $0x84] ss:$8 sps:$4 sm:$0xff]   ;;  %v8880_v2 = vld [vmem:[#allocation5 + $0x80] ss:$8 sps:$4 sm:$0xff]   ;;  %v8892_v23 = vld [vmem:[#allocation7 + $0x98] sm:$0xff]  }
 0xabd   :  { %v3154_v36 = vadd.f32 %v3153_v59, %v3152_v17  ;;  %v3186_v63 = vpack.c.bf16 %v3160_v24, %v3160_v24  ;;  %v3251_v25 = vsel %vm1422_vm7, %v3236_v28, %v3250_v43  ;;  %v3237_v9 = vunpack.c.l.b16 %v3180_v29  ;;  %v8865_v24 = vld [vmem:[#allocation5 + $0xd0] ss:$8 sps:$4 sm:$0xff]   ;;  %v8887_v18 = vld [vmem:[#allocation7 + $0xe8] sm:$0xff]   ;;  %v8889_v11 = vld [vmem:[#allocation7 + $0xe0] sm:$0xff]  }
 0xabe   :  { %v3170_v33 = vadd.f32 %v3169_v45, %v3168_v16  ;;  %v3163_v5 = vrot.slane %v3162_v20, 2  ;;  %v7609_v16 = vld [vmem:[%s11205_s6 + $0x1] ss:$0 sm:$0xff] }
 0xabf   :  { %v3185_v53 = vpack.c.bf16 %v3154_v36, %v3154_v36  ;;  %v3243_v3 = vunpack.c.l.b16 %v3186_v63  ;;  %v3252_v17 = vsel %vm1424_vm8, %v3237_v9, %v3251_v25  ;;  %v8888_v63 = vld [vmem:[#allocation7 + $0xa8] sm:$0xff]   ;;  %v8890_v28 = vld [vmem:[#allocation7 + $0xa0] sm:$0xff]  }
 0xac0   :  { %v3171_v37 = vrot.slane %v3170_v33, 1  ;;  %v3164_v41 = vadd.f32 %v3163_v5, %v3162_v20  ;;  %v8859_v20 = vld [vmem:[#allocation5 + $0xf0] ss:$8 sps:$4 sm:$0xff]   ;;  %v8864_v5 = vld [vmem:[#allocation5 + $0xe4] ss:$8 sps:$4 sm:$0xff]  }
 0xac1   :  { %v3242_v10 = vunpack.c.l.b16 %v3185_v53  ;;  %3507 = vmatpush1.bf16.msra.mxu0 %v8859_v20  ;;  %v8870_v53 = vld [vmem:[#allocation5 + $0xc4] ss:$8 sps:$4 sm:$0xff]  }
 0xac2   :  { %v3172_v0 = vadd.f32 %v3171_v37, %v3170_v33  ;;  %v3165_v51 = vrot.slane %v3164_v41, 1  ;;  %3508 = vmatprep.subr.bf16.mxu0 %v8864_v5  ;;  %v8871_v37 = vld [vmem:[#allocation5 + $0xb0] ss:$8 sps:$4 sm:$0xff]  }
 0xac3   :  { %v3256_v31 = vsel %vm1418_vm5, %v3242_v10, %v3255_v57  ;;  %v8883_v10 = vld [vmem:[#allocation7 + $0xf8] sm:$0xff]  }
 0xac4   :  { %v3166_v32 = vadd.f32 %v3165_v51, %v3164_v41  ;;  %v3188_v52 = vpack.c.bf16 %v3172_v0, %v3172_v0  ;;  %v3257_v27 = vsel %vm1420_vm6, %v3243_v3, %v3256_v31  ;;  %v8876_v41 = vld [vmem:[#allocation5 + $0xa4] ss:$8 sps:$4 sm:$0xff]   ;;  %v8884_v0 = vld [vmem:[#allocation7 + $0xb8] sm:$0xff]   ;;  %v8885_v51 = vld [vmem:[#allocation7 + $0xf0] sm:$0xff]   ;;  %8037 = vmatprep.subr.bf16.mxu1 %v8883_v10 }
 0xac5   :  { %3509 = vmatpush1.bf16.msra.mxu0 %v8862_v55 }
 0xac6   :  { %v3187_v26 = vpack.c.bf16 %v3166_v32, %v3166_v32  ;;  %v3245_v39 = vunpack.c.l.b16 %v3188_v52  ;;  %3510 = vmatprep.subr.bf16.mxu0 %v8867_v49  ;;  %v8891_v32 = vld [vmem:[#allocation7 + $0xd8] sm:$0xff]  }
 0xac8   :  { %v3244_v4 = vunpack.c.l.b16 %v3187_v26 }
 0xac9   :  { %3511 = vmatpush1.bf16.msra.mxu0 %v8865_v24 }
 0xaca   :  { %v3258_v58 = vsel %vm1422_vm7, %v3244_v4, %v3257_v27  ;;  %3512 = vmatprep.subr.bf16.mxu0 %v8870_v53  ;;  %v7620_v4 = vld [vmem:[%s11206_s7 + $0x1] ss:$0 sm:$0xff] }
 0xacb   :  { %v3259_v35 = vsel %vm1424_vm8, %v3245_v39, %v3258_v58  ;;  %v7621_v58 = vld [vmem:[%s11207_s8 + $0x1] ss:$0 sm:$0xff] }
 0xacc   :  { %v3260_v34 = vpack.c.b16 %v3259_v35, %v3252_v17 }
 0xacd   :  { %3513 = vmatpush1.bf16.msra.mxu0 %v8868_v22 }
 0xace   :  { %8478 = vmatmul.mubr.bf16.vlgmr.msra.gmra.mxu1 %v3260_v34  ;;  %3514 = vmatprep.subr.bf16.mxu0 %v8873_v15 }
 0xacf   :  { %8038 = vmatpush3.bf16.msra.mxu1 %v8884_v0 }
 0xad0   :  { %8039 = vmatprep.subr.bf16.mxu1 %v8885_v51 }
 0xad1   :  { %3515 = vmatpush1.bf16.msra.mxu0 %v8871_v37  ;;  %v7640_v37 = vld [vmem:[%s11211_s12 + $0x1] ss:$0 sm:$0xff] }
 0xad2   :  { %3516 = vmatprep.subr.bf16.mxu0 %v8876_v41 }
 0xad3   :  { %8040 = vmatpush3.bf16.msra.mxu1 %v8886_v54  ;;  %v8899_v54 = vld [vmem:[#allocation2 + $0x228] ss:$12 sps:$4 sm:$0xff]  }
 0xad4   :  { %8041 = vmatprep.subr.bf16.mxu1 %v8887_v18  ;;  %v8901_v18 = vld [vmem:[#allocation2 + $0x22c] ss:$12 sps:$4 sm:$0xff]  }
 0xad5   :  { %3517 = vmatpush1.bf16.msra.mxu0 %v8874_v21 }
 0xad6   :  { %3518 = vmatprep.subr.bf16.mxu0 %v8879_v62 }
 0xad7   :  { %8042 = vmatpush3.bf16.msra.mxu1 %v8888_v63  ;;  %v8902_v63 = vld [vmem:[#allocation2 + $0x230] ss:$12 sps:$4 sm:$0xff]  }
 0xad8   :  { %8043 = vmatprep.subr.bf16.mxu1 %v8889_v11 }
 0xad9   :  { %3519 = vmatpush1.bf16.msra.mxu0 %v8877_v12 }
 0xada   :  { %3520 = vmatprep.subr.bf16.mxu0 %v8882_v48 }
 0xadb   :  { %8044 = vmatpush3.bf16.msra.mxu1 %v8890_v28 }
 0xadc   :  { %8045 = vmatprep.subr.bf16.mxu1 %v8891_v32 }
 0xadd   :  { %3521 = vmatpush1.bf16.msra.mxu0 %v8880_v2 }
 0xade   :  { %3957 = vmatprep.subr.bf16.mxu0 %v8901_v18  ;;  %v9377_v18 = vld [vmem:[%s11200_s1 + $0x30] sm:$0xff] }
 0xadf   :  { %8046 = vmatpush3.bf16.msra.mxu1 %v8892_v23 }
 0xb8e   :  { %v3344_v7 = vpop.f32.mrf.mxu1 }
 0xb8f   :  { %v3345_v1 = vadd.f32 %v7609_v16, %v3344_v7  ;;  %v11219_v7 = vmov 0  }
 0xb90   :  { %v8479_v14 = vpop.f32.mrf.mxu1 }
 0xb91   :  { %v3351_v6 = vadd.f32 %v3345_v1, %v10023_v42  ;;  %v8893_v1 = vld [vmem:[#allocation7 + $0xd0] sm:$0xff]  }
 0xb92   :  { %v3347_v59 = vpop.f32.mrf.mxu1  ;;  %v8894_v14 = vld [vmem:[#allocation7 + $0x90] sm:$0xff]   ;;  %8047 = vmatprep.subr.bf16.mxu1 %v8893_v1 }
 0xb93   :  { %v3348_v50 = vadd.f32 %v7609_v16, %v3347_v59  ;;  %3357 = vadd.xlane.f32.xlu0 %v3351_v6  ;;  %8048 = vmatpush3.bf16.msra.mxu1 %v8894_v14  ;;  %v8896_v59 = vld [vmem:[#allocation7 + $0x88] sm:$0xff]   ;;  %v8919_v1 = vld [vmem:[#allocation2 + $0x1b0] ss:$12 sps:$4 sm:$0xff]   ;;  %v8922_v14 = vld [vmem:[#allocation2 + $0x1b8] ss:$12 sps:$4 sm:$0xff]  }
 0xb94   :  { %v8480_v19 = vpop.f32.mrf.mxu1 }
 0xb95   :  { %v3352_v45 = vadd.f32 %v3348_v50, %v10025_v47  ;;  %v8897_v50 = vld [vmem:[#allocation7 + $0xc0] sm:$0xff]  }
 0xb96   :  { %v8898_v19 = vld [vmem:[#allocation7 + $0x80] sm:$0xff]  }
 0xb97   :  { %3359 = vadd.xlane.f32.xlu1 %v3352_v45 }
 0xc1c   :  { %v3358_v38 = vpop.xlane.xlu0 %3357 }
 0xc1d   :  { %v3361_v8 = vmul.f32 0.0078125, %v3358_v38 }
 0xc1f   :  { %v10365_v36 = vsub.f32 %v3351_v6, %v3361_v8  ;;  %v8895_v6 = vld [vmem:[#allocation7 + $0xc8] sm:$0xff]  }
 0xc20   :  { %v3360_v61 = vpop.xlane.xlu1 %3359  ;;  %8049 = vmatprep.subr.bf16.mxu1 %v8895_v6  ;;  %v8925_v6 = vld [vmem:[#allocation2 + $0x19c] ss:$12 sps:$4 sm:$0xff]  }
 0xc21   :  { %v3362_v13 = vmul.f32 0.0078125, %v3360_v61  ;;  %v3365_v42 = vmul.f32 %v10365_v36, %v10365_v36  ;;  %8050 = vmatpush3.bf16.msra.mxu1 %v8896_v59  ;;  %v8923_v59 = vld [vmem:[#allocation2 + $0x198] ss:$12 sps:$4 sm:$0xff]  }
 0xc22   :  { %8051 = vmatprep.subr.bf16.mxu1 %v8897_v50  ;;  %v8926_v50 = vld [vmem:[#allocation2 + $0x1a0] ss:$12 sps:$4 sm:$0xff]  }
 0xc23   :  { %v10369_v33 = vsub.f32 %v3352_v45, %v3362_v13  ;;  %3367 = vadd.xlane.f32.xlu0 %v3365_v42  ;;  %v7622_v45 = vld [vmem:[%s11209_s10 + $0x2] sm:$0x3] }
 0xc24   :  { %v3423_v60 = vrot.slane %v7622_v45, %v9664_v46  ;;  %v3419_v38 = vrot.slane %v7622_v45, %v9654_v40  ;;  %v8927_v45 = vld [vmem:[#allocation2 + $0x180] ss:$12 sps:$4 sm:$0xff]  }
 0xc25   :  { %v3366_v47 = vmul.f32 %v10369_v33, %v10369_v33  ;;  %8052 = vmatpush3.bf16.msra.mxu1 %v8898_v19  ;;  %v8929_v19 = vld [vmem:[#allocation2 + $0x184] ss:$12 sps:$4 sm:$0xff]  }
 0xc26   :  { %8481 = vmatprep.subr.bf16.mxu1 %v11217_v56 }
 0xc27   :  { %3369 = vadd.xlane.f32.xlu1 %v3366_v47 }
 0xcac   :  { %v3368_v29 = vpop.xlane.xlu0 %3367 }
 0xcad   :  { %v3371_v57 = vmul.f32 0.0078125, %v3368_v29 }
 0xcaf   :  { %v3373_v52 = vadd.f32 1e-05, %v3371_v57 }
 0xcb0   :  { %v3370_v31 = vpop.xlane.xlu1 %3369 }
 0xcb1   :  { %9195 = vrsqrt.f32 %v3373_v52  ;;  %v3372_v26 = vmul.f32 0.0078125, %v3370_v31 }
 0xcb3   :  { %v3374_v43 = vadd.f32 1e-05, %v3372_v26  ;;  %v8905_v26 = vld [vmem:[#allocation2 + $0x214] ss:$12 sps:$4 sm:$0xff]  }
 0xcb5   :  { %9197 = vrsqrt.f32 %v3374_v43  ;;  %v8903_v43 = vld [vmem:[#allocation2 + $0x210] ss:$12 sps:$4 sm:$0xff]  }
 0xcbe   :  { %v9196_v3 = vpop.eup %9195 }
 0xcbf   :  { %v3377_v25 = vmul.f32 %v9196_v3, %v10365_v36  ;;  %v8906_v3 = vld [vmem:[#allocation2 + $0x218] ss:$12 sps:$4 sm:$0xff]  }
 0xcc1   :  { %v3385_v27 = vmul.f32 %v7620_v4, %v3377_v25  ;;  %v8909_v25 = vld [vmem:[#allocation2 + $0x1fc] ss:$12 sps:$4 sm:$0xff]  }
 0xcc2   :  { %v9198_v9 = vpop.eup %9197 }
 0xcc3   :  { %v3378_v39 = vmul.f32 %v9198_v9, %v10369_v33  ;;  %v3393_v35 = vadd.f32 %v7621_v58, %v3385_v27  ;;  %v8910_v9 = vld [vmem:[#allocation2 + $0x200] ss:$12 sps:$4 sm:$0xff]   ;;  %v8913_v27 = vld [vmem:[#allocation2 + $0x1e4] ss:$12 sps:$4 sm:$0xff]  }
 0xcc5   :  { %v3386_v17 = vmul.f32 %v7620_v4, %v3378_v39  ;;  %v8907_v4 = vld [vmem:[#allocation2 + $0x1f8] ss:$12 sps:$4 sm:$0xff]   ;;  %v8911_v39 = vld [vmem:[#allocation2 + $0x1e0] ss:$12 sps:$4 sm:$0xff]  }
 0xcc7   :  { %v3394_v34 = vadd.f32 %v7621_v58, %v3386_v17  ;;  %v8914_v58 = vld [vmem:[#allocation2 + $0x1e8] ss:$12 sps:$4 sm:$0xff]   ;;  %v8917_v17 = vld [vmem:[#allocation2 + $0x1cc] ss:$12 sps:$4 sm:$0xff]  }
 0xcc9   :  { %v3395_v16 = vpack.c.bf16 %v3394_v34, %v3393_v35 }
 0xccb   :  { %3539 = vmatmul.mubr.bf16.vlgmr.msra.gmra.mxu0 %v3395_v16  ;;  %v8921_v16 = vld [vmem:[#allocation2 + $0x1b4] ss:$12 sps:$4 sm:$0xff]  }
 0xccc   :  { %3989 = vmatprep.mubr.bf16.mxu0 %v11219_v7  ;;  %3958 = vmatpush1.bf16.msra.mxu0 %v8899_v54  ;;  %v9376_v54 = vld [vmem:[%s11200_s1 + $0x38] sm:$0xff] }
 0xccd   :  { %3959 = vmatprep.subr.bf16.mxu0 %v8905_v26 }
 0xcd0   :  { %3960 = vmatpush1.bf16.msra.mxu0 %v8903_v43 }
 0xcd1   :  { %3961 = vmatprep.subr.bf16.mxu0 %v8909_v25 }
 0xcd4   :  { %3962 = vmatpush1.bf16.msra.mxu0 %v8907_v4 }
 0xcd5   :  { %3963 = vmatprep.subr.bf16.mxu0 %v8913_v27 }
 0xcd8   :  { %3964 = vmatpush1.bf16.msra.mxu0 %v8911_v39 }
 0xcd9   :  { %3965 = vmatprep.subr.bf16.mxu0 %v8917_v17 }
 0xd8b   :  { %v3540_v20 = vpop.f32.mrf.mxu0 }
 0xd8c   :  { %v3541_v42 = vadd.f32 %v3540_v20, %v3419_v38  ;;  %v8930_v20 = vld [vmem:[#allocation2 + $0x188] ss:$12 sps:$4 sm:$0xff]  }
 0xd8d   :  { %v3542_v8 = vpop.f32.mrf.mxu0 }
 0xd8e   :  { %v3543_v61 = vadd.f32 %v3542_v8, %v3423_v60  ;;  %v3549_v24 = vmax.f32 %v3541_v42, 0.0 }
 0xd8f   :  { %v3544_v36 = vpop.f32.mrf.mxu0 }
 0xd90   :  { %v3545_v13 = vadd.f32 %v3544_v36, %v3419_v38  ;;  %v3550_v55 = vmax.f32 %v3543_v61, 0.0  ;;  %v9368_v38 = vld [vmem:[%s11201_s2] sm:$0xff] }
 0xd91   :  { %v3546_v33 = vpop.f32.mrf.mxu0 }
 0xd92   :  { %v3547_v47 = vadd.f32 %v3546_v33, %v3423_v60  ;;  %v3551_v5 = vmax.f32 %v3545_v13, 0.0  ;;  %v9367_v60 = vld [vmem:[%s11200_s1 + $0x78] sm:$0xff] }
 0xd94   :  { %v3552_v49 = vmax.f32 %v3547_v47, 0.0  ;;  %v3553_v22 = vpack.c.bf16 %v3551_v5, %v3549_v24 }
 0xd96   :  { %v3554_v53 = vpack.c.bf16 %v3552_v49, %v3550_v55  ;;  %v7659_v55 = vld [vmem:[%s11212_s13 + $0x1] ss:$0 sm:$0xff] }
 0xd98   :  { %3724 = vmatprep.mubr.bf16.mxu1 %v3554_v53 }
 0xd99   :  { %3725 = vmatmul.mubr.bf16.vlgmr.msra.gmra.mxu1 %v3553_v22  ;;  %v7660_v22 = vld [vmem:[%s11213_s14 + $0x1] ss:$0 sm:$0xff] }
 0xd9a   :  { %8497 = vmatprep.mubr.msk.bf16.mxu1 %vm9499_vm0, %v11217_v56  ;;  %8482 = vmatpush3.bf16.msra.mxu1 %v8902_v63  ;;  %v9378_v63 = vld [vmem:[%s11200_s1 + $0x28] sm:$0xff] }
 0xd9b   :  { %8483 = vmatprep.subr.bf16.mxu1 %v11217_v56 }
 0xd9e   :  { %8484 = vmatpush3.bf16.msra.mxu1 %v8906_v3 }
 0xd9f   :  { %8485 = vmatprep.subr.bf16.mxu1 %v11217_v56 }
 0xda2   :  { %8486 = vmatpush3.bf16.msra.mxu1 %v8910_v9 }
 0xda3   :  { %8487 = vmatprep.subr.bf16.mxu1 %v11217_v56 }
 0xda6   :  { %8488 = vmatpush3.bf16.msra.mxu1 %v8914_v58 }
 0xda7   :  { %8489 = vmatprep.subr.bf16.mxu1 %v11217_v56 }
 0xe59   :  { %v8053_v15 = vpop.f32.mrf.mxu1 }
 0xe5b   :  { %v8054_v41 = vpop.f32.mrf.mxu1 }
 0xe5c   :  { %v8055_v21 = vadd.f32 %v8054_v41, %v8053_v15 }
 0xe5d   :  { %v8056_v62 = vpop.f32.mrf.mxu1 }
 0xe5e   :  { %v3727_v12 = vadd.f32 %v8055_v21, %v7640_v37 }
 0xe5f   :  { %v8057_v48 = vpop.f32.mrf.mxu1 }
 0xe60   :  { %v8058_v2 = vadd.f32 %v8057_v48, %v8056_v62  ;;  %v3733_v10 = vadd.f32 %v3727_v12, %v3393_v35  ;;  %v8915_v35 = vld [vmem:[#allocation2 + $0x1c8] ss:$12 sps:$4 sm:$0xff]   ;;  %v9371_v48 = vld [vmem:[%s11200_s1 + $0x60] sm:$0xff] }
 0xe61   :  { %3966 = vmatpush1.bf16.msra.mxu0 %v8915_v35  ;;  %v9369_v62 = vld [vmem:[%s11200_s1 + $0x70] sm:$0xff]  ;;  %v9370_v12 = vld [vmem:[%s11200_s1 + $0x68] sm:$0xff] }
 0xe62   :  { %v3730_v0 = vadd.f32 %v8058_v2, %v7640_v37  ;;  %3739 = vadd.xlane.f32.xlu0 %v3733_v10  ;;  %3967 = vmatprep.subr.bf16.mxu0 %v8921_v16  ;;  %v9372_v2 = vld [vmem:[%s11200_s1 + $0x58] sm:$0xff] }
 0xe64   :  { %v3734_v51 = vadd.f32 %v3730_v0, %v3394_v34  ;;  %v8918_v34 = vld [vmem:[#allocation2 + $0x1d0] ss:$12 sps:$4 sm:$0xff]   ;;  %v9374_v0 = vld [vmem:[%s11200_s1 + $0x48] sm:$0xff] }
 0xe65   :  { %8490 = vmatpush3.bf16.msra.mxu1 %v8918_v34  ;;  %3968 = vmatpush1.bf16.msra.mxu0 %v8919_v1 }
 0xe66   :  { %3741 = vadd.xlane.f32.xlu1 %v3734_v51  ;;  %8491 = vmatprep.subr.bf16.mxu1 %v11217_v56 }
 0xe67   :  { %3969 = vmatprep.subr.bf16.mxu0 %v8925_v6 }
 0xe69   :  { %8492 = vmatpush3.bf16.msra.mxu1 %v8922_v14  ;;  %3970 = vmatpush1.bf16.msra.mxu0 %v8923_v59 }
 0xe6a   :  { %8493 = vmatprep.subr.bf16.mxu1 %v11217_v56  ;;  %3971 = vmatprep.subr.bf16.mxu0 %v8929_v19 }
 0xe6d   :  { %8494 = vmatpush3.bf16.msra.mxu1 %v8926_v50  ;;  %3972 = vmatpush1.bf16.msra.mxu0 %v8927_v45 }
 0xe6e   :  { %8495 = vmatprep.subr.bf16.mxu1 %v11217_v56  ;;  %8501 = vmatprep.subr.mxu0 %v9367_v60 }
 0xe71   :  { %8496 = vmatpush3.bf16.msra.mxu1 %v8930_v20 }
 0xe72   :  { %8557 = vmatprep.subr.mxu1 %v9368_v38 }
 0xeeb   :  { %v3740_v11 = vpop.xlane.xlu0 %3739 }
 0xeec   :  { %v3743_v28 = vmul.f32 0.0078125, %v3740_v11  ;;  %v9379_v11 = vld [vmem:[%s11200_s1 + $0x20] sm:$0xff] }
 0xeee   :  { %v10394_v32 = vsub.f32 %v3733_v10, %v3743_v28  ;;  %v9373_v10 = vld [vmem:[%s11200_s1 + $0x50] sm:$0xff]  ;;  %v9380_v28 = vld [vmem:[%s11200_s1 + $0x18] sm:$0xff] }
 0xeef   :  { %v3742_v23 = vpop.xlane.xlu1 %3741 }
 0xef0   :  { %v3744_v29 = vmul.f32 0.0078125, %v3742_v23  ;;  %v3747_v57 = vmul.f32 %v10394_v32, %v10394_v32  ;;  %v9382_v23 = vld [vmem:[%s11200_s1 + $0x8] sm:$0xff] }
 0xef2   :  { %v10398_v52 = vsub.f32 %v3734_v51, %v3744_v29  ;;  %3749 = vadd.xlane.f32.xlu0 %v3747_v57  ;;  %v9375_v51 = vld [vmem:[%s11200_s1 + $0x40] sm:$0xff] }
 0xef3   :  { %v9383_v29 = vld [vmem:[%s11200_s1] sm:$0xff] }
 0xef4   :  { %v3748_v31 = vmul.f32 %v10398_v52, %v10398_v52  ;;  %v10477_v57 = vld [vmem:[%s11203_s4 + $0x6] sm:$0x7] }
 0xef5   :  { %v3821_v39 = vrot.slane %v10477_v57, %v9664_v46 }
 0xef6   :  { %3751 = vadd.xlane.f32.xlu1 %v3748_v31 }
 0xf7b   :  { %v3750_v8 = vpop.xlane.xlu0 %3749 }
 0xf7c   :  { %v3753_v36 = vmul.f32 0.0078125, %v3750_v8 }
 0xf7e   :  { %v3755_v61 = vadd.f32 1e-05, %v3753_v36 }
 0xf7f   :  { %v3752_v13 = vpop.xlane.xlu1 %3751 }
 0xf80   :  { %9199 = vrsqrt.f32 %v3755_v61  ;;  %v3754_v42 = vmul.f32 0.0078125, %v3752_v13 }
 0xf82   :  { %v3756_v33 = vadd.f32 1e-05, %v3754_v42 }
 0xf84   :  { %9201 = vrsqrt.f32 %v3756_v33 }
 0xf8d   :  { %v9200_v47 = vpop.eup %9199 }
 0xf8e   :  { %v3759_v5 = vmul.f32 %v9200_v47, %v10394_v32  ;;  %v9381_v32 = vld [vmem:[%s11200_s1 + $0x10] sm:$0xff] }
 0xf90   :  { %v3767_v53 = vmul.f32 %v7659_v55, %v3759_v5 }
 0xf91   :  { %v9202_v49 = vpop.eup %9201 }
 0xf92   :  { %v3760_v24 = vmul.f32 %v9202_v49, %v10398_v52  ;;  %v10422_v37 = vadd.f32 %v7660_v22, %v3767_v53  ;;  %v3817_v52 = vrot.slane %v10477_v57, %v9654_v40 }
 0xf94   :  { %v3768_v15 = vmul.f32 %v7659_v55, %v3760_v24 }
 0xf96   :  { %v10424_v41 = vadd.f32 %v7660_v22, %v3768_v15 }
 0xf98   :  { %v3777_v21 = vpack.c.bf16 %v10424_v41, %v10422_v37 }
 0xf9a   :  { %3990 = vmatmul.mubr.bf16.vlgmr.msra.gmra.mxu0 %v3777_v21  ;;  %8498 = vmatmul.mubr.bf16.vlgmr.msra.gmra.mxu1 %v3777_v21 }
 0xf9b   :  { %8502 = vmatpush3.msra.mxu0 %v9367_v60  ;;  %8558 = vmatpush3.msra.mxu1 %v9368_v38 }
 0xf9c   :  { %8503 = vmatprep.subr.mxu0 %v9369_v62  ;;  %8583 = vmatprep.subr.bf16.mxu1 %v11217_v56 }
 0xf9d   :  { %8504 = vmatpush3.msra.mxu0 %v9369_v62 }
 0xf9e   :  { %8505 = vmatprep.subr.mxu0 %v9370_v12 }
 0xf9f   :  { %8506 = vmatpush3.msra.mxu0 %v9370_v12 }
 0xfa0   :  { %8507 = vmatprep.subr.mxu0 %v9371_v48 }
 0xfa1   :  { %8508 = vmatpush3.msra.mxu0 %v9371_v48 }
 0xfa2   :  { %8509 = vmatprep.subr.mxu0 %v9372_v2 }
 0xfa3   :  { %8510 = vmatpush3.msra.mxu0 %v9372_v2 }
 0xfa4   :  { %8511 = vmatprep.subr.mxu0 %v9373_v10 }
 0xfa5   :  { %8512 = vmatpush3.msra.mxu0 %v9373_v10 }
 0xfa6   :  { %8513 = vmatprep.subr.mxu0 %v9374_v0 }
 0xfa7   :  { %8514 = vmatpush3.msra.mxu0 %v9374_v0 }
 0xfa8   :  { %8515 = vmatprep.subr.mxu0 %v9375_v51 }
 0xfa9   :  { %8516 = vmatpush3.msra.mxu0 %v9375_v51 }
 0xfaa   :  { %8517 = vmatprep.subr.mxu0 %v9376_v54 }
 0xfab   :  { %8518 = vmatpush3.msra.mxu0 %v9376_v54 }
 0xfac   :  { %8519 = vmatprep.subr.mxu0 %v9377_v18 }
 0xfad   :  { %8520 = vmatpush3.msra.mxu0 %v9377_v18 }
 0xfae   :  { %8521 = vmatprep.subr.mxu0 %v9378_v63 }
 0xfaf   :  { %8522 = vmatpush3.msra.mxu0 %v9378_v63 }
 0xfb0   :  { %8523 = vmatprep.subr.mxu0 %v9379_v11 }
 0xfb1   :  { %8524 = vmatpush3.msra.mxu0 %v9379_v11 }
 0xfb2   :  { %8525 = vmatprep.subr.mxu0 %v9380_v28 }
 0xfb3   :  { %8526 = vmatpush3.msra.mxu0 %v9380_v28 }
 0xfb4   :  { %8527 = vmatprep.subr.mxu0 %v9381_v32 }
 0xfb5   :  { %8528 = vmatpush3.msra.mxu0 %v9381_v32 }
 0xfb6   :  { %8529 = vmatprep.subr.mxu0 %v9382_v23 }
 0xfb7   :  { %8530 = vmatpush3.msra.mxu0 %v9382_v23 }
 0xfb8   :  { %8531 = vmatprep.subr.mxu0 %v9383_v29 }
 0xfb9   :  { %8532 = vmatpush3.msra.mxu0 %v9383_v29 }
0x105a   :  { %v3991_v31 = vpop.f32.mrf.mxu0  ;;  %v10481_v26 = vpop.f32.mrf.mxu1 }
0x105b   :  { %v3992_v43 = vadd.f32 %v3991_v31, %v3817_v52 }
0x105c   :  { %v3993_v3 = vpop.f32.mrf.mxu0  ;;  %v8499_v25 = vpop.f32.mrf.mxu1 }
0x105d   :  { %v4043_v4 = vcombine.high %v3992_v43, %v3992_v43  ;;  %v4050_v9 = vrot.slane %v3992_v43, %v9661_v44  ;;  %v3994_v50 = vadd.f32 %v3993_v3, %v3821_v39 }
0x105e   :  { %v3995_v27 = vpop.f32.mrf.mxu0  ;;  %v10486_v58 = vpop.f32.mrf.mxu1 }
0x105f   :  { %v4057_v17 = vrot.slane %v4043_v4, %v9661_v44  ;;  %v4058_v35 = vcombine.high %v4050_v9, %v4050_v9  ;;  %v4066_v34 = vrot.slane %v4050_v9, %v9661_v44  ;;  %v3996_v6 = vadd.f32 %v3995_v27, %v3817_v52 }
0x1060   :  { %v8500_v16 = vpop.f32.mrf.mxu1  ;;  %v3997_v2 = vpop.f32.mrf.mxu0 }
0x1061   :  { %v4080_v1 = vrot.slane %v4058_v35, %v9661_v44  ;;  %v4088_v14 = vcombine.high %v4066_v34, %v4066_v34  ;;  %v4073_v59 = vrot.slane %v4057_v17, %v9661_v44  ;;  %v4144_v19 = vrot.slane %v4066_v34, %v9654_v40 }
0x1062   :  { %v4059_v45 = vcombine.high %v4057_v17, %v4057_v17  ;;  %v4099_v36 = vrot.slane %v3996_v6, %v9661_v44  ;;  %v4092_v55 = vcombine.high %v3996_v6, %v3996_v6  ;;  %v3998_v63 = vadd.f32 %v3997_v2, %v3821_v39 }
0x1063   :  { %v4148_v20 = vrot.slane %v4080_v1, %v9654_v40  ;;  %v4152_v60 = vrot.slane %v4088_v14, %v9654_v40  ;;  %v4090_v38 = vcombine.high %v4080_v1, %v4080_v1  ;;  %v4221_v8 = vmul.f32 %v4144_v19, %v3994_v50 }
0x1064   :  { %v4160_v33 = vrot.slane %v4073_v59, %v9654_v40  ;;  %v4087_v47 = vrot.slane %v4059_v45, %v9661_v44  ;;  %v4089_v5 = vcombine.high %v4073_v59, %v4073_v59  ;;  %v4107_v49 = vcombine.high %v4099_v36, %v4099_v36 }
0x1065   :  { %v4222_v61 = vmul.f32 %v4148_v20, %v3994_v50  ;;  %v4223_v13 = vmul.f32 %v4152_v60, %v3994_v50  ;;  %v4156_v42 = vrot.slane %v4090_v38, %v9654_v40  ;;  %8533 = vmatprep.mubr.f32.mxu0 %v4221_v8  ;;  %v4115_v15 = vrot.slane %v4099_v36, %v9661_v44 }
0x1066   :  { %v4164_v53 = vrot.slane %v4087_v47, %v9654_v40  ;;  %v4091_v22 = vcombine.high %v4087_v47, %v4087_v47  ;;  %v4225_v21 = vmul.f32 %v4160_v33, %v3994_v50  ;;  %v4168_v62 = vrot.slane %v4089_v5, %v9654_v40 }
0x1067   :  { %8534 = vmatmul.mubr.f32.vlgmr.msra.gmra.mxu0 %v4222_v61  ;;  %v4224_v24 = vmul.f32 %v4156_v42, %v3994_v50  ;;  %v4106_v12 = vrot.slane %v4092_v55, %v9661_v44  ;;  %v4129_v48 = vrot.slane %v4107_v49, %v9661_v44  ;;  %v4137_v51 = vcombine.high %v4115_v15, %v4115_v15 }
0x1068   :  { %8536 = vmatprep.mubr.f32.mxu0 %v4223_v13  ;;  %v4226_v10 = vmul.f32 %v4164_v53, %v3994_v50  ;;  %v4172_v0 = vrot.slane %v4091_v22, %v9654_v40  ;;  %v4227_v54 = vmul.f32 %v4168_v62, %v3994_v50  ;;  %v4176_v18 = vrot.slane %v4115_v15, %v9654_v40 }
0x1069   :  { %v4108_v11 = vcombine.high %v4106_v12, %v4106_v12  ;;  %v4180_v32 = vrot.slane %v4129_v48, %v9654_v40  ;;  %v4139_v23 = vcombine.high %v4129_v48, %v4129_v48  ;;  %v4122_v29 = vrot.slane %v4106_v12, %v9661_v44 }
0x106a   :  { %v4228_v28 = vmul.f32 %v4172_v0, %v3994_v50  ;;  %v4229_v52 = vmul.f32 %v4176_v18, %v3998_v63  ;;  %v4184_v31 = vrot.slane %v4137_v51, %v9654_v40 }
0x106b   :  { %8537 = vmatmul.mubr.f32.gmra.mxu0 %v4224_v24  ;;  %v4230_v43 = vmul.f32 %v4180_v32, %v3998_v63  ;;  %v4188_v3 = vrot.slane %v4139_v23, %v9654_v40  ;;  %v4136_v25 = vrot.slane %v4108_v11, %v9661_v44  ;;  %v4192_v9 = vrot.slane %v4122_v29, %v9654_v40 }
0x106c   :  { %8539 = vmatprep.mubr.f32.mxu0 %v4225_v21  ;;  %v4231_v4 = vmul.f32 %v4184_v31, %v3998_v63  ;;  %v4138_v39 = vcombine.high %v4122_v29, %v4122_v29 }
0x106d   :  { %v4232_v27 = vmul.f32 %v4188_v3, %v3998_v63  ;;  %v4196_v17 = vrot.slane %v4136_v25, %v9654_v40  ;;  %v4140_v35 = vcombine.high %v4136_v25, %v4136_v25  ;;  %v4233_v34 = vmul.f32 %v4192_v9, %v3998_v63 }
0x106e   :  { %v4200_v16 = vrot.slane %v4138_v39, %v9654_v40 }
0x106f   :  { %8540 = vmatmul.mubr.f32.gmra.mxu0 %v4226_v10  ;;  %v4234_v1 = vmul.f32 %v4196_v17, %v3998_v63  ;;  %v4204_v14 = vrot.slane %v4140_v35, %v9654_v40 }
0x1070   :  { %8542 = vmatprep.mubr.f32.mxu0 %v4227_v54  ;;  %v4235_v6 = vmul.f32 %v4200_v16, %v3998_v63 }
0x1071   :  { %v4236_v59 = vmul.f32 %v4204_v14, %v3998_v63 }
0x1073   :  { %8543 = vmatmul.mubr.f32.gmra.mxu0 %v4228_v28 }
0x1074   :  { %8545 = vmatprep.mubr.f32.mxu0 %v4229_v52 }
0x1077   :  { %8546 = vmatmul.mubr.f32.gmra.mxu0 %v4230_v43 }
0x1078   :  { %8548 = vmatprep.mubr.f32.mxu0 %v4231_v4 }
0x107b   :  { %8549 = vmatmul.mubr.f32.gmra.mxu0 %v4232_v27 }
0x107c   :  { %8551 = vmatprep.mubr.f32.mxu0 %v4233_v34 }
0x107f   :  { %8552 = vmatmul.mubr.f32.gmra.mxu0 %v4234_v1 }
0x1080   :  { %8554 = vmatprep.mubr.f32.mxu0 %v4235_v6 }
0x1083   :  { %8555 = vmatmul.mubr.f32.gmra.mxu0 %v4236_v59 }
0x1084   :  { %5372 = vmatprep.mubr.bf16.mxu0 %v11219_v7 }
0x1127   :  { %v8535_v50 = vpop.f32.mrf.mxu0 }
0x1128   :  { %v4383_v19 = vmul.f32 0.25, %v8535_v50 }
0x1129   :  { %v4303_v45 = vpop.f32.mrf.mxu0 }
0x112a   :  { %v4405_v20 = vsel %vm731_vm1, %v4383_v19, -inf  ;;  %v4382_v60 = vmul.f32 0.25, %v4303_v45 }
0x112b   :  { %v4406_v38 = vrot.slane %v4405_v20, 4  ;;  %v8538_v8 = vpop.f32.mrf.mxu0 }
0x112c   :  { %v4398_v36 = vsel %vm731_vm1, %v4382_v60, -inf  ;;  %v10518_v61 = vmul.f32 0.25, %v8538_v8 }
0x112d   :  { %v4407_v13 = vmax.f32 %v4405_v20, %v4406_v38  ;;  %v4399_v42 = vrot.slane %v4398_v36, 4  ;;  %v4313_v33 = vpop.f32.mrf.mxu0 }
0x112e   :  { %v4419_v47 = vsel %vm731_vm1, %v10518_v61, -inf  ;;  %v10522_v5 = vmul.f32 0.25, %v4313_v33 }
0x112f   :  { %v4408_v55 = vrot.slane %v4407_v13, 2  ;;  %v4400_v49 = vmax.f32 %v4398_v36, %v4399_v42  ;;  %v4420_v24 = vrot.slane %v4419_v47, 4  ;;  %v8541_v53 = vpop.f32.mrf.mxu0 }
0x1130   :  { %v4412_v22 = vsel %vm731_vm1, %v10522_v5, -inf  ;;  %v10526_v15 = vmul.f32 0.25, %v8541_v53 }
0x1131   :  { %v4409_v21 = vmax.f32 %v4407_v13, %v4408_v55  ;;  %v4401_v62 = vrot.slane %v4400_v49, 2  ;;  %v4421_v12 = vmax.f32 %v4419_v47, %v4420_v24  ;;  %v4413_v48 = vrot.slane %v4412_v22, 4  ;;  %v4323_v2 = vpop.f32.mrf.mxu0 }
0x1132   :  { %v4433_v10 = vsel %vm731_vm1, %v10526_v15, -inf  ;;  %v10530_v0 = vmul.f32 0.25, %v4323_v2 }
0x1133   :  { %v4410_v51 = vrot.slane %v4409_v21, 1  ;;  %v4402_v54 = vmax.f32 %v4400_v49, %v4401_v62  ;;  %v4422_v18 = vrot.slane %v4421_v12, 2  ;;  %v4414_v63 = vmax.f32 %v4412_v22, %v4413_v48  ;;  %v8544_v11 = vpop.f32.mrf.mxu0 }
0x1134   :  { %v4434_v28 = vrot.slane %v4433_v10, 4  ;;  %v4426_v32 = vsel %vm731_vm1, %v10530_v0, -inf  ;;  %v10534_v23 = vmul.f32 0.25, %v8544_v11 }
0x1135   :  { %v4411_v29 = vmax.f32 %v4409_v21, %v4410_v51  ;;  %v4403_v52 = vrot.slane %v4402_v54, 1  ;;  %v4423_v31 = vmax.f32 %v4421_v12, %v4422_v18  ;;  %v4415_v43 = vrot.slane %v4414_v63, 2  ;;  %v4333_v3 = vpop.f32.mrf.mxu0 }
0x1136   :  { %v4435_v25 = vmax.f32 %v4433_v10, %v4434_v28  ;;  %v4427_v4 = vrot.slane %v4426_v32, 4  ;;  %v4447_v9 = vsel %vm731_vm1, %v10534_v23, -inf  ;;  %v10538_v39 = vmul.f32 0.25, %v4333_v3 }
0x1137   :  { %v4511_v27 = vsub.f32 %v4383_v19, %v4411_v29  ;;  %v4404_v17 = vmax.f32 %v4402_v54, %v4403_v52  ;;  %v4424_v35 = vrot.slane %v4423_v31, 1  ;;  %v4416_v34 = vmax.f32 %v4414_v63, %v4415_v43  ;;  %v8547_v16 = vpop.f32.mrf.mxu0 }
0x1138   :  { %v4436_v1 = vrot.slane %v4435_v25, 2  ;;  %v4428_v14 = vmax.f32 %v4426_v32, %v4427_v4  ;;  %v4448_v6 = vrot.slane %v4447_v9, 4  ;;  %v4440_v59 = vsel %vm731_vm1, %v10538_v39, -inf }
0x1139   :  { %v4528_v50 = vmul.f32 1.442695, %v4511_v27  ;;  %v4510_v45 = vsub.f32 %v4382_v60, %v4404_v17  ;;  %v4425_v20 = vmax.f32 %v4423_v31, %v4424_v35  ;;  %v4417_v38 = vrot.slane %v4416_v34, 1  ;;  %v4343_v8 = vpop.f32.mrf.mxu0 }
0x113a   :  { %v4437_v36 = vmax.f32 %v4435_v25, %v4436_v1  ;;  %v4429_v13 = vrot.slane %v4428_v14, 2  ;;  %v4449_v42 = vmax.f32 %v4447_v9, %v4448_v6  ;;  %v4441_v33 = vrot.slane %v4440_v59, 4 }
0x113b   :  { %9203 = vpow2.f32 %v4528_v50  ;;  %v4526_v19 = vmul.f32 1.442695, %v4510_v45  ;;  %v4513_v47 = vsub.f32 %v10518_v61, %v4425_v20  ;;  %v4418_v55 = vmax.f32 %v4416_v34, %v4417_v38  ;;  %v8550_v21 = vpop.f32.mrf.mxu0 }
0x113c   :  { %v4438_v49 = vrot.slane %v4437_v36, 1  ;;  %v4430_v24 = vmax.f32 %v4428_v14, %v4429_v13  ;;  %v4450_v53 = vrot.slane %v4449_v42, 2  ;;  %v4442_v22 = vmax.f32 %v4440_v59, %v4441_v33 }
0x113d   :  { %9205 = vpow2.f32 %v4526_v19  ;;  %v4532_v62 = vmul.f32 1.442695, %v4513_v47  ;;  %v4512_v60 = vsub.f32 %v10522_v5, %v4418_v55  ;;  %v10544_v12 = vmul.f32 0.25, %v8547_v16  ;;  %v4353_v29 = vpop.f32.mrf.mxu0 }
0x113e   :  { %v4439_v48 = vmax.f32 %v4437_v36, %v4438_v49  ;;  %v4431_v2 = vrot.slane %v4430_v24, 1  ;;  %v4451_v10 = vmax.f32 %v4449_v42, %v4450_v53  ;;  %v4443_v51 = vrot.slane %v4442_v22, 2 }
0x113f   :  { %9207 = vpow2.f32 %v4532_v62  ;;  %v4530_v54 = vmul.f32 1.442695, %v4512_v60  ;;  %v4461_v61 = vsel %vm731_vm1, %v10544_v12, -inf  ;;  %v10548_v18 = vmul.f32 0.25, %v4343_v8  ;;  %v8553_v59 = vpop.f32.mrf.mxu0 }
0x1140   :  { %v4515_v63 = vsub.f32 %v10526_v15, %v4439_v48  ;;  %v4432_v11 = vmax.f32 %v4430_v24, %v4431_v2  ;;  %v4452_v28 = vrot.slane %v4451_v10, 1  ;;  %v4444_v32 = vmax.f32 %v4442_v22, %v4443_v51 }
0x1141   :  { %9209 = vpow2.f32 %v4530_v54  ;;  %v4462_v5 = vrot.slane %v4461_v61, 4  ;;  %v4454_v52 = vsel %vm731_vm1, %v10548_v18, -inf  ;;  %v10553_v31 = vmul.f32 0.25, %v8550_v21 }
0x1142   :  { %v4536_v43 = vmul.f32 1.442695, %v4515_v63  ;;  %v4514_v3 = vsub.f32 %v10530_v0, %v4432_v11  ;;  %v4453_v25 = vmax.f32 %v4451_v10, %v4452_v28  ;;  %v4445_v4 = vrot.slane %v4444_v32, 1 }
0x1143   :  { %v4463_v9 = vmax.f32 %v4461_v61, %v4462_v5  ;;  %v4455_v27 = vrot.slane %v4454_v52, 4  ;;  %v4475_v15 = vsel %vm731_vm1, %v10553_v31, -inf  ;;  %v10558_v17 = vmul.f32 0.25, %v4353_v29 }
0x1144   :  { %9211 = vpow2.f32 %v4536_v43  ;;  %v4534_v35 = vmul.f32 1.442695, %v4514_v3  ;;  %v4517_v34 = vsub.f32 %v10534_v23, %v4453_v25  ;;  %v4446_v16 = vmax.f32 %v4444_v32, %v4445_v4 }
0x1145   :  { %v4464_v1 = vrot.slane %v4463_v9, 2  ;;  %v4456_v14 = vmax.f32 %v4454_v52, %v4455_v27  ;;  %v4476_v6 = vrot.slane %v4475_v15, 4  ;;  %v4468_v0 = vsel %vm731_vm1, %v10558_v17, -inf }
0x1146   :  { %9213 = vpow2.f32 %v4534_v35  ;;  %v4540_v50 = vmul.f32 1.442695, %v4517_v34  ;;  %v4516_v45 = vsub.f32 %v10538_v39, %v4446_v16  ;;  %v4469_v20 = vrot.slane %v4468_v0, 4 }
0x1147   :  { %v4465_v38 = vmax.f32 %v4463_v9, %v4464_v1  ;;  %v4457_v8 = vrot.slane %v4456_v14, 2  ;;  %v4477_v36 = vmax.f32 %v4475_v15, %v4476_v6  ;;  %v10566_v33 = vmul.f32 0.25, %v8553_v59 }
0x1148   :  { %v10564_v13 = vpop.eup %9203  ;;  %9215 = vpow2.f32 %v4540_v50  ;;  %v4538_v23 = vmul.f32 1.442695, %v4516_v45  ;;  %v4470_v42 = vmax.f32 %v4468_v0, %v4469_v20 }
0x1149   :  { %v4565_v19 = vsel %vm731_vm1, %v10564_v13, 0.0  ;;  %v4466_v47 = vrot.slane %v4465_v38, 1  ;;  %v4458_v55 = vmax.f32 %v4456_v14, %v4457_v8  ;;  %v4478_v49 = vrot.slane %v4477_v36, 2 }
0x114a   :  { %v10570_v24 = vpop.eup %9205  ;;  %v4566_v39 = vrot.slane %v4565_v19, 4  ;;  %9217 = vpow2.f32 %v4538_v23  ;;  %v4471_v53 = vrot.slane %v4470_v42, 2  ;;  %v4489_v54 = vsel %vm731_vm1, %v10566_v33, -inf }
0x114b   :  { %v4558_v22 = vsel %vm731_vm1, %v10570_v24, 0.0  ;;  %v4467_v21 = vmax.f32 %v4465_v38, %v4466_v47  ;;  %v4459_v62 = vrot.slane %v4458_v55, 1  ;;  %v4479_v60 = vmax.f32 %v4477_v36, %v4478_v49 }
0x114c   :  { %v10574_v48 = vpop.eup %9207  ;;  %v4567_v2 = vadd.f32 %v4566_v39, %v4565_v19  ;;  %v4559_v10 = vrot.slane %v4558_v22, 4  ;;  %v4472_v51 = vmax.f32 %v4470_v42, %v4471_v53  ;;  %v4490_v34 = vrot.slane %v4489_v54, 4 }
0x114d   :  { %v4579_v61 = vsel %vm731_vm1, %v10574_v48, 0.0  ;;  %v4519_v63 = vsub.f32 %v10544_v12, %v4467_v21  ;;  %v4460_v11 = vmax.f32 %v4458_v55, %v4459_v62  ;;  %v4480_v28 = vrot.slane %v4479_v60, 1  ;;  %v4363_v12 = vpop.f32.mrf.mxu0 }
0x114e   :  { %v10581_v32 = vpop.eup %9209  ;;  %v4568_v29 = vrot.slane %v4567_v2, 2  ;;  %v4560_v5 = vadd.f32 %v4559_v10, %v4558_v22  ;;  %v4580_v52 = vrot.slane %v4579_v61, 4  ;;  %v4473_v43 = vrot.slane %v4472_v51, 1 }
0x114f   :  { %v4572_v3 = vsel %vm731_vm1, %v10581_v32, 0.0  ;;  %v4544_v25 = vmul.f32 1.442695, %v4519_v63  ;;  %v4518_v4 = vsub.f32 %v10548_v18, %v4460_v11  ;;  %v4481_v9 = vmax.f32 %v4479_v60, %v4480_v28  ;;  %v8556_v42 = vpop.f32.mrf.mxu0 }
0x1150   :  { %v4569_v27 = vadd.f32 %v4568_v29, %v4567_v2  ;;  %v4581_v15 = vadd.f32 %v4580_v52, %v4579_v61  ;;  %v4573_v35 = vrot.slane %v4572_v3, 4  ;;  %v4474_v6 = vmax.f32 %v4472_v51, %v4473_v43 }
0x1151   :  { %v10586_v16 = vpop.eup %9211  ;;  %9219 = vpow2.f32 %v4544_v25  ;;  %v4542_v1 = vmul.f32 1.442695, %v4518_v4  ;;  %v4521_v14 = vsub.f32 %v10553_v31, %v4481_v9  ;;  %v4561_v59 = vrot.slane %v4560_v5, 2  ;;  %v4373_v63 = vpop.f32.mrf.mxu0 }
0x1152   :  { %v4570_v0 = vrot.slane %v4569_v27, 1  ;;  %v4582_v50 = vrot.slane %v4581_v15, 2  ;;  %v4574_v45 = vadd.f32 %v4573_v35, %v4572_v3  ;;  %v4593_v18 = vsel %vm731_vm1, %v10586_v16, 0.0 }
0x1153   :  { %v10589_v20 = vpop.eup %9213  ;;  %9221 = vpow2.f32 %v4542_v1  ;;  %v4548_v38 = vmul.f32 1.442695, %v4521_v14  ;;  %v4520_v8 = vsub.f32 %v10558_v17, %v4474_v6  ;;  %v10594_v23 = vmul.f32 0.25, %v4363_v12 }
0x1154   :  { %v4575_v36 = vrot.slane %v4574_v45, 2  ;;  %v4594_v31 = vrot.slane %v4593_v18, 4  ;;  %v4586_v47 = vsel %vm731_vm1, %v10589_v20, 0.0  ;;  %v4571_v49 = vadd.f32 %v4570_v0, %v4569_v27 }
0x1155   :  { %v10596_v19 = vpop.eup %9215  ;;  %9223 = vpow2.f32 %v4548_v38  ;;  %v4546_v55 = vmul.f32 1.442695, %v4520_v8  ;;  %v4562_v39 = vadd.f32 %v4561_v59, %v4560_v5  ;;  %v10600_v53 = vadd.f32 %v4582_v50, %v4581_v15 }
0x1156   :  { %v4587_v22 = vrot.slane %v4586_v47, 4  ;;  %v4595_v17 = vadd.f32 %v4594_v31, %v4593_v18  ;;  %v4607_v62 = vsel %vm731_vm1, %v10596_v19, 0.0  ;;  %v4491_v60 = vmax.f32 %v4489_v54, %v4490_v34 }
0x1157   :  { %v10602_v21 = vpop.eup %9217  ;;  %9225 = vpow2.f32 %v4546_v55  ;;  %v10606_v2 = vadd.f32 %v4575_v36, %v4574_v45  ;;  %v4608_v51 = vrot.slane %v4607_v62, 4  ;;  %v4482_v5 = vsel %vm731_vm1, %v10594_v23, -inf }
0x1158   :  { %v4588_v10 = vadd.f32 %v4587_v22, %v4586_v47  ;;  %v4600_v61 = vsel %vm731_vm1, %v10602_v21, 0.0  ;;  %v4596_v11 = vrot.slane %v4595_v17, 2  ;;  %v4492_v29 = vrot.slane %v4491_v60, 2 }
0x1159   :  { %v4601_v28 = vrot.slane %v4600_v61, 4  ;;  %v4609_v43 = vadd.f32 %v4608_v51, %v4607_v62  ;;  %v4483_v3 = vrot.slane %v4482_v5, 4  ;;  %v10612_v25 = vmul.f32 0.25, %v8556_v42 }
0x115a   :  { %v4589_v52 = vrot.slane %v4588_v10, 2  ;;  %v4563_v54 = vrot.slane %v4562_v39, 1  ;;  %v10614_v4 = vadd.f32 %v4596_v11, %v4595_v17  ;;  %v4493_v9 = vmax.f32 %v4491_v60, %v4492_v29 }
0x115b   :  { %v10616_v27 = vmul.f32 0.25, %v4373_v63  ;;  %9227 = vrcp.f32 %v4571_v49  ;;  %v4602_v15 = vadd.f32 %v4601_v28, %v4600_v61  ;;  %v4484_v35 = vmax.f32 %v4482_v5, %v4483_v3 }
0x115c   :  { %v4503_v34 = vsel %vm731_vm1, %v10612_v25, -inf  ;;  %v4584_v12 = vrot.slane %v10600_v53, 1  ;;  %v4610_v1 = vrot.slane %v4609_v43, 2  ;;  %v4494_v14 = vrot.slane %v4493_v9, 1 }
0x115d   :  { %v4504_v6 = vrot.slane %v4503_v34, 4  ;;  %v4577_v59 = vrot.slane %v10606_v2, 1  ;;  %v4590_v50 = vadd.f32 %v4589_v52, %v4588_v10  ;;  %v4485_v45 = vrot.slane %v4484_v35, 2 }
0x115e   :  { %v10621_v0 = vpop.eup %9219  ;;  %v4496_v18 = vsel %vm731_vm1, %v10616_v27, -inf  ;;  %v4598_v38 = vrot.slane %v10614_v4, 1  ;;  %v4495_v36 = vmax.f32 %v4493_v9, %v4494_v14  ;;  %v4603_v47 = vrot.slane %v4602_v15, 2 }
0x115f   :  { %v4621_v8 = vsel %vm731_vm1, %v10621_v0, 0.0  ;;  %v4505_v42 = vmax.f32 %v4503_v34, %v4504_v6  ;;  %v4486_v49 = vmax.f32 %v4484_v35, %v4485_v45  ;;  %v4497_v22 = vrot.slane %v4496_v18, 4 }
0x1160   :  { %v10629_v31 = vpop.eup %9221  ;;  %v4622_v55 = vrot.slane %v4621_v8, 4  ;;  %v4611_v17 = vadd.f32 %v4610_v1, %v4609_v43  ;;  %v4523_v60 = vsub.f32 %v10566_v33, %v4495_v36  ;;  %v4564_v3 = vadd.f32 %v4563_v54, %v4562_v39 }
0x1161   :  { %v4614_v62 = vsel %vm731_vm1, %v10629_v31, 0.0  ;;  %v4506_v10 = vrot.slane %v4505_v42, 2  ;;  %v4487_v11 = vrot.slane %v4486_v49, 1  ;;  %v4498_v28 = vmax.f32 %v4496_v18, %v4497_v22 }
0x1162   :  { %v10634_v51 = vpop.eup %9223  ;;  %v4623_v61 = vadd.f32 %v4622_v55, %v4621_v8  ;;  %v4615_v63 = vrot.slane %v4614_v62, 4  ;;  %v4552_v5 = vmul.f32 1.442695, %v4523_v60  ;;  %v4604_v43 = vadd.f32 %v4603_v47, %v4602_v15 }
0x1163   :  { %v4635_v29 = vsel %vm731_vm1, %v10634_v51, 0.0  ;;  %v4507_v52 = vmax.f32 %v4505_v42, %v4506_v10  ;;  %v4488_v1 = vmax.f32 %v4486_v49, %v4487_v11  ;;  %v4499_v6 = vrot.slane %v4498_v28, 2 }
0x1164   :  { %v10638_v9 = vpop.eup %9225  ;;  %v4616_v35 = vadd.f32 %v4615_v63, %v4614_v62  ;;  %v4636_v34 = vrot.slane %v4635_v29, 4  ;;  %9229 = vpow2.f32 %v4552_v5  ;;  %v4624_v45 = vrot.slane %v4623_v61, 2 }
0x1165   :  { %v4628_v33 = vsel %vm731_vm1, %v10638_v9, 0.0  ;;  %v4508_v14 = vrot.slane %v4507_v52, 1  ;;  %v4522_v55 = vsub.f32 %v10594_v23, %v4488_v1  ;;  %v4500_v39 = vmax.f32 %v4498_v28, %v4499_v6 }
0x1166   :  { %v4617_v18 = vrot.slane %v4616_v35, 2  ;;  %v4637_v8 = vadd.f32 %v4636_v34, %v4635_v29  ;;  %v4629_v36 = vrot.slane %v4628_v33, 4  ;;  %9231 = vrcp.f32 %v4564_v3 }
0x1167   :  { %v4509_v42 = vmax.f32 %v4507_v52, %v4508_v14  ;;  %v4591_v54 = vrot.slane %v4590_v50, 1  ;;  %v4612_v15 = vrot.slane %v4611_v17, 1  ;;  %v4605_v62 = vrot.slane %v4604_v43, 1 }
0x1168   :  { %v4618_v47 = vadd.f32 %v4617_v18, %v4616_v35  ;;  %v4630_v22 = vadd.f32 %v4629_v36, %v4628_v33  ;;  %v9228_v49 = vpop.eup %9227  ;;  %v4550_v60 = vmul.f32 1.442695, %v4522_v55  ;;  %v4501_v63 = vrot.slane %v4500_v39, 1 }
0x1169   :  { %v4525_v10 = vsub.f32 %v10612_v25, %v4509_v42  ;;  %v4625_v11 = vadd.f32 %v4624_v45, %v4623_v61  ;;  %v4638_v5 = vrot.slane %v4637_v8, 2  ;;  %v4578_v29 = vadd.f32 %v4577_v59, %v10606_v2 }
0x116a   :  { %v4631_v56 = vrot.slane %v4630_v22, 2  ;;  %9233 = vpow2.f32 %v4550_v60  ;;  %v4502_v52 = vmax.f32 %v4500_v39, %v4501_v63  ;;  %v4585_v28 = vadd.f32 %v4584_v12, %v10600_v53 }
0x116b   :  { %v4556_v23 = vmul.f32 1.442695, %v4525_v10  ;;  %v4619_v3 = vrot.slane %v4618_v47, 1  ;;  %9235 = vrcp.f32 %v4578_v29  ;;  %v4592_v34 = vadd.f32 %v4591_v54, %v4590_v50 }
0x116c   :  { %v4632_v35 = vadd.f32 %v4631_v56, %v4630_v22  ;;  %v4524_v25 = vsub.f32 %v10616_v27, %v4502_v52  ;;  %v4599_v61 = vadd.f32 %v4598_v38, %v10614_v4  ;;  %v4606_v1 = vadd.f32 %v4605_v62, %v4604_v43 }
0x116d   :  { %9237 = vpow2.f32 %v4556_v23  ;;  %v4613_v59 = vadd.f32 %v4612_v15, %v4611_v17  ;;  %v4626_v14 = vrot.slane %v4625_v11, 1  ;;  %v4639_v6 = vadd.f32 %v4638_v5, %v4637_v8 }
0x116e   :  { %9239 = vrcp.f32 %v4585_v28  ;;  %v4633_v33 = vrot.slane %v4632_v35, 1  ;;  %v4554_v2 = vmul.f32 1.442695, %v4524_v25  ;;  %v4620_v45 = vadd.f32 %v4619_v3, %v4618_v47 }
0x116f   :  { %9241 = vrcp.f32 %v4592_v34  ;;  %v4640_v12 = vrot.slane %v4639_v6, 1  ;;  %v4627_v38 = vadd.f32 %v4626_v14, %v4625_v11  ;;  %v4687_v18 = vmul.f32 %v9228_v49, %v10564_v13 }
0x1170   :  { %9243 = vrcp.f32 %v4599_v61  ;;  %v4634_v27 = vadd.f32 %v4633_v33, %v4632_v35 }
0x1171   :  { %9245 = vpow2.f32 %v4554_v2  ;;  %v10650_v53 = vpop.eup %9229  ;;  %v4641_v55 = vadd.f32 %v4640_v12, %v4639_v6 }
0x1172   :  { %9247 = vrcp.f32 %v4606_v1  ;;  %v4649_v56 = vsel %vm731_vm1, %v10650_v53, 0.0 }
0x1173   :  { %9249 = vrcp.f32 %v4613_v59  ;;  %v9232_v4 = vpop.eup %9231  ;;  %v4650_v50 = vrot.slane %v4649_v56, 4 }
0x1174   :  { %9251 = vrcp.f32 %v4620_v45  ;;  %v4686_v17 = vmul.f32 %v9232_v4, %v10570_v24 }
0x1175   :  { %v4651_v43 = vadd.f32 %v4650_v50, %v4649_v56  ;;  %9253 = vrcp.f32 %v4634_v27 }
0x1176   :  { %8559 = vmatprep.mubr.msk.f32.mxu1 %vm731_vm1, %v4686_v17  ;;  %9255 = vrcp.f32 %v4627_v38 }
0x1177   :  { %v10657_v8 = vpop.eup %9233  ;;  %v4652_v36 = vrot.slane %v4651_v43, 2  ;;  %8560 = vmatmul.mubr.msk.f32.vlgmr.msra.gmra.mxu1 %vm731_vm1, %v4687_v18  ;;  %9257 = vrcp.f32 %v4641_v55 }
0x1178   :  { %v9236_v42 = vpop.eup %9235  ;;  %v4642_v39 = vsel %vm731_vm1, %v10657_v8, 0.0 }
0x1179   :  { %v4653_v24 = vadd.f32 %v4652_v36, %v4651_v43  ;;  %v4643_v15 = vrot.slane %v4642_v39, 4  ;;  %v4688_v13 = vmul.f32 %v9236_v42, %v10581_v32 }
0x117a   :  { %v10662_v54 = vpop.eup %9237 }
0x117b   :  { %v9240_v47 = vpop.eup %9239  ;;  %v4663_v22 = vsel %vm731_vm1, %v10662_v54, 0.0  ;;  %v4644_v62 = vadd.f32 %v4643_v15, %v4642_v39  ;;  %8562 = vmatprep.mubr.msk.f32.mxu1 %vm731_vm1, %v4688_v13  ;;  %v4654_v11 = vrot.slane %v4653_v24, 1  ;;  %v8934_v15 = vld [vmem:[%s11204_s5 + $0xa0] sm:$0xff]   ;;  %v8935_v13 = vld [vmem:[%s11204_s5 + $0x98] sm:$0xff]  }
0x117c   :  { %v9242_v49 = vpop.eup %9241  ;;  %v4664_v60 = vrot.slane %v4663_v22, 4  ;;  %v4689_v10 = vmul.f32 %v9240_v47, %v10574_v48  ;;  %v8936_v47 = vld [vmem:[%s11204_s5 + $0x90] sm:$0xff]  }
0x117d   :  { %v9244_v63 = vpop.eup %9243  ;;  %v4690_v5 = vmul.f32 %v9242_v49, %v10589_v20  ;;  %v4645_v23 = vrot.slane %v4644_v62, 2  ;;  %v4655_v20 = vadd.f32 %v4654_v11, %v4653_v24  ;;  %v8938_v49 = vld [vmem:[%s11204_s5 + $0x80] sm:$0xff]  }
0x117e   :  { %v9246_v29 = vpop.eup %9245  ;;  %v4665_v52 = vadd.f32 %v4664_v60, %v4663_v22  ;;  %8563 = vmatmul.mubr.msk.f32.gmra.mxu1 %vm731_vm1, %v4689_v10  ;;  %v4691_v3 = vmul.f32 %v9244_v63, %v10586_v16  ;;  %v8937_v22 = vld [vmem:[%s11204_s5 + $0x88] sm:$0xff]  }
0x117f   :  { %v9248_v32 = vpop.eup %9247  ;;  %v4656_v28 = vsel %vm731_vm1, %v9246_v29, 0.0  ;;  %8565 = vmatprep.mubr.msk.f32.mxu1 %vm731_vm1, %v4690_v5  ;;  %v4646_v34 = vadd.f32 %v4645_v23, %v4644_v62  ;;  %9259 = vrcp.f32 %v4655_v20  ;;  %v3825_v62 = vrot.slane %v10477_v57, %v9923_v30 }
0x1180   :  { %v9250_v35 = vpop.eup %9249  ;;  %v4666_v48 = vrot.slane %v4665_v52, 2  ;;  %v4657_v25 = vrot.slane %v4656_v28, 4  ;;  %v4692_v61 = vmul.f32 %v9248_v32, %v10602_v21 }
0x1181   :  { %v9252_v1 = vpop.eup %9251  ;;  %v4647_v33 = vrot.slane %v4646_v34, 1  ;;  %v4693_v56 = vmul.f32 %v9250_v35, %v10596_v19  ;;  %v4035_v60 = vadd.f32 %v10481_v26, %v3825_v62 }
0x1182   :  { %v4667_v2 = vadd.f32 %v4666_v48, %v4665_v52  ;;  %v4658_v59 = vadd.f32 %v4657_v25, %v4656_v28  ;;  %8566 = vmatmul.mubr.msk.f32.gmra.mxu1 %vm731_vm1, %v4691_v3  ;;  %v4694_v14 = vmul.f32 %v9252_v1, %v10629_v31  ;;  %v9254_v6 = vpop.eup %9253 }
0x1183   :  { %8568 = vmatprep.mubr.msk.f32.mxu1 %vm731_vm1, %v4692_v61  ;;  %v4648_v27 = vadd.f32 %v4647_v33, %v4646_v34  ;;  %v9256_v4 = vpop.eup %9255  ;;  %v4696_v12 = vmul.f32 %v9254_v6, %v10638_v9  ;;  %v10731_v6 = vadd.f32 %v10486_v58, %v3825_v62 }
0x1184   :  { %v4668_v45 = vrot.slane %v4667_v2, 1  ;;  %v4659_v16 = vrot.slane %v4658_v59, 2  ;;  %v4695_v31 = vmul.f32 %v9256_v4, %v10621_v0  ;;  %v9258_v17 = vpop.eup %9257 }
0x1185   :  { %9261 = vrcp.f32 %v4648_v27  ;;  %v4697_v19 = vmul.f32 %v9258_v17, %v10634_v51  ;;  %v11220_v51 = vmov 0.0  }
0x1186   :  { %v4660_v21 = vadd.f32 %v4659_v16, %v4658_v59  ;;  %8569 = vmatmul.mubr.msk.f32.gmra.mxu1 %vm731_vm1, %v4693_v56  ;;  %v4669_v50 = vadd.f32 %v4668_v45, %v4667_v2 }
0x1187   :  { %8571 = vmatprep.mubr.msk.f32.mxu1 %vm731_vm1, %v4694_v14 }
0x1188   :  { %v4661_v38 = vrot.slane %v4660_v21, 1  ;;  %9263 = vrcp.f32 %v4669_v50 }
0x118a   :  { %8572 = vmatmul.mubr.msk.f32.gmra.mxu1 %vm731_vm1, %v4695_v31  ;;  %v4662_v43 = vadd.f32 %v4661_v38, %v4660_v21 }
0x118b   :  { %8574 = vmatprep.mubr.msk.f32.mxu1 %vm731_vm1, %v4696_v12 }
0x118c   :  { %9265 = vrcp.f32 %v4662_v43  ;;  %v9260_v18 = vpop.eup %9259 }
0x118d   :  { %v4699_v55 = vmul.f32 %v9260_v18, %v10650_v53  ;;  %v8931_v53 = vld [vmem:[%s11204_s5 + $0xb8] sm:$0xff]  }
0x118e   :  { %8575 = vmatmul.mubr.msk.f32.gmra.mxu1 %vm731_vm1, %v4697_v19 }
0x118f   :  { %8584 = vmatpush3.bf16.msra.mxu1 %v8931_v53 }
0x1190   :  { %8585 = vmatprep.subr.bf16.mxu1 %v11220_v51 }
0x1192   :  { %v9262_v36 = vpop.eup %9261 }
0x1193   :  { %v4698_v9 = vmul.f32 %v9262_v36, %v10657_v8  ;;  %v8932_v8 = vld [vmem:[%s11204_s5 + $0xb0] sm:$0xff]  }
0x1194   :  { %8586 = vmatpush3.bf16.msra.mxu1 %v8932_v8 }
0x1195   :  { %8577 = vmatprep.mubr.msk.f32.mxu1 %vm731_vm1, %v4698_v9  ;;  %v9264_v0 = vpop.eup %9263  ;;  %8587 = vmatprep.subr.bf16.mxu1 %v11220_v51 }
0x1196   :  { %8578 = vmatmul.mubr.msk.f32.gmra.mxu1 %vm731_vm1, %v4699_v55  ;;  %v4701_v24 = vmul.f32 %v9264_v0, %v10662_v54  ;;  %v8933_v54 = vld [vmem:[%s11204_s5 + $0xa8] sm:$0xff]  }
0x1198   :  { %8588 = vmatpush3.bf16.msra.mxu1 %v8933_v54 }
0x1199   :  { %v9266_v42 = vpop.eup %9265  ;;  %8589 = vmatprep.subr.bf16.mxu1 %v11220_v51 }
0x119a   :  { %v4700_v39 = vmul.f32 %v9266_v42, %v9246_v29 }
0x119c   :  { %8580 = vmatprep.mubr.msk.f32.mxu1 %vm731_vm1, %v4700_v39  ;;  %8590 = vmatpush3.bf16.msra.mxu1 %v8934_v15 }
0x119d   :  { %8581 = vmatmul.mubr.msk.f32.gmra.mxu1 %vm731_vm1, %v4701_v24  ;;  %8591 = vmatprep.subr.bf16.mxu1 %v11220_v51 }
0x119e   :  { %8599 = vmatprep.mubr.msk.bf16.mxu1 %vm9499_vm0, %v11220_v51 }
0x11a0   :  { %8592 = vmatpush3.bf16.msra.mxu1 %v8935_v13 }
0x11a1   :  { %8593 = vmatprep.subr.bf16.mxu1 %v11220_v51 }
0x11a4   :  { %8594 = vmatpush3.bf16.msra.mxu1 %v8936_v47 }
0x11a5   :  { %8595 = vmatprep.subr.bf16.mxu1 %v11220_v51 }
0x11a8   :  { %8596 = vmatpush3.bf16.msra.mxu1 %v8937_v22 }
0x11a9   :  { %8597 = vmatprep.subr.bf16.mxu1 %v11220_v51 }
0x11ac   :  { %8598 = vmatpush3.bf16.msra.mxu1 %v8938_v49 }
0x1237   :  { %v8561_v10 = vpop.f32.mrf.mxu1 }
0x1238   :  { %v4896_v63 = vmul.f32 %v8561_v10, %v4035_v60 }
0x1239   :  { %v4816_v11 = vpop.f32.mrf.mxu1 }
0x123a   :  { %v4895_v5 = vmul.f32 %v4816_v11, %v4035_v60  ;;  %v4917_v29 = vrot.slane %v4896_v63, 4 }
0x123c   :  { %v4911_v23 = vrot.slane %v4895_v5, 4  ;;  %v4918_v28 = vadd.f32 %v4917_v29, %v4896_v63 }
0x123e   :  { %v8564_v52 = vpop.f32.mrf.mxu1  ;;  %v4912_v32 = vadd.f32 %v4911_v23, %v4895_v5  ;;  %v4919_v61 = vrot.slane %v4918_v28, 2 }
0x123f   :  { %v4898_v3 = vmul.f32 %v8564_v52, %v4035_v60 }
0x1240   :  { %v4826_v35 = vpop.f32.mrf.mxu1  ;;  %v4913_v34 = vrot.slane %v4912_v32, 2  ;;  %v4920_v2 = vadd.f32 %v4919_v61, %v4918_v28 }
0x1241   :  { %v4897_v25 = vmul.f32 %v4826_v35, %v4035_v60  ;;  %v4929_v1 = vrot.slane %v4898_v3, 4 }
0x1242   :  { %v8567_v48 = vpop.f32.mrf.mxu1  ;;  %v4914_v57 = vadd.f32 %v4913_v34, %v4912_v32  ;;  %v4921_v12 = vrot.slane %v4920_v2, 1 }
0x1243   :  { %v4923_v26 = vrot.slane %v4897_v25, 4  ;;  %v4930_v59 = vadd.f32 %v4929_v1, %v4898_v3  ;;  %v4900_v56 = vmul.f32 %v8567_v48, %v4035_v60 }
0x1244   :  { %v4836_v20 = vpop.f32.mrf.mxu1  ;;  %v4915_v16 = vrot.slane %v4914_v57, 1  ;;  %v4922_v0 = vadd.f32 %v4921_v12, %v4920_v2 }
0x1245   :  { %v4899_v45 = vmul.f32 %v4836_v20, %v4035_v60  ;;  %v4924_v4 = vadd.f32 %v4923_v26, %v4897_v25  ;;  %v4931_v50 = vrot.slane %v4930_v59, 2  ;;  %v4941_v18 = vrot.slane %v4900_v56, 4 }
0x1246   :  { %v8570_v33 = vpop.f32.mrf.mxu1  ;;  %v4916_v19 = vadd.f32 %v4915_v16, %v4914_v57  ;;  %v5008_v63 = vpack.c.bf16 %v4922_v0, %v4922_v0 }
0x1247   :  { %v4935_v31 = vrot.slane %v4899_v45, 4  ;;  %v4925_v9 = vrot.slane %v4924_v4, 2  ;;  %v4932_v42 = vadd.f32 %v4931_v50, %v4930_v59  ;;  %v4902_v39 = vmul.f32 %v8570_v33, %v4035_v60 }
0x1248   :  { %v4846_v14 = vpop.f32.mrf.mxu1  ;;  %v5007_v15 = vpack.c.bf16 %v4916_v19, %v4916_v19  ;;  %v4942_v13 = vadd.f32 %v4941_v18, %v4900_v56  ;;  %v5065_v61 = vunpack.c.l.b16 %v5008_v63 }
0x1249   :  { %v4901_v17 = vmul.f32 %v4846_v14, %v4035_v60  ;;  %v4936_v24 = vadd.f32 %v4935_v31, %v4899_v45  ;;  %v4926_v47 = vadd.f32 %v4925_v9, %v4924_v4  ;;  %v4933_v11 = vrot.slane %v4932_v42, 1 }
0x124a   :  { %v8573_v27 = vpop.f32.mrf.mxu1  ;;  %v4953_v5 = vrot.slane %v4902_v39, 4  ;;  %v4943_v60 = vrot.slane %v4942_v13, 2  ;;  %v5064_v3 = vunpack.c.l.b16 %v5007_v15 }
0x124b   :  { %v4904_v21 = vmul.f32 %v8573_v27, %v10731_v6  ;;  %v4947_v53 = vrot.slane %v4901_v17, 4  ;;  %v4937_v29 = vrot.slane %v4936_v24, 2  ;;  %v4927_v35 = vrot.slane %v4926_v47, 1 }
0x124c   :  { %v4856_v38 = vpop.f32.mrf.mxu1  ;;  %v10738_v33 = vadd.f32 %v4933_v11, %v4932_v42  ;;  %v4954_v2 = vadd.f32 %v4953_v5, %v4902_v39  ;;  %v5080_v4 = vsel %vm1412_vm2, %v5065_v61, %v5064_v3  ;;  %v4944_v12 = vadd.f32 %v4943_v60, %v4942_v13 }
0x124d   :  { %v4965_v43 = vrot.slane %v4904_v21, 4  ;;  %v4903_v58 = vmul.f32 %v4856_v38, %v10731_v6  ;;  %v4948_v23 = vadd.f32 %v4947_v53, %v4901_v17  ;;  %v4938_v26 = vadd.f32 %v4937_v29, %v4936_v24 }
0x124e   :  { %v8576_v36 = vpop.f32.mrf.mxu1  ;;  %v5010_v19 = vpack.c.bf16 %v10738_v33, %v10738_v33  ;;  %v4945_v53 = vrot.slane %v4944_v12, 1 }
0x124f   :  { %v4966_v55 = vadd.f32 %v4965_v43, %v4904_v21  ;;  %v4959_v8 = vrot.slane %v4903_v58, 4  ;;  %v4906_v54 = vmul.f32 %v8576_v36, %v10731_v6  ;;  %v4949_v59 = vrot.slane %v4948_v23, 2 }
0x1250   :  { %v4866_v10 = vpop.f32.mrf.mxu1  ;;  %v4928_v21 = vadd.f32 %v4927_v35, %v4926_v47  ;;  %v4939_v18 = vrot.slane %v4938_v26, 1  ;;  %v4955_v36 = vrot.slane %v4954_v2, 2  ;;  %v4946_v33 = vadd.f32 %v4945_v53, %v4944_v12 }
0x1251   :  { %v4967_v22 = vrot.slane %v4966_v55, 2  ;;  %v4960_v49 = vadd.f32 %v4959_v8, %v4903_v58  ;;  %v4977_v62 = vrot.slane %v4906_v54, 4  ;;  %v4905_v28 = vmul.f32 %v4866_v10, %v10731_v6 }
0x1252   :  { %v4950_v9 = vadd.f32 %v4949_v59, %v4948_v23  ;;  %v5009_v24 = vpack.c.bf16 %v4928_v21, %v4928_v21  ;;  %v4956_v5 = vadd.f32 %v4955_v36, %v4954_v2  ;;  %v5012_v36 = vpack.c.bf16 %v4946_v33, %v4946_v33  ;;  %v8939_v33 = vld [vmem:[#allocation5 + $0x170] ss:$8 sps:$4 sm:$0xff]  }
0x1253   :  { %v4961_v52 = vrot.slane %v4960_v49, 2  ;;  %v4978_v32 = vadd.f32 %v4977_v62, %v4906_v54  ;;  %v4968_v34 = vadd.f32 %v4967_v22, %v4966_v55  ;;  %v4971_v20 = vrot.slane %v4905_v28, 4 }
0x1254   :  { %v4940_v62 = vadd.f32 %v4939_v18, %v4938_v26  ;;  %v4951_v10 = vrot.slane %v4950_v9, 1  ;;  %v4957_v26 = vrot.slane %v4956_v5, 1  ;;  %v5067_v18 = vunpack.c.l.b16 %v5010_v19 }
0x1255   :  { %v4962_v48 = vadd.f32 %v4961_v52, %v4960_v49  ;;  %v4979_v1 = vrot.slane %v4978_v32, 2  ;;  %v4972_v16 = vadd.f32 %v4971_v20, %v4905_v28  ;;  %v4969_v50 = vrot.slane %v4968_v34, 1 }
0x1256   :  { %v8579_v25 = vpop.f32.mrf.mxu1  ;;  %v5011_v61 = vpack.c.bf16 %v4940_v62, %v4940_v62 }
0x1257   :  { %v4908_v57 = vmul.f32 %v8579_v25, %v10731_v6  ;;  %v4963_v45 = vrot.slane %v4962_v48, 1  ;;  %v4980_v38 = vadd.f32 %v4979_v1, %v4978_v32  ;;  %v4973_v31 = vrot.slane %v4972_v16, 2 }
0x1258   :  { %v4876_v14 = vpop.f32.mrf.mxu1  ;;  %v4970_v8 = vadd.f32 %v4969_v50, %v4968_v34  ;;  %v5066_v32 = vunpack.c.l.b16 %v5009_v24  ;;  %v4952_v1 = vadd.f32 %v4951_v10, %v4950_v9  ;;  %v4958_v9 = vadd.f32 %v4957_v26, %v4956_v5  ;;  %v8941_v26 = vld [vmem:[#allocation5 + $0x174] ss:$8 sps:$4 sm:$0xff]  }
0x1259   :  { %v4989_v56 = vrot.slane %v4908_v57, 4  ;;  %v4907_v27 = vmul.f32 %v4876_v14, %v10731_v6  ;;  %v4964_v58 = vadd.f32 %v4963_v45, %v4962_v48  ;;  %v4974_v0 = vadd.f32 %v4973_v31, %v4972_v16  ;;  %5340 = vmatprep.subr.bf16.mxu0 %v8941_v26 }
0x125a   :  { %v4981_v13 = vrot.slane %v4980_v38, 1  ;;  %v5016_v60 = vpack.c.bf16 %v4970_v8, %v4970_v8  ;;  %v5081_v2 = vsel %vm1414_vm3, %v5066_v32, %v5080_v4  ;;  %v5013_v31 = vpack.c.bf16 %v4952_v1, %v4952_v1  ;;  %5341 = vmatpush1.bf16.msra.mxu0 %v8939_v33 }
0x125b   :  { %v4990_v17 = vadd.f32 %v4989_v56, %v4908_v57  ;;  %v4983_v43 = vrot.slane %v4907_v27, 4  ;;  %v4975_v47 = vrot.slane %v4974_v0, 1  ;;  %v5015_v29 = vpack.c.bf16 %v4964_v58, %v4964_v58 }
0x125c   :  { %v4982_v35 = vadd.f32 %v4981_v13, %v4980_v38  ;;  %v5073_v56 = vunpack.c.l.b16 %v5016_v60  ;;  %v5068_v38 = vunpack.c.l.b16 %v5011_v61  ;;  %v5070_v8 = vunpack.c.l.b16 %v5013_v31  ;;  %v8948_v31 = vld [vmem:[#allocation5 + $0x140] ss:$8 sps:$4 sm:$0xff]  }
0x125d   :  { %v8582_v55 = vpop.f32.mrf.mxu1  ;;  %v4991_v42 = vrot.slane %v4990_v17, 2  ;;  %v4984_v39 = vadd.f32 %v4983_v43, %v4907_v27  ;;  %v4976_v23 = vadd.f32 %v4975_v47, %v4974_v0  ;;  %v5072_v59 = vunpack.c.l.b16 %v5015_v29 }
0x125e   :  { %v4910_v54 = vmul.f32 %v8582_v55, %v10731_v6  ;;  %v5018_v27 = vpack.c.bf16 %v4982_v35, %v4982_v35  ;;  %v5014_v13 = vpack.c.bf16 %v4958_v9, %v4958_v9  ;;  %v8959_v9 = vld [vmem:[#allocation5 + $0x114] ss:$8 sps:$4 sm:$0xff]  }
0x125f   :  { %v4886_v15 = vpop.f32.mrf.mxu1  ;;  %v4992_v22 = vadd.f32 %v4991_v42, %v4990_v17  ;;  %v4985_v49 = vrot.slane %v4984_v39, 2  ;;  %v5017_v34 = vpack.c.bf16 %v4976_v23, %v4976_v23  ;;  %v5087_v12 = vsel %vm1412_vm2, %v5073_v56, %v5072_v59  ;;  %v8944_v56 = vld [vmem:[#allocation5 + $0x164] ss:$8 sps:$4 sm:$0xff]  }
0x1260   :  { %v5001_v63 = vrot.slane %v4910_v54, 4  ;;  %v4909_v11 = vmul.f32 %v4886_v15, %v10731_v6  ;;  %v5082_v42 = vsel %vm1416_vm4, %v5067_v18, %v5081_v2  ;;  %v5069_v15 = vunpack.c.l.b16 %v5012_v36  ;;  %5342 = vmatprep.subr.bf16.mxu0 %v8944_v56  ;;  %v8956_v18 = vld [vmem:[#allocation5 + $0x124] ss:$8 sps:$4 sm:$0xff]   ;;  %v8954_v36 = vld [vmem:[#allocation5 + $0x120] ss:$8 sps:$4 sm:$0xff]  }
0x1261   :  { %v4986_v52 = vadd.f32 %v4985_v49, %v4984_v39  ;;  %v4993_v48 = vrot.slane %v4992_v22, 1  ;;  %v5074_v14 = vunpack.c.l.b16 %v5017_v34  ;;  %v5075_v39 = vunpack.c.l.b16 %v5018_v27  ;;  %v8942_v27 = vld [vmem:[#allocation5 + $0x160] ss:$8 sps:$4 sm:$0xff]  }
0x1262   :  { %v5002_v28 = vadd.f32 %v5001_v63, %v4910_v54  ;;  %v4995_v3 = vrot.slane %v4909_v11, 4  ;;  %v5083_v53 = vsel %vm1418_vm5, %v5068_v38, %v5082_v42  ;;  %v5071_v5 = vunpack.c.l.b16 %v5014_v13  ;;  %5343 = vmatpush1.bf16.msra.mxu0 %v8942_v27  ;;  %v8950_v38 = vld [vmem:[#allocation5 + $0x144] ss:$8 sps:$4 sm:$0xff]   ;;  %v8965_v42 = vld [vmem:[#allocation7 + $0x170] sm:$0xff]   ;;  %v8972_v13 = vld [vmem:[#allocation7 + $0x118] sm:$0xff]  }
0x1263   :  { %v4987_v25 = vrot.slane %v4986_v52, 1  ;;  %v4994_v21 = vadd.f32 %v4993_v48, %v4992_v22  ;;  %v5088_v55 = vsel %vm1414_vm3, %v5074_v14, %v5087_v12  ;;  %v5084_v62 = vsel %vm1420_vm6, %v5069_v15, %v5083_v53  ;;  %v8957_v12 = vld [vmem:[#allocation5 + $0x110] ss:$8 sps:$4 sm:$0xff]   ;;  %v8968_v53 = vld [vmem:[#allocation7 + $0x128] sm:$0xff]  }
0x1264   :  { %v5003_v20 = vrot.slane %v5002_v28, 2  ;;  %v4996_v57 = vadd.f32 %v4995_v3, %v4909_v11  ;;  %v5089_v19 = vsel %vm1416_vm4, %v5075_v39, %v5088_v55  ;;  %v5085_v63 = vsel %vm1422_vm7, %v5070_v8, %v5084_v62  ;;  %v7719_v3 = vld [vmem:[%s11205_s6 + $0x2] ss:$0 sm:$0xff]  ;;  %v8962_v55 = vld [vmem:[#allocation5 + $0x104] ss:$8 sps:$4 sm:$0xff]   ;;  %v8966_v39 = vld [vmem:[#allocation7 + $0x130] sm:$0xff]  }
0x1265   :  { %v4988_v6 = vadd.f32 %v4987_v25, %v4986_v52  ;;  %v5020_v24 = vpack.c.bf16 %v4994_v21, %v4994_v21  ;;  %v5086_v32 = vsel %vm1424_vm8, %v5071_v5, %v5085_v63  ;;  %v8947_v21 = vld [vmem:[#allocation5 + $0x154] ss:$8 sps:$4 sm:$0xff]   ;;  %v8969_v8 = vld [vmem:[#allocation7 + $0x160] sm:$0xff]  }
0x1266   :  { %v5004_v45 = vadd.f32 %v5003_v20, %v5002_v28  ;;  %v4997_v16 = vrot.slane %v4996_v57, 2  ;;  %5344 = vmatprep.subr.bf16.mxu0 %v8947_v21  ;;  %v8971_v15 = vld [vmem:[#allocation7 + $0x158] sm:$0xff]   ;;  %v7730_v5 = vld [vmem:[%s11206_s7 + $0x2] ss:$0 sm:$0xff] }
0x1267   :  { %v5019_v50 = vpack.c.bf16 %v4988_v6, %v4988_v6  ;;  %v5077_v10 = vunpack.c.l.b16 %v5020_v24  ;;  %v8967_v24 = vld [vmem:[#allocation7 + $0x168] sm:$0xff]  }
0x1268   :  { %v5005_v17 = vrot.slane %v5004_v45, 1  ;;  %v4998_v43 = vadd.f32 %v4997_v16, %v4996_v57 }
0x1269   :  { %v5076_v58 = vunpack.c.l.b16 %v5019_v50  ;;  %v8945_v50 = vld [vmem:[#allocation5 + $0x150] ss:$8 sps:$4 sm:$0xff]  }
0x126a   :  { %v5006_v4 = vadd.f32 %v5005_v17, %v5004_v45  ;;  %v4999_v0 = vrot.slane %v4998_v43, 1  ;;  %5345 = vmatpush1.bf16.msra.mxu0 %v8945_v50  ;;  %v8953_v17 = vld [vmem:[#allocation5 + $0x134] ss:$8 sps:$4 sm:$0xff]  }
0x126b   :  { %v5090_v22 = vsel %vm1418_vm5, %v5076_v58, %v5089_v19  ;;  %5346 = vmatprep.subr.bf16.mxu0 %v8950_v38  ;;  %v8960_v58 = vld [vmem:[#allocation5 + $0x100] ss:$8 sps:$4 sm:$0xff]  }
0x126c   :  { %v5000_v54 = vadd.f32 %v4999_v0, %v4998_v43  ;;  %v5022_v47 = vpack.c.bf16 %v5006_v4, %v5006_v4  ;;  %v5091_v23 = vsel %vm1420_vm6, %v5077_v10, %v5090_v22  ;;  %v8951_v43 = vld [vmem:[#allocation5 + $0x130] ss:$8 sps:$4 sm:$0xff]  }
0x126d   :  { %v8963_v4 = vld [vmem:[#allocation7 + $0x178] sm:$0xff]  }
0x126e   :  { %v5021_v49 = vpack.c.bf16 %v5000_v54, %v5000_v54  ;;  %v5079_v29 = vunpack.c.l.b16 %v5022_v47  ;;  %5347 = vmatpush1.bf16.msra.mxu0 %v8948_v31  ;;  %v8964_v0 = vld [vmem:[#allocation7 + $0x138] sm:$0xff]   ;;  %8126 = vmatprep.subr.bf16.mxu1 %v8963_v4  ;;  %v8970_v54 = vld [vmem:[#allocation7 + $0x120] sm:$0xff]  }
0x126f   :  { %5348 = vmatprep.subr.bf16.mxu0 %v8953_v17 }
0x1270   :  { %v5078_v11 = vunpack.c.l.b16 %v5021_v49 }
0x1272   :  { %v5092_v52 = vsel %vm1422_vm7, %v5078_v11, %v5091_v23  ;;  %5349 = vmatpush1.bf16.msra.mxu0 %v8951_v43  ;;  %v7750_v43 = vld [vmem:[%s11211_s12 + $0x2] ss:$0 sm:$0xff] }
0x1273   :  { %v5093_v60 = vsel %vm1424_vm8, %v5079_v29, %v5092_v52  ;;  %5350 = vmatprep.subr.bf16.mxu0 %v8956_v18 }
0x1274   :  { %v5094_v28 = vpack.c.b16 %v5093_v60, %v5086_v32  ;;  %v7731_v32 = vld [vmem:[%s11207_s8 + $0x2] ss:$0 sm:$0xff] }
0x1276   :  { %8600 = vmatmul.mubr.bf16.vlgmr.msra.gmra.mxu1 %v5094_v28  ;;  %5351 = vmatpush1.bf16.msra.mxu0 %v8954_v36 }
0x1277   :  { %5352 = vmatprep.subr.bf16.mxu0 %v8959_v9  ;;  %8127 = vmatpush3.bf16.msra.mxu1 %v8964_v0 }
0x1278   :  { %8128 = vmatprep.subr.bf16.mxu1 %v8965_v42 }
0x127a   :  { %5353 = vmatpush1.bf16.msra.mxu0 %v8957_v12 }
0x127b   :  { %5354 = vmatprep.subr.bf16.mxu0 %v8962_v55  ;;  %8129 = vmatpush3.bf16.msra.mxu1 %v8966_v39  ;;  %v8979_v39 = vld [vmem:[#allocation2 + $0x2e8] ss:$12 sps:$4 sm:$0xff]  }
0x127c   :  { %8130 = vmatprep.subr.bf16.mxu1 %v8967_v24  ;;  %v8981_v24 = vld [vmem:[#allocation2 + $0x2ec] ss:$12 sps:$4 sm:$0xff]  }
0x127e   :  { %5355 = vmatpush1.bf16.msra.mxu0 %v8960_v58 }
0x127f   :  { %8131 = vmatpush3.bf16.msra.mxu1 %v8968_v53  ;;  %v8982_v53 = vld [vmem:[#allocation2 + $0x2f0] ss:$12 sps:$4 sm:$0xff]   ;;  %5791 = vmatprep.subr.bf16.mxu0 %v8981_v24 }
0x1280   :  { %8132 = vmatprep.subr.bf16.mxu1 %v8969_v8  ;;  %v9394_v24 = vld [vmem:[%s11200_s1 + $0x30] sm:$0xff] }
0x1283   :  { %8133 = vmatpush3.bf16.msra.mxu1 %v8970_v54 }
0x1284   :  { %8134 = vmatprep.subr.bf16.mxu1 %v8971_v15 }
0x1287   :  { %8135 = vmatpush3.bf16.msra.mxu1 %v8972_v13 }
0x1336   :  { %v5178_v35 = vpop.f32.mrf.mxu1 }
0x1337   :  { %v5179_v34 = vadd.f32 %v7719_v3, %v5178_v35 }
0x1338   :  { %v8601_v48 = vpop.f32.mrf.mxu1 }
0x1339   :  { %v5185_v25 = vadd.f32 %v5179_v34, %v10422_v37  ;;  %v8973_v34 = vld [vmem:[#allocation7 + $0x150] sm:$0xff]  }
0x133a   :  { %v5181_v61 = vpop.f32.mrf.mxu1  ;;  %v8974_v48 = vld [vmem:[#allocation7 + $0x110] sm:$0xff]   ;;  %8136 = vmatprep.subr.bf16.mxu1 %v8973_v34 }
0x133b   :  { %v5182_v1 = vadd.f32 %v7719_v3, %v5181_v61  ;;  %5191 = vadd.xlane.f32.xlu0 %v5185_v25  ;;  %8137 = vmatpush3.bf16.msra.mxu1 %v8974_v48  ;;  %v8976_v61 = vld [vmem:[#allocation7 + $0x108] sm:$0xff]   ;;  %v8999_v34 = vld [vmem:[#allocation2 + $0x270] ss:$12 sps:$4 sm:$0xff]   ;;  %v9002_v48 = vld [vmem:[#allocation2 + $0x278] ss:$12 sps:$4 sm:$0xff]  }
0x133c   :  { %v8602_v20 = vpop.f32.mrf.mxu1 }
0x133d   :  { %v5186_v57 = vadd.f32 %v5182_v1, %v10424_v41  ;;  %v8977_v1 = vld [vmem:[#allocation7 + $0x140] sm:$0xff]  }
0x133e   :  { %v8978_v20 = vld [vmem:[#allocation7 + $0x100] sm:$0xff]  }
0x133f   :  { %5193 = vadd.xlane.f32.xlu1 %v5186_v57 }
0x13c4   :  { %v5192_v59 = vpop.xlane.xlu0 %5191 }
0x13c5   :  { %v5195_v6 = vmul.f32 0.0078125, %v5192_v59 }
0x13c7   :  { %v10764_v2 = vsub.f32 %v5185_v25, %v5195_v6  ;;  %v8975_v25 = vld [vmem:[#allocation7 + $0x148] sm:$0xff]  }
0x13c8   :  { %v5194_v14 = vpop.xlane.xlu1 %5193  ;;  %8138 = vmatprep.subr.bf16.mxu1 %v8975_v25  ;;  %v9005_v25 = vld [vmem:[#allocation2 + $0x25c] ss:$12 sps:$4 sm:$0xff]  }
0x13c9   :  { %v5196_v45 = vmul.f32 0.0078125, %v5194_v14  ;;  %v5199_v37 = vmul.f32 %v10764_v2, %v10764_v2  ;;  %8139 = vmatpush3.bf16.msra.mxu1 %v8976_v61  ;;  %v9003_v61 = vld [vmem:[#allocation2 + $0x258] ss:$12 sps:$4 sm:$0xff]  }
0x13ca   :  { %8140 = vmatprep.subr.bf16.mxu1 %v8977_v1  ;;  %v9006_v1 = vld [vmem:[#allocation2 + $0x260] ss:$12 sps:$4 sm:$0xff]  }
0x13cb   :  { %v10768_v16 = vsub.f32 %v5186_v57, %v5196_v45  ;;  %5201 = vadd.xlane.f32.xlu0 %v5199_v37  ;;  %v7732_v57 = vld [vmem:[%s11209_s10 + $0x4] sm:$0x3] }
0x13cc   :  { %v5257_v26 = vrot.slane %v7732_v57, %v9664_v46  ;;  %v5253_v59 = vrot.slane %v7732_v57, %v9654_v40  ;;  %v9007_v57 = vld [vmem:[#allocation2 + $0x240] ss:$12 sps:$4 sm:$0xff]  }
0x13cd   :  { %v5200_v41 = vmul.f32 %v10768_v16, %v10768_v16  ;;  %8141 = vmatpush3.bf16.msra.mxu1 %v8978_v20  ;;  %v9009_v20 = vld [vmem:[#allocation2 + $0x244] ss:$12 sps:$4 sm:$0xff]  }
0x13ce   :  { %8603 = vmatprep.subr.bf16.mxu1 %v11220_v51 }
0x13cf   :  { %5203 = vadd.xlane.f32.xlu1 %v5200_v41 }
0x1454   :  { %v5202_v19 = vpop.xlane.xlu0 %5201 }
0x1455   :  { %v5205_v47 = vmul.f32 0.0078125, %v5202_v19 }
0x1457   :  { %v5207_v22 = vadd.f32 1e-05, %v5205_v47 }
0x1458   :  { %v5204_v49 = vpop.xlane.xlu1 %5203 }
0x1459   :  { %9267 = vrsqrt.f32 %v5207_v22  ;;  %v5206_v62 = vmul.f32 0.0078125, %v5204_v49 }
0x145b   :  { %v5208_v10 = vadd.f32 1e-05, %v5206_v62  ;;  %v8985_v62 = vld [vmem:[#allocation2 + $0x2d4] ss:$12 sps:$4 sm:$0xff]  }
0x145d   :  { %9269 = vrsqrt.f32 %v5208_v10  ;;  %v8983_v10 = vld [vmem:[#allocation2 + $0x2d0] ss:$12 sps:$4 sm:$0xff]  }
0x1466   :  { %v9268_v63 = vpop.eup %9267 }
0x1467   :  { %v5211_v11 = vmul.f32 %v9268_v63, %v10764_v2  ;;  %v8986_v63 = vld [vmem:[#allocation2 + $0x2d8] ss:$12 sps:$4 sm:$0xff]  }
0x1469   :  { %v5219_v52 = vmul.f32 %v7730_v5, %v5211_v11  ;;  %v8989_v11 = vld [vmem:[#allocation2 + $0x2bc] ss:$12 sps:$4 sm:$0xff]  }
0x146a   :  { %v9270_v29 = vpop.eup %9269 }
0x146b   :  { %v5212_v23 = vmul.f32 %v9270_v29, %v10768_v16  ;;  %v5227_v28 = vadd.f32 %v7731_v32, %v5219_v52  ;;  %v8990_v29 = vld [vmem:[#allocation2 + $0x2c0] ss:$12 sps:$4 sm:$0xff]   ;;  %v8993_v52 = vld [vmem:[#allocation2 + $0x2a4] ss:$12 sps:$4 sm:$0xff]  }
0x146d   :  { %v5220_v60 = vmul.f32 %v7730_v5, %v5212_v23  ;;  %v8987_v5 = vld [vmem:[#allocation2 + $0x2b8] ss:$12 sps:$4 sm:$0xff]   ;;  %v8991_v23 = vld [vmem:[#allocation2 + $0x2a0] ss:$12 sps:$4 sm:$0xff]  }
0x146f   :  { %v5228_v3 = vadd.f32 %v7731_v32, %v5220_v60  ;;  %v8994_v32 = vld [vmem:[#allocation2 + $0x2a8] ss:$12 sps:$4 sm:$0xff]   ;;  %v8997_v60 = vld [vmem:[#allocation2 + $0x28c] ss:$12 sps:$4 sm:$0xff]  }
0x1471   :  { %v5229_v35 = vpack.c.bf16 %v5228_v3, %v5227_v28 }
0x1473   :  { %5373 = vmatmul.mubr.bf16.vlgmr.msra.gmra.mxu0 %v5229_v35  ;;  %v9001_v35 = vld [vmem:[#allocation2 + $0x274] ss:$12 sps:$4 sm:$0xff]  }
0x1474   :  { %5823 = vmatprep.mubr.bf16.mxu0 %v11219_v7  ;;  %5792 = vmatpush1.bf16.msra.mxu0 %v8979_v39  ;;  %v9393_v39 = vld [vmem:[%s11200_s1 + $0x38] sm:$0xff] }
0x1475   :  { %5793 = vmatprep.subr.bf16.mxu0 %v8985_v62 }
0x1478   :  { %5794 = vmatpush1.bf16.msra.mxu0 %v8983_v10 }
0x1479   :  { %5795 = vmatprep.subr.bf16.mxu0 %v8989_v11 }
0x147c   :  { %5796 = vmatpush1.bf16.msra.mxu0 %v8987_v5 }
0x147d   :  { %5797 = vmatprep.subr.bf16.mxu0 %v8993_v52 }
0x1480   :  { %5798 = vmatpush1.bf16.msra.mxu0 %v8991_v23 }
0x1481   :  { %5799 = vmatprep.subr.bf16.mxu0 %v8997_v60 }
0x1533   :  { %v5374_v33 = vpop.f32.mrf.mxu0 }
0x1534   :  { %v5375_v37 = vadd.f32 %v5374_v33, %v5253_v59  ;;  %v9010_v33 = vld [vmem:[#allocation2 + $0x248] ss:$12 sps:$4 sm:$0xff]  }
0x1535   :  { %v5376_v6 = vpop.f32.mrf.mxu0 }
0x1536   :  { %v5377_v14 = vadd.f32 %v5376_v6, %v5257_v26  ;;  %v5383_v50 = vmax.f32 %v5375_v37, 0.0 }
0x1537   :  { %v5378_v2 = vpop.f32.mrf.mxu0 }
0x1538   :  { %v5379_v45 = vadd.f32 %v5378_v2, %v5253_v59  ;;  %v5384_v27 = vmax.f32 %v5377_v14, 0.0  ;;  %v9385_v59 = vld [vmem:[%s11201_s2] sm:$0xff]  ;;  %s9500_s2 = smov [#allocation8]  }
0x1539   :  { %v5380_v16 = vpop.f32.mrf.mxu0  ;;  %s7452_s17 = sshll.u32 %s9500_s2, 4  ;;  %s7453_s17 = int_to_ptr.vmem [resolvable:$true] %s7452_s17 }
0x153a   :  { %v5381_v41 = vadd.f32 %v5380_v16, %v5257_v26  ;;  %v5385_v56 = vmax.f32 %v5379_v45, 0.0  ;;  %v9384_v26 = vld [vmem:[%s11200_s1 + $0x78] sm:$0xff]  ;;  %s9461_s18 = scalar_lea.vmem %s7453_s17, 256  ;;  %p9466_p2 = scmp.lt.s32.totalorder %s7453_s17, %s7453_s17 }
0x153b   :  { %p9462_p1 = scmp.ne.s32.totalorder %s7453_s17, %s9461_s18  ;;  %p9467_p3 = scmp.lt.s32.totalorder %s9461_s18, %s9461_s18 }
0x153c   :  { %v5386_v21 = vmax.f32 %v5381_v41, 0.0  ;;  %v5387_v31 = vpack.c.bf16 %v5385_v56, %v5383_v50 }
0x153d   :  { %p9468_p4 = por %p9467_p3, %p9466_p2 }
0x153e   :  { %v5388_v38 = vpack.c.bf16 %v5386_v21, %v5384_v27  ;;  %v7769_v27 = vld [vmem:[%s11212_s13 + $0x2] ss:$0 sm:$0xff] }
0x153f   :  { %p9469_p5 = pnand %p9468_p4, %p9462_p1 }
0x1540   :  { %5558 = vmatprep.mubr.bf16.mxu1 %v5388_v38 }
0x1541   :  { %5559 = vmatmul.mubr.bf16.vlgmr.msra.gmra.mxu1 %v5387_v31  ;;  %v7770_v31 = vld [vmem:[%s11213_s14 + $0x2] ss:$0 sm:$0xff] }
0x1542   :  { %8619 = vmatprep.mubr.msk.bf16.mxu1 %vm9499_vm0, %v11220_v51  ;;  %8604 = vmatpush3.bf16.msra.mxu1 %v8982_v53  ;;  %v9395_v53 = vld [vmem:[%s11200_s1 + $0x28] sm:$0xff] }
0x1543   :  { %8605 = vmatprep.subr.bf16.mxu1 %v11220_v51 }
0x1546   :  { %8606 = vmatpush3.bf16.msra.mxu1 %v8986_v63 }
0x1547   :  { %8607 = vmatprep.subr.bf16.mxu1 %v11220_v51 }
0x154a   :  { %8608 = vmatpush3.bf16.msra.mxu1 %v8990_v29 }
0x154b   :  { %8609 = vmatprep.subr.bf16.mxu1 %v11220_v51 }
0x154e   :  { %8610 = vmatpush3.bf16.msra.mxu1 %v8994_v32 }
0x154f   :  { %8611 = vmatprep.subr.bf16.mxu1 %v11220_v51 }
0x1601   :  { %v8142_v17 = vpop.f32.mrf.mxu1 }
0x1603   :  { %v8143_v18 = vpop.f32.mrf.mxu1 }
0x1604   :  { %v8144_v36 = vadd.f32 %v8143_v18, %v8142_v17 }
0x1605   :  { %v8145_v9 = vpop.f32.mrf.mxu1 }
0x1606   :  { %v5561_v12 = vadd.f32 %v8144_v36, %v7750_v43 }
0x1607   :  { %v8146_v55 = vpop.f32.mrf.mxu1 }
0x1608   :  { %v8147_v58 = vadd.f32 %v8146_v55, %v8145_v9  ;;  %v5567_v4 = vadd.f32 %v5561_v12, %v5227_v28  ;;  %v8995_v28 = vld [vmem:[#allocation2 + $0x288] ss:$12 sps:$4 sm:$0xff]   ;;  %v9388_v55 = vld [vmem:[%s11200_s1 + $0x60] sm:$0xff] }
0x1609   :  { %5800 = vmatpush1.bf16.msra.mxu0 %v8995_v28  ;;  %v9386_v9 = vld [vmem:[%s11200_s1 + $0x70] sm:$0xff]  ;;  %v9387_v12 = vld [vmem:[%s11200_s1 + $0x68] sm:$0xff] }
0x160a   :  { %v5564_v0 = vadd.f32 %v8147_v58, %v7750_v43  ;;  %5573 = vadd.xlane.f32.xlu0 %v5567_v4  ;;  %5801 = vmatprep.subr.bf16.mxu0 %v9001_v35  ;;  %v9389_v58 = vld [vmem:[%s11200_s1 + $0x58] sm:$0xff] }
0x160c   :  { %v5568_v42 = vadd.f32 %v5564_v0, %v5228_v3  ;;  %v8998_v3 = vld [vmem:[#allocation2 + $0x290] ss:$12 sps:$4 sm:$0xff]   ;;  %v9391_v0 = vld [vmem:[%s11200_s1 + $0x48] sm:$0xff] }
0x160d   :  { %8612 = vmatpush3.bf16.msra.mxu1 %v8998_v3  ;;  %5802 = vmatpush1.bf16.msra.mxu0 %v8999_v34 }
0x160e   :  { %5575 = vadd.xlane.f32.xlu1 %v5568_v42  ;;  %8613 = vmatprep.subr.bf16.mxu1 %v11220_v51 }
0x160f   :  { %5803 = vmatprep.subr.bf16.mxu0 %v9005_v25 }
0x1611   :  { %8614 = vmatpush3.bf16.msra.mxu1 %v9002_v48  ;;  %5804 = vmatpush1.bf16.msra.mxu0 %v9003_v61 }
0x1612   :  { %8615 = vmatprep.subr.bf16.mxu1 %v11220_v51  ;;  %5805 = vmatprep.subr.bf16.mxu0 %v9009_v20 }
0x1615   :  { %8616 = vmatpush3.bf16.msra.mxu1 %v9006_v1  ;;  %5806 = vmatpush1.bf16.msra.mxu0 %v9007_v57 }
0x1616   :  { %8617 = vmatprep.subr.bf16.mxu1 %v11220_v51  ;;  %8623 = vmatprep.subr.mxu0 %v9384_v26 }
0x1619   :  { %8618 = vmatpush3.bf16.msra.mxu1 %v9010_v33 }
0x161a   :  { %8679 = vmatprep.subr.mxu1 %v9385_v59 }
0x1693   :  { %v5574_v8 = vpop.xlane.xlu0 %5573 }
0x1694   :  { %v5577_v54 = vmul.f32 0.0078125, %v5574_v8  ;;  %v9396_v8 = vld [vmem:[%s11200_s1 + $0x20] sm:$0xff] }
0x1696   :  { %v10793_v15 = vsub.f32 %v5567_v4, %v5577_v54  ;;  %v9390_v4 = vld [vmem:[%s11200_s1 + $0x50] sm:$0xff]  ;;  %v9397_v54 = vld [vmem:[%s11200_s1 + $0x18] sm:$0xff] }
0x1697   :  { %v5576_v13 = vpop.xlane.xlu1 %5575 }
0x1698   :  { %v5578_v19 = vmul.f32 0.0078125, %v5576_v13  ;;  %v5581_v47 = vmul.f32 %v10793_v15, %v10793_v15  ;;  %v9399_v13 = vld [vmem:[%s11200_s1 + $0x8] sm:$0xff] }
0x169a   :  { %v10797_v22 = vsub.f32 %v5568_v42, %v5578_v19  ;;  %5583 = vadd.xlane.f32.xlu0 %v5581_v47  ;;  %v9392_v42 = vld [vmem:[%s11200_s1 + $0x40] sm:$0xff]  ;;  %v10876_v47 = vld [vmem:[%s11203_s4 + $0x9] sm:$0x7] }
0x169b   :  { %v9400_v19 = vld [vmem:[%s11200_s1] sm:$0xff]  ;;  %v5655_v23 = vrot.slane %v10876_v47, %v9664_v46 }
0x169c   :  { %v5582_v49 = vmul.f32 %v10797_v22, %v10797_v22 }
0x169e   :  { %5585 = vadd.xlane.f32.xlu1 %v5582_v49 }
0x1723   :  { %v5584_v6 = vpop.xlane.xlu0 %5583 }
0x1724   :  { %v5587_v2 = vmul.f32 0.0078125, %v5584_v6 }
0x1726   :  { %v5589_v14 = vadd.f32 1e-05, %v5587_v2 }
0x1727   :  { %v5586_v45 = vpop.xlane.xlu1 %5585 }
0x1728   :  { %9271 = vrsqrt.f32 %v5589_v14  ;;  %v5588_v37 = vmul.f32 0.0078125, %v5586_v45 }
0x172a   :  { %v5590_v16 = vadd.f32 1e-05, %v5588_v37 }
0x172c   :  { %9273 = vrsqrt.f32 %v5590_v16 }
0x1735   :  { %v9272_v41 = vpop.eup %9271 }
0x1736   :  { %v5593_v56 = vmul.f32 %v9272_v41, %v10793_v15  ;;  %v9398_v15 = vld [vmem:[%s11200_s1 + $0x10] sm:$0xff] }
0x1738   :  { %v5601_v38 = vmul.f32 %v7769_v27, %v5593_v56 }
0x1739   :  { %v9274_v21 = vpop.eup %9273 }
0x173a   :  { %v5594_v50 = vmul.f32 %v9274_v21, %v10797_v22  ;;  %v10821_v43 = vadd.f32 %v7770_v31, %v5601_v38  ;;  %v5651_v22 = vrot.slane %v10876_v47, %v9654_v40 }
0x173c   :  { %v5602_v17 = vmul.f32 %v7769_v27, %v5594_v50 }
0x173e   :  { %v10823_v18 = vadd.f32 %v7770_v31, %v5602_v17 }
0x1740   :  { %v5611_v36 = vpack.c.bf16 %v10823_v18, %v10821_v43 }
0x1742   :  { %5824 = vmatmul.mubr.bf16.vlgmr.msra.gmra.mxu0 %v5611_v36  ;;  %8620 = vmatmul.mubr.bf16.vlgmr.msra.gmra.mxu1 %v5611_v36 }
0x1743   :  { %8624 = vmatpush3.msra.mxu0 %v9384_v26  ;;  %8680 = vmatpush3.msra.mxu1 %v9385_v59 }
0x1744   :  { %8625 = vmatprep.subr.mxu0 %v9386_v9 }
0x1745   :  { %8626 = vmatpush3.msra.mxu0 %v9386_v9 }
0x1746   :  { %8627 = vmatprep.subr.mxu0 %v9387_v12 }
0x1747   :  { %8628 = vmatpush3.msra.mxu0 %v9387_v12 }
0x1748   :  { %8629 = vmatprep.subr.mxu0 %v9388_v55 }
0x1749   :  { %8630 = vmatpush3.msra.mxu0 %v9388_v55 }
0x174a   :  { %8631 = vmatprep.subr.mxu0 %v9389_v58 }
0x174b   :  { %8632 = vmatpush3.msra.mxu0 %v9389_v58 }
0x174c   :  { %8633 = vmatprep.subr.mxu0 %v9390_v4 }
0x174d   :  { %8634 = vmatpush3.msra.mxu0 %v9390_v4 }
0x174e   :  { %8635 = vmatprep.subr.mxu0 %v9391_v0 }
0x174f   :  { %8636 = vmatpush3.msra.mxu0 %v9391_v0 }
0x1750   :  { %8637 = vmatprep.subr.mxu0 %v9392_v42 }
0x1751   :  { %8638 = vmatpush3.msra.mxu0 %v9392_v42 }
0x1752   :  { %8639 = vmatprep.subr.mxu0 %v9393_v39 }
0x1753   :  { %8640 = vmatpush3.msra.mxu0 %v9393_v39 }
0x1754   :  { %8641 = vmatprep.subr.mxu0 %v9394_v24 }
0x1755   :  { %8642 = vmatpush3.msra.mxu0 %v9394_v24 }
0x1756   :  { %8643 = vmatprep.subr.mxu0 %v9395_v53 }
0x1757   :  { %8644 = vmatpush3.msra.mxu0 %v9395_v53 }
0x1758   :  { %8645 = vmatprep.subr.mxu0 %v9396_v8 }
0x1759   :  { %8646 = vmatpush3.msra.mxu0 %v9396_v8 }
0x175a   :  { %8647 = vmatprep.subr.mxu0 %v9397_v54 }
0x175b   :  { %8648 = vmatpush3.msra.mxu0 %v9397_v54 }
0x175c   :  { %8649 = vmatprep.subr.mxu0 %v9398_v15 }
0x175d   :  { %8650 = vmatpush3.msra.mxu0 %v9398_v15 }
0x175e   :  { %8651 = vmatprep.subr.mxu0 %v9399_v13 }
0x175f   :  { %8652 = vmatpush3.msra.mxu0 %v9399_v13 }
0x1760   :  { %8653 = vmatprep.subr.mxu0 %v9400_v19 }
0x1761   :  { %8654 = vmatpush3.msra.mxu0 %v9400_v19 }
0x1762   :  { %8705 = vmatprep.subr.bf16.mxu0 %v11220_v51 }
0x1802   :  { %v5825_v49 = vpop.f32.mrf.mxu0  ;;  %v10880_v62 = vpop.f32.mrf.mxu1 }
0x1803   :  { %v5826_v10 = vadd.f32 %v5825_v49, %v5651_v22 }
0x1804   :  { %v5827_v63 = vpop.f32.mrf.mxu0  ;;  %v8621_v11 = vpop.f32.mrf.mxu1 }
0x1805   :  { %v5877_v5 = vcombine.high %v5826_v10, %v5826_v10  ;;  %v5884_v29 = vrot.slane %v5826_v10, %v9661_v44  ;;  %v5828_v1 = vadd.f32 %v5827_v63, %v5655_v23 }
0x1806   :  { %v5829_v52 = vpop.f32.mrf.mxu0  ;;  %v10885_v32 = vpop.f32.mrf.mxu1 }
0x1807   :  { %v5891_v60 = vrot.slane %v5877_v5, %v9661_v44  ;;  %v5892_v28 = vcombine.high %v5884_v29, %v5884_v29  ;;  %v5900_v3 = vrot.slane %v5884_v29, %v9661_v44  ;;  %v5830_v25 = vadd.f32 %v5829_v52, %v5651_v22 }
0x1808   :  { %v8622_v35 = vpop.f32.mrf.mxu1  ;;  %v5831_v58 = vpop.f32.mrf.mxu0 }
0x1809   :  { %v5914_v34 = vrot.slane %v5892_v28, %v9661_v44  ;;  %v5922_v48 = vcombine.high %v5900_v3, %v5900_v3  ;;  %v5907_v61 = vrot.slane %v5891_v60, %v9661_v44  ;;  %v5978_v20 = vrot.slane %v5900_v3, %v9654_v40 }
0x180a   :  { %v5893_v57 = vcombine.high %v5891_v60, %v5891_v60  ;;  %v5933_v2 = vrot.slane %v5830_v25, %v9661_v44  ;;  %v5926_v27 = vcombine.high %v5830_v25, %v5830_v25  ;;  %v5832_v53 = vadd.f32 %v5831_v58, %v5655_v23 }
0x180b   :  { %v5982_v33 = vrot.slane %v5914_v34, %v9654_v40  ;;  %v5986_v26 = vrot.slane %v5922_v48, %v9654_v40  ;;  %v5924_v59 = vcombine.high %v5914_v34, %v5914_v34  ;;  %v6055_v6 = vmul.f32 %v5978_v20, %v5828_v1 }
0x180c   :  { %v5994_v16 = vrot.slane %v5907_v61, %v9654_v40  ;;  %v5921_v41 = vrot.slane %v5893_v57, %v9661_v44  ;;  %v5923_v56 = vcombine.high %v5907_v61, %v5907_v61  ;;  %v5941_v21 = vcombine.high %v5933_v2, %v5933_v2 }
0x180d   :  { %v6056_v14 = vmul.f32 %v5982_v33, %v5828_v1  ;;  %v6057_v45 = vmul.f32 %v5986_v26, %v5828_v1  ;;  %v5990_v37 = vrot.slane %v5924_v59, %v9654_v40  ;;  %8655 = vmatprep.mubr.f32.mxu0 %v6055_v6  ;;  %v5949_v17 = vrot.slane %v5933_v2, %v9661_v44 }
0x180e   :  { %v5998_v38 = vrot.slane %v5921_v41, %v9654_v40  ;;  %v5925_v31 = vcombine.high %v5921_v41, %v5921_v41  ;;  %v6059_v36 = vmul.f32 %v5994_v16, %v5828_v1  ;;  %v6002_v9 = vrot.slane %v5923_v56, %v9654_v40 }
0x180f   :  { %8656 = vmatmul.mubr.f32.vlgmr.msra.gmra.mxu0 %v6056_v14  ;;  %v6058_v50 = vmul.f32 %v5990_v37, %v5828_v1  ;;  %v5940_v12 = vrot.slane %v5926_v27, %v9661_v44  ;;  %v5963_v55 = vrot.slane %v5941_v21, %v9661_v44  ;;  %v5971_v42 = vcombine.high %v5949_v17, %v5949_v17 }
0x1810   :  { %8658 = vmatprep.mubr.f32.mxu0 %v6057_v45  ;;  %v6060_v4 = vmul.f32 %v5998_v38, %v5828_v1  ;;  %v6006_v0 = vrot.slane %v5925_v31, %v9654_v40  ;;  %v6061_v39 = vmul.f32 %v6002_v9, %v5828_v1  ;;  %v6010_v24 = vrot.slane %v5949_v17, %v9654_v40 }
0x1811   :  { %v5942_v8 = vcombine.high %v5940_v12, %v5940_v12  ;;  %v6014_v15 = vrot.slane %v5963_v55, %v9654_v40  ;;  %v5973_v13 = vcombine.high %v5963_v55, %v5963_v55  ;;  %v5956_v19 = vrot.slane %v5940_v12, %v9661_v44 }
0x1812   :  { %v6062_v54 = vmul.f32 %v6006_v0, %v5828_v1  ;;  %v6063_v22 = vmul.f32 %v6010_v24, %v5832_v53  ;;  %v6018_v49 = vrot.slane %v5971_v42, %v9654_v40 }
0x1813   :  { %8659 = vmatmul.mubr.f32.gmra.mxu0 %v6058_v50  ;;  %v6064_v10 = vmul.f32 %v6014_v15, %v5832_v53  ;;  %v6022_v63 = vrot.slane %v5973_v13, %v9654_v40  ;;  %v5970_v11 = vrot.slane %v5942_v8, %v9661_v44  ;;  %v6026_v29 = vrot.slane %v5956_v19, %v9654_v40 }
0x1814   :  { %8661 = vmatprep.mubr.f32.mxu0 %v6059_v36  ;;  %v6065_v5 = vmul.f32 %v6018_v49, %v5832_v53  ;;  %v5972_v23 = vcombine.high %v5956_v19, %v5956_v19 }
0x1815   :  { %v6066_v52 = vmul.f32 %v6022_v63, %v5832_v53  ;;  %v6030_v60 = vrot.slane %v5970_v11, %v9654_v40  ;;  %v5974_v28 = vcombine.high %v5970_v11, %v5970_v11  ;;  %v6067_v3 = vmul.f32 %v6026_v29, %v5832_v53 }
0x1816   :  { %v6034_v35 = vrot.slane %v5972_v23, %v9654_v40 }
0x1817   :  { %8662 = vmatmul.mubr.f32.gmra.mxu0 %v6060_v4  ;;  %v6068_v34 = vmul.f32 %v6030_v60, %v5832_v53  ;;  %v6038_v48 = vrot.slane %v5974_v28, %v9654_v40 }
0x1818   :  { %8664 = vmatprep.mubr.f32.mxu0 %v6061_v39  ;;  %v6069_v25 = vmul.f32 %v6034_v35, %v5832_v53 }
0x1819   :  { %v6070_v44 = vmul.f32 %v6038_v48, %v5832_v53 }
0x181b   :  { %8665 = vmatmul.mubr.f32.gmra.mxu0 %v6062_v54 }
0x181c   :  { %8667 = vmatprep.mubr.f32.mxu0 %v6063_v22 }
0x181f   :  { %8668 = vmatmul.mubr.f32.gmra.mxu0 %v6064_v10 }
0x1820   :  { %8670 = vmatprep.mubr.f32.mxu0 %v6065_v5 }
0x1823   :  { %8671 = vmatmul.mubr.f32.gmra.mxu0 %v6066_v52 }
0x1824   :  { %8673 = vmatprep.mubr.f32.mxu0 %v6067_v3 }
0x1827   :  { %8674 = vmatmul.mubr.f32.gmra.mxu0 %v6068_v34 }
0x1828   :  { %8676 = vmatprep.mubr.f32.mxu0 %v6069_v25 }
0x182b   :  { %8677 = vmatmul.mubr.f32.gmra.mxu0 %v6070_v44 }
0x182c   :  { %8721 = vmatprep.mubr.msk.bf16.mxu0 %vm9499_vm0, %v11220_v51 }
0x18cf   :  { %v8657_v61 = vpop.f32.mrf.mxu0 }
0x18d0   :  { %v6217_v1 = vmul.f32 0.25, %v8657_v61 }
0x18d1   :  { %v6137_v20 = vpop.f32.mrf.mxu0 }
0x18d2   :  { %v6239_v57 = vsel %vm731_vm1, %v6217_v1, -inf  ;;  %v6216_v33 = vmul.f32 0.25, %v6137_v20 }
0x18d3   :  { %v6240_v26 = vrot.slane %v6239_v57, 4  ;;  %v8660_v59 = vpop.f32.mrf.mxu0 }
0x18d4   :  { %v6232_v6 = vsel %vm731_vm1, %v6216_v33, -inf  ;;  %v10918_v2 = vmul.f32 0.25, %v8660_v59 }
0x18d5   :  { %v6241_v14 = vmax.f32 %v6239_v57, %v6240_v26  ;;  %v6233_v45 = vrot.slane %v6232_v6, 4  ;;  %v6147_v37 = vpop.f32.mrf.mxu0 }
0x18d6   :  { %v6253_v16 = vsel %vm731_vm1, %v10918_v2, -inf  ;;  %v10922_v41 = vmul.f32 0.25, %v6147_v37 }
0x18d7   :  { %v6242_v56 = vrot.slane %v6241_v14, 2  ;;  %v6234_v27 = vmax.f32 %v6232_v6, %v6233_v45  ;;  %v6254_v21 = vrot.slane %v6253_v16, 4  ;;  %v8663_v50 = vpop.f32.mrf.mxu0 }
0x18d8   :  { %v6246_v38 = vsel %vm731_vm1, %v10922_v41, -inf  ;;  %v10926_v31 = vmul.f32 0.25, %v8663_v50 }
0x18d9   :  { %v6243_v17 = vmax.f32 %v6241_v14, %v6242_v56  ;;  %v6235_v36 = vrot.slane %v6234_v27, 2  ;;  %v6255_v9 = vmax.f32 %v6253_v16, %v6254_v21  ;;  %v6247_v12 = vrot.slane %v6246_v38, 4  ;;  %v6157_v55 = vpop.f32.mrf.mxu0 }
0x18da   :  { %v6267_v58 = vsel %vm731_vm1, %v10926_v31, -inf  ;;  %v10930_v4 = vmul.f32 0.25, %v6157_v55 }
0x18db   :  { %v6244_v0 = vrot.slane %v6243_v17, 1  ;;  %v6236_v42 = vmax.f32 %v6234_v27, %v6235_v36  ;;  %v6256_v39 = vrot.slane %v6255_v9, 2  ;;  %v6248_v24 = vmax.f32 %v6246_v38, %v6247_v12  ;;  %v8666_v53 = vpop.f32.mrf.mxu0 }
0x18dc   :  { %v6268_v8 = vrot.slane %v6267_v58, 4  ;;  %v6260_v54 = vsel %vm731_vm1, %v10930_v4, -inf  ;;  %v10934_v15 = vmul.f32 0.25, %v8666_v53 }
0x18dd   :  { %v6245_v13 = vmax.f32 %v6243_v17, %v6244_v0  ;;  %v6237_v19 = vrot.slane %v6236_v42, 1  ;;  %v6257_v22 = vmax.f32 %v6255_v9, %v6256_v39  ;;  %v6249_v49 = vrot.slane %v6248_v24, 2  ;;  %v6167_v10 = vpop.f32.mrf.mxu0 }
0x18de   :  { %v6269_v63 = vmax.f32 %v6267_v58, %v6268_v8  ;;  %v6261_v11 = vrot.slane %v6260_v54, 4  ;;  %v6281_v5 = vsel %vm731_vm1, %v10934_v15, -inf  ;;  %v10938_v29 = vmul.f32 0.25, %v6167_v10 }
0x18df   :  { %v6345_v23 = vsub.f32 %v6217_v1, %v6245_v13  ;;  %v6238_v52 = vmax.f32 %v6236_v42, %v6237_v19  ;;  %v6258_v60 = vrot.slane %v6257_v22, 1  ;;  %v6250_v28 = vmax.f32 %v6248_v24, %v6249_v49  ;;  %v8669_v3 = vpop.f32.mrf.mxu0 }
0x18e0   :  { %v6270_v35 = vrot.slane %v6269_v63, 2  ;;  %v6262_v34 = vmax.f32 %v6260_v54, %v6261_v11  ;;  %v6282_v48 = vrot.slane %v6281_v5, 4  ;;  %v6274_v25 = vsel %vm731_vm1, %v10938_v29, -inf }
0x18e1   :  { %v6362_v44 = vmul.f32 1.442695, %v6345_v23  ;;  %v6344_v61 = vsub.f32 %v6216_v33, %v6238_v52  ;;  %v6259_v20 = vmax.f32 %v6257_v22, %v6258_v60  ;;  %v6251_v57 = vrot.slane %v6250_v28, 1  ;;  %v6177_v26 = vpop.f32.mrf.mxu0 }
0x18e2   :  { %v6271_v59 = vmax.f32 %v6269_v63, %v6270_v35  ;;  %v6263_v6 = vrot.slane %v6262_v34, 2  ;;  %v6283_v14 = vmax.f32 %v6281_v5, %v6282_v48  ;;  %v6275_v45 = vrot.slane %v6274_v25, 4 }
0x18e3   :  { %9275 = vpow2.f32 %v6362_v44  ;;  %v6360_v1 = vmul.f32 1.442695, %v6344_v61  ;;  %v6347_v37 = vsub.f32 %v10918_v2, %v6259_v20  ;;  %v6252_v16 = vmax.f32 %v6250_v28, %v6251_v57  ;;  %v8672_v38 = vpop.f32.mrf.mxu0 }
0x18e4   :  { %v6272_v56 = vrot.slane %v6271_v59, 1  ;;  %v6264_v27 = vmax.f32 %v6262_v34, %v6263_v6  ;;  %v6284_v21 = vrot.slane %v6283_v14, 2  ;;  %v6276_v50 = vmax.f32 %v6274_v25, %v6275_v45 }
0x18e5   :  { %9277 = vpow2.f32 %v6360_v1  ;;  %v6366_v17 = vmul.f32 1.442695, %v6347_v37  ;;  %v6346_v33 = vsub.f32 %v10922_v41, %v6252_v16  ;;  %v10944_v36 = vmul.f32 0.25, %v8669_v3  ;;  %v6187_v54 = vpop.f32.mrf.mxu0 }
0x18e6   :  { %v6273_v9 = vmax.f32 %v6271_v59, %v6272_v56  ;;  %v6265_v12 = vrot.slane %v6264_v27, 1  ;;  %v6285_v55 = vmax.f32 %v6283_v14, %v6284_v21  ;;  %v6277_v58 = vrot.slane %v6276_v50, 2 }
0x18e7   :  { %9279 = vpow2.f32 %v6366_v17  ;;  %v6364_v0 = vmul.f32 1.442695, %v6346_v33  ;;  %v6295_v2 = vsel %vm731_vm1, %v10944_v36, -inf  ;;  %v10948_v42 = vmul.f32 0.25, %v6177_v26  ;;  %v8675_v48 = vpop.f32.mrf.mxu0 }
0x18e8   :  { %v6349_v39 = vsub.f32 %v10926_v31, %v6273_v9  ;;  %v6266_v24 = vmax.f32 %v6264_v27, %v6265_v12  ;;  %v6286_v53 = vrot.slane %v6285_v55, 1  ;;  %v6278_v8 = vmax.f32 %v6276_v50, %v6277_v58 }
0x18e9   :  { %9281 = vpow2.f32 %v6364_v0  ;;  %v6296_v41 = vrot.slane %v6295_v2, 4  ;;  %v6288_v13 = vsel %vm731_vm1, %v10948_v42, -inf  ;;  %v10953_v19 = vmul.f32 0.25, %v8672_v38 }
0x18ea   :  { %v6370_v22 = vmul.f32 1.442695, %v6349_v39  ;;  %v6348_v49 = vsub.f32 %v10930_v4, %v6266_v24  ;;  %v6287_v10 = vmax.f32 %v6285_v55, %v6286_v53  ;;  %v6279_v63 = vrot.slane %v6278_v8, 1 }
0x18eb   :  { %v6297_v11 = vmax.f32 %v6295_v2, %v6296_v41  ;;  %v6289_v5 = vrot.slane %v6288_v13, 4  ;;  %v6309_v31 = vsel %vm731_vm1, %v10953_v19, -inf  ;;  %v10958_v23 = vmul.f32 0.25, %v6187_v54 }
0x18ec   :  { %9283 = vpow2.f32 %v6370_v22  ;;  %v6368_v52 = vmul.f32 1.442695, %v6348_v49  ;;  %v6351_v60 = vsub.f32 %v10934_v15, %v6287_v10  ;;  %v6280_v28 = vmax.f32 %v6278_v8, %v6279_v63 }
0x18ed   :  { %v6298_v3 = vrot.slane %v6297_v11, 2  ;;  %v6290_v35 = vmax.f32 %v6288_v13, %v6289_v5  ;;  %v6310_v34 = vrot.slane %v6309_v31, 4  ;;  %v6302_v4 = vsel %vm731_vm1, %v10958_v23, -inf }
0x18ee   :  { %9285 = vpow2.f32 %v6368_v52  ;;  %v6374_v25 = vmul.f32 1.442695, %v6351_v60  ;;  %v6350_v44 = vsub.f32 %v10938_v29, %v6280_v28  ;;  %v6303_v61 = vrot.slane %v6302_v4, 4 }
0x18ef   :  { %v6299_v20 = vmax.f32 %v6297_v11, %v6298_v3  ;;  %v6291_v57 = vrot.slane %v6290_v35, 2  ;;  %v6311_v26 = vmax.f32 %v6309_v31, %v6310_v34  ;;  %v10966_v14 = vmul.f32 0.25, %v8675_v48 }
0x18f0   :  { %v10964_v59 = vpop.eup %9275  ;;  %9287 = vpow2.f32 %v6374_v25  ;;  %v6372_v15 = vmul.f32 1.442695, %v6350_v44  ;;  %v6304_v6 = vmax.f32 %v6302_v4, %v6303_v61 }
0x18f1   :  { %v6399_v45 = vsel %vm731_vm1, %v10964_v59, 0.0  ;;  %v6300_v1 = vrot.slane %v6299_v20, 1  ;;  %v6292_v37 = vmax.f32 %v6290_v35, %v6291_v57  ;;  %v6312_v16 = vrot.slane %v6311_v26, 2 }
0x18f2   :  { %v10970_v56 = vpop.eup %9277  ;;  %v6400_v29 = vrot.slane %v6399_v45, 4  ;;  %9289 = vpow2.f32 %v6372_v15  ;;  %v6305_v27 = vrot.slane %v6304_v6, 2  ;;  %v6323_v58 = vsel %vm731_vm1, %v10966_v14, -inf }
0x18f3   :  { %v6392_v21 = vsel %vm731_vm1, %v10970_v56, 0.0  ;;  %v6301_v50 = vmax.f32 %v6299_v20, %v6300_v1  ;;  %v6293_v38 = vrot.slane %v6292_v37, 1  ;;  %v6313_v17 = vmax.f32 %v6311_v26, %v6312_v16 }
0x18f4   :  { %v10974_v33 = vpop.eup %9279  ;;  %v6401_v9 = vadd.f32 %v6400_v29, %v6399_v45  ;;  %v6393_v12 = vrot.slane %v6392_v21, 4  ;;  %v6306_v55 = vmax.f32 %v6304_v6, %v6305_v27  ;;  %v6324_v52 = vrot.slane %v6323_v58, 4 }
0x18f5   :  { %v6413_v0 = vsel %vm731_vm1, %v10974_v33, 0.0  ;;  %v6353_v2 = vsub.f32 %v10944_v36, %v6301_v50  ;;  %v6294_v39 = vmax.f32 %v6292_v37, %v6293_v38  ;;  %v6314_v24 = vrot.slane %v6313_v17, 1  ;;  %v6197_v36 = vpop.f32.mrf.mxu0 }
0x18f6   :  { %v10981_v53 = vpop.eup %9281  ;;  %v6402_v8 = vrot.slane %v6401_v9, 2  ;;  %v6394_v54 = vadd.f32 %v6393_v12, %v6392_v21  ;;  %v6414_v41 = vrot.slane %v6413_v0, 4  ;;  %v6307_v13 = vrot.slane %v6306_v55, 1 }
0x18f7   :  { %v6406_v22 = vsel %vm731_vm1, %v10981_v53, 0.0  ;;  %v6378_v49 = vmul.f32 1.442695, %v6353_v2  ;;  %v6352_v10 = vsub.f32 %v10948_v42, %v6294_v39  ;;  %v6315_v63 = vmax.f32 %v6313_v17, %v6314_v24  ;;  %v8678_v15 = vpop.f32.mrf.mxu0 }
0x18f8   :  { %v6403_v11 = vadd.f32 %v6402_v8, %v6401_v9  ;;  %v6415_v5 = vadd.f32 %v6414_v41, %v6413_v0  ;;  %v6407_v31 = vrot.slane %v6406_v22, 4  ;;  %v6308_v35 = vmax.f32 %v6306_v55, %v6307_v13 }
0x18f9   :  { %v10986_v60 = vpop.eup %9283  ;;  %9291 = vpow2.f32 %v6378_v49  ;;  %v6376_v28 = vmul.f32 1.442695, %v6352_v10  ;;  %v6355_v3 = vsub.f32 %v10953_v19, %v6315_v63  ;;  %v6395_v4 = vrot.slane %v6394_v54, 2  ;;  %v6207_v0 = vpop.f32.mrf.mxu0 }
0x18fa   :  { %v6404_v34 = vrot.slane %v6403_v11, 1  ;;  %v6416_v48 = vrot.slane %v6415_v5, 2  ;;  %v6408_v25 = vadd.f32 %v6407_v31, %v6406_v22  ;;  %v6427_v42 = vsel %vm731_vm1, %v10986_v60, 0.0 }
0x18fb   :  { %v10989_v44 = vpop.eup %9285  ;;  %9293 = vpow2.f32 %v6376_v28  ;;  %v6382_v61 = vmul.f32 1.442695, %v6355_v3  ;;  %v6354_v20 = vsub.f32 %v10958_v23, %v6308_v35  ;;  %v10994_v26 = vmul.f32 0.25, %v6197_v36 }
0x18fc   :  { %v6409_v57 = vrot.slane %v6408_v25, 2  ;;  %v6428_v19 = vrot.slane %v6427_v42, 4  ;;  %v6420_v45 = vsel %vm731_vm1, %v10989_v44, 0.0  ;;  %v6405_v37 = vadd.f32 %v6404_v34, %v6403_v11 }
0x18fd   :  { %v10996_v6 = vpop.eup %9287  ;;  %9295 = vpow2.f32 %v6382_v61  ;;  %v6380_v1 = vmul.f32 1.442695, %v6354_v20  ;;  %v6396_v16 = vadd.f32 %v6395_v4, %v6394_v54  ;;  %v11000_v29 = vadd.f32 %v6416_v48, %v6415_v5 }
0x18fe   :  { %v6421_v27 = vrot.slane %v6420_v45, 4  ;;  %v6429_v23 = vadd.f32 %v6428_v19, %v6427_v42  ;;  %v6441_v50 = vsel %vm731_vm1, %v10996_v6, 0.0  ;;  %v6325_v38 = vmax.f32 %v6323_v58, %v6324_v52 }
0x18ff   :  { %v11002_v21 = vpop.eup %9289  ;;  %9297 = vpow2.f32 %v6380_v1  ;;  %v11006_v17 = vadd.f32 %v6409_v57, %v6408_v25  ;;  %v6442_v12 = vrot.slane %v6441_v50, 4  ;;  %v6316_v8 = vsel %vm731_vm1, %v10994_v26, -inf }
0x1900   :  { %v6422_v9 = vadd.f32 %v6421_v27, %v6420_v45  ;;  %v6434_v55 = vsel %vm731_vm1, %v11002_v21, 0.0  ;;  %v6430_v2 = vrot.slane %v6429_v23, 2  ;;  %v6326_v24 = vrot.slane %v6325_v38, 2 }
0x1901   :  { %v6435_v39 = vrot.slane %v6434_v55, 4  ;;  %v6443_v41 = vadd.f32 %v6442_v12, %v6441_v50  ;;  %v6317_v13 = vrot.slane %v6316_v8, 4  ;;  %v11012_v22 = vmul.f32 0.25, %v8678_v15 }
0x1902   :  { %v6423_v54 = vrot.slane %v6422_v9, 2  ;;  %v6397_v58 = vrot.slane %v6396_v16, 1  ;;  %v11014_v49 = vadd.f32 %v6430_v2, %v6429_v23  ;;  %v6327_v10 = vmax.f32 %v6325_v38, %v6326_v24 }
0x1903   :  { %v11016_v63 = vmul.f32 0.25, %v6207_v0  ;;  %9299 = vrcp.f32 %v6405_v37  ;;  %v6436_v11 = vadd.f32 %v6435_v39, %v6434_v55  ;;  %v6318_v5 = vmax.f32 %v6316_v8, %v6317_v13 }
0x1904   :  { %v6337_v31 = vsel %vm731_vm1, %v11012_v22, -inf  ;;  %v6418_v52 = vrot.slane %v11000_v29, 1  ;;  %v6444_v36 = vrot.slane %v6443_v41, 2  ;;  %v6328_v28 = vrot.slane %v6327_v10, 1 }
0x1905   :  { %v6338_v3 = vrot.slane %v6337_v31, 4  ;;  %v6411_v34 = vrot.slane %v11006_v17, 1  ;;  %v6424_v4 = vadd.f32 %v6423_v54, %v6422_v9  ;;  %v6319_v48 = vrot.slane %v6318_v5, 2 }
0x1906   :  { %v11021_v35 = vpop.eup %9291  ;;  %v6330_v25 = vsel %vm731_vm1, %v11016_v63, -inf  ;;  %v6432_v42 = vrot.slane %v11014_v49, 1  ;;  %v6329_v20 = vmax.f32 %v6327_v10, %v6328_v28  ;;  %v6437_v19 = vrot.slane %v6436_v11, 2 }
0x1907   :  { %v6455_v61 = vsel %vm731_vm1, %v11021_v35, 0.0  ;;  %v6339_v57 = vmax.f32 %v6337_v31, %v6338_v3  ;;  %v6320_v1 = vmax.f32 %v6318_v5, %v6319_v48  ;;  %v6331_v37 = vrot.slane %v6330_v25, 4 }
0x1908   :  { %v11029_v15 = vpop.eup %9293  ;;  %v6456_v45 = vrot.slane %v6455_v61, 4  ;;  %v6445_v27 = vadd.f32 %v6444_v36, %v6443_v41  ;;  %v6357_v50 = vsub.f32 %v10966_v14, %v6329_v20  ;;  %v6398_v54 = vadd.f32 %v6397_v58, %v6396_v16 }
0x1909   :  { %v6448_v23 = vsel %vm731_vm1, %v11029_v15, 0.0  ;;  %v6340_v38 = vrot.slane %v6339_v57, 2  ;;  %v6321_v0 = vrot.slane %v6320_v1, 1  ;;  %v6332_v2 = vmax.f32 %v6330_v25, %v6331_v37 }
0x190a   :  { %v11034_v9 = vpop.eup %9295  ;;  %v6457_v12 = vadd.f32 %v6456_v45, %v6455_v61  ;;  %v6449_v55 = vrot.slane %v6448_v23, 4  ;;  %v6386_v24 = vmul.f32 1.442695, %v6357_v50  ;;  %v6438_v41 = vadd.f32 %v6437_v19, %v6436_v11 }
0x190b   :  { %v6469_v39 = vsel %vm731_vm1, %v11034_v9, 0.0  ;;  %v6341_v8 = vmax.f32 %v6339_v57, %v6340_v38  ;;  %v6322_v31 = vmax.f32 %v6320_v1, %v6321_v0  ;;  %v6333_v28 = vrot.slane %v6332_v2, 2 }
0x190c   :  { %v11038_v13 = vpop.eup %9297  ;;  %v6450_v10 = vadd.f32 %v6449_v55, %v6448_v23  ;;  %v6470_v5 = vrot.slane %v6469_v39, 4  ;;  %9301 = vpow2.f32 %v6386_v24  ;;  %v6458_v3 = vrot.slane %v6457_v12, 2 }
0x190d   :  { %v6462_v14 = vsel %vm731_vm1, %v11038_v13, 0.0  ;;  %v6342_v36 = vrot.slane %v6341_v8, 1  ;;  %v6356_v20 = vsub.f32 %v10994_v26, %v6322_v31  ;;  %v6334_v16 = vmax.f32 %v6332_v2, %v6333_v28 }
0x190e   :  { %v6451_v48 = vrot.slane %v6450_v10, 2  ;;  %v6471_v25 = vadd.f32 %v6470_v5, %v6469_v39  ;;  %v6463_v61 = vrot.slane %v6462_v14, 4  ;;  %9303 = vrcp.f32 %v6398_v54 }
0x190f   :  { %v6343_v57 = vmax.f32 %v6341_v8, %v6342_v36  ;;  %v6425_v58 = vrot.slane %v6424_v4, 1  ;;  %v6446_v11 = vrot.slane %v6445_v27, 1  ;;  %v6439_v37 = vrot.slane %v6438_v41, 1 }
0x1910   :  { %v6452_v19 = vadd.f32 %v6451_v48, %v6450_v10  ;;  %v6464_v45 = vadd.f32 %v6463_v61, %v6462_v14  ;;  %v9300_v1 = vpop.eup %9299  ;;  %v6384_v23 = vmul.f32 1.442695, %v6356_v20  ;;  %v6335_v38 = vrot.slane %v6334_v16, 1 }
0x1911   :  { %v6359_v50 = vsub.f32 %v11012_v22, %v6343_v57  ;;  %v6459_v55 = vadd.f32 %v6458_v3, %v6457_v12  ;;  %v6472_v0 = vrot.slane %v6471_v25, 2  ;;  %v6412_v39 = vadd.f32 %v6411_v34, %v11006_v17 }
0x1912   :  { %v6465_v24 = vrot.slane %v6464_v45, 2  ;;  %9305 = vpow2.f32 %v6384_v23  ;;  %v6336_v8 = vmax.f32 %v6334_v16, %v6335_v38  ;;  %v6419_v2 = vadd.f32 %v6418_v52, %v11000_v29 }
0x1913   :  { %v6390_v26 = vmul.f32 1.442695, %v6359_v50  ;;  %v6453_v54 = vrot.slane %v6452_v19, 1  ;;  %9307 = vrcp.f32 %v6412_v39  ;;  %v6426_v5 = vadd.f32 %v6425_v58, %v6424_v4 }
0x1914   :  { %v6466_v10 = vadd.f32 %v6465_v24, %v6464_v45  ;;  %v6358_v22 = vsub.f32 %v11016_v63, %v6336_v8  ;;  %v6433_v12 = vadd.f32 %v6432_v42, %v11014_v49  ;;  %v6440_v31 = vadd.f32 %v6439_v37, %v6438_v41 }
0x1915   :  { %9309 = vpow2.f32 %v6390_v26  ;;  %v6447_v34 = vadd.f32 %v6446_v11, %v6445_v27  ;;  %v6460_v36 = vrot.slane %v6459_v55, 1  ;;  %v6473_v28 = vadd.f32 %v6472_v0, %v6471_v25 }
0x1916   :  { %9311 = vrcp.f32 %v6419_v2  ;;  %v6467_v14 = vrot.slane %v6466_v10, 1  ;;  %v6388_v17 = vmul.f32 1.442695, %v6358_v22  ;;  %v6454_v3 = vadd.f32 %v6453_v54, %v6452_v19 }
0x1917   :  { %9313 = vrcp.f32 %v6426_v5  ;;  %v6474_v4 = vrot.slane %v6473_v28, 1  ;;  %v6461_v41 = vadd.f32 %v6460_v36, %v6459_v55  ;;  %v6521_v25 = vmul.f32 %v9300_v1, %v10964_v59 }
0x1918   :  { %9315 = vrcp.f32 %v6433_v12  ;;  %v6468_v63 = vadd.f32 %v6467_v14, %v6466_v10 }
0x1919   :  { %9317 = vpow2.f32 %v6388_v17  ;;  %v11050_v29 = vpop.eup %9301  ;;  %v6475_v57 = vadd.f32 %v6474_v4, %v6473_v28 }
0x191a   :  { %9319 = vrcp.f32 %v6440_v31  ;;  %v6483_v52 = vsel %vm731_vm1, %v11050_v29, 0.0 }
0x191b   :  { %9321 = vrcp.f32 %v6447_v34  ;;  %v9304_v49 = vpop.eup %9303  ;;  %v6484_v42 = vrot.slane %v6483_v52, 4 }
0x191c   :  { %9323 = vrcp.f32 %v6454_v3  ;;  %v6520_v27 = vmul.f32 %v9304_v49, %v10970_v56 }
0x191d   :  { %v6485_v48 = vadd.f32 %v6484_v42, %v6483_v52  ;;  %9325 = vrcp.f32 %v6468_v63 }
0x191e   :  { %8681 = vmatprep.mubr.msk.f32.mxu1 %vm731_vm1, %v6520_v27  ;;  %9327 = vrcp.f32 %v6461_v41 }
0x191f   :  { %v11057_v61 = vpop.eup %9305  ;;  %v6486_v20 = vrot.slane %v6485_v48, 2  ;;  %8682 = vmatmul.mubr.msk.f32.vlgmr.msra.gmra.mxu1 %vm731_vm1, %v6521_v25  ;;  %9329 = vrcp.f32 %v6475_v57 }
0x1920   :  { %v9308_v16 = vpop.eup %9307  ;;  %v6476_v58 = vsel %vm731_vm1, %v11057_v61, 0.0 }
0x1921   :  { %v6487_v56 = vadd.f32 %v6486_v20, %v6485_v48  ;;  %v6477_v19 = vrot.slane %v6476_v58, 4  ;;  %v6522_v59 = vmul.f32 %v9308_v16, %v10981_v53 }
0x1922   :  { %v11062_v11 = vpop.eup %9309 }
0x1923   :  { %v9312_v45 = vpop.eup %9311  ;;  %v6497_v1 = vsel %vm731_vm1, %v11062_v11, 0.0  ;;  %v6478_v23 = vadd.f32 %v6477_v19, %v6476_v58  ;;  %8684 = vmatprep.mubr.msk.f32.mxu1 %vm731_vm1, %v6522_v59  ;;  %v6488_v0 = vrot.slane %v6487_v56, 1  ;;  %v9016_v19 = vld [vmem:[%s11204_s5 + $0xd0] sm:$0xff]   ;;  %v9017_v59 = vld [vmem:[%s11204_s5 + $0xc8] sm:$0xff]  }
0x1924   :  { %v9314_v37 = vpop.eup %9313  ;;  %v6498_v50 = vrot.slane %v6497_v1, 4  ;;  %v6523_v38 = vmul.f32 %v9312_v45, %v10974_v33  ;;  %v9018_v45 = vld [vmem:[%s11204_s5 + $0xc0] sm:$0xff]  }
0x1925   :  { %v9316_v55 = vpop.eup %9315  ;;  %v6524_v24 = vmul.f32 %v9314_v37, %v10989_v44  ;;  %v6479_v26 = vrot.slane %v6478_v23, 2  ;;  %v6489_v44 = vadd.f32 %v6488_v0, %v6487_v56 }
0x1926   :  { %v9318_v39 = vpop.eup %9317  ;;  %v6499_v8 = vadd.f32 %v6498_v50, %v6497_v1  ;;  %8685 = vmatmul.mubr.msk.f32.gmra.mxu1 %vm731_vm1, %v6523_v38  ;;  %v6525_v54 = vmul.f32 %v9316_v55, %v10986_v60  ;;  %v5659_v1 = vrot.slane %v10876_v47, %v9923_v30 }
0x1927   :  { %v9320_v53 = vpop.eup %9319  ;;  %v6490_v2 = vsel %vm731_vm1, %v9318_v39, 0.0  ;;  %8687 = vmatprep.mubr.msk.f32.mxu1 %vm731_vm1, %v6524_v24  ;;  %v6480_v5 = vadd.f32 %v6479_v26, %v6478_v23  ;;  %9331 = vrcp.f32 %v6489_v44 }
0x1928   :  { %v9322_v10 = vpop.eup %9321  ;;  %v6500_v33 = vrot.slane %v6499_v8, 2  ;;  %v6491_v22 = vrot.slane %v6490_v2, 4  ;;  %v6526_v12 = vmul.f32 %v9320_v53, %v11002_v21  ;;  %v5869_v37 = vadd.f32 %v10880_v62, %v5659_v1 }
0x1929   :  { %v9324_v31 = vpop.eup %9323  ;;  %v6481_v14 = vrot.slane %v6480_v5, 1  ;;  %v6527_v52 = vmul.f32 %v9322_v10, %v10996_v6 }
0x192a   :  { %v6501_v17 = vadd.f32 %v6500_v33, %v6499_v8  ;;  %v6492_v34 = vadd.f32 %v6491_v22, %v6490_v2  ;;  %8688 = vmatmul.mubr.msk.f32.gmra.mxu1 %vm731_vm1, %v6525_v54  ;;  %v6528_v36 = vmul.f32 %v9324_v31, %v11029_v15  ;;  %v9326_v28 = vpop.eup %9325 }
0x192b   :  { %8690 = vmatprep.mubr.msk.f32.mxu1 %vm731_vm1, %v6526_v12  ;;  %v6482_v63 = vadd.f32 %v6481_v14, %v6480_v5  ;;  %v9328_v49 = vpop.eup %9327  ;;  %v6530_v4 = vmul.f32 %v9326_v28, %v11038_v13  ;;  %v11130_v14 = vadd.f32 %v10885_v32, %v5659_v1 }
0x192c   :  { %v6502_v3 = vrot.slane %v6501_v17, 1  ;;  %v6493_v60 = vrot.slane %v6492_v34, 2  ;;  %v6529_v15 = vmul.f32 %v9328_v49, %v11021_v35  ;;  %v9330_v27 = vpop.eup %9329 }
0x192d   :  { %9333 = vrcp.f32 %v6482_v63  ;;  %v6531_v6 = vmul.f32 %v9330_v27, %v11034_v9  ;;  %v9011_v9 = vld [vmem:[%s11204_s5 + $0xf8] sm:$0xff]  }
0x192e   :  { %v6494_v21 = vadd.f32 %v6493_v60, %v6492_v34  ;;  %8691 = vmatmul.mubr.msk.f32.gmra.mxu1 %vm731_vm1, %v6527_v52  ;;  %v6503_v42 = vadd.f32 %v6502_v3, %v6501_v17  ;;  %8706 = vmatpush3.bf16.msra.mxu0 %v9011_v9 }
0x192f   :  { %8693 = vmatprep.mubr.msk.f32.mxu1 %vm731_vm1, %v6528_v36  ;;  %8707 = vmatprep.subr.bf16.mxu0 %v11220_v51 }
0x1930   :  { %v6495_v41 = vrot.slane %v6494_v21, 1  ;;  %9335 = vrcp.f32 %v6503_v42 }
0x1932   :  { %8694 = vmatmul.mubr.msk.f32.gmra.mxu1 %vm731_vm1, %v6529_v15  ;;  %v6496_v48 = vadd.f32 %v6495_v41, %v6494_v21 }
0x1933   :  { %8696 = vmatprep.mubr.msk.f32.mxu1 %vm731_vm1, %v6530_v4 }
0x1934   :  { %9337 = vrcp.f32 %v6496_v48  ;;  %v9332_v25 = vpop.eup %9331 }
0x1935   :  { %v6533_v57 = vmul.f32 %v9332_v25, %v11050_v29  ;;  %v9012_v29 = vld [vmem:[%s11204_s5 + $0xf0] sm:$0xff]  }
0x1936   :  { %8697 = vmatmul.mubr.msk.f32.gmra.mxu1 %vm731_vm1, %v6531_v6  ;;  %8708 = vmatpush3.bf16.msra.mxu0 %v9012_v29 }
0x1937   :  { %8709 = vmatprep.subr.bf16.mxu0 %v11220_v51 }
0x193a   :  { %v9334_v20 = vpop.eup %9333 }
0x193b   :  { %v6532_v13 = vmul.f32 %v9334_v20, %v11057_v61  ;;  %v9013_v61 = vld [vmem:[%s11204_s5 + $0xe8] sm:$0xff]  }
0x193c   :  { %8710 = vmatpush3.bf16.msra.mxu0 %v9013_v61 }
0x193d   :  { %8699 = vmatprep.mubr.msk.f32.mxu1 %vm731_vm1, %v6532_v13  ;;  %v9336_v35 = vpop.eup %9335  ;;  %8711 = vmatprep.subr.bf16.mxu0 %v11220_v51 }
0x193e   :  { %8700 = vmatmul.mubr.msk.f32.gmra.mxu1 %vm731_vm1, %v6533_v57  ;;  %v6535_v56 = vmul.f32 %v9336_v35, %v11062_v11  ;;  %v9015_v11 = vld [vmem:[%s11204_s5 + $0xd8] sm:$0xff]  }
0x1941   :  { %v9338_v16 = vpop.eup %9337 }
0x1942   :  { %v6534_v58 = vmul.f32 %v9338_v16, %v9318_v39 }
0x1944   :  { %8702 = vmatprep.mubr.msk.f32.mxu1 %vm731_vm1, %v6534_v58 }
0x1945   :  { %8703 = vmatmul.mubr.msk.f32.gmra.mxu1 %vm731_vm1, %v6535_v56 }
0x1946   :  { %7206 = vmatprep.mubr.bf16.mxu1 %v11219_v7  ;;  %v9014_v7 = vld [vmem:[%s11204_s5 + $0xe0] sm:$0xff]  }
0x1947   :  { %8712 = vmatpush3.bf16.msra.mxu0 %v9014_v7 }
0x1948   :  { %8713 = vmatprep.subr.bf16.mxu0 %v11220_v51 }
0x194b   :  { %8714 = vmatpush3.bf16.msra.mxu0 %v9015_v11 }
0x194c   :  { %8715 = vmatprep.subr.bf16.mxu0 %v11220_v51 }
0x194f   :  { %8716 = vmatpush3.bf16.msra.mxu0 %v9016_v19 }
0x1950   :  { %8717 = vmatprep.subr.bf16.mxu0 %v11220_v51 }
0x1953   :  { %8718 = vmatpush3.bf16.msra.mxu0 %v9017_v59 }
0x1954   :  { %8719 = vmatprep.subr.bf16.mxu0 %v11220_v51 }
0x1957   :  { %8720 = vmatpush3.bf16.msra.mxu0 %v9018_v45 }
0x19df   :  { %v8683_v23 = vpop.f32.mrf.mxu1 }
0x19e0   :  { %v6730_v50 = vmul.f32 %v8683_v23, %v5869_v37 }
0x19e1   :  { %v6650_v38 = vpop.f32.mrf.mxu1 }
0x19e2   :  { %v6729_v55 = vmul.f32 %v6650_v38, %v5869_v37  ;;  %v6751_v0 = vrot.slane %v6730_v50, 4 }
0x19e4   :  { %v6745_v24 = vrot.slane %v6729_v55, 4  ;;  %v6752_v8 = vadd.f32 %v6751_v0, %v6730_v50 }
0x19e6   :  { %v8686_v39 = vpop.f32.mrf.mxu1  ;;  %v6746_v26 = vadd.f32 %v6745_v24, %v6729_v55  ;;  %v6753_v5 = vrot.slane %v6752_v8, 2 }
0x19e7   :  { %v6732_v51 = vmul.f32 %v8686_v39, %v5869_v37 }
0x19e8   :  { %v6660_v53 = vpop.f32.mrf.mxu1  ;;  %v6747_v2 = vrot.slane %v6746_v26, 2  ;;  %v6754_v12 = vadd.f32 %v6753_v5, %v6752_v8 }
0x19e9   :  { %v6731_v10 = vmul.f32 %v6660_v53, %v5869_v37  ;;  %v6763_v33 = vrot.slane %v6732_v51, 4 }
0x19ea   :  { %v8689_v54 = vpop.f32.mrf.mxu1  ;;  %v6748_v30 = vadd.f32 %v6747_v2, %v6746_v26  ;;  %v6755_v52 = vrot.slane %v6754_v12, 1 }
0x19eb   :  { %v6757_v62 = vrot.slane %v6731_v10, 4  ;;  %v6764_v31 = vadd.f32 %v6763_v33, %v6732_v51  ;;  %v6734_v36 = vmul.f32 %v8689_v54, %v5869_v37 }
0x19ec   :  { %v6670_v22 = vpop.f32.mrf.mxu1  ;;  %v6749_v34 = vrot.slane %v6748_v30, 1  ;;  %v6756_v25 = vadd.f32 %v6755_v52, %v6754_v12 }
0x19ed   :  { %v6733_v17 = vmul.f32 %v6670_v22, %v5869_v37  ;;  %v6758_v3 = vadd.f32 %v6757_v62, %v6731_v10  ;;  %v6765_v63 = vrot.slane %v6764_v31, 2  ;;  %v6775_v15 = vrot.slane %v6734_v36, 4 }
0x19ee   :  { %v8692_v47 = vpop.f32.mrf.mxu1  ;;  %v6750_v41 = vadd.f32 %v6749_v34, %v6748_v30  ;;  %v6842_v59 = vpack.c.bf16 %v6756_v25, %v6756_v25 }
0x19ef   :  { %v6769_v21 = vrot.slane %v6733_v17, 4  ;;  %v6759_v48 = vrot.slane %v6758_v3, 2  ;;  %v6766_v20 = vadd.f32 %v6765_v63, %v6764_v31  ;;  %v6736_v13 = vmul.f32 %v8692_v47, %v5869_v37 }
0x19f0   :  { %v6680_v44 = vpop.f32.mrf.mxu1  ;;  %v6841_v56 = vpack.c.bf16 %v6750_v41, %v6750_v41  ;;  %v6776_v9 = vadd.f32 %v6775_v15, %v6734_v36  ;;  %v6899_v53 = vunpack.c.l.b16 %v6842_v59 }
0x19f1   :  { %v6735_v4 = vmul.f32 %v6680_v44, %v5869_v37  ;;  %v6770_v57 = vadd.f32 %v6769_v21, %v6733_v17  ;;  %v6760_v29 = vadd.f32 %v6759_v48, %v6758_v3  ;;  %v6767_v45 = vrot.slane %v6766_v20, 1 }
0x19f2   :  { %v8695_v28 = vpop.f32.mrf.mxu1  ;;  %v6787_v1 = vrot.slane %v6736_v13, 4  ;;  %v6777_v37 = vrot.slane %v6776_v9, 2  ;;  %v6898_v24 = vunpack.c.l.b16 %v6841_v56 }
0x19f3   :  { %v6738_v60 = vmul.f32 %v8695_v28, %v11130_v14  ;;  %v6781_v35 = vrot.slane %v6735_v4, 4  ;;  %v6771_v23 = vrot.slane %v6770_v57, 2  ;;  %v6761_v39 = vrot.slane %v6760_v29, 1 }
0x19f4   :  { %v6690_v49 = vpop.f32.mrf.mxu1  ;;  %v11137_v5 = vadd.f32 %v6767_v45, %v6766_v20  ;;  %v6788_v22 = vadd.f32 %v6787_v1, %v6736_v13  ;;  %v6914_v17 = vsel %vm1412_vm2, %v6899_v53, %v6898_v24  ;;  %v6778_v36 = vadd.f32 %v6777_v37, %v6776_v9 }
0x19f5   :  { %v6799_v42 = vrot.slane %v6738_v60, 4  ;;  %v6737_v32 = vmul.f32 %v6690_v49, %v11130_v14  ;;  %v6782_v50 = vadd.f32 %v6781_v35, %v6735_v4  ;;  %v6772_v33 = vadd.f32 %v6771_v23, %v6770_v57 }
0x19f6   :  { %v8698_v27 = vpop.f32.mrf.mxu1  ;;  %v6762_v34 = vadd.f32 %v6761_v39, %v6760_v29  ;;  %v6844_v49 = vpack.c.bf16 %v11137_v5, %v11137_v5  ;;  %v6789_v4 = vrot.slane %v6788_v22, 2  ;;  %v6779_v25 = vrot.slane %v6778_v36, 1 }
0x19f7   :  { %v6800_v6 = vadd.f32 %v6799_v42, %v6738_v60  ;;  %v6793_v16 = vrot.slane %v6737_v32, 4  ;;  %v6740_v58 = vmul.f32 %v8698_v27, %v11130_v14  ;;  %v6783_v30 = vrot.slane %v6782_v50, 2 }
0x19f8   :  { %v6700_v19 = vpop.f32.mrf.mxu1  ;;  %v6773_v21 = vrot.slane %v6772_v33, 1  ;;  %v6780_v53 = vadd.f32 %v6779_v25, %v6778_v36 }
0x19f9   :  { %v6801_v61 = vrot.slane %v6800_v6, 2  ;;  %v6794_v7 = vadd.f32 %v6793_v16, %v6737_v32  ;;  %v6811_v11 = vrot.slane %v6740_v58, 4  ;;  %v6739_v0 = vmul.f32 %v6700_v19, %v11130_v14 }
0x19fa   :  { %v6784_v42 = vadd.f32 %v6783_v30, %v6782_v50  ;;  %v6843_v32 = vpack.c.bf16 %v6762_v34, %v6762_v34  ;;  %v6774_v9 = vadd.f32 %v6773_v21, %v6772_v33 }
0x19fb   :  { %v6795_v38 = vrot.slane %v6794_v7, 2  ;;  %v6812_v55 = vadd.f32 %v6811_v11, %v6740_v58  ;;  %v6802_v26 = vadd.f32 %v6801_v61, %v6800_v6  ;;  %v6805_v54 = vrot.slane %v6739_v0, 4 }
0x19fc   :  { %v6785_v29 = vrot.slane %v6784_v42, 1  ;;  %v6790_v11 = vadd.f32 %v6789_v4, %v6788_v22  ;;  %v6900_v1 = vunpack.c.l.b16 %v6843_v32  ;;  %v6845_v39 = vpack.c.bf16 %v6774_v9, %v6774_v9 }
0x19fd   :  { %v6796_v8 = vadd.f32 %v6795_v38, %v6794_v7  ;;  %v6813_v2 = vrot.slane %v6812_v55, 2  ;;  %v6806_v12 = vadd.f32 %v6805_v54, %v6739_v0  ;;  %v6803_v28 = vrot.slane %v6802_v26, 1 }
0x19fe   :  { %v8701_v51 = vpop.f32.mrf.mxu1 }
0x19ff   :  { %v6742_v10 = vmul.f32 %v8701_v51, %v11130_v14  ;;  %v6797_v62 = vrot.slane %v6796_v8, 1  ;;  %v6814_v3 = vadd.f32 %v6813_v2, %v6812_v55  ;;  %v6807_v60 = vrot.slane %v6806_v12, 2 }
0x1a00   :  { %v6710_v47 = vpop.f32.mrf.mxu1  ;;  %v6804_v20 = vadd.f32 %v6803_v28, %v6802_v26  ;;  %v6786_v26 = vadd.f32 %v6785_v29, %v6784_v42  ;;  %v6791_v2 = vrot.slane %v6790_v11, 1 }
0x1a01   :  { %v6823_v31 = vrot.slane %v6742_v10, 4  ;;  %v6741_v44 = vmul.f32 %v6710_v47, %v11130_v14  ;;  %v6798_v15 = vadd.f32 %v6797_v62, %v6796_v8  ;;  %v6808_v27 = vadd.f32 %v6807_v60, %v6806_v12 }
0x1a02   :  { %v6815_v35 = vrot.slane %v6814_v3, 1  ;;  %v6850_v23 = vpack.c.bf16 %v6804_v20, %v6804_v20  ;;  %v6846_v60 = vpack.c.bf16 %v6780_v53, %v6780_v53 }
0x1a03   :  { %v6824_v52 = vadd.f32 %v6823_v31, %v6742_v10  ;;  %v6817_v63 = vrot.slane %v6741_v44, 4  ;;  %v6809_v16 = vrot.slane %v6808_v27, 1  ;;  %v6849_v19 = vpack.c.bf16 %v6798_v15, %v6798_v15 }
0x1a04   :  { %v6816_v55 = vadd.f32 %v6815_v35, %v6814_v3  ;;  %v6915_v10 = vsel %vm1414_vm3, %v6900_v1, %v6914_v17  ;;  %v6907_v30 = vunpack.c.l.b16 %v6850_v23  ;;  %v6902_v31 = vunpack.c.l.b16 %v6845_v39  ;;  %v9019_v39 = vld [vmem:[#allocation5 + $0x1f0] ss:$8 sps:$4 sm:$0xff]  }
0x1a05   :  { %v8704_v41 = vpop.f32.mrf.mxu1  ;;  %v6825_v48 = vrot.slane %v6824_v52, 2  ;;  %v6818_v6 = vadd.f32 %v6817_v63, %v6741_v44  ;;  %v6810_v59 = vadd.f32 %v6809_v16, %v6808_v27  ;;  %v6906_v54 = vunpack.c.l.b16 %v6849_v19 }
0x1a06   :  { %v6744_v13 = vmul.f32 %v8704_v41, %v11130_v14  ;;  %v6852_v47 = vpack.c.bf16 %v6816_v55, %v6816_v55  ;;  %v6847_v44 = vpack.c.bf16 %v6786_v26, %v6786_v26  ;;  %v6901_v3 = vunpack.c.l.b16 %v6844_v49  ;;  %v9021_v26 = vld [vmem:[#allocation5 + $0x1f4] ss:$8 sps:$4 sm:$0xff]  }
0x1a07   :  { %v6720_v57 = vpop.f32.mrf.mxu1  ;;  %v6826_v58 = vadd.f32 %v6825_v48, %v6824_v52  ;;  %v6819_v56 = vrot.slane %v6818_v6, 2  ;;  %v6851_v37 = vpack.c.bf16 %v6810_v59, %v6810_v59  ;;  %v6792_v52 = vadd.f32 %v6791_v2, %v6790_v11  ;;  %7174 = vmatprep.subr.bf16.mxu1 %v9021_v26 }
0x1a08   :  { %v6835_v61 = vrot.slane %v6744_v13, 4  ;;  %v6743_v7 = vmul.f32 %v6720_v57, %v11130_v14  ;;  %v6921_v36 = vsel %vm1412_vm2, %v6907_v30, %v6906_v54  ;;  %v6916_v42 = vsel %vm1416_vm4, %v6901_v3, %v6915_v10  ;;  %7175 = vmatpush1.bf16.msra.mxu1 %v9019_v39  ;;  %v9024_v10 = vld [vmem:[#allocation5 + $0x1e4] ss:$8 sps:$4 sm:$0xff]  }
0x1a09   :  { %v6820_v45 = vadd.f32 %v6819_v56, %v6818_v6  ;;  %v6827_v0 = vrot.slane %v6826_v58, 1  ;;  %v6908_v5 = vunpack.c.l.b16 %v6851_v37  ;;  %v6909_v41 = vunpack.c.l.b16 %v6852_v47  ;;  %7176 = vmatprep.subr.bf16.mxu1 %v9024_v10  ;;  %v9030_v30 = vld [vmem:[#allocation5 + $0x1c4] ss:$8 sps:$4 sm:$0xff]   ;;  %v9028_v47 = vld [vmem:[#allocation5 + $0x1c0] ss:$8 sps:$4 sm:$0xff]  }
0x1a0a   :  { %v6836_v50 = vadd.f32 %v6835_v61, %v6744_v13  ;;  %v6829_v38 = vrot.slane %v6743_v7, 4  ;;  %v6917_v27 = vsel %vm1418_vm5, %v6902_v31, %v6916_v42  ;;  %v6904_v48 = vunpack.c.l.b16 %v6847_v44  ;;  %v9036_v31 = vld [vmem:[#allocation5 + $0x1a4] ss:$8 sps:$4 sm:$0xff]   ;;  %v9034_v44 = vld [vmem:[#allocation5 + $0x1a0] ss:$8 sps:$4 sm:$0xff]  }
0x1a0b   :  { %v6821_v24 = vrot.slane %v6820_v45, 1  ;;  %v6828_v62 = vadd.f32 %v6827_v0, %v6826_v58  ;;  %v6922_v63 = vsel %vm1414_vm3, %v6908_v5, %v6921_v36  ;;  %v6903_v32 = vunpack.c.l.b16 %v6846_v60  ;;  %v9022_v5 = vld [vmem:[#allocation5 + $0x1e0] ss:$8 sps:$4 sm:$0xff]   ;;  %v9042_v3 = vld [vmem:[#allocation5 + $0x184] ss:$8 sps:$4 sm:$0xff]   ;;  %v9044_v36 = vld [vmem:[#allocation7 + $0x1b8] sm:$0xff]  }
0x1a0c   :  { %v6837_v8 = vrot.slane %v6836_v50, 2  ;;  %v6830_v51 = vadd.f32 %v6829_v38, %v6743_v7  ;;  %v6848_v25 = vpack.c.bf16 %v6792_v52, %v6792_v52  ;;  %v6923_v49 = vsel %vm1416_vm4, %v6909_v41, %v6922_v63  ;;  %7177 = vmatpush1.bf16.msra.mxu1 %v9022_v5  ;;  %v9040_v60 = vld [vmem:[#allocation5 + $0x180] ss:$8 sps:$4 sm:$0xff]   ;;  %v9043_v52 = vld [vmem:[#allocation7 + $0x1f8] sm:$0xff]   ;;  %v9045_v63 = vld [vmem:[#allocation7 + $0x1f0] sm:$0xff]  }
0x1a0d   :  { %v6822_v14 = vadd.f32 %v6821_v24, %v6820_v45  ;;  %v6854_v15 = vpack.c.bf16 %v6828_v62, %v6828_v62  ;;  %v6918_v35 = vsel %vm1420_vm6, %v6903_v32, %v6917_v27  ;;  %v7829_v45 = vld [vmem:[%s11205_s6 + $0x3] ss:$0 sm:$0xff]  ;;  %v9033_v62 = vld [vmem:[#allocation5 + $0x1b4] ss:$8 sps:$4 sm:$0xff]   ;;  %8215 = vmatprep.subr.bf16.mxu0 %v9043_v52 }
0x1a0e   :  { %v6838_v33 = vadd.f32 %v6837_v8, %v6836_v50  ;;  %v6831_v22 = vrot.slane %v6830_v51, 2  ;;  %v6919_v58 = vsel %vm1422_vm7, %v6904_v48, %v6918_v35  ;;  %v6905_v9 = vunpack.c.l.b16 %v6848_v25  ;;  %v9049_v42 = vld [vmem:[#allocation7 + $0x1e0] sm:$0xff]   ;;  %v9052_v27 = vld [vmem:[#allocation7 + $0x198] sm:$0xff]  }
0x1a0f   :  { %v6853_v12 = vpack.c.bf16 %v6822_v14, %v6822_v14  ;;  %v6911_v16 = vunpack.c.l.b16 %v6854_v15  ;;  %v9050_v41 = vld [vmem:[#allocation7 + $0x1a0] sm:$0xff]   ;;  %v9051_v15 = vld [vmem:[#allocation7 + $0x1d8] sm:$0xff]  }
0x1a10   :  { %v6839_v34 = vrot.slane %v6838_v33, 1  ;;  %v6832_v28 = vadd.f32 %v6831_v22, %v6830_v51  ;;  %v6920_v11 = vsel %vm1424_vm8, %v6905_v9, %v6919_v58  ;;  %v9025_v22 = vld [vmem:[#allocation5 + $0x1d0] ss:$8 sps:$4 sm:$0xff]   ;;  %v7840_v35 = vld [vmem:[%s11206_s7 + $0x3] ss:$0 sm:$0xff] }
0x1a11   :  { %v6910_v21 = vunpack.c.l.b16 %v6853_v12  ;;  %v9031_v12 = vld [vmem:[#allocation5 + $0x1b0] ss:$8 sps:$4 sm:$0xff]   ;;  %v7841_v9 = vld [vmem:[%s11207_s8 + $0x3] ss:$0 sm:$0xff] }
0x1a12   :  { %v6840_v17 = vadd.f32 %v6839_v34, %v6838_v33  ;;  %v6833_v4 = vrot.slane %v6832_v28, 1  ;;  %v9027_v33 = vld [vmem:[#allocation5 + $0x1d4] ss:$8 sps:$4 sm:$0xff]  }
0x1a13   :  { %v6924_v13 = vsel %vm1418_vm5, %v6910_v21, %v6923_v49  ;;  %7178 = vmatprep.subr.bf16.mxu1 %v9027_v33  ;;  %v9039_v34 = vld [vmem:[#allocation5 + $0x194] ss:$8 sps:$4 sm:$0xff]  }
0x1a14   :  { %v6834_v6 = vadd.f32 %v6833_v4, %v6832_v28  ;;  %v6856_v20 = vpack.c.bf16 %v6840_v17, %v6840_v17  ;;  %v6925_v61 = vsel %vm1420_vm6, %v6911_v16, %v6924_v13  ;;  %7179 = vmatpush1.bf16.msra.mxu1 %v9025_v22  ;;  %v9037_v28 = vld [vmem:[#allocation5 + $0x190] ss:$8 sps:$4 sm:$0xff]   ;;  %v9047_v17 = vld [vmem:[#allocation7 + $0x1e8] sm:$0xff]  }
0x1a15   :  { %7180 = vmatprep.subr.bf16.mxu1 %v9030_v30  ;;  %v9046_v21 = vld [vmem:[#allocation7 + $0x1b0] sm:$0xff]   ;;  %v9048_v4 = vld [vmem:[#allocation7 + $0x1a8] sm:$0xff]  }
0x1a16   :  { %v6855_v57 = vpack.c.bf16 %v6834_v6, %v6834_v6  ;;  %v6913_v29 = vunpack.c.l.b16 %v6856_v20 }
0x1a18   :  { %v6912_v56 = vunpack.c.l.b16 %v6855_v57  ;;  %7181 = vmatpush1.bf16.msra.mxu1 %v9028_v47 }
0x1a19   :  { %7182 = vmatprep.subr.bf16.mxu1 %v9033_v62 }
0x1a1a   :  { %v6926_v7 = vsel %vm1422_vm7, %v6912_v56, %v6925_v61 }
0x1a1b   :  { %v6927_v19 = vsel %vm1424_vm8, %v6913_v29, %v6926_v7 }
0x1a1c   :  { %v6928_v59 = vpack.c.b16 %v6927_v19, %v6920_v11  ;;  %7183 = vmatpush1.bf16.msra.mxu1 %v9031_v12  ;;  %v9053_v19 = vld [vmem:[#allocation7 + $0x1d0] sm:$0xff]  }
0x1a1d   :  { %7184 = vmatprep.subr.bf16.mxu1 %v9036_v31 }
0x1a1e   :  { %8722 = vmatmul.mubr.bf16.vlgmr.msra.gmra.mxu0 %v6928_v59  ;;  %v9054_v59 = vld [vmem:[#allocation7 + $0x190] sm:$0xff]  }
0x1a1f   :  { %8216 = vmatpush3.bf16.msra.mxu0 %v9044_v36 }
0x1a20   :  { %7185 = vmatpush1.bf16.msra.mxu1 %v9034_v44  ;;  %8217 = vmatprep.subr.bf16.mxu0 %v9045_v63 }
0x1a21   :  { %7186 = vmatprep.subr.bf16.mxu1 %v9039_v34 }
0x1a23   :  { %8218 = vmatpush3.bf16.msra.mxu0 %v9046_v21 }
0x1a24   :  { %7187 = vmatpush1.bf16.msra.mxu1 %v9037_v28  ;;  %8219 = vmatprep.subr.bf16.mxu0 %v9047_v17 }
0x1a25   :  { %7188 = vmatprep.subr.bf16.mxu1 %v9042_v3 }
0x1a27   :  { %8220 = vmatpush3.bf16.msra.mxu0 %v9048_v4 }
0x1a28   :  { %7189 = vmatpush1.bf16.msra.mxu1 %v9040_v60  ;;  %8221 = vmatprep.subr.bf16.mxu0 %v9049_v42 }
0x1a2b   :  { %8222 = vmatpush3.bf16.msra.mxu0 %v9050_v41 }
0x1a2c   :  { %8223 = vmatprep.subr.bf16.mxu0 %v9051_v15 }
0x1a2f   :  { %8224 = vmatpush3.bf16.msra.mxu0 %v9052_v27 }
0x1a30   :  { %8225 = vmatprep.subr.bf16.mxu0 %v9053_v19 }
0x1a33   :  { %8226 = vmatpush3.bf16.msra.mxu0 %v9054_v59 }
0x1ade   :  { %v7012_v1 = vpop.f32.mrf.mxu0 }
0x1adf   :  { %v7013_v23 = vadd.f32 %v7829_v45, %v7012_v1  ;;  %v9056_v1 = vld [vmem:[#allocation7 + $0x188] sm:$0xff]  }
0x1ae0   :  { %v8723_v50 = vpop.f32.mrf.mxu0 }
0x1ae1   :  { %v7019_v38 = vadd.f32 %v7013_v23, %v10821_v43  ;;  %v9057_v23 = vld [vmem:[#allocation7 + $0x1c0] sm:$0xff]  }
0x1ae2   :  { %v7015_v55 = vpop.f32.mrf.mxu0  ;;  %v9058_v50 = vld [vmem:[#allocation7 + $0x180] sm:$0xff]  }
0x1ae3   :  { %v7016_v37 = vadd.f32 %v7829_v45, %v7015_v55  ;;  %7025 = vadd.xlane.f32.xlu0 %v7019_v38  ;;  %v9055_v45 = vld [vmem:[#allocation7 + $0x1c8] sm:$0xff]  }
0x1ae4   :  { %v8724_v0 = vpop.f32.mrf.mxu0  ;;  %8227 = vmatprep.subr.bf16.mxu0 %v9055_v45 }
0x1ae5   :  { %v7020_v24 = vadd.f32 %v7016_v37, %v10823_v18  ;;  %8228 = vmatpush3.bf16.msra.mxu0 %v9056_v1 }
0x1ae6   :  { %8229 = vmatprep.subr.bf16.mxu0 %v9057_v23 }
0x1ae7   :  { %7027 = vadd.xlane.f32.xlu1 %v7020_v24 }
0x1ae9   :  { %8230 = vmatpush3.bf16.msra.mxu0 %v9058_v50 }
0x1b6c   :  { %v7026_v8 = vpop.xlane.xlu0 %7025 }
0x1b6d   :  { %v7029_v51 = vmul.f32 0.0078125, %v7026_v8 }
0x1b6f   :  { %v11163_v53 = vsub.f32 %v7019_v38, %v7029_v51  ;;  %v7842_v38 = vld [vmem:[%s11209_s10 + $0x6] sm:$0x3] }
0x1b70   :  { %v7028_v2 = vpop.xlane.xlu1 %7027  ;;  %v7091_v37 = vrot.slane %v7842_v38, %v9664_v46  ;;  %v7087_v0 = vrot.slane %v7842_v38, %v9654_v40  ;;  %v7860_v40 = vld [vmem:[%s11211_s12 + $0x3] ss:$0 sm:$0xff] }
0x1b71   :  { %v7030_v54 = vmul.f32 0.0078125, %v7028_v2  ;;  %v7033_v43 = vmul.f32 %v11163_v53, %v11163_v53 }
0x1b73   :  { %v11167_v14 = vsub.f32 %v7020_v24, %v7030_v54  ;;  %7035 = vadd.xlane.f32.xlu0 %v7033_v43 }
0x1b75   :  { %v7034_v18 = vmul.f32 %v11167_v14, %v11167_v14 }
0x1b77   :  { %7037 = vadd.xlane.f32.xlu1 %v7034_v18 }
0x1bfc   :  { %v7036_v48 = vpop.xlane.xlu0 %7035 }
0x1bfd   :  { %v7039_v6 = vmul.f32 0.0078125, %v7036_v48 }
0x1bff   :  { %v7041_v32 = vadd.f32 1e-05, %v7039_v6 }
0x1c00   :  { %v7038_v25 = vpop.xlane.xlu1 %7037 }
0x1c01   :  { %9339 = vrsqrt.f32 %v7041_v32  ;;  %v7040_v49 = vmul.f32 0.0078125, %v7038_v25  ;;  %v7879_v32 = vld [vmem:[%s11212_s13 + $0x3] ss:$0 sm:$0xff] }
0x1c03   :  { %v7042_v20 = vadd.f32 1e-05, %v7040_v49  ;;  %v7880_v49 = vld [vmem:[%s11213_s14 + $0x3] ss:$0 sm:$0xff] }
0x1c05   :  { %9341 = vrsqrt.f32 %v7042_v20 }
0x1c0e   :  { %v9340_v13 = vpop.eup %9339 }
0x1c0f   :  { %v7045_v57 = vmul.f32 %v9340_v13, %v11163_v53 }
0x1c11   :  { %v7053_v56 = vmul.f32 %v7840_v35, %v7045_v57 }
0x1c12   :  { %v9342_v16 = vpop.eup %9341 }
0x1c13   :  { %v7046_v58 = vmul.f32 %v9342_v16, %v11167_v14  ;;  %v7061_v61 = vadd.f32 %v7841_v9, %v7053_v56 }
0x1c15   :  { %v7054_v29 = vmul.f32 %v7840_v35, %v7046_v58 }
0x1c17   :  { %v7062_v7 = vadd.f32 %v7841_v9, %v7054_v29 }
0x1c19   :  { %v7063_v11 = vpack.c.bf16 %v7062_v7, %v7061_v61 }
0x1c1b   :  { %7207 = vmatmul.mubr.bf16.vlgmr.msra.gmra.mxu1 %v7063_v11 }
0x1cdb   :  { %v7208_v55 = vpop.f32.mrf.mxu1 }
0x1cdc   :  { %v7209_v51 = vadd.f32 %v7208_v55, %v7087_v0 }
0x1cdd   :  { %v7210_v24 = vpop.f32.mrf.mxu1 }
0x1cde   :  { %v7211_v26 = vadd.f32 %v7210_v24, %v7091_v37  ;;  %v7217_v18 = vmax.f32 %v7209_v51, 0.0 }
0x1cdf   :  { %v7212_v39 = vpop.f32.mrf.mxu1 }
0x1ce0   :  { %v7213_v8 = vadd.f32 %v7212_v39, %v7087_v0  ;;  %v7218_v43 = vmax.f32 %v7211_v26, 0.0 }
0x1ce1   :  { %v7214_v53 = vpop.f32.mrf.mxu1 }
0x1ce2   :  { %v7215_v2 = vadd.f32 %v7214_v53, %v7091_v37  ;;  %v7219_v54 = vmax.f32 %v7213_v8, 0.0 }
0x1ce4   :  { %v7220_v14 = vmax.f32 %v7215_v2, 0.0  ;;  %v7221_v5 = vpack.c.bf16 %v7219_v54, %v7217_v18 }
0x1ce6   :  { %v7222_v10 = vpack.c.bf16 %v7220_v14, %v7218_v43 }
0x1ce8   :  { %7392 = vmatprep.mubr.bf16.mxu0 %v7222_v10 }
0x1ce9   :  { %7393 = vmatmul.mubr.bf16.vlgmr.msra.gmra.mxu0 %v7221_v5 }
0x1da9   :  { %v8231_v33 = vpop.f32.mrf.mxu0 }
0x1dab   :  { %v8232_v46 = vpop.f32.mrf.mxu0 }
0x1dac   :  { %v8233_v22 = vadd.f32 %v8232_v46, %v8231_v33 }
0x1dad   :  { %v8234_v30 = vpop.f32.mrf.mxu0 }
0x1dae   :  { %v7395_v47 = vadd.f32 %v8233_v22, %v7860_v40 }
0x1daf   :  { %v8235_v62 = vpop.f32.mrf.mxu0 }
0x1db0   :  { %v8236_v12 = vadd.f32 %v8235_v62, %v8234_v30  ;;  %v7401_v31 = vadd.f32 %v7395_v47, %v7061_v61 }
0x1db2   :  { %v7398_v44 = vadd.f32 %v8236_v12, %v7860_v40  ;;  %7407 = vadd.xlane.f32.xlu0 %v7401_v31 }
0x1db4   :  { %v7402_v34 = vadd.f32 %v7398_v44, %v7062_v7 }
0x1db6   :  { %7409 = vadd.xlane.f32.xlu1 %v7402_v34 }
0x1e3b   :  { %v7408_v28 = vpop.xlane.xlu0 %7407 }
0x1e3c   :  { %v7411_v3 = vmul.f32 0.0078125, %v7408_v28 }
0x1e3e   :  { %v7413_v60 = vsub.f32 %v7401_v31, %v7411_v3 }
0x1e3f   :  { %v7410_v52 = vpop.xlane.xlu1 %7409 }
0x1e40   :  { %v7412_v36 = vmul.f32 0.0078125, %v7410_v52  ;;  %v7415_v63 = vmul.f32 %v7413_v60, %v7413_v60 }
0x1e42   :  { %v7414_v21 = vsub.f32 %v7402_v34, %v7412_v36  ;;  %7417 = vadd.xlane.f32.xlu0 %v7415_v63 }
0x1e44   :  { %v7416_v17 = vmul.f32 %v7414_v21, %v7414_v21 }
0x1e46   :  { %7419 = vadd.xlane.f32.xlu1 %v7416_v17 }
0x1ecb   :  { %v7418_v4 = vpop.xlane.xlu0 %7417 }
0x1ecc   :  { %v7421_v42 = vmul.f32 0.0078125, %v7418_v4 }
0x1ece   :  { %v7423_v41 = vadd.f32 1e-05, %v7421_v42 }
0x1ecf   :  { %v7420_v15 = vpop.xlane.xlu1 %7419 }
0x1ed0   :  { %9343 = vrsqrt.f32 %v7423_v41  ;;  %v7422_v27 = vmul.f32 0.0078125, %v7420_v15 }
0x1ed2   :  { %v7424_v48 = vadd.f32 1e-05, %v7422_v27 }
0x1ed4   :  { %9345 = vrsqrt.f32 %v7424_v48 }
0x1edd   :  { %v9344_v6 = vpop.eup %9343 }
0x1ede   :  { %v7427_v25 = vmul.f32 %v9344_v6, %v7413_v60 }
0x1ee0   :  { %v7435_v20 = vmul.f32 %v7879_v32, %v7427_v25 }
0x1ee1   :  { %v9346_v13 = vpop.eup %9345 }
0x1ee2   :  { %v7428_v57 = vmul.f32 %v9346_v13, %v7414_v21  ;;  %v7443_v35 = vadd.f32 %v7880_v49, %v7435_v20 }
0x1ee4   :  { %v7436_v16 = vmul.f32 %v7879_v32, %v7428_v57  ;;  %7445 = vst [vmem:[#allocation8] sm:$0xff] %v7443_v35 }
0x1ee6   :  { %v7444_v58 = vadd.f32 %v7880_v49, %v7436_v16 }
0x1ee8   :  { %7446 = vst [vmem:[#allocation8 + $0x8] sm:$0xff] %v7444_v58 }
0x1ee9   :  { %9472 = shalt.err (!%p9469_p5)
}
0x1eea   :  { %7458 = dma.vmem_to_hbm [thread:$0]  %s7453_s17, 256, %s11214_s15, [#allocation4], %s9488_s21, %s9488_s21, %s9489_s22  }
0x1eeb   :  { %9485 = dma.done.wait [#allocation4], 256  }
0x1eec   :  { %9486 = vsyncadd [#allocation4], 4294967040 }
0x1eed   :  { %7462 = vsyncpa [#allocation3], 1 }
0x1eee   :  { %7463 = vsyncpa [#allocation6], 1 }
0x1eef   :  { %7464 = vsyncpa [#allocation4], 1 }

</bundles_post_ra>
